<compile_context>
chip_gen: v5e
topology: v5e:2x2
jax: 0.10.0
libtpu: 0.0.40
codegen_flags: <defaults>
</compile_context>

<pallas_src>
import functools

import jax
import jax.numpy as jnp
from jax.experimental import pallas as pl
from jax.experimental.pallas import tpu as pltpu

# ----------------------------------------------------------------------------
# Module-level config (the reference imports these; scaled to small shapes).
# ----------------------------------------------------------------------------
IMG_HEIGHT = 64
IMG_WIDTH = 64
ANCHOR_SIZE_13 = 8     # coarsest scale (plays the role of the 13x13 map)
ANCHOR_SIZE_26 = 16
ANCHOR_SIZE_52 = 32
NUM_CLASSES = 3
NUM_ANCHORS = 3
VEC = 5 + NUM_CLASSES          # [conf, x, y, w, h, cls...]
HEAD_C = NUM_ANCHORS * VEC     # 24 channels per head
HIDDEN = 32

ANCHORS_GROUP = {
    ANCHOR_SIZE_13: [[14.0, 18.0], [22.0, 30.0], [36.0, 42.0]],
    ANCHOR_SIZE_26: [[8.0, 10.0], [12.0, 16.0], [18.0, 24.0]],
    ANCHOR_SIZE_52: [[4.0, 5.0], [6.0, 8.0], [9.0, 12.0]],
}


# ----------------------------------------------------------------------------
# Kernel 1: fused per-scale backbone stage.
#   hidden = LeakyReLU(p @ Wh + bh)        (MXU)
#   head   = hidden @ Wo + bo              (MXU)
#   mask   = head[:, a*VEC] > thresh       (VPU, per anchor)
# Outputs the hidden features (needed for the next 2x2 pool) and the per-anchor
# confidence mask; the unused head channels never leave the kernel.
# ----------------------------------------------------------------------------
def _scale_kernel(p_ref, wh_ref, bh_ref, wo_ref, bo_ref, f_ref, mask_ref, *,
                  thresh):
    h = jnp.dot(p_ref[...], wh_ref[...],
                preferred_element_type=jnp.float32) + bh_ref[...]
    h = jnp.where(h > 0, h, 0.1 * h)          # DarkNet-style LeakyReLU(0.1)
    f_ref[...] = h
    head = jnp.dot(h, wo_ref[...],
                   preferred_element_type=jnp.float32) + bo_ref[...]
    keep = (head > thresh).astype(jnp.float32)
    for a in range(NUM_ANCHORS):              # conf channel of anchor a
        mask_ref[:, a:a + 1] = keep[:, a * VEC:a * VEC + 1]


def scale_forward(p, wh, bh, wo, bo, thresh):
    """p: (N, H, W, Cin) pooled NHWC input.

    Returns f: (N, H, W, HIDDEN) features, mask: (N*H*W*NUM_ANCHORS,) f32 0/1.
    """
    N, H, W, Cin = p.shape
    M = N * H * W
    BM = min(M, 512)                           # rows per block (multiple of 8)
    assert M % BM == 0
    pf = p.reshape(M, Cin)

    f, mask = pl.pallas_call(
        functools.partial(_scale_kernel, thresh=float(thresh)),
        out_shape=(
            jax.ShapeDtypeStruct((M, HIDDEN), jnp.float32),
            jax.ShapeDtypeStruct((M, NUM_ANCHORS), jnp.float32),
        ),
        grid=(M // BM,),
        in_specs=[
            pl.BlockSpec((BM, Cin), lambda i: (i, 0)),
            pl.BlockSpec((Cin, HIDDEN), lambda i: (0, 0)),
            pl.BlockSpec((1, HIDDEN), lambda i: (0, 0)),
            pl.BlockSpec((HIDDEN, HEAD_C), lambda i: (0, 0)),
            pl.BlockSpec((1, HEAD_C), lambda i: (0, 0)),
        ],
        out_specs=(
            pl.BlockSpec((BM, HIDDEN), lambda i: (i, 0)),
            pl.BlockSpec((BM, NUM_ANCHORS), lambda i: (i, 0)),
        ),
        compiler_params=pltpu.CompilerParams(
            dimension_semantics=("parallel",)),
    )(pf, wh, bh.reshape(1, HIDDEN), wo, bo.reshape(1, HEAD_C))
    return f.reshape(N, H, W, HIDDEN), mask.reshape(M * NUM_ANCHORS)


def avg_pool_2x2(x):
    N, H, W, C = x.shape
    return x.reshape(N, H // 2, 2, W // 2, 2, C).mean(axis=(2, 4))


# ----------------------------------------------------------------------------
# Kernel 2: lane-dense box decode (_parse).
#   rnd_ref : (A, 4, PB)  random [x, y, w, h] per anchor/pixel (reference quirk:
#                          vector = torch.randn(...), so boxes depend only on
#                          the random draw and the cell index, never on `head`).
#   box_ref : (A, 5, PB)  [n, cx, cy, w, h] per anchor/pixel, pixel axis last.
# (n, h, w) indices are generated in-kernel with broadcasted_iota + bit ops
# (H, W are powers of two); t / anchors are compile-time constants.
# ----------------------------------------------------------------------------
def _decode_kernel(rnd_ref, box_ref, *, t, anchors, w_bits, h_bits, pb):
    base = pl.program_id(0) * pb
    lane = jax.lax.broadcasted_iota(jnp.int32, (1, pb), 1) + base   # pixel id
    w_idx = jnp.bitwise_and(lane, (1 << w_bits) - 1)
    h_idx = jnp.bitwise_and(lane >> w_bits, (1 << h_bits) - 1)
    n_idx = lane >> (w_bits + h_bits)
    w_f = w_idx.astype(jnp.float32)
    h_f = h_idx.astype(jnp.float32)
    n_f = n_idx.astype(jnp.float32)
    for a in range(NUM_ANCHORS):
        r = rnd_ref[a]                                   # (4, pb)
        cx = (w_f + r[0:1, :]) * t                       # vector[:, 1]
        cy = (h_f + r[1:2, :]) * t                       # vector[:, 2]
        bw = float(anchors[a][0]) * jnp.exp(r[2:3, :])   # vector[:, 3]
        bh = float(anchors[a][1]) * jnp.exp(r[3:4, :])   # vector[:, 4]
        box_ref[a, 0:1, :] = n_f
        box_ref[a, 1:2, :] = cx
        box_ref[a, 2:3, :] = cy
        box_ref[a, 3:4, :] = bw
        box_ref[a, 4:5, :] = bh


def decode_boxes(key, N, H, W, t, anchors):
    """Returns dense boxes (N*H*W*NUM_ANCHORS, 5) in (n, h, w, a) row order."""
    assert (W & (W - 1)) == 0 and (H & (H - 1)) == 0, "H, W must be powers of 2"
    A = NUM_ANCHORS
    P = N * H * W
    PB = min(P, 512)                 # lane block, multiple of 128
    assert P % PB == 0 and PB % 128 == 0
    rnd = jax.random.normal(key, (A, 4, P), jnp.float32)

    boxes = pl.pallas_call(
        functools.partial(
            _decode_kernel, t=float(t), anchors=anchors,
            w_bits=W.bit_length() - 1, h_bits=H.bit_length() - 1, pb=PB),
        out_shape=jax.ShapeDtypeStruct((A, 5, P), jnp.float32),
        grid=(P // PB,),
        in_specs=[pl.BlockSpec((A, 4, PB), lambda i: (0, 0, i))],
        out_specs=pl.BlockSpec((A, 5, PB), lambda i: (0, 0, i)),
        compiler_params=pltpu.CompilerParams(
            dimension_semantics=("parallel",)),
    )(rnd)
    # restore the reference row order (n, h, w, a): (A, 5, P) -> (P*A, 5)
    return jnp.transpose(boxes, (2, 0, 1)).reshape(P * A, 5)


# ----------------------------------------------------------------------------
# Parameters for the DarkNet53 stand-in (deterministic init).
# ----------------------------------------------------------------------------
def init_params(key):
    ks = jax.random.split(key, 12)
    p = {}
    p["w1"] = 0.1 * jax.random.normal(ks[0], (3, HIDDEN), jnp.float32)
    p["b1"] = 0.1 * jax.random.normal(ks[1], (HIDDEN,), jnp.float32)
    p["w2"] = 0.1 * jax.random.normal(ks[2], (HIDDEN, HIDDEN), jnp.float32)
    p["b2"] = 0.1 * jax.random.normal(ks[3], (HIDDEN,), jnp.float32)
    p["w3"] = 0.1 * jax.random.normal(ks[4], (HIDDEN, HIDDEN), jnp.float32)
    p["b3"] = 0.1 * jax.random.normal(ks[5], (HIDDEN,), jnp.float32)
    p["hw13"] = 0.1 * jax.random.normal(ks[6], (HIDDEN, HEAD_C), jnp.float32)
    p["hb13"] = 0.1 * jax.random.normal(ks[7], (HEAD_C,), jnp.float32)
    p["hw26"] = 0.1 * jax.random.normal(ks[8], (HIDDEN, HEAD_C), jnp.float32)
    p["hb26"] = 0.1 * jax.random.normal(ks[9], (HEAD_C,), jnp.float32)
    p["hw52"] = 0.1 * jax.random.normal(ks[10], (HIDDEN, HEAD_C), jnp.float32)
    p["hb52"] = 0.1 * jax.random.normal(ks[11], (HEAD_C,), jnp.float32)
    return p


# ----------------------------------------------------------------------------
# Jitted dense pipeline: 3 fused backbone calls + 3 decode calls, no
# data-dependent shapes.  The single boolean gather happens outside.
# ----------------------------------------------------------------------------
@functools.partial(jax.jit, static_argnums=(1,))
def _detector_dense(x, thresh, params, key):
    N = x.shape[0]

    p52 = avg_pool_2x2(x)                                   # (N, 32, 32, 3)
    f52, mask52 = scale_forward(p52, params["w1"], params["b1"],
                                params["hw52"], params["hb52"], thresh)
    p26 = avg_pool_2x2(f52)                                 # (N, 16, 16, 32)
    f26, mask26 = scale_forward(p26, params["w2"], params["b2"],
                                params["hw26"], params["hb26"], thresh)
    p13 = avg_pool_2x2(f26)                                 # (N, 8, 8, 32)
    _f13, mask13 = scale_forward(p13, params["w3"], params["b3"],
                                 params["hw13"], params["hb13"], thresh)

    k13, k26, k52 = jax.random.split(key, 3)
    boxes13 = decode_boxes(k13, N, p13.shape[1], p13.shape[2],
                           IMG_HEIGHT / ANCHOR_SIZE_13,
                           ANCHORS_GROUP[ANCHOR_SIZE_13])
    boxes26 = decode_boxes(k26, N, p26.shape[1], p26.shape[2],
                           IMG_HEIGHT / ANCHOR_SIZE_26,
                           ANCHORS_GROUP[ANCHOR_SIZE_26])
    boxes52 = decode_boxes(k52, N, p52.shape[1], p52.shape[2],
                           IMG_HEIGHT / ANCHOR_SIZE_52,
                           ANCHORS_GROUP[ANCHOR_SIZE_52])

    # reference concatenation order: 13, 26, 52
    boxes = jnp.concatenate([boxes13, boxes26, boxes52], axis=0)
    mask = jnp.concatenate([mask13, mask26, mask52], axis=0)
    return boxes, mask


def detector_forward(x, thresh, anchors_group, params, key):
    # NOTE: anchors_group is kept for signature parity with the reference; its
    # values (== module-level ANCHORS_GROUP) are baked into the decode kernels
    # as compile-time constants.
    del anchors_group
    boxes, mask = _detector_dense(x, float(thresh), params, key)
    # TODO(synk): data-dependent `mask.nonzero()` row selection cannot live in a
    # TPU kernel; one boolean gather over all three scales happens here.
    # NOTE: the reference forward computes torch.cat(...) and returns None
    # (a bug); we return the filtered concatenation so it can be inspected.
    return boxes[mask > 0.5]


if __name__ == "__main__":
    key = jax.random.PRNGKey(0)
    k_img, k_params, k_rand = jax.random.split(key, 3)

    x = jax.random.normal(k_img, (2, IMG_HEIGHT, IMG_WIDTH, 3), jnp.float32)
    params = init_params(k_params)
    thresh = 0.0

    boxes = detector_forward(x, thresh, ANCHORS_GROUP, params, k_rand)
    jax.block_until_ready(boxes)
    assert boxes.ndim == 2 and boxes.shape[1] == 5
    print("KERNEL_OK")
</pallas_src>

<mosaic_0001>
module attributes {stable_mosaic.version = 11 : i64} {
  func.func @_decode_kernel(%arg0: i32, %arg1: memref<3x4x512xf32, #tpu.memory_space<vmem>>, %arg2: memref<3x5x512xf32, #tpu.memory_space<vmem>>) attributes {dimension_semantics = [#tpu.dimension_semantics<parallel>], iteration_bounds = array<i64: 4>, scalar_prefetch = 0 : i64, scratch_operands = 0 : i64, tpu.core_type = #tpu.core_type<tc>, window_params = [{transform_indices = @transform_0, window_bounds = array<i64: 3, 4, 512>}, {transform_indices = @transform_1, window_bounds = array<i64: 3, 5, 512>}]} {
    %c512_i32 = arith.constant 512 : i32
    %0 = arith.muli %arg0, %c512_i32 : i32
    %1 = tpu.iota {dimensions = array<i32: 1>} : vector<1x512xi32>
    %2 = vector.broadcast %0 : i32 to vector<1x512xi32>
    %3 = arith.addi %1, %2 : vector<1x512xi32>
    %c31_i32 = arith.constant 31 : i32
    %4 = vector.broadcast %c31_i32 : i32 to vector<1x512xi32>
    %5 = arith.andi %3, %4 : vector<1x512xi32>
    %c5_i32 = arith.constant 5 : i32
    %6 = vector.broadcast %c5_i32 : i32 to vector<1x512xi32>
    %7 = arith.shrsi %3, %6 : vector<1x512xi32>
    %c31_i32_0 = arith.constant 31 : i32
    %8 = vector.broadcast %c31_i32_0 : i32 to vector<1x512xi32>
    %9 = arith.andi %7, %8 : vector<1x512xi32>
    %c10_i32 = arith.constant 10 : i32
    %10 = vector.broadcast %c10_i32 : i32 to vector<1x512xi32>
    %11 = arith.shrsi %3, %10 : vector<1x512xi32>
    %12 = arith.sitofp %5 : vector<1x512xi32> to vector<1x512xf32>
    %13 = arith.sitofp %9 : vector<1x512xi32> to vector<1x512xf32>
    %14 = arith.sitofp %11 : vector<1x512xi32> to vector<1x512xf32>
    %c0 = arith.constant 0 : index
    %c0_1 = arith.constant 0 : index
    %c0_2 = arith.constant 0 : index
    %15 = vector.load %arg1[%c0, %c0_1, %c0_2] : memref<3x4x512xf32, #tpu.memory_space<vmem>>, vector<1x4x512xf32>
    %16 = vector.shape_cast %15 : vector<1x4x512xf32> to vector<4x512xf32>
    %17 = vector.extract_strided_slice %16 {offsets = [0, 0], sizes = [1, 512], strides = [1, 1]} : vector<4x512xf32> to vector<1x512xf32>
    %18 = arith.addf %12, %17 : vector<1x512xf32>
    %cst = arith.constant 2.000000e+00 : f32
    %19 = vector.broadcast %cst : f32 to vector<1x512xf32>
    %20 = arith.mulf %18, %19 : vector<1x512xf32>
    %21 = vector.extract_strided_slice %16 {offsets = [1, 0], sizes = [1, 512], strides = [1, 1]} : vector<4x512xf32> to vector<1x512xf32>
    %22 = arith.addf %13, %21 : vector<1x512xf32>
    %cst_3 = arith.constant 2.000000e+00 : f32
    %23 = vector.broadcast %cst_3 : f32 to vector<1x512xf32>
    %24 = arith.mulf %22, %23 : vector<1x512xf32>
    %25 = vector.extract_strided_slice %16 {offsets = [2, 0], sizes = [1, 512], strides = [1, 1]} : vector<4x512xf32> to vector<1x512xf32>
    %26 = math.exp %25 : vector<1x512xf32>
    %cst_4 = arith.constant 4.000000e+00 : f32
    %27 = vector.broadcast %cst_4 : f32 to vector<1x512xf32>
    %28 = arith.mulf %27, %26 : vector<1x512xf32>
    %29 = vector.extract_strided_slice %16 {offsets = [3, 0], sizes = [1, 512], strides = [1, 1]} : vector<4x512xf32> to vector<1x512xf32>
    %30 = math.exp %29 : vector<1x512xf32>
    %cst_5 = arith.constant 5.000000e+00 : f32
    %31 = vector.broadcast %cst_5 : f32 to vector<1x512xf32>
    %32 = arith.mulf %31, %30 : vector<1x512xf32>
    %c0_6 = arith.constant 0 : index
    %c0_7 = arith.constant 0 : index
    %c0_8 = arith.constant 0 : index
    %33 = vector.load %arg2[%c0_6, %c0_7, %c0_8] : memref<3x5x512xf32, #tpu.memory_space<vmem>>, vector<1x1x512xf32>
    %34 = vector.shape_cast %33 : vector<1x1x512xf32> to vector<1x512xf32>
    %35 = vector.shape_cast %14 : vector<1x512xf32> to vector<1x1x512xf32>
    tpu.vector_store %arg2[%c0_6, %c0_7, %c0_8], %35 {strides = array<i32>} : memref<3x5x512xf32, #tpu.memory_space<vmem>>, vector<1x1x512xf32>,
    %c0_9 = arith.constant 0 : index
    %c1 = arith.constant 1 : index
    %c0_10 = arith.constant 0 : index
    %36 = vector.load %arg2[%c0_9, %c1, %c0_10] : memref<3x5x512xf32, #tpu.memory_space<vmem>>, vector<1x1x512xf32>
    %37 = vector.shape_cast %36 : vector<1x1x512xf32> to vector<1x512xf32>
    %38 = vector.shape_cast %20 : vector<1x512xf32> to vector<1x1x512xf32>
    tpu.vector_store %arg2[%c0_9, %c1, %c0_10], %38 {strides = array<i32>} : memref<3x5x512xf32, #tpu.memory_space<vmem>>, vector<1x1x512xf32>,
    %c0_11 = arith.constant 0 : index
    %c2 = arith.constant 2 : index
    %c0_12 = arith.constant 0 : index
    %39 = vector.load %arg2[%c0_11, %c2, %c0_12] : memref<3x5x512xf32, #tpu.memory_space<vmem>>, vector<1x1x512xf32>
    %40 = vector.shape_cast %39 : vector<1x1x512xf32> to vector<1x512xf32>
    %41 = vector.shape_cast %24 : vector<1x512xf32> to vector<1x1x512xf32>
    tpu.vector_store %arg2[%c0_11, %c2, %c0_12], %41 {strides = array<i32>} : memref<3x5x512xf32, #tpu.memory_space<vmem>>, vector<1x1x512xf32>,
    %c0_13 = arith.constant 0 : index
    %c3 = arith.constant 3 : index
    %c0_14 = arith.constant 0 : index
    %42 = vector.load %arg2[%c0_13, %c3, %c0_14] : memref<3x5x512xf32, #tpu.memory_space<vmem>>, vector<1x1x512xf32>
    %43 = vector.shape_cast %42 : vector<1x1x512xf32> to vector<1x512xf32>
    %44 = vector.shape_cast %28 : vector<1x512xf32> to vector<1x1x512xf32>
    tpu.vector_store %arg2[%c0_13, %c3, %c0_14], %44 {strides = array<i32>} : memref<3x5x512xf32, #tpu.memory_space<vmem>>, vector<1x1x512xf32>,
    %c0_15 = arith.constant 0 : index
    %c4 = arith.constant 4 : index
    %c0_16 = arith.constant 0 : index
    %45 = vector.load %arg2[%c0_15, %c4, %c0_16] : memref<3x5x512xf32, #tpu.memory_space<vmem>>, vector<1x1x512xf32>
    %46 = vector.shape_cast %45 : vector<1x1x512xf32> to vector<1x512xf32>
    %47 = vector.shape_cast %32 : vector<1x512xf32> to vector<1x1x512xf32>
    tpu.vector_store %arg2[%c0_15, %c4, %c0_16], %47 {strides = array<i32>} : memref<3x5x512xf32, #tpu.memory_space<vmem>>, vector<1x1x512xf32>,
    %c1_17 = arith.constant 1 : index
    %c0_18 = arith.constant 0 : index
    %c0_19 = arith.constant 0 : index
    %48 = vector.load %arg1[%c1_17, %c0_18, %c0_19] : memref<3x4x512xf32, #tpu.memory_space<vmem>>, vector<1x4x512xf32>
    %49 = vector.shape_cast %48 : vector<1x4x512xf32> to vector<4x512xf32>
    %50 = vector.extract_strided_slice %49 {offsets = [0, 0], sizes = [1, 512], strides = [1, 1]} : vector<4x512xf32> to vector<1x512xf32>
    %51 = arith.addf %12, %50 : vector<1x512xf32>
    %cst_20 = arith.constant 2.000000e+00 : f32
    %52 = vector.broadcast %cst_20 : f32 to vector<1x512xf32>
    %53 = arith.mulf %51, %52 : vector<1x512xf32>
    %54 = vector.extract_strided_slice %49 {offsets = [1, 0], sizes = [1, 512], strides = [1, 1]} : vector<4x512xf32> to vector<1x512xf32>
    %55 = arith.addf %13, %54 : vector<1x512xf32>
    %cst_21 = arith.constant 2.000000e+00 : f32
    %56 = vector.broadcast %cst_21 : f32 to vector<1x512xf32>
    %57 = arith.mulf %55, %56 : vector<1x512xf32>
    %58 = vector.extract_strided_slice %49 {offsets = [2, 0], sizes = [1, 512], strides = [1, 1]} : vector<4x512xf32> to vector<1x512xf32>
    %59 = math.exp %58 : vector<1x512xf32>
    %cst_22 = arith.constant 6.000000e+00 : f32
    %60 = vector.broadcast %cst_22 : f32 to vector<1x512xf32>
    %61 = arith.mulf %60, %59 : vector<1x512xf32>
    %62 = vector.extract_strided_slice %49 {offsets = [3, 0], sizes = [1, 512], strides = [1, 1]} : vector<4x512xf32> to vector<1x512xf32>
    %63 = math.exp %62 : vector<1x512xf32>
    %cst_23 = arith.constant 8.000000e+00 : f32
    %64 = vector.broadcast %cst_23 : f32 to vector<1x512xf32>
    %65 = arith.mulf %64, %63 : vector<1x512xf32>
    %c1_24 = arith.constant 1 : index
    %c0_25 = arith.constant 0 : index
    %c0_26 = arith.constant 0 : index
    %66 = vector.load %arg2[%c1_24, %c0_25, %c0_26] : memref<3x5x512xf32, #tpu.memory_space<vmem>>, vector<1x1x512xf32>
    %67 = vector.shape_cast %66 : vector<1x1x512xf32> to vector<1x512xf32>
    %68 = vector.shape_cast %14 : vector<1x512xf32> to vector<1x1x512xf32>
    tpu.vector_store %arg2[%c1_24, %c0_25, %c0_26], %68 {strides = array<i32>} : memref<3x5x512xf32, #tpu.memory_space<vmem>>, vector<1x1x512xf32>,
    %c1_27 = arith.constant 1 : index
    %c1_28 = arith.constant 1 : index
    %c0_29 = arith.constant 0 : index
    %69 = vector.load %arg2[%c1_27, %c1_28, %c0_29] : memref<3x5x512xf32, #tpu.memory_space<vmem>>, vector<1x1x512xf32>
    %70 = vector.shape_cast %69 : vector<1x1x512xf32> to vector<1x512xf32>
    %71 = vector.shape_cast %53 : vector<1x512xf32> to vector<1x1x512xf32>
    tpu.vector_store %arg2[%c1_27, %c1_28, %c0_29], %71 {strides = array<i32>} : memref<3x5x512xf32, #tpu.memory_space<vmem>>, vector<1x1x512xf32>,
    %c1_30 = arith.constant 1 : index
    %c2_31 = arith.constant 2 : index
    %c0_32 = arith.constant 0 : index
    %72 = vector.load %arg2[%c1_30, %c2_31, %c0_32] : memref<3x5x512xf32, #tpu.memory_space<vmem>>, vector<1x1x512xf32>
    %73 = vector.shape_cast %72 : vector<1x1x512xf32> to vector<1x512xf32>
    %74 = vector.shape_cast %57 : vector<1x512xf32> to vector<1x1x512xf32>
    tpu.vector_store %arg2[%c1_30, %c2_31, %c0_32], %74 {strides = array<i32>} : memref<3x5x512xf32, #tpu.memory_space<vmem>>, vector<1x1x512xf32>,
    %c1_33 = arith.constant 1 : index
    %c3_34 = arith.constant 3 : index
    %c0_35 = arith.constant 0 : index
    %75 = vector.load %arg2[%c1_33, %c3_34, %c0_35] : memref<3x5x512xf32, #tpu.memory_space<vmem>>, vector<1x1x512xf32>
    %76 = vector.shape_cast %75 : vector<1x1x512xf32> to vector<1x512xf32>
    %77 = vector.shape_cast %61 : vector<1x512xf32> to vector<1x1x512xf32>
    tpu.vector_store %arg2[%c1_33, %c3_34, %c0_35], %77 {strides = array<i32>} : memref<3x5x512xf32, #tpu.memory_space<vmem>>, vector<1x1x512xf32>,
    %c1_36 = arith.constant 1 : index
    %c4_37 = arith.constant 4 : index
    %c0_38 = arith.constant 0 : index
    %78 = vector.load %arg2[%c1_36, %c4_37, %c0_38] : memref<3x5x512xf32, #tpu.memory_space<vmem>>, vector<1x1x512xf32>
    %79 = vector.shape_cast %78 : vector<1x1x512xf32> to vector<1x512xf32>
    %80 = vector.shape_cast %65 : vector<1x512xf32> to vector<1x1x512xf32>
    tpu.vector_store %arg2[%c1_36, %c4_37, %c0_38], %80 {strides = array<i32>} : memref<3x5x512xf32, #tpu.memory_space<vmem>>, vector<1x1x512xf32>,
    %c2_39 = arith.constant 2 : index
    %c0_40 = arith.constant 0 : index
    %c0_41 = arith.constant 0 : index
    %81 = vector.load %arg1[%c2_39, %c0_40, %c0_41] : memref<3x4x512xf32, #tpu.memory_space<vmem>>, vector<1x4x512xf32>
    %82 = vector.shape_cast %81 : vector<1x4x512xf32> to vector<4x512xf32>
    %83 = vector.extract_strided_slice %82 {offsets = [0, 0], sizes = [1, 512], strides = [1, 1]} : vector<4x512xf32> to vector<1x512xf32>
    %84 = arith.addf %12, %83 : vector<1x512xf32>
    %cst_42 = arith.constant 2.000000e+00 : f32
    %85 = vector.broadcast %cst_42 : f32 to vector<1x512xf32>
    %86 = arith.mulf %84, %85 : vector<1x512xf32>
    %87 = vector.extract_strided_slice %82 {offsets = [1, 0], sizes = [1, 512], strides = [1, 1]} : vector<4x512xf32> to vector<1x512xf32>
    %88 = arith.addf %13, %87 : vector<1x512xf32>
    %cst_43 = arith.constant 2.000000e+00 : f32
    %89 = vector.broadcast %cst_43 : f32 to vector<1x512xf32>
    %90 = arith.mulf %88, %89 : vector<1x512xf32>
    %91 = vector.extract_strided_slice %82 {offsets = [2, 0], sizes = [1, 512], strides = [1, 1]} : vector<4x512xf32> to vector<1x512xf32>
    %92 = math.exp %91 : vector<1x512xf32>
    %cst_44 = arith.constant 9.000000e+00 : f32
    %93 = vector.broadcast %cst_44 : f32 to vector<1x512xf32>
    %94 = arith.mulf %93, %92 : vector<1x512xf32>
    %95 = vector.extract_strided_slice %82 {offsets = [3, 0], sizes = [1, 512], strides = [1, 1]} : vector<4x512xf32> to vector<1x512xf32>
    %96 = math.exp %95 : vector<1x512xf32>
    %cst_45 = arith.constant 1.200000e+01 : f32
    %97 = vector.broadcast %cst_45 : f32 to vector<1x512xf32>
    %98 = arith.mulf %97, %96 : vector<1x512xf32>
    %c2_46 = arith.constant 2 : index
    %c0_47 = arith.constant 0 : index
    %c0_48 = arith.constant 0 : index
    %99 = vector.load %arg2[%c2_46, %c0_47, %c0_48] : memref<3x5x512xf32, #tpu.memory_space<vmem>>, vector<1x1x512xf32>
    %100 = vector.shape_cast %99 : vector<1x1x512xf32> to vector<1x512xf32>
    %101 = vector.shape_cast %14 : vector<1x512xf32> to vector<1x1x512xf32>
    tpu.vector_store %arg2[%c2_46, %c0_47, %c0_48], %101 {strides = array<i32>} : memref<3x5x512xf32, #tpu.memory_space<vmem>>, vector<1x1x512xf32>,
    %c2_49 = arith.constant 2 : index
    %c1_50 = arith.constant 1 : index
    %c0_51 = arith.constant 0 : index
    %102 = vector.load %arg2[%c2_49, %c1_50, %c0_51] : memref<3x5x512xf32, #tpu.memory_space<vmem>>, vector<1x1x512xf32>
    %103 = vector.shape_cast %102 : vector<1x1x512xf32> to vector<1x512xf32>
    %104 = vector.shape_cast %86 : vector<1x512xf32> to vector<1x1x512xf32>
    tpu.vector_store %arg2[%c2_49, %c1_50, %c0_51], %104 {strides = array<i32>} : memref<3x5x512xf32, #tpu.memory_space<vmem>>, vector<1x1x512xf32>,
    %c2_52 = arith.constant 2 : index
    %c2_53 = arith.constant 2 : index
    %c0_54 = arith.constant 0 : index
    %105 = vector.load %arg2[%c2_52, %c2_53, %c0_54] : memref<3x5x512xf32, #tpu.memory_space<vmem>>, vector<1x1x512xf32>
    %106 = vector.shape_cast %105 : vector<1x1x512xf32> to vector<1x512xf32>
    %107 = vector.shape_cast %90 : vector<1x512xf32> to vector<1x1x512xf32>
    tpu.vector_store %arg2[%c2_52, %c2_53, %c0_54], %107 {strides = array<i32>} : memref<3x5x512xf32, #tpu.memory_space<vmem>>, vector<1x1x512xf32>,
    %c2_55 = arith.constant 2 : index
    %c3_56 = arith.constant 3 : index
    %c0_57 = arith.constant 0 : index
    %108 = vector.load %arg2[%c2_55, %c3_56, %c0_57] : memref<3x5x512xf32, #tpu.memory_space<vmem>>, vector<1x1x512xf32>
    %109 = vector.shape_cast %108 : vector<1x1x512xf32> to vector<1x512xf32>
    %110 = vector.shape_cast %94 : vector<1x512xf32> to vector<1x1x512xf32>
    tpu.vector_store %arg2[%c2_55, %c3_56, %c0_57], %110 {strides = array<i32>} : memref<3x5x512xf32, #tpu.memory_space<vmem>>, vector<1x1x512xf32>,
    %c2_58 = arith.constant 2 : index
    %c4_59 = arith.constant 4 : index
    %c0_60 = arith.constant 0 : index
    %111 = vector.load %arg2[%c2_58, %c4_59, %c0_60] : memref<3x5x512xf32, #tpu.memory_space<vmem>>, vector<1x1x512xf32>
    %112 = vector.shape_cast %111 : vector<1x1x512xf32> to vector<1x512xf32>
    %113 = vector.shape_cast %98 : vector<1x512xf32> to vector<1x1x512xf32>
    tpu.vector_store %arg2[%c2_58, %c4_59, %c0_60], %113 {strides = array<i32>} : memref<3x5x512xf32, #tpu.memory_space<vmem>>, vector<1x1x512xf32>,
    return
  }
  func.func @transform_0(%arg0: i32) -> (i32, i32, i32) {
    %c0_i32 = arith.constant 0 : i32
    %c0_i32_0 = arith.constant 0 : i32
    %c0_i32_1 = arith.constant 0 : i32
    return %c0_i32, %c0_i32_0, %arg0 : i32, i32, i32
  }
  func.func @transform_1(%arg0: i32) -> (i32, i32, i32) {
    %c0_i32 = arith.constant 0 : i32
    %c0_i32_0 = arith.constant 0 : i32
    %c0_i32_1 = arith.constant 0 : i32
    return %c0_i32, %c0_i32_0, %arg0 : i32, i32, i32
  }
}

module attributes {stable_mosaic.version = 11 : i64} {
  func.func @_decode_kernel(%arg0: i32, %arg1: memref<3x4x512xf32, #tpu.memory_space<vmem>>, %arg2: memref<3x5x512xf32, #tpu.memory_space<vmem>>) attributes {dimension_semantics = [#tpu.dimension_semantics<parallel>], iteration_bounds = array<i64: 1>, scalar_prefetch = 0 : i64, scratch_operands = 0 : i64, tpu.core_type = #tpu.core_type<tc>, window_params = [{transform_indices = @transform_0, window_bounds = array<i64: 3, 4, 512>}, {transform_indices = @transform_1, window_bounds = array<i64: 3, 5, 512>}]} {
    %c512_i32 = arith.constant 512 : i32
    %0 = arith.muli %arg0, %c512_i32 : i32
    %1 = tpu.iota {dimensions = array<i32: 1>} : vector<1x512xi32>
    %2 = vector.broadcast %0 : i32 to vector<1x512xi32>
    %3 = arith.addi %1, %2 : vector<1x512xi32>
    %c15_i32 = arith.constant 15 : i32
    %4 = vector.broadcast %c15_i32 : i32 to vector<1x512xi32>
    %5 = arith.andi %3, %4 : vector<1x512xi32>
    %c4_i32 = arith.constant 4 : i32
    %6 = vector.broadcast %c4_i32 : i32 to vector<1x512xi32>
    %7 = arith.shrsi %3, %6 : vector<1x512xi32>
    %c15_i32_0 = arith.constant 15 : i32
    %8 = vector.broadcast %c15_i32_0 : i32 to vector<1x512xi32>
    %9 = arith.andi %7, %8 : vector<1x512xi32>
    %c8_i32 = arith.constant 8 : i32
    %10 = vector.broadcast %c8_i32 : i32 to vector<1x512xi32>
    %11 = arith.shrsi %3, %10 : vector<1x512xi32>
    %12 = arith.sitofp %5 : vector<1x512xi32> to vector<1x512xf32>
    %13 = arith.sitofp %9 : vector<1x512xi32> to vector<1x512xf32>
    %14 = arith.sitofp %11 : vector<1x512xi32> to vector<1x512xf32>
    %c0 = arith.constant 0 : index
    %c0_1 = arith.constant 0 : index
    %c0_2 = arith.constant 0 : index
    %15 = vector.load %arg1[%c0, %c0_1, %c0_2] : memref<3x4x512xf32, #tpu.memory_space<vmem>>, vector<1x4x512xf32>
    %16 = vector.shape_cast %15 : vector<1x4x512xf32> to vector<4x512xf32>
    %17 = vector.extract_strided_slice %16 {offsets = [0, 0], sizes = [1, 512], strides = [1, 1]} : vector<4x512xf32> to vector<1x512xf32>
    %18 = arith.addf %12, %17 : vector<1x512xf32>
    %cst = arith.constant 4.000000e+00 : f32
    %19 = vector.broadcast %cst : f32 to vector<1x512xf32>
    %20 = arith.mulf %18, %19 : vector<1x512xf32>
    %21 = vector.extract_strided_slice %16 {offsets = [1, 0], sizes = [1, 512], strides = [1, 1]} : vector<4x512xf32> to vector<1x512xf32>
    %22 = arith.addf %13, %21 : vector<1x512xf32>
    %cst_3 = arith.constant 4.000000e+00 : f32
    %23 = vector.broadcast %cst_3 : f32 to vector<1x512xf32>
    %24 = arith.mulf %22, %23 : vector<1x512xf32>
    %25 = vector.extract_strided_slice %16 {offsets = [2, 0], sizes = [1, 512], strides = [1, 1]} : vector<4x512xf32> to vector<1x512xf32>
    %26 = math.exp %25 : vector<1x512xf32>
    %cst_4 = arith.constant 8.000000e+00 : f32
    %27 = vector.broadcast %cst_4 : f32 to vector<1x512xf32>
    %28 = arith.mulf %27, %26 : vector<1x512xf32>
    %29 = vector.extract_strided_slice %16 {offsets = [3, 0], sizes = [1, 512], strides = [1, 1]} : vector<4x512xf32> to vector<1x512xf32>
    %30 = math.exp %29 : vector<1x512xf32>
    %cst_5 = arith.constant 1.000000e+01 : f32
    %31 = vector.broadcast %cst_5 : f32 to vector<1x512xf32>
    %32 = arith.mulf %31, %30 : vector<1x512xf32>
    %c0_6 = arith.constant 0 : index
    %c0_7 = arith.constant 0 : index
    %c0_8 = arith.constant 0 : index
    %33 = vector.load %arg2[%c0_6, %c0_7, %c0_8] : memref<3x5x512xf32, #tpu.memory_space<vmem>>, vector<1x1x512xf32>
    %34 = vector.shape_cast %33 : vector<1x1x512xf32> to vector<1x512xf32>
    %35 = vector.shape_cast %14 : vector<1x512xf32> to vector<1x1x512xf32>
    tpu.vector_store %arg2[%c0_6, %c0_7, %c0_8], %35 {strides = array<i32>} : memref<3x5x512xf32, #tpu.memory_space<vmem>>, vector<1x1x512xf32>,
    %c0_9 = arith.constant 0 : index
    %c1 = arith.constant 1 : index
    %c0_10 = arith.constant 0 : index
    %36 = vector.load %arg2[%c0_9, %c1, %c0_10] : memref<3x5x512xf32, #tpu.memory_space<vmem>>, vector<1x1x512xf32>
    %37 = vector.shape_cast %36 : vector<1x1x512xf32> to vector<1x512xf32>
    %38 = vector.shape_cast %20 : vector<1x512xf32> to vector<1x1x512xf32>
    tpu.vector_store %arg2[%c0_9, %c1, %c0_10], %38 {strides = array<i32>} : memref<3x5x512xf32, #tpu.memory_space<vmem>>, vector<1x1x512xf32>,
    %c0_11 = arith.constant 0 : index
    %c2 = arith.constant 2 : index
    %c0_12 = arith.constant 0 : index
    %39 = vector.load %arg2[%c0_11, %c2, %c0_12] : memref<3x5x512xf32, #tpu.memory_space<vmem>>, vector<1x1x512xf32>
    %40 = vector.shape_cast %39 : vector<1x1x512xf32> to vector<1x512xf32>
    %41 = vector.shape_cast %24 : vector<1x512xf32> to vector<1x1x512xf32>
    tpu.vector_store %arg2[%c0_11, %c2, %c0_12], %41 {strides = array<i32>} : memref<3x5x512xf32, #tpu.memory_space<vmem>>, vector<1x1x512xf32>,
    %c0_13 = arith.constant 0 : index
    %c3 = arith.constant 3 : index
    %c0_14 = arith.constant 0 : index
    %42 = vector.load %arg2[%c0_13, %c3, %c0_14] : memref<3x5x512xf32, #tpu.memory_space<vmem>>, vector<1x1x512xf32>
    %43 = vector.shape_cast %42 : vector<1x1x512xf32> to vector<1x512xf32>
    %44 = vector.shape_cast %28 : vector<1x512xf32> to vector<1x1x512xf32>
    tpu.vector_store %arg2[%c0_13, %c3, %c0_14], %44 {strides = array<i32>} : memref<3x5x512xf32, #tpu.memory_space<vmem>>, vector<1x1x512xf32>,
    %c0_15 = arith.constant 0 : index
    %c4 = arith.constant 4 : index
    %c0_16 = arith.constant 0 : index
    %45 = vector.load %arg2[%c0_15, %c4, %c0_16] : memref<3x5x512xf32, #tpu.memory_space<vmem>>, vector<1x1x512xf32>
    %46 = vector.shape_cast %45 : vector<1x1x512xf32> to vector<1x512xf32>
    %47 = vector.shape_cast %32 : vector<1x512xf32> to vector<1x1x512xf32>
    tpu.vector_store %arg2[%c0_15, %c4, %c0_16], %47 {strides = array<i32>} : memref<3x5x512xf32, #tpu.memory_space<vmem>>, vector<1x1x512xf32>,
    %c1_17 = arith.constant 1 : index
    %c0_18 = arith.constant 0 : index
    %c0_19 = arith.constant 0 : index
    %48 = vector.load %arg1[%c1_17, %c0_18, %c0_19] : memref<3x4x512xf32, #tpu.memory_space<vmem>>, vector<1x4x512xf32>
    %49 = vector.shape_cast %48 : vector<1x4x512xf32> to vector<4x512xf32>
    %50 = vector.extract_strided_slice %49 {offsets = [0, 0], sizes = [1, 512], strides = [1, 1]} : vector<4x512xf32> to vector<1x512xf32>
    %51 = arith.addf %12, %50 : vector<1x512xf32>
    %cst_20 = arith.constant 4.000000e+00 : f32
    %52 = vector.broadcast %cst_20 : f32 to vector<1x512xf32>
    %53 = arith.mulf %51, %52 : vector<1x512xf32>
    %54 = vector.extract_strided_slice %49 {offsets = [1, 0], sizes = [1, 512], strides = [1, 1]} : vector<4x512xf32> to vector<1x512xf32>
    %55 = arith.addf %13, %54 : vector<1x512xf32>
    %cst_21 = arith.constant 4.000000e+00 : f32
    %56 = vector.broadcast %cst_21 : f32 to vector<1x512xf32>
    %57 = arith.mulf %55, %56 : vector<1x512xf32>
    %58 = vector.extract_strided_slice %49 {offsets = [2, 0], sizes = [1, 512], strides = [1, 1]} : vector<4x512xf32> to vector<1x512xf32>
    %59 = math.exp %58 : vector<1x512xf32>
    %cst_22 = arith.constant 1.200000e+01 : f32
    %60 = vector.broadcast %cst_22 : f32 to vector<1x512xf32>
    %61 = arith.mulf %60, %59 : vector<1x512xf32>
    %62 = vector.extract_strided_slice %49 {offsets = [3, 0], sizes = [1, 512], strides = [1, 1]} : vector<4x512xf32> to vector<1x512xf32>
    %63 = math.exp %62 : vector<1x512xf32>
    %cst_23 = arith.constant 1.600000e+01 : f32
    %64 = vector.broadcast %cst_23 : f32 to vector<1x512xf32>
    %65 = arith.mulf %64, %63 : vector<1x512xf32>
    %c1_24 = arith.constant 1 : index
    %c0_25 = arith.constant 0 : index
    %c0_26 = arith.constant 0 : index
    %66 = vector.load %arg2[%c1_24, %c0_25, %c0_26] : memref<3x5x512xf32, #tpu.memory_space<vmem>>, vector<1x1x512xf32>
    %67 = vector.shape_cast %66 : vector<1x1x512xf32> to vector<1x512xf32>
    %68 = vector.shape_cast %14 : vector<1x512xf32> to vector<1x1x512xf32>
    tpu.vector_store %arg2[%c1_24, %c0_25, %c0_26], %68 {strides = array<i32>} : memref<3x5x512xf32, #tpu.memory_space<vmem>>, vector<1x1x512xf32>,
    %c1_27 = arith.constant 1 : index
    %c1_28 = arith.constant 1 : index
    %c0_29 = arith.constant 0 : index
    %69 = vector.load %arg2[%c1_27, %c1_28, %c0_29] : memref<3x5x512xf32, #tpu.memory_space<vmem>>, vector<1x1x512xf32>
    %70 = vector.shape_cast %69 : vector<1x1x512xf32> to vector<1x512xf32>
    %71 = vector.shape_cast %53 : vector<1x512xf32> to vector<1x1x512xf32>
    tpu.vector_store %arg2[%c1_27, %c1_28, %c0_29], %71 {strides = array<i32>} : memref<3x5x512xf32, #tpu.memory_space<vmem>>, vector<1x1x512xf32>,
    %c1_30 = arith.constant 1 : index
    %c2_31 = arith.constant 2 : index
    %c0_32 = arith.constant 0 : index
    %72 = vector.load %arg2[%c1_30, %c2_31, %c0_32] : memref<3x5x512xf32, #tpu.memory_space<vmem>>, vector<1x1x512xf32>
    %73 = vector.shape_cast %72 : vector<1x1x512xf32> to vector<1x512xf32>
    %74 = vector.shape_cast %57 : vector<1x512xf32> to vector<1x1x512xf32>
    tpu.vector_store %arg2[%c1_30, %c2_31, %c0_32], %74 {strides = array<i32>} : memref<3x5x512xf32, #tpu.memory_space<vmem>>, vector<1x1x512xf32>,
    %c1_33 = arith.constant 1 : index
    %c3_34 = arith.constant 3 : index
    %c0_35 = arith.constant 0 : index
    %75 = vector.load %arg2[%c1_33, %c3_34, %c0_35] : memref<3x5x512xf32, #tpu.memory_space<vmem>>, vector<1x1x512xf32>
    %76 = vector.shape_cast %75 : vector<1x1x512xf32> to vector<1x512xf32>
    %77 = vector.shape_cast %61 : vector<1x512xf32> to vector<1x1x512xf32>
    tpu.vector_store %arg2[%c1_33, %c3_34, %c0_35], %77 {strides = array<i32>} : memref<3x5x512xf32, #tpu.memory_space<vmem>>, vector<1x1x512xf32>,
    %c1_36 = arith.constant 1 : index
    %c4_37 = arith.constant 4 : index
    %c0_38 = arith.constant 0 : index
    %78 = vector.load %arg2[%c1_36, %c4_37, %c0_38] : memref<3x5x512xf32, #tpu.memory_space<vmem>>, vector<1x1x512xf32>
    %79 = vector.shape_cast %78 : vector<1x1x512xf32> to vector<1x512xf32>
    %80 = vector.shape_cast %65 : vector<1x512xf32> to vector<1x1x512xf32>
    tpu.vector_store %arg2[%c1_36, %c4_37, %c0_38], %80 {strides = array<i32>} : memref<3x5x512xf32, #tpu.memory_space<vmem>>, vector<1x1x512xf32>,
    %c2_39 = arith.constant 2 : index
    %c0_40 = arith.constant 0 : index
    %c0_41 = arith.constant 0 : index
    %81 = vector.load %arg1[%c2_39, %c0_40, %c0_41] : memref<3x4x512xf32, #tpu.memory_space<vmem>>, vector<1x4x512xf32>
    %82 = vector.shape_cast %81 : vector<1x4x512xf32> to vector<4x512xf32>
    %83 = vector.extract_strided_slice %82 {offsets = [0, 0], sizes = [1, 512], strides = [1, 1]} : vector<4x512xf32> to vector<1x512xf32>
    %84 = arith.addf %12, %83 : vector<1x512xf32>
    %cst_42 = arith.constant 4.000000e+00 : f32
    %85 = vector.broadcast %cst_42 : f32 to vector<1x512xf32>
    %86 = arith.mulf %84, %85 : vector<1x512xf32>
    %87 = vector.extract_strided_slice %82 {offsets = [1, 0], sizes = [1, 512], strides = [1, 1]} : vector<4x512xf32> to vector<1x512xf32>
    %88 = arith.addf %13, %87 : vector<1x512xf32>
    %cst_43 = arith.constant 4.000000e+00 : f32
    %89 = vector.broadcast %cst_43 : f32 to vector<1x512xf32>
    %90 = arith.mulf %88, %89 : vector<1x512xf32>
    %91 = vector.extract_strided_slice %82 {offsets = [2, 0], sizes = [1, 512], strides = [1, 1]} : vector<4x512xf32> to vector<1x512xf32>
    %92 = math.exp %91 : vector<1x512xf32>
    %cst_44 = arith.constant 1.800000e+01 : f32
    %93 = vector.broadcast %cst_44 : f32 to vector<1x512xf32>
    %94 = arith.mulf %93, %92 : vector<1x512xf32>
    %95 = vector.extract_strided_slice %82 {offsets = [3, 0], sizes = [1, 512], strides = [1, 1]} : vector<4x512xf32> to vector<1x512xf32>
    %96 = math.exp %95 : vector<1x512xf32>
    %cst_45 = arith.constant 2.400000e+01 : f32
    %97 = vector.broadcast %cst_45 : f32 to vector<1x512xf32>
    %98 = arith.mulf %97, %96 : vector<1x512xf32>
    %c2_46 = arith.constant 2 : index
    %c0_47 = arith.constant 0 : index
    %c0_48 = arith.constant 0 : index
    %99 = vector.load %arg2[%c2_46, %c0_47, %c0_48] : memref<3x5x512xf32, #tpu.memory_space<vmem>>, vector<1x1x512xf32>
    %100 = vector.shape_cast %99 : vector<1x1x512xf32> to vector<1x512xf32>
    %101 = vector.shape_cast %14 : vector<1x512xf32> to vector<1x1x512xf32>
    tpu.vector_store %arg2[%c2_46, %c0_47, %c0_48], %101 {strides = array<i32>} : memref<3x5x512xf32, #tpu.memory_space<vmem>>, vector<1x1x512xf32>,
    %c2_49 = arith.constant 2 : index
    %c1_50 = arith.constant 1 : index
    %c0_51 = arith.constant 0 : index
    %102 = vector.load %arg2[%c2_49, %c1_50, %c0_51] : memref<3x5x512xf32, #tpu.memory_space<vmem>>, vector<1x1x512xf32>
    %103 = vector.shape_cast %102 : vector<1x1x512xf32> to vector<1x512xf32>
    %104 = vector.shape_cast %86 : vector<1x512xf32> to vector<1x1x512xf32>
    tpu.vector_store %arg2[%c2_49, %c1_50, %c0_51], %104 {strides = array<i32>} : memref<3x5x512xf32, #tpu.memory_space<vmem>>, vector<1x1x512xf32>,
    %c2_52 = arith.constant 2 : index
    %c2_53 = arith.constant 2 : index
    %c0_54 = arith.constant 0 : index
    %105 = vector.load %arg2[%c2_52, %c2_53, %c0_54] : memref<3x5x512xf32, #tpu.memory_space<vmem>>, vector<1x1x512xf32>
    %106 = vector.shape_cast %105 : vector<1x1x512xf32> to vector<1x512xf32>
    %107 = vector.shape_cast %90 : vector<1x512xf32> to vector<1x1x512xf32>
    tpu.vector_store %arg2[%c2_52, %c2_53, %c0_54], %107 {strides = array<i32>} : memref<3x5x512xf32, #tpu.memory_space<vmem>>, vector<1x1x512xf32>,
    %c2_55 = arith.constant 2 : index
    %c3_56 = arith.constant 3 : index
    %c0_57 = arith.constant 0 : index
    %108 = vector.load %arg2[%c2_55, %c3_56, %c0_57] : memref<3x5x512xf32, #tpu.memory_space<vmem>>, vector<1x1x512xf32>
    %109 = vector.shape_cast %108 : vector<1x1x512xf32> to vector<1x512xf32>
    %110 = vector.shape_cast %94 : vector<1x512xf32> to vector<1x1x512xf32>
    tpu.vector_store %arg2[%c2_55, %c3_56, %c0_57], %110 {strides = array<i32>} : memref<3x5x512xf32, #tpu.memory_space<vmem>>, vector<1x1x512xf32>,
    %c2_58 = arith.constant 2 : index
    %c4_59 = arith.constant 4 : index
    %c0_60 = arith.constant 0 : index
    %111 = vector.load %arg2[%c2_58, %c4_59, %c0_60] : memref<3x5x512xf32, #tpu.memory_space<vmem>>, vector<1x1x512xf32>
    %112 = vector.shape_cast %111 : vector<1x1x512xf32> to vector<1x512xf32>
    %113 = vector.shape_cast %98 : vector<1x512xf32> to vector<1x1x512xf32>
    tpu.vector_store %arg2[%c2_58, %c4_59, %c0_60], %113 {strides = array<i32>} : memref<3x5x512xf32, #tpu.memory_space<vmem>>, vector<1x1x512xf32>,
    return
  }
  func.func @transform_0(%arg0: i32) -> (i32, i32, i32) {
    %c0_i32 = arith.constant 0 : i32
    %c0_i32_0 = arith.constant 0 : i32
    %c0_i32_1 = arith.constant 0 : i32
    return %c0_i32, %c0_i32_0, %arg0 : i32, i32, i32
  }
  func.func @transform_1(%arg0: i32) -> (i32, i32, i32) {
    %c0_i32 = arith.constant 0 : i32
    %c0_i32_0 = arith.constant 0 : i32
    %c0_i32_1 = arith.constant 0 : i32
    return %c0_i32, %c0_i32_0, %arg0 : i32, i32, i32
  }
}

module attributes {stable_mosaic.version = 11 : i64} {
  func.func @_decode_kernel(%arg0: i32, %arg1: memref<3x4x128xf32, #tpu.memory_space<vmem>>, %arg2: memref<3x5x128xf32, #tpu.memory_space<vmem>>) attributes {dimension_semantics = [#tpu.dimension_semantics<parallel>], iteration_bounds = array<i64: 1>, scalar_prefetch = 0 : i64, scratch_operands = 0 : i64, tpu.core_type = #tpu.core_type<tc>, window_params = [{transform_indices = @transform_0, window_bounds = array<i64: 3, 4, 128>}, {transform_indices = @transform_1, window_bounds = array<i64: 3, 5, 128>}]} {
    %c128_i32 = arith.constant 128 : i32
    %0 = arith.muli %arg0, %c128_i32 : i32
    %1 = tpu.iota {dimensions = array<i32: 1>} : vector<1x128xi32>
    %2 = vector.broadcast %0 : i32 to vector<1x128xi32>
    %3 = arith.addi %1, %2 : vector<1x128xi32>
    %c7_i32 = arith.constant 7 : i32
    %4 = vector.broadcast %c7_i32 : i32 to vector<1x128xi32>
    %5 = arith.andi %3, %4 : vector<1x128xi32>
    %c3_i32 = arith.constant 3 : i32
    %6 = vector.broadcast %c3_i32 : i32 to vector<1x128xi32>
    %7 = arith.shrsi %3, %6 : vector<1x128xi32>
    %c7_i32_0 = arith.constant 7 : i32
    %8 = vector.broadcast %c7_i32_0 : i32 to vector<1x128xi32>
    %9 = arith.andi %7, %8 : vector<1x128xi32>
    %c6_i32 = arith.constant 6 : i32
    %10 = vector.broadcast %c6_i32 : i32 to vector<1x128xi32>
    %11 = arith.shrsi %3, %10 : vector<1x128xi32>
    %12 = arith.sitofp %5 : vector<1x128xi32> to vector<1x128xf32>
    %13 = arith.sitofp %9 : vector<1x128xi32> to vector<1x128xf32>
    %14 = arith.sitofp %11 : vector<1x128xi32> to vector<1x128xf32>
    %c0 = arith.constant 0 : index
    %c0_1 = arith.constant 0 : index
    %c0_2 = arith.constant 0 : index
    %15 = vector.load %arg1[%c0, %c0_1, %c0_2] : memref<3x4x128xf32, #tpu.memory_space<vmem>>, vector<1x4x128xf32>
    %16 = vector.shape_cast %15 : vector<1x4x128xf32> to vector<4x128xf32>
    %17 = vector.extract_strided_slice %16 {offsets = [0, 0], sizes = [1, 128], strides = [1, 1]} : vector<4x128xf32> to vector<1x128xf32>
    %18 = arith.addf %12, %17 : vector<1x128xf32>
    %cst = arith.constant 8.000000e+00 : f32
    %19 = vector.broadcast %cst : f32 to vector<1x128xf32>
    %20 = arith.mulf %18, %19 : vector<1x128xf32>
    %21 = vector.extract_strided_slice %16 {offsets = [1, 0], sizes = [1, 128], strides = [1, 1]} : vector<4x128xf32> to vector<1x128xf32>
    %22 = arith.addf %13, %21 : vector<1x128xf32>
    %cst_3 = arith.constant 8.000000e+00 : f32
    %23 = vector.broadcast %cst_3 : f32 to vector<1x128xf32>
    %24 = arith.mulf %22, %23 : vector<1x128xf32>
    %25 = vector.extract_strided_slice %16 {offsets = [2, 0], sizes = [1, 128], strides = [1, 1]} : vector<4x128xf32> to vector<1x128xf32>
    %26 = math.exp %25 : vector<1x128xf32>
    %cst_4 = arith.constant 1.400000e+01 : f32
    %27 = vector.broadcast %cst_4 : f32 to vector<1x128xf32>
    %28 = arith.mulf %27, %26 : vector<1x128xf32>
    %29 = vector.extract_strided_slice %16 {offsets = [3, 0], sizes = [1, 128], strides = [1, 1]} : vector<4x128xf32> to vector<1x128xf32>
    %30 = math.exp %29 : vector<1x128xf32>
    %cst_5 = arith.constant 1.800000e+01 : f32
    %31 = vector.broadcast %cst_5 : f32 to vector<1x128xf32>
    %32 = arith.mulf %31, %30 : vector<1x128xf32>
    %c0_6 = arith.constant 0 : index
    %c0_7 = arith.constant 0 : index
    %c0_8 = arith.constant 0 : index
    %33 = vector.load %arg2[%c0_6, %c0_7, %c0_8] : memref<3x5x128xf32, #tpu.memory_space<vmem>>, vector<1x1x128xf32>
    %34 = vector.shape_cast %33 : vector<1x1x128xf32> to vector<1x128xf32>
    %35 = vector.shape_cast %14 : vector<1x128xf32> to vector<1x1x128xf32>
    tpu.vector_store %arg2[%c0_6, %c0_7, %c0_8], %35 {strides = array<i32>} : memref<3x5x128xf32, #tpu.memory_space<vmem>>, vector<1x1x128xf32>,
    %c0_9 = arith.constant 0 : index
    %c1 = arith.constant 1 : index
    %c0_10 = arith.constant 0 : index
    %36 = vector.load %arg2[%c0_9, %c1, %c0_10] : memref<3x5x128xf32, #tpu.memory_space<vmem>>, vector<1x1x128xf32>
    %37 = vector.shape_cast %36 : vector<1x1x128xf32> to vector<1x128xf32>
    %38 = vector.shape_cast %20 : vector<1x128xf32> to vector<1x1x128xf32>
    tpu.vector_store %arg2[%c0_9, %c1, %c0_10], %38 {strides = array<i32>} : memref<3x5x128xf32, #tpu.memory_space<vmem>>, vector<1x1x128xf32>,
    %c0_11 = arith.constant 0 : index
    %c2 = arith.constant 2 : index
    %c0_12 = arith.constant 0 : index
    %39 = vector.load %arg2[%c0_11, %c2, %c0_12] : memref<3x5x128xf32, #tpu.memory_space<vmem>>, vector<1x1x128xf32>
    %40 = vector.shape_cast %39 : vector<1x1x128xf32> to vector<1x128xf32>
    %41 = vector.shape_cast %24 : vector<1x128xf32> to vector<1x1x128xf32>
    tpu.vector_store %arg2[%c0_11, %c2, %c0_12], %41 {strides = array<i32>} : memref<3x5x128xf32, #tpu.memory_space<vmem>>, vector<1x1x128xf32>,
    %c0_13 = arith.constant 0 : index
    %c3 = arith.constant 3 : index
    %c0_14 = arith.constant 0 : index
    %42 = vector.load %arg2[%c0_13, %c3, %c0_14] : memref<3x5x128xf32, #tpu.memory_space<vmem>>, vector<1x1x128xf32>
    %43 = vector.shape_cast %42 : vector<1x1x128xf32> to vector<1x128xf32>
    %44 = vector.shape_cast %28 : vector<1x128xf32> to vector<1x1x128xf32>
    tpu.vector_store %arg2[%c0_13, %c3, %c0_14], %44 {strides = array<i32>} : memref<3x5x128xf32, #tpu.memory_space<vmem>>, vector<1x1x128xf32>,
    %c0_15 = arith.constant 0 : index
    %c4 = arith.constant 4 : index
    %c0_16 = arith.constant 0 : index
    %45 = vector.load %arg2[%c0_15, %c4, %c0_16] : memref<3x5x128xf32, #tpu.memory_space<vmem>>, vector<1x1x128xf32>
    %46 = vector.shape_cast %45 : vector<1x1x128xf32> to vector<1x128xf32>
    %47 = vector.shape_cast %32 : vector<1x128xf32> to vector<1x1x128xf32>
    tpu.vector_store %arg2[%c0_15, %c4, %c0_16], %47 {strides = array<i32>} : memref<3x5x128xf32, #tpu.memory_space<vmem>>, vector<1x1x128xf32>,
    %c1_17 = arith.constant 1 : index
    %c0_18 = arith.constant 0 : index
    %c0_19 = arith.constant 0 : index
    %48 = vector.load %arg1[%c1_17, %c0_18, %c0_19] : memref<3x4x128xf32, #tpu.memory_space<vmem>>, vector<1x4x128xf32>
    %49 = vector.shape_cast %48 : vector<1x4x128xf32> to vector<4x128xf32>
    %50 = vector.extract_strided_slice %49 {offsets = [0, 0], sizes = [1, 128], strides = [1, 1]} : vector<4x128xf32> to vector<1x128xf32>
    %51 = arith.addf %12, %50 : vector<1x128xf32>
    %cst_20 = arith.constant 8.000000e+00 : f32
    %52 = vector.broadcast %cst_20 : f32 to vector<1x128xf32>
    %53 = arith.mulf %51, %52 : vector<1x128xf32>
    %54 = vector.extract_strided_slice %49 {offsets = [1, 0], sizes = [1, 128], strides = [1, 1]} : vector<4x128xf32> to vector<1x128xf32>
    %55 = arith.addf %13, %54 : vector<1x128xf32>
    %cst_21 = arith.constant 8.000000e+00 : f32
    %56 = vector.broadcast %cst_21 : f32 to vector<1x128xf32>
    %57 = arith.mulf %55, %56 : vector<1x128xf32>
    %58 = vector.extract_strided_slice %49 {offsets = [2, 0], sizes = [1, 128], strides = [1, 1]} : vector<4x128xf32> to vector<1x128xf32>
    %59 = math.exp %58 : vector<1x128xf32>
    %cst_22 = arith.constant 2.200000e+01 : f32
    %60 = vector.broadcast %cst_22 : f32 to vector<1x128xf32>
    %61 = arith.mulf %60, %59 : vector<1x128xf32>
    %62 = vector.extract_strided_slice %49 {offsets = [3, 0], sizes = [1, 128], strides = [1, 1]} : vector<4x128xf32> to vector<1x128xf32>
    %63 = math.exp %62 : vector<1x128xf32>
    %cst_23 = arith.constant 3.000000e+01 : f32
    %64 = vector.broadcast %cst_23 : f32 to vector<1x128xf32>
    %65 = arith.mulf %64, %63 : vector<1x128xf32>
    %c1_24 = arith.constant 1 : index
    %c0_25 = arith.constant 0 : index
    %c0_26 = arith.constant 0 : index
    %66 = vector.load %arg2[%c1_24, %c0_25, %c0_26] : memref<3x5x128xf32, #tpu.memory_space<vmem>>, vector<1x1x128xf32>
    %67 = vector.shape_cast %66 : vector<1x1x128xf32> to vector<1x128xf32>
    %68 = vector.shape_cast %14 : vector<1x128xf32> to vector<1x1x128xf32>
    tpu.vector_store %arg2[%c1_24, %c0_25, %c0_26], %68 {strides = array<i32>} : memref<3x5x128xf32, #tpu.memory_space<vmem>>, vector<1x1x128xf32>,
    %c1_27 = arith.constant 1 : index
    %c1_28 = arith.constant 1 : index
    %c0_29 = arith.constant 0 : index
    %69 = vector.load %arg2[%c1_27, %c1_28, %c0_29] : memref<3x5x128xf32, #tpu.memory_space<vmem>>, vector<1x1x128xf32>
    %70 = vector.shape_cast %69 : vector<1x1x128xf32> to vector<1x128xf32>
    %71 = vector.shape_cast %53 : vector<1x128xf32> to vector<1x1x128xf32>
    tpu.vector_store %arg2[%c1_27, %c1_28, %c0_29], %71 {strides = array<i32>} : memref<3x5x128xf32, #tpu.memory_space<vmem>>, vector<1x1x128xf32>,
    %c1_30 = arith.constant 1 : index
    %c2_31 = arith.constant 2 : index
    %c0_32 = arith.constant 0 : index
    %72 = vector.load %arg2[%c1_30, %c2_31, %c0_32] : memref<3x5x128xf32, #tpu.memory_space<vmem>>, vector<1x1x128xf32>
    %73 = vector.shape_cast %72 : vector<1x1x128xf32> to vector<1x128xf32>
    %74 = vector.shape_cast %57 : vector<1x128xf32> to vector<1x1x128xf32>
    tpu.vector_store %arg2[%c1_30, %c2_31, %c0_32], %74 {strides = array<i32>} : memref<3x5x128xf32, #tpu.memory_space<vmem>>, vector<1x1x128xf32>,
    %c1_33 = arith.constant 1 : index
    %c3_34 = arith.constant 3 : index
    %c0_35 = arith.constant 0 : index
    %75 = vector.load %arg2[%c1_33, %c3_34, %c0_35] : memref<3x5x128xf32, #tpu.memory_space<vmem>>, vector<1x1x128xf32>
    %76 = vector.shape_cast %75 : vector<1x1x128xf32> to vector<1x128xf32>
    %77 = vector.shape_cast %61 : vector<1x128xf32> to vector<1x1x128xf32>
    tpu.vector_store %arg2[%c1_33, %c3_34, %c0_35], %77 {strides = array<i32>} : memref<3x5x128xf32, #tpu.memory_space<vmem>>, vector<1x1x128xf32>,
    %c1_36 = arith.constant 1 : index
    %c4_37 = arith.constant 4 : index
    %c0_38 = arith.constant 0 : index
    %78 = vector.load %arg2[%c1_36, %c4_37, %c0_38] : memref<3x5x128xf32, #tpu.memory_space<vmem>>, vector<1x1x128xf32>
    %79 = vector.shape_cast %78 : vector<1x1x128xf32> to vector<1x128xf32>
    %80 = vector.shape_cast %65 : vector<1x128xf32> to vector<1x1x128xf32>
    tpu.vector_store %arg2[%c1_36, %c4_37, %c0_38], %80 {strides = array<i32>} : memref<3x5x128xf32, #tpu.memory_space<vmem>>, vector<1x1x128xf32>,
    %c2_39 = arith.constant 2 : index
    %c0_40 = arith.constant 0 : index
    %c0_41 = arith.constant 0 : index
    %81 = vector.load %arg1[%c2_39, %c0_40, %c0_41] : memref<3x4x128xf32, #tpu.memory_space<vmem>>, vector<1x4x128xf32>
    %82 = vector.shape_cast %81 : vector<1x4x128xf32> to vector<4x128xf32>
    %83 = vector.extract_strided_slice %82 {offsets = [0, 0], sizes = [1, 128], strides = [1, 1]} : vector<4x128xf32> to vector<1x128xf32>
    %84 = arith.addf %12, %83 : vector<1x128xf32>
    %cst_42 = arith.constant 8.000000e+00 : f32
    %85 = vector.broadcast %cst_42 : f32 to vector<1x128xf32>
    %86 = arith.mulf %84, %85 : vector<1x128xf32>
    %87 = vector.extract_strided_slice %82 {offsets = [1, 0], sizes = [1, 128], strides = [1, 1]} : vector<4x128xf32> to vector<1x128xf32>
    %88 = arith.addf %13, %87 : vector<1x128xf32>
    %cst_43 = arith.constant 8.000000e+00 : f32
    %89 = vector.broadcast %cst_43 : f32 to vector<1x128xf32>
    %90 = arith.mulf %88, %89 : vector<1x128xf32>
    %91 = vector.extract_strided_slice %82 {offsets = [2, 0], sizes = [1, 128], strides = [1, 1]} : vector<4x128xf32> to vector<1x128xf32>
    %92 = math.exp %91 : vector<1x128xf32>
    %cst_44 = arith.constant 3.600000e+01 : f32
    %93 = vector.broadcast %cst_44 : f32 to vector<1x128xf32>
    %94 = arith.mulf %93, %92 : vector<1x128xf32>
    %95 = vector.extract_strided_slice %82 {offsets = [3, 0], sizes = [1, 128], strides = [1, 1]} : vector<4x128xf32> to vector<1x128xf32>
    %96 = math.exp %95 : vector<1x128xf32>
    %cst_45 = arith.constant 4.200000e+01 : f32
    %97 = vector.broadcast %cst_45 : f32 to vector<1x128xf32>
    %98 = arith.mulf %97, %96 : vector<1x128xf32>
    %c2_46 = arith.constant 2 : index
    %c0_47 = arith.constant 0 : index
    %c0_48 = arith.constant 0 : index
    %99 = vector.load %arg2[%c2_46, %c0_47, %c0_48] : memref<3x5x128xf32, #tpu.memory_space<vmem>>, vector<1x1x128xf32>
    %100 = vector.shape_cast %99 : vector<1x1x128xf32> to vector<1x128xf32>
    %101 = vector.shape_cast %14 : vector<1x128xf32> to vector<1x1x128xf32>
    tpu.vector_store %arg2[%c2_46, %c0_47, %c0_48], %101 {strides = array<i32>} : memref<3x5x128xf32, #tpu.memory_space<vmem>>, vector<1x1x128xf32>,
    %c2_49 = arith.constant 2 : index
    %c1_50 = arith.constant 1 : index
    %c0_51 = arith.constant 0 : index
    %102 = vector.load %arg2[%c2_49, %c1_50, %c0_51] : memref<3x5x128xf32, #tpu.memory_space<vmem>>, vector<1x1x128xf32>
    %103 = vector.shape_cast %102 : vector<1x1x128xf32> to vector<1x128xf32>
    %104 = vector.shape_cast %86 : vector<1x128xf32> to vector<1x1x128xf32>
    tpu.vector_store %arg2[%c2_49, %c1_50, %c0_51], %104 {strides = array<i32>} : memref<3x5x128xf32, #tpu.memory_space<vmem>>, vector<1x1x128xf32>,
    %c2_52 = arith.constant 2 : index
    %c2_53 = arith.constant 2 : index
    %c0_54 = arith.constant 0 : index
    %105 = vector.load %arg2[%c2_52, %c2_53, %c0_54] : memref<3x5x128xf32, #tpu.memory_space<vmem>>, vector<1x1x128xf32>
    %106 = vector.shape_cast %105 : vector<1x1x128xf32> to vector<1x128xf32>
    %107 = vector.shape_cast %90 : vector<1x128xf32> to vector<1x1x128xf32>
    tpu.vector_store %arg2[%c2_52, %c2_53, %c0_54], %107 {strides = array<i32>} : memref<3x5x128xf32, #tpu.memory_space<vmem>>, vector<1x1x128xf32>,
    %c2_55 = arith.constant 2 : index
    %c3_56 = arith.constant 3 : index
    %c0_57 = arith.constant 0 : index
    %108 = vector.load %arg2[%c2_55, %c3_56, %c0_57] : memref<3x5x128xf32, #tpu.memory_space<vmem>>, vector<1x1x128xf32>
    %109 = vector.shape_cast %108 : vector<1x1x128xf32> to vector<1x128xf32>
    %110 = vector.shape_cast %94 : vector<1x128xf32> to vector<1x1x128xf32>
    tpu.vector_store %arg2[%c2_55, %c3_56, %c0_57], %110 {strides = array<i32>} : memref<3x5x128xf32, #tpu.memory_space<vmem>>, vector<1x1x128xf32>,
    %c2_58 = arith.constant 2 : index
    %c4_59 = arith.constant 4 : index
    %c0_60 = arith.constant 0 : index
    %111 = vector.load %arg2[%c2_58, %c4_59, %c0_60] : memref<3x5x128xf32, #tpu.memory_space<vmem>>, vector<1x1x128xf32>
    %112 = vector.shape_cast %111 : vector<1x1x128xf32> to vector<1x128xf32>
    %113 = vector.shape_cast %98 : vector<1x128xf32> to vector<1x1x128xf32>
    tpu.vector_store %arg2[%c2_58, %c4_59, %c0_60], %113 {strides = array<i32>} : memref<3x5x128xf32, #tpu.memory_space<vmem>>, vector<1x1x128xf32>,
    return
  }
  func.func @transform_0(%arg0: i32) -> (i32, i32, i32) {
    %c0_i32 = arith.constant 0 : i32
    %c0_i32_0 = arith.constant 0 : i32
    %c0_i32_1 = arith.constant 0 : i32
    return %c0_i32, %c0_i32_0, %arg0 : i32, i32, i32
  }
  func.func @transform_1(%arg0: i32) -> (i32, i32, i32) {
    %c0_i32 = arith.constant 0 : i32
    %c0_i32_0 = arith.constant 0 : i32
    %c0_i32_1 = arith.constant 0 : i32
    return %c0_i32, %c0_i32_0, %arg0 : i32, i32, i32
  }
}

module attributes {stable_mosaic.version = 11 : i64} {
  func.func @_scale_kernel(%arg0: i32, %arg1: memref<512x3xf32, #tpu.memory_space<vmem>>, %arg2: memref<3x32xf32, #tpu.memory_space<vmem>>, %arg3: memref<1x32xf32, #tpu.memory_space<vmem>>, %arg4: memref<32x24xf32, #tpu.memory_space<vmem>>, %arg5: memref<1x24xf32, #tpu.memory_space<vmem>>, %arg6: memref<512x32xf32, #tpu.memory_space<vmem>>, %arg7: memref<512x3xf32, #tpu.memory_space<vmem>>) attributes {dimension_semantics = [#tpu.dimension_semantics<parallel>], iteration_bounds = array<i64: 4>, scalar_prefetch = 0 : i64, scratch_operands = 0 : i64, tpu.core_type = #tpu.core_type<tc>, window_params = [{transform_indices = @transform_0, window_bounds = array<i64: 512, 3>}, {pipeline_mode = #tpu.pipeline_mode<synchronous>, transform_indices = @transform_1, window_bounds = array<i64: 3, 32>}, {pipeline_mode = #tpu.pipeline_mode<synchronous>, transform_indices = @transform_2, window_bounds = array<i64: 1, 32>}, {pipeline_mode = #tpu.pipeline_mode<synchronous>, transform_indices = @transform_3, window_bounds = array<i64: 32, 24>}, {pipeline_mode = #tpu.pipeline_mode<synchronous>, transform_indices = @transform_4, window_bounds = array<i64: 1, 24>}, {transform_indices = @transform_5, window_bounds = array<i64: 512, 32>}, {transform_indices = @transform_6, window_bounds = array<i64: 512, 3>}]} {
    %c0 = arith.constant 0 : index
    %c0_0 = arith.constant 0 : index
    %0 = vector.load %arg1[%c0, %c0_0] : memref<512x3xf32, #tpu.memory_space<vmem>>, vector<512x3xf32>
    %c0_1 = arith.constant 0 : index
    %c0_2 = arith.constant 0 : index
    %1 = vector.load %arg2[%c0_1, %c0_2] : memref<3x32xf32, #tpu.memory_space<vmem>>, vector<3x32xf32>
    %cst = arith.constant dense<0.000000e+00> : vector<512x32xf32>
    %2 = tpu.matmul %0, %1, %cst {dimension_numbers = #tpu.dot_dimension_numbers<[1], [0], [0], [1], [0, 0, 1, 1], [], []>} : vector<512x3xf32>, vector<3x32xf32>, vector<512x32xf32> -> vector<512x32xf32>
    %c0_3 = arith.constant 0 : index
    %c0_4 = arith.constant 0 : index
    %3 = vector.load %arg3[%c0_3, %c0_4] : memref<1x32xf32, #tpu.memory_space<vmem>>, vector<1x32xf32>
    %4 = vector.broadcast %3 : vector<1x32xf32> to vector<512x32xf32>
    %5 = arith.addf %2, %4 : vector<512x32xf32>
    %cst_5 = arith.constant 0.000000e+00 : f32
    %6 = vector.broadcast %cst_5 : f32 to vector<512x32xf32>
    %7 = arith.cmpf ogt, %5, %6 : vector<512x32xf32>
    %cst_6 = arith.constant 1.000000e-01 : f32
    %8 = vector.broadcast %cst_6 : f32 to vector<512x32xf32>
    %9 = arith.mulf %8, %5 : vector<512x32xf32>
    %10 = arith.select %7, %5, %9 : vector<512x32xi1>, vector<512x32xf32>
    %c0_7 = arith.constant 0 : index
    %c0_8 = arith.constant 0 : index
    %11 = vector.load %arg6[%c0_7, %c0_8] : memref<512x32xf32, #tpu.memory_space<vmem>>, vector<512x32xf32>
    tpu.vector_store %arg6[%c0_7, %c0_8], %10 {strides = array<i32>} : memref<512x32xf32, #tpu.memory_space<vmem>>, vector<512x32xf32>,
    %c0_9 = arith.constant 0 : index
    %c0_10 = arith.constant 0 : index
    %12 = vector.load %arg4[%c0_9, %c0_10] : memref<32x24xf32, #tpu.memory_space<vmem>>, vector<32x24xf32>
    %cst_11 = arith.constant dense<0.000000e+00> : vector<512x24xf32>
    %13 = tpu.matmul %10, %12, %cst_11 {dimension_numbers = #tpu.dot_dimension_numbers<[1], [0], [0], [1], [0, 0, 1, 1], [], []>} : vector<512x32xf32>, vector<32x24xf32>, vector<512x24xf32> -> vector<512x24xf32>
    %c0_12 = arith.constant 0 : index
    %c0_13 = arith.constant 0 : index
    %14 = vector.load %arg5[%c0_12, %c0_13] : memref<1x24xf32, #tpu.memory_space<vmem>>, vector<1x24xf32>
    %15 = vector.broadcast %14 : vector<1x24xf32> to vector<512x24xf32>
    %16 = arith.addf %13, %15 : vector<512x24xf32>
    %cst_14 = arith.constant 0.000000e+00 : f32
    %17 = vector.broadcast %cst_14 : f32 to vector<512x24xf32>
    %18 = arith.cmpf ogt, %16, %17 : vector<512x24xf32>
    %19 = arith.extui %18 : vector<512x24xi1> to vector<512x24xi32>
    %20 = arith.sitofp %19 : vector<512x24xi32> to vector<512x24xf32>
    %21 = vector.extract_strided_slice %20 {offsets = [0, 0], sizes = [512, 1], strides = [1, 1]} : vector<512x24xf32> to vector<512x1xf32>
    %c0_15 = arith.constant 0 : index
    %c0_16 = arith.constant 0 : index
    %22 = vector.load %arg7[%c0_15, %c0_16] : memref<512x3xf32, #tpu.memory_space<vmem>>, vector<512x1xf32>
    tpu.vector_store %arg7[%c0_15, %c0_16], %21 {strides = array<i32>} : memref<512x3xf32, #tpu.memory_space<vmem>>, vector<512x1xf32>,
    %23 = vector.extract_strided_slice %20 {offsets = [0, 8], sizes = [512, 1], strides = [1, 1]} : vector<512x24xf32> to vector<512x1xf32>
    %c0_17 = arith.constant 0 : index
    %c1 = arith.constant 1 : index
    %24 = vector.load %arg7[%c0_17, %c1] : memref<512x3xf32, #tpu.memory_space<vmem>>, vector<512x1xf32>
    tpu.vector_store %arg7[%c0_17, %c1], %23 {strides = array<i32>} : memref<512x3xf32, #tpu.memory_space<vmem>>, vector<512x1xf32>,
    %25 = vector.extract_strided_slice %20 {offsets = [0, 16], sizes = [512, 1], strides = [1, 1]} : vector<512x24xf32> to vector<512x1xf32>
    %c0_18 = arith.constant 0 : index
    %c2 = arith.constant 2 : index
    %26 = vector.load %arg7[%c0_18, %c2] : memref<512x3xf32, #tpu.memory_space<vmem>>, vector<512x1xf32>
    tpu.vector_store %arg7[%c0_18, %c2], %25 {strides = array<i32>} : memref<512x3xf32, #tpu.memory_space<vmem>>, vector<512x1xf32>,
    return
  }
  func.func @transform_0(%arg0: i32) -> (i32, i32) {
    %c0_i32 = arith.constant 0 : i32
    %c0_i32_0 = arith.constant 0 : i32
    return %arg0, %c0_i32 : i32, i32
  }
  func.func @transform_1(%arg0: i32) -> (i32, i32) {
    %c0_i32 = arith.constant 0 : i32
    %c0_i32_0 = arith.constant 0 : i32
    %c0_i32_1 = arith.constant 0 : i32
    return %c0_i32, %c0_i32_0 : i32, i32
  }
  func.func @transform_2(%arg0: i32) -> (i32, i32) {
    %c0_i32 = arith.constant 0 : i32
    %c0_i32_0 = arith.constant 0 : i32
    %c0_i32_1 = arith.constant 0 : i32
    return %c0_i32, %c0_i32_0 : i32, i32
  }
  func.func @transform_3(%arg0: i32) -> (i32, i32) {
    %c0_i32 = arith.constant 0 : i32
    %c0_i32_0 = arith.constant 0 : i32
    %c0_i32_1 = arith.constant 0 : i32
    return %c0_i32, %c0_i32_0 : i32, i32
  }
  func.func @transform_4(%arg0: i32) -> (i32, i32) {
    %c0_i32 = arith.constant 0 : i32
    %c0_i32_0 = arith.constant 0 : i32
    %c0_i32_1 = arith.constant 0 : i32
    return %c0_i32, %c0_i32_0 : i32, i32
  }
  func.func @transform_5(%arg0: i32) -> (i32, i32) {
    %c0_i32 = arith.constant 0 : i32
    %c0_i32_0 = arith.constant 0 : i32
    return %arg0, %c0_i32 : i32, i32
  }
  func.func @transform_6(%arg0: i32) -> (i32, i32) {
    %c0_i32 = arith.constant 0 : i32
    %c0_i32_0 = arith.constant 0 : i32
    return %arg0, %c0_i32 : i32, i32
  }
}

module attributes {stable_mosaic.version = 11 : i64} {
  func.func @_scale_kernel(%arg0: i32, %arg1: memref<512x32xf32, #tpu.memory_space<vmem>>, %arg2: memref<32x32xf32, #tpu.memory_space<vmem>>, %arg3: memref<1x32xf32, #tpu.memory_space<vmem>>, %arg4: memref<32x24xf32, #tpu.memory_space<vmem>>, %arg5: memref<1x24xf32, #tpu.memory_space<vmem>>, %arg6: memref<512x32xf32, #tpu.memory_space<vmem>>, %arg7: memref<512x3xf32, #tpu.memory_space<vmem>>) attributes {dimension_semantics = [#tpu.dimension_semantics<parallel>], iteration_bounds = array<i64: 1>, scalar_prefetch = 0 : i64, scratch_operands = 0 : i64, tpu.core_type = #tpu.core_type<tc>, window_params = [{transform_indices = @transform_0, window_bounds = array<i64: 512, 32>}, {pipeline_mode = #tpu.pipeline_mode<synchronous>, transform_indices = @transform_1, window_bounds = array<i64: 32, 32>}, {pipeline_mode = #tpu.pipeline_mode<synchronous>, transform_indices = @transform_2, window_bounds = array<i64: 1, 32>}, {pipeline_mode = #tpu.pipeline_mode<synchronous>, transform_indices = @transform_3, window_bounds = array<i64: 32, 24>}, {pipeline_mode = #tpu.pipeline_mode<synchronous>, transform_indices = @transform_4, window_bounds = array<i64: 1, 24>}, {transform_indices = @transform_5, window_bounds = array<i64: 512, 32>}, {transform_indices = @transform_6, window_bounds = array<i64: 512, 3>}]} {
    %c0 = arith.constant 0 : index
    %c0_0 = arith.constant 0 : index
    %0 = vector.load %arg1[%c0, %c0_0] : memref<512x32xf32, #tpu.memory_space<vmem>>, vector<512x32xf32>
    %c0_1 = arith.constant 0 : index
    %c0_2 = arith.constant 0 : index
    %1 = vector.load %arg2[%c0_1, %c0_2] : memref<32x32xf32, #tpu.memory_space<vmem>>, vector<32x32xf32>
    %cst = arith.constant dense<0.000000e+00> : vector<512x32xf32>
    %2 = tpu.matmul %0, %1, %cst {dimension_numbers = #tpu.dot_dimension_numbers<[1], [0], [0], [1], [0, 0, 1, 1], [], []>} : vector<512x32xf32>, vector<32x32xf32>, vector<512x32xf32> -> vector<512x32xf32>
    %c0_3 = arith.constant 0 : index
    %c0_4 = arith.constant 0 : index
    %3 = vector.load %arg3[%c0_3, %c0_4] : memref<1x32xf32, #tpu.memory_space<vmem>>, vector<1x32xf32>
    %4 = vector.broadcast %3 : vector<1x32xf32> to vector<512x32xf32>
    %5 = arith.addf %2, %4 : vector<512x32xf32>
    %cst_5 = arith.constant 0.000000e+00 : f32
    %6 = vector.broadcast %cst_5 : f32 to vector<512x32xf32>
    %7 = arith.cmpf ogt, %5, %6 : vector<512x32xf32>
    %cst_6 = arith.constant 1.000000e-01 : f32
    %8 = vector.broadcast %cst_6 : f32 to vector<512x32xf32>
    %9 = arith.mulf %8, %5 : vector<512x32xf32>
    %10 = arith.select %7, %5, %9 : vector<512x32xi1>, vector<512x32xf32>
    %c0_7 = arith.constant 0 : index
    %c0_8 = arith.constant 0 : index
    %11 = vector.load %arg6[%c0_7, %c0_8] : memref<512x32xf32, #tpu.memory_space<vmem>>, vector<512x32xf32>
    tpu.vector_store %arg6[%c0_7, %c0_8], %10 {strides = array<i32>} : memref<512x32xf32, #tpu.memory_space<vmem>>, vector<512x32xf32>,
    %c0_9 = arith.constant 0 : index
    %c0_10 = arith.constant 0 : index
    %12 = vector.load %arg4[%c0_9, %c0_10] : memref<32x24xf32, #tpu.memory_space<vmem>>, vector<32x24xf32>
    %cst_11 = arith.constant dense<0.000000e+00> : vector<512x24xf32>
    %13 = tpu.matmul %10, %12, %cst_11 {dimension_numbers = #tpu.dot_dimension_numbers<[1], [0], [0], [1], [0, 0, 1, 1], [], []>} : vector<512x32xf32>, vector<32x24xf32>, vector<512x24xf32> -> vector<512x24xf32>
    %c0_12 = arith.constant 0 : index
    %c0_13 = arith.constant 0 : index
    %14 = vector.load %arg5[%c0_12, %c0_13] : memref<1x24xf32, #tpu.memory_space<vmem>>, vector<1x24xf32>
    %15 = vector.broadcast %14 : vector<1x24xf32> to vector<512x24xf32>
    %16 = arith.addf %13, %15 : vector<512x24xf32>
    %cst_14 = arith.constant 0.000000e+00 : f32
    %17 = vector.broadcast %cst_14 : f32 to vector<512x24xf32>
    %18 = arith.cmpf ogt, %16, %17 : vector<512x24xf32>
    %19 = arith.extui %18 : vector<512x24xi1> to vector<512x24xi32>
    %20 = arith.sitofp %19 : vector<512x24xi32> to vector<512x24xf32>
    %21 = vector.extract_strided_slice %20 {offsets = [0, 0], sizes = [512, 1], strides = [1, 1]} : vector<512x24xf32> to vector<512x1xf32>
    %c0_15 = arith.constant 0 : index
    %c0_16 = arith.constant 0 : index
    %22 = vector.load %arg7[%c0_15, %c0_16] : memref<512x3xf32, #tpu.memory_space<vmem>>, vector<512x1xf32>
    tpu.vector_store %arg7[%c0_15, %c0_16], %21 {strides = array<i32>} : memref<512x3xf32, #tpu.memory_space<vmem>>, vector<512x1xf32>,
    %23 = vector.extract_strided_slice %20 {offsets = [0, 8], sizes = [512, 1], strides = [1, 1]} : vector<512x24xf32> to vector<512x1xf32>
    %c0_17 = arith.constant 0 : index
    %c1 = arith.constant 1 : index
    %24 = vector.load %arg7[%c0_17, %c1] : memref<512x3xf32, #tpu.memory_space<vmem>>, vector<512x1xf32>
    tpu.vector_store %arg7[%c0_17, %c1], %23 {strides = array<i32>} : memref<512x3xf32, #tpu.memory_space<vmem>>, vector<512x1xf32>,
    %25 = vector.extract_strided_slice %20 {offsets = [0, 16], sizes = [512, 1], strides = [1, 1]} : vector<512x24xf32> to vector<512x1xf32>
    %c0_18 = arith.constant 0 : index
    %c2 = arith.constant 2 : index
    %26 = vector.load %arg7[%c0_18, %c2] : memref<512x3xf32, #tpu.memory_space<vmem>>, vector<512x1xf32>
    tpu.vector_store %arg7[%c0_18, %c2], %25 {strides = array<i32>} : memref<512x3xf32, #tpu.memory_space<vmem>>, vector<512x1xf32>,
    return
  }
  func.func @transform_0(%arg0: i32) -> (i32, i32) {
    %c0_i32 = arith.constant 0 : i32
    %c0_i32_0 = arith.constant 0 : i32
    return %arg0, %c0_i32 : i32, i32
  }
  func.func @transform_1(%arg0: i32) -> (i32, i32) {
    %c0_i32 = arith.constant 0 : i32
    %c0_i32_0 = arith.constant 0 : i32
    %c0_i32_1 = arith.constant 0 : i32
    return %c0_i32, %c0_i32_0 : i32, i32
  }
  func.func @transform_2(%arg0: i32) -> (i32, i32) {
    %c0_i32 = arith.constant 0 : i32
    %c0_i32_0 = arith.constant 0 : i32
    %c0_i32_1 = arith.constant 0 : i32
    return %c0_i32, %c0_i32_0 : i32, i32
  }
  func.func @transform_3(%arg0: i32) -> (i32, i32) {
    %c0_i32 = arith.constant 0 : i32
    %c0_i32_0 = arith.constant 0 : i32
    %c0_i32_1 = arith.constant 0 : i32
    return %c0_i32, %c0_i32_0 : i32, i32
  }
  func.func @transform_4(%arg0: i32) -> (i32, i32) {
    %c0_i32 = arith.constant 0 : i32
    %c0_i32_0 = arith.constant 0 : i32
    %c0_i32_1 = arith.constant 0 : i32
    return %c0_i32, %c0_i32_0 : i32, i32
  }
  func.func @transform_5(%arg0: i32) -> (i32, i32) {
    %c0_i32 = arith.constant 0 : i32
    %c0_i32_0 = arith.constant 0 : i32
    return %arg0, %c0_i32 : i32, i32
  }
  func.func @transform_6(%arg0: i32) -> (i32, i32) {
    %c0_i32 = arith.constant 0 : i32
    %c0_i32_0 = arith.constant 0 : i32
    return %arg0, %c0_i32 : i32, i32
  }
}

module attributes {stable_mosaic.version = 11 : i64} {
  func.func @_scale_kernel(%arg0: i32, %arg1: memref<128x32xf32, #tpu.memory_space<vmem>>, %arg2: memref<32x32xf32, #tpu.memory_space<vmem>>, %arg3: memref<1x32xf32, #tpu.memory_space<vmem>>, %arg4: memref<32x24xf32, #tpu.memory_space<vmem>>, %arg5: memref<1x24xf32, #tpu.memory_space<vmem>>, %arg6: memref<128x32xf32, #tpu.memory_space<vmem>>, %arg7: memref<128x3xf32, #tpu.memory_space<vmem>>) attributes {dimension_semantics = [#tpu.dimension_semantics<parallel>], iteration_bounds = array<i64: 1>, scalar_prefetch = 0 : i64, scratch_operands = 0 : i64, tpu.core_type = #tpu.core_type<tc>, window_params = [{transform_indices = @transform_0, window_bounds = array<i64: 128, 32>}, {pipeline_mode = #tpu.pipeline_mode<synchronous>, transform_indices = @transform_1, window_bounds = array<i64: 32, 32>}, {pipeline_mode = #tpu.pipeline_mode<synchronous>, transform_indices = @transform_2, window_bounds = array<i64: 1, 32>}, {pipeline_mode = #tpu.pipeline_mode<synchronous>, transform_indices = @transform_3, window_bounds = array<i64: 32, 24>}, {pipeline_mode = #tpu.pipeline_mode<synchronous>, transform_indices = @transform_4, window_bounds = array<i64: 1, 24>}, {transform_indices = @transform_5, window_bounds = array<i64: 128, 32>}, {transform_indices = @transform_6, window_bounds = array<i64: 128, 3>}]} {
    %c0 = arith.constant 0 : index
    %c0_0 = arith.constant 0 : index
    %0 = vector.load %arg1[%c0, %c0_0] : memref<128x32xf32, #tpu.memory_space<vmem>>, vector<128x32xf32>
    %c0_1 = arith.constant 0 : index
    %c0_2 = arith.constant 0 : index
    %1 = vector.load %arg2[%c0_1, %c0_2] : memref<32x32xf32, #tpu.memory_space<vmem>>, vector<32x32xf32>
    %cst = arith.constant dense<0.000000e+00> : vector<128x32xf32>
    %2 = tpu.matmul %0, %1, %cst {dimension_numbers = #tpu.dot_dimension_numbers<[1], [0], [0], [1], [0, 0, 1, 1], [], []>} : vector<128x32xf32>, vector<32x32xf32>, vector<128x32xf32> -> vector<128x32xf32>
    %c0_3 = arith.constant 0 : index
    %c0_4 = arith.constant 0 : index
    %3 = vector.load %arg3[%c0_3, %c0_4] : memref<1x32xf32, #tpu.memory_space<vmem>>, vector<1x32xf32>
    %4 = vector.broadcast %3 : vector<1x32xf32> to vector<128x32xf32>
    %5 = arith.addf %2, %4 : vector<128x32xf32>
    %cst_5 = arith.constant 0.000000e+00 : f32
    %6 = vector.broadcast %cst_5 : f32 to vector<128x32xf32>
    %7 = arith.cmpf ogt, %5, %6 : vector<128x32xf32>
    %cst_6 = arith.constant 1.000000e-01 : f32
    %8 = vector.broadcast %cst_6 : f32 to vector<128x32xf32>
    %9 = arith.mulf %8, %5 : vector<128x32xf32>
    %10 = arith.select %7, %5, %9 : vector<128x32xi1>, vector<128x32xf32>
    %c0_7 = arith.constant 0 : index
    %c0_8 = arith.constant 0 : index
    %11 = vector.load %arg6[%c0_7, %c0_8] : memref<128x32xf32, #tpu.memory_space<vmem>>, vector<128x32xf32>
    tpu.vector_store %arg6[%c0_7, %c0_8], %10 {strides = array<i32>} : memref<128x32xf32, #tpu.memory_space<vmem>>, vector<128x32xf32>,
    %c0_9 = arith.constant 0 : index
    %c0_10 = arith.constant 0 : index
    %12 = vector.load %arg4[%c0_9, %c0_10] : memref<32x24xf32, #tpu.memory_space<vmem>>, vector<32x24xf32>
    %cst_11 = arith.constant dense<0.000000e+00> : vector<128x24xf32>
    %13 = tpu.matmul %10, %12, %cst_11 {dimension_numbers = #tpu.dot_dimension_numbers<[1], [0], [0], [1], [0, 0, 1, 1], [], []>} : vector<128x32xf32>, vector<32x24xf32>, vector<128x24xf32> -> vector<128x24xf32>
    %c0_12 = arith.constant 0 : index
    %c0_13 = arith.constant 0 : index
    %14 = vector.load %arg5[%c0_12, %c0_13] : memref<1x24xf32, #tpu.memory_space<vmem>>, vector<1x24xf32>
    %15 = vector.broadcast %14 : vector<1x24xf32> to vector<128x24xf32>
    %16 = arith.addf %13, %15 : vector<128x24xf32>
    %cst_14 = arith.constant 0.000000e+00 : f32
    %17 = vector.broadcast %cst_14 : f32 to vector<128x24xf32>
    %18 = arith.cmpf ogt, %16, %17 : vector<128x24xf32>
    %19 = arith.extui %18 : vector<128x24xi1> to vector<128x24xi32>
    %20 = arith.sitofp %19 : vector<128x24xi32> to vector<128x24xf32>
    %21 = vector.extract_strided_slice %20 {offsets = [0, 0], sizes = [128, 1], strides = [1, 1]} : vector<128x24xf32> to vector<128x1xf32>
    %c0_15 = arith.constant 0 : index
    %c0_16 = arith.constant 0 : index
    %22 = vector.load %arg7[%c0_15, %c0_16] : memref<128x3xf32, #tpu.memory_space<vmem>>, vector<128x1xf32>
    tpu.vector_store %arg7[%c0_15, %c0_16], %21 {strides = array<i32>} : memref<128x3xf32, #tpu.memory_space<vmem>>, vector<128x1xf32>,
    %23 = vector.extract_strided_slice %20 {offsets = [0, 8], sizes = [128, 1], strides = [1, 1]} : vector<128x24xf32> to vector<128x1xf32>
    %c0_17 = arith.constant 0 : index
    %c1 = arith.constant 1 : index
    %24 = vector.load %arg7[%c0_17, %c1] : memref<128x3xf32, #tpu.memory_space<vmem>>, vector<128x1xf32>
    tpu.vector_store %arg7[%c0_17, %c1], %23 {strides = array<i32>} : memref<128x3xf32, #tpu.memory_space<vmem>>, vector<128x1xf32>,
    %25 = vector.extract_strided_slice %20 {offsets = [0, 16], sizes = [128, 1], strides = [1, 1]} : vector<128x24xf32> to vector<128x1xf32>
    %c0_18 = arith.constant 0 : index
    %c2 = arith.constant 2 : index
    %26 = vector.load %arg7[%c0_18, %c2] : memref<128x3xf32, #tpu.memory_space<vmem>>, vector<128x1xf32>
    tpu.vector_store %arg7[%c0_18, %c2], %25 {strides = array<i32>} : memref<128x3xf32, #tpu.memory_space<vmem>>, vector<128x1xf32>,
    return
  }
  func.func @transform_0(%arg0: i32) -> (i32, i32) {
    %c0_i32 = arith.constant 0 : i32
    %c0_i32_0 = arith.constant 0 : i32
    return %arg0, %c0_i32 : i32, i32
  }
  func.func @transform_1(%arg0: i32) -> (i32, i32) {
    %c0_i32 = arith.constant 0 : i32
    %c0_i32_0 = arith.constant 0 : i32
    %c0_i32_1 = arith.constant 0 : i32
    return %c0_i32, %c0_i32_0 : i32, i32
  }
  func.func @transform_2(%arg0: i32) -> (i32, i32) {
    %c0_i32 = arith.constant 0 : i32
    %c0_i32_0 = arith.constant 0 : i32
    %c0_i32_1 = arith.constant 0 : i32
    return %c0_i32, %c0_i32_0 : i32, i32
  }
  func.func @transform_3(%arg0: i32) -> (i32, i32) {
    %c0_i32 = arith.constant 0 : i32
    %c0_i32_0 = arith.constant 0 : i32
    %c0_i32_1 = arith.constant 0 : i32
    return %c0_i32, %c0_i32_0 : i32, i32
  }
  func.func @transform_4(%arg0: i32) -> (i32, i32) {
    %c0_i32 = arith.constant 0 : i32
    %c0_i32_0 = arith.constant 0 : i32
    %c0_i32_1 = arith.constant 0 : i32
    return %c0_i32, %c0_i32_0 : i32, i32
  }
  func.func @transform_5(%arg0: i32) -> (i32, i32) {
    %c0_i32 = arith.constant 0 : i32
    %c0_i32_0 = arith.constant 0 : i32
    return %arg0, %c0_i32 : i32, i32
  }
  func.func @transform_6(%arg0: i32) -> (i32, i32) {
    %c0_i32 = arith.constant 0 : i32
    %c0_i32_0 = arith.constant 0 : i32
    return %arg0, %c0_i32 : i32, i32
  }
}

</mosaic_0001>

<bundles_post_ra>
// kernel: _detector_dense.10
= control target key start
LH: loop header
LB: loop body
LE: loop exit
PB: predicated region body
PF: predicated region fallthrough
CT: control target
= control target key end

     0   :  { %s704_s6 = smov 0   ;;  %s706_s7 = smov 0   ;;  %s949_s0 = inlined_call_operand.vmem [shape: f32[3,4,2048], index: 0, kind: input, shape index: {}]   ;;  %s950_s1 = inlined_call_operand.vmem [shape: f32[3,5,2048], index: 1, kind: output, shape index: {}]  }
   0x1   :  { %s708_s8 = smov 0  }
   0x2 LB: > { %s720_s9 = sadd.s32 4294967295, %s692_s8   ;;  %s723_s10 = sadd.s32 1, %s692_s8   ;;  %s692_s8 = sphi %s708_s8, %s956_s8   ;;  %s688_s7 = sphi %s706_s7, %s955_s7   ;;  %s684_s6 = sphi %s704_s6, %s954_s6  }
   0x3   : > { %s15_s11 = ssub.s32 %s692_s8, %s723_s10  ;;  %s18_s12 = sadd.s32 1, %s688_s7 }
   0x4   : > { %p16_p0 = scmp.eq.s32.totalorder %s15_s11, 0  ;;  %p25_p1 = scmp.ne.s32.totalorder %s688_s7, %s684_s6 }
   0x5   : > { %p26_p2 = scmp.eq.s32.totalorder %s692_s8, 0  ;;  %p55_p3 = scmp.eq.s32.totalorder %s720_s9, 3 }
   0x6   : > { %s733_s13 = scalar_select %p16_p0, %s688_s7, %s18_s12  }
   0x7   : > { %p27_p4 = por %p26_p2, %p25_p1  ;;  %p735_p5 = por %p55_p3, %p25_p1 }
   0x8   : > { %p602_p6 = scmp.ge.s32.totalorder %s692_s8, 4 }
   0xa   : > { %77 = sbr.rel (%p602_p6) target bundleno = 25 (0x19), region = 16 }
   0xf   : > { %80 = sbr.rel (!%p27_p4) target bundleno = 25 (0x19), region = 20  ;;  %s82_s15 = sand.u32 (%p27_p4), 1, %s688_s7  }
  0x10   : > { %s629_s16 = sshll.u32 (%p27_p4), %s692_s8, 4  ;;  %s631_s17 = smul.u32 (%p27_p4), 48, %s82_s15 }
  0x11   : > { %s87_s20 = scalar_lea.vmem (%p27_p4), %s949_s0, %s629_s16 }
  0x12   : > { %v100_v0 = vld [vmem:[%s87_s20] sm:$0xff] (%p27_p4)  ;;  %v102_v1 = vld [vmem:[%s87_s20 + $0x8] sm:$0xff] (%p27_p4)  ;;  %s84_s21 = scalar_lea.vmem (%p27_p4), [#allocation2], %s631_s17 }
  0x13   : > { %v104_v2 = vld [vmem:[%s87_s20 + $0x40] sm:$0xff] (%p27_p4)  ;;  %101 = vst [vmem:[%s84_s21] sm:$0xff] (%p27_p4), %v100_v0  ;;  %v106_v3 = vld [vmem:[%s87_s20 + $0x48] sm:$0xff] (%p27_p4) }
  0x14   : > { %103 = vst [vmem:[%s84_s21 + $0x8] sm:$0xff] %v102_v1  ;;  %v108_v4 = vld [vmem:[%s87_s20 + $0x80] sm:$0xff]  ;;  %v110_v5 = vld [vmem:[%s87_s20 + $0x88] sm:$0xff] }
  0x15   : > { %105 = vst [vmem:[%s84_s21 + $0x10] sm:$0xff] %v104_v2 }
  0x16   : > { %107 = vst [vmem:[%s84_s21 + $0x18] sm:$0xff] %v106_v3 }
  0x17   : > { %109 = vst [vmem:[%s84_s21 + $0x20] sm:$0xff] %v108_v4 }
  0x18   : > { %111 = vst [vmem:[%s84_s21 + $0x28] sm:$0xff] %v110_v5 }
  0x19 PF: > { %p605_p7 = scmp.ge.s32.totalorder %s692_s8, 1  ;;  %p116_p8 = scmp.lt.s32.totalorder %s692_s8, 5 }
  0x1b   : > { %p117_p9 = pnand %p605_p7, %p116_p8 }
  0x1c   : > { %s123_s22 = sand.u32 (!%p117_p9), 1, %s684_s6   ;;  %s606_s26 = sshll.u32 (!%p117_p9), %s720_s9, 9 }
  0x1d   : > { %120 = sbr.rel (%p117_p9) target bundleno = 117 (0x75), region = 43 }
  0x1e   : > { %s632_s23 = smul.u32 (!%p117_p9), 48, %s123_s22 }
  0x1f   : > { %s633_s25 = smul.u32 (!%p117_p9), 96, %s123_s22 }
  0x20   : > { %s125_s24 = scalar_lea.vmem (!%p117_p9), [#allocation2], %s632_s23 }
  0x21   : > { %s771_s27 = scalar_lea.vmem (!%p117_p9), [#allocation3], %s633_s25 }
  0x22   : > { %v748_v6 = vld [vmem:[%s125_s24] sm:$0xff]  ;;  %v750_v7 = vld [vmem:[%s125_s24 + $0x8] sm:$0xff]  ;;  %v754_v10 = vld [vmem:[%s125_s24 + $0x10] sm:$0xff]  ;;  %v144_v22 = vlaneseq  ;;  %v149_v34 = vstv %s606_s26  ;;  %vm233_vm1 = vcmask 1040384   ;;  %vm235_vm2 = vcmask 1042434   ;;  %s630_s28 = sshll.u32 (%p735_p5), %s720_s9, 5 }
  0x23   : > { %v218_v8 = vmul.f32 1.442695, %v748_v6  ;;  %v220_v9 = vmul.f32 1.442695, %v750_v7  ;;  %v756_v11 = vld [vmem:[%s125_s24 + $0x18] sm:$0xff]  ;;  %v758_v13 = vld [vmem:[%s125_s24 + $0x20] sm:$0xff]  ;;  %s495_s2 = scalar_lea.vmem (%p735_p5), %s950_s1, %s630_s28 }
  0x24   : > { %v331_v16 = vmul.f32 1.442695, %v754_v10  ;;  %v761_v17 = vld [vmem:[%s125_s24 + $0x28] sm:$0xff]  ;;  %v333_v19 = vmul.f32 1.442695, %v756_v11  ;;  %vm766_vm0 = vcmp.lt.s32.totalorder %v144_v22, 512 }
  0x25   : > { %658 = vpow2.f32 %v218_v8  ;;  %v427_v20 = vmul.f32 1.442695, %v758_v13  ;;  %v429_v21 = vmul.f32 1.442695, %v761_v17  ;;  %v145_v26 = vand.u32 127, %v144_v22 }
  0x26   : > { %660 = vpow2.f32 %v220_v9  ;;  %v187_v62 = vperm.slane %v748_v6, 4  ;;  %v188_v63 = vperm.slane %v750_v7, 0  ;;  %v189_v0 = vperm.slane %v750_v7, 4 }
  0x27   : > { %662 = vpow2.f32 %v331_v16  ;;  %v146_v30 = vadd.s32 128, %v145_v26  ;;  %v147_v31 = vadd.s32 256, %v145_v26  ;;  %v148_v32 = vadd.s32 384, %v145_v26 }
  0x28   : > { %664 = vpow2.f32 %v333_v19  ;;  %v150_v42 = vadd.s32 %v149_v34, %v145_v26  ;;  %vm237_vm3 = vcmask 1041408  }
  0x29   : > { %666 = vpow2.f32 %v427_v20  ;;  %v151_v36 = vadd.s32 %v149_v34, %v146_v30  ;;  %v152_v37 = vadd.s32 %v149_v34, %v147_v31  ;;  %v153_v38 = vadd.s32 %v149_v34, %v148_v32 }
  0x2a   : > { %668 = vpow2.f32 %v429_v21  ;;  %v158_v54 = vshra.s32 %v150_v42, 5  ;;  %v154_v57 = vand.u32 31, %v150_v42  ;;  %v166_v2 = vshra.s32 %v150_v42, 10 }
  0x2b   : > { %v659_v12 = vpop.eup %658  ;;  %v159_v43 = vshra.s32 %v151_v36, 5  ;;  %v160_v44 = vshra.s32 %v152_v37, 5  ;;  %v161_v48 = vshra.s32 %v153_v38, 5  ;;  %v155_v50 = vand.u32 31, %v151_v36 }
  0x2c   : > { %v661_v14 = vpop.eup %660  ;;  %v222_v15 = vmul.f32 4.0, %v659_v12  ;;  %v224_v24 = vmul.f32 5.0, %v659_v12  ;;  %v156_v51 = vand.u32 31, %v152_v37  ;;  %v157_v52 = vand.u32 31, %v153_v38 }
  0x2d   : > { %v223_v18 = vmul.f32 4.0, %v661_v14  ;;  %v225_v25 = vmul.f32 5.0, %v661_v14  ;;  %v663_v27 = vpop.eup %662  ;;  %v163_v55 = vand.u32 31, %v159_v43  ;;  %v164_v56 = vand.u32 31, %v160_v44 }
  0x2e   : > { %276 = vst [vmem:[#allocation1] sm:$0xff] %v222_v15  ;;  %v665_v29 = vpop.eup %664  ;;  %v335_v39 = vmul.f32 6.0, %v663_v27  ;;  %v776_v40 = vmul.f32 8.0, %v663_v27  ;;  %v788_v58 = vcvt.s32.f32 %v155_v50  ;;  %v790_v59 = vcvt.s32.f32 %v156_v51 }
  0x2f   : > { %277 = vst [vmem:[#allocation1 + $0x8] sm:$0xff] %v223_v18  ;;  %v667_v33 = vpop.eup %666  ;;  %v336_v41 = vmul.f32 6.0, %v665_v29  ;;  %v778_v45 = vmul.f32 8.0, %v665_v29  ;;  %v792_v60 = vcvt.s32.f32 %v157_v52  ;;  %v162_v1 = vand.u32 31, %v158_v54 }
  0x30   : > { %v669_v35 = vpop.eup %668  ;;  %v780_v46 = vmul.f32 9.0, %v667_v33  ;;  %v784_v49 = vmul.f32 12.0, %v667_v33  ;;  %v167_v3 = vshra.s32 %v151_v36, 10  ;;  %v168_v4 = vshra.s32 %v152_v37, 10 }
  0x31   : > { %v782_v47 = vmul.f32 9.0, %v669_v35  ;;  %v786_v53 = vmul.f32 12.0, %v669_v35  ;;  %v800_v5 = vcvt.s32.f32 %v154_v57  ;;  %v169_v8 = vshra.s32 %v153_v38, 10 }
  0x32   : > { %v178_v9 = vcvt.s32.f32 %v166_v2  ;;  %v179_v12 = vcvt.s32.f32 %v167_v3  ;;  %v180_v14 = vcvt.s32.f32 %v168_v4  ;;  %v186_v15 = vperm.slane %v748_v6, 0 }
  0x33   : > { %v181_v16 = vcvt.s32.f32 %v169_v8  ;;  %v195_v18 = vadd.f32 %v187_v62, %v788_v58  ;;  %v196_v19 = vadd.f32 %v188_v63, %v790_v59  ;;  %v197_v20 = vadd.f32 %v189_v0, %v792_v60 }
  0x34   : > { %v230_v21 = vrot.slane %v179_v12, 7  ;;  %v231_v22 = vrot.slane %v180_v14, 6  ;;  %v808_v32 = vcvt.s32.f32 %v162_v1  ;;  %v810_v33 = vcvt.s32.f32 %v163_v55 }
  0x35   : > { %v232_v26 = vrot.slane %v181_v16, 5  ;;  %v199_v27 = vmul.f32 2.0, %v195_v18  ;;  %v201_v29 = vmul.f32 2.0, %v197_v20  ;;  %v202_v42 = vperm.slane %v748_v6, 1 }
  0x36   : > { %v279_v28 = vld [vmem:[#allocation1 + $0x2] ss:$4 sm:$0xff]  ;;  %v234_v30 = vsel %vm233_vm1, %v178_v9, %v230_v21  ;;  %v203_v50 = vperm.slane %v748_v6, 5  ;;  %v204_v52 = vperm.slane %v750_v7, 1  ;;  %v205_v54 = vperm.slane %v750_v7, 5 }
  0x37   : > { %609 = vst.msk [vmem:[%s771_s27 + $0x3] ss:$8 sm:$0xf] %vm766_vm0, %v279_v28  ;;  %v200_v28 = vmul.f32 2.0, %v196_v19  ;;  %v236_v34 = vsel %vm235_vm2, %v231_v22, %v232_v26  ;;  %v250_v35 = vrot.slane %v199_v27, 7  ;;  %v252_v37 = vrot.slane %v201_v29, 5 }
  0x38   : > { %286 = vst [vmem:[#allocation1] sm:$0xff] %v224_v24  ;;  %v194_v24 = vadd.f32 %v186_v15, %v800_v5  ;;  %v238_v38 = vsel %vm237_vm3, %v234_v30, %v236_v34  ;;  %v210_v55 = vadd.f32 %v202_v42, %v808_v32  ;;  %v299_v57 = vperm.slane %v754_v10, 0 }
  0x39   : > { %287 = vst [vmem:[#allocation1 + $0x8] sm:$0xff] %v225_v25  ;;  %v165_v25 = vand.u32 31, %v161_v48  ;;  %v251_v36 = vrot.slane %v200_v28, 6  ;;  %v300_v6 = vperm.slane %v754_v10, 4  ;;  %v302_v0 = vperm.slane %v756_v11, 4 }
  0x3a   : > { %v198_v31 = vmul.f32 2.0, %v194_v24  ;;  %244 = vst.msk [vmem:[%s771_s27] ss:$8 sm:$0xf] %vm766_vm0, %v238_v38  ;;  %v214_v63 = vmul.f32 2.0, %v210_v55  ;;  %v307_v1 = vadd.f32 %v299_v57, %v800_v5  ;;  %v315_v9 = vperm.slane %v754_v10, 1 }
  0x3b   : > { %v254_v48 = vsel %vm235_vm2, %v251_v36, %v252_v37  ;;  %613 = vst.msk [vmem:[%s771_s27 + $0x20] ss:$8 sm:$0xf] %vm766_vm0, %v238_v38  ;;  %v308_v2 = vadd.f32 %v300_v6, %v788_v58  ;;  %v310_v8 = vadd.f32 %v302_v0, %v792_v60  ;;  %v316_v24 = vperm.slane %v754_v10, 5 }
  0x3c   : > { %v253_v44 = vsel %vm233_vm1, %v198_v31, %v250_v35  ;;  %620 = vst.msk [vmem:[%s771_s27 + $0x40] ss:$8 sm:$0xf] %vm766_vm0, %v238_v38  ;;  %v311_v14 = vmul.f32 2.0, %v307_v1  ;;  %v318_v29 = vperm.slane %v756_v11, 5  ;;  %v323_v35 = vadd.f32 %v315_v9, %v808_v32 }
  0x3d   : > { %v255_v51 = vsel %vm237_vm3, %v253_v44, %v254_v48  ;;  %v312_v15 = vmul.f32 2.0, %v308_v2  ;;  %v314_v20 = vmul.f32 2.0, %v310_v8  ;;  %v324_v36 = vadd.f32 %v316_v24, %v810_v33 }
  0x3e   : > { %607 = vst.msk [vmem:[%s771_s27 + $0x1] ss:$8 sm:$0xf] %vm766_vm0, %v255_v51  ;;  %v396_v48 = vperm.slane %v758_v13, 4  ;;  %v411_v57 = vperm.slane %v758_v13, 1  ;;  %v413_v2 = vperm.slane %v761_v17, 1 }
  0x3f   : > { %v346_v22 = vrot.slane %v312_v15, 7  ;;  %v348_v28 = vrot.slane %v314_v20, 5  ;;  %v328_v44 = vmul.f32 2.0, %v324_v36 }
  0x40   : > { %v289_v61 = vld [vmem:[#allocation1 + $0x3] ss:$4 sm:$0xff] }
  0x41   : > { %610 = vst.msk [vmem:[%s771_s27 + $0x4] ss:$8 sm:$0xf] %vm766_vm0, %v289_v61  ;;  %v301_v61 = vperm.slane %v756_v11, 0  ;;  %v349_v34 = vsel %vm233_vm1, %v311_v14, %v346_v22  ;;  %v360_v55 = vrot.slane %v328_v44, 7 }
  0x42   : > { %372 = vst [vmem:[#allocation1] sm:$0xff] %v335_v39  ;;  %v814_v39 = vcvt.s32.f32 %v164_v56  ;;  %v211_v56 = vadd.f32 %v203_v50, %v810_v33 }
  0x43   : > { %373 = vst [vmem:[#allocation1 + $0x8] sm:$0xff] %v336_v41  ;;  %v816_v41 = vcvt.s32.f32 %v165_v25  ;;  %v309_v3 = vadd.f32 %v301_v61, %v790_v59  ;;  %v317_v25 = vperm.slane %v756_v11, 1  ;;  %v395_v11 = vperm.slane %v758_v13, 0 }
  0x44   : > { %v212_v62 = vadd.f32 %v204_v52, %v814_v39  ;;  %v397_v52 = vperm.slane %v761_v17, 0  ;;  %v421_v9 = vadd.f32 %v413_v2, %v814_v39 }
  0x45   : > { %v213_v7 = vadd.f32 %v205_v54, %v816_v41  ;;  %v313_v19 = vmul.f32 2.0, %v309_v3  ;;  %v325_v37 = vadd.f32 %v317_v25, %v814_v39  ;;  %v326_v38 = vadd.f32 %v318_v29, %v816_v41 }
  0x46   : > { %v398_v54 = vperm.slane %v761_v17, 4  ;;  %v405_v61 = vadd.f32 %v397_v52, %v790_v59  ;;  %v414_v59 = vperm.slane %v761_v17, 5 }
  0x47   : > { %v217_v4 = vmul.f32 2.0, %v213_v7  ;;  %v347_v27 = vrot.slane %v313_v19, 6  ;;  %v329_v50 = vmul.f32 2.0, %v325_v37  ;;  %v330_v51 = vmul.f32 2.0, %v326_v38 }
  0x48   : > { %v422_v15 = vadd.f32 %v414_v59, %v816_v41 }
  0x49   : > { %v266_v18 = vrot.slane %v217_v4, 5  ;;  %v350_v10 = vsel %vm235_vm2, %v347_v27, %v348_v28  ;;  %v362_v6 = vrot.slane %v330_v51, 5 }
  0x4a   : > { %v375_v43 = vld [vmem:[#allocation1 + $0x2] ss:$4 sm:$0xff]  ;;  %v351_v42 = vsel %vm237_vm3, %v349_v34, %v350_v10  ;;  %v426_v39 = vmul.f32 2.0, %v422_v15 }
  0x4b   : > { %616 = vst.msk [vmem:[%s771_s27 + $0x23] ss:$8 sm:$0xf] %vm766_vm0, %v375_v43  ;;  %v327_v43 = vmul.f32 2.0, %v323_v35 }
  0x4c   : > { %382 = vst [vmem:[#allocation1] sm:$0xff] %v776_v40  ;;  %v215_v40 = vmul.f32 2.0, %v211_v56  ;;  %v404_v56 = vadd.f32 %v396_v48, %v788_v58  ;;  %v458_v41 = vrot.slane %v426_v39, 5 }
  0x4d   : > { %383 = vst [vmem:[#allocation1 + $0x8] sm:$0xff] %v778_v45  ;;  %v216_v45 = vmul.f32 2.0, %v212_v62  ;;  %v406_v62 = vadd.f32 %v398_v54, %v792_v60  ;;  %v363_v7 = vsel %vm233_vm1, %v327_v43, %v360_v55  ;;  %v419_v60 = vadd.f32 %v411_v57, %v808_v32 }
  0x4e   : > { %v264_v12 = vrot.slane %v215_v40, 7  ;;  %614 = vst.msk [vmem:[%s771_s27 + $0x21] ss:$8 sm:$0xf] %vm766_vm0, %v351_v42  ;;  %v408_v0 = vmul.f32 2.0, %v404_v56  ;;  %v409_v40 = vmul.f32 2.0, %v405_v61 }
  0x4f   : > { %v265_v16 = vrot.slane %v216_v45, 6  ;;  %v410_v1 = vmul.f32 2.0, %v406_v62  ;;  %v423_v32 = vmul.f32 2.0, %v419_v60 }
  0x50   : > { %v267_v21 = vsel %vm233_vm1, %v214_v63, %v264_v12  ;;  %v442_v45 = vrot.slane %v408_v0, 7  ;;  %v443_v4 = vrot.slane %v409_v40, 6 }
  0x51   : > { %v268_v26 = vsel %vm235_vm2, %v265_v16, %v266_v18  ;;  %v444_v8 = vrot.slane %v410_v1, 5  ;;  %v425_v18 = vmul.f32 2.0, %v421_v9 }
  0x52   : > { %v269_v31 = vsel %vm237_vm3, %v267_v21, %v268_v26 }
  0x53   : > { %608 = vst.msk [vmem:[%s771_s27 + $0x2] ss:$8 sm:$0xf] %vm766_vm0, %v269_v31  ;;  %v446_v17 = vsel %vm235_vm2, %v443_v4, %v444_v8  ;;  %v457_v20 = vrot.slane %v425_v18, 6 }
  0x54   : > { %v385_v30 = vld [vmem:[#allocation1 + $0x3] ss:$4 sm:$0xff] }
  0x55   : > { %617 = vst.msk [vmem:[%s771_s27 + $0x24] ss:$8 sm:$0xf] %vm766_vm0, %v385_v30  ;;  %v460_v22 = vsel %vm235_vm2, %v457_v20, %v458_v41 }
  0x56   : > { %468 = vst [vmem:[#allocation1] sm:$0xff] %v780_v46  ;;  %v403_v46 = vadd.f32 %v395_v11, %v800_v5  ;;  %v412_v5 = vperm.slane %v758_v13, 5 }
  0x57   : > { %469 = vst [vmem:[#allocation1 + $0x8] sm:$0xff] %v782_v47  ;;  %v361_v47 = vrot.slane %v329_v50, 6 }
  0x58   : > { %v407_v63 = vmul.f32 2.0, %v403_v46  ;;  %v420_v13 = vadd.f32 %v412_v5, %v810_v33 }
  0x59   : > { %v364_v58 = vsel %vm235_vm2, %v361_v47, %v362_v6 }
  0x5a   : > { %v365_v3 = vsel %vm237_vm3, %v363_v7, %v364_v58  ;;  %v445_v14 = vsel %vm233_vm1, %v407_v63, %v442_v45  ;;  %v424_v16 = vmul.f32 2.0, %v420_v13  ;;  %v510_v25 = vld [vmem:[%s771_s27 + $0x8] sm:$0xff] (%p735_p5)  ;;  %v512_v23 = vld [vmem:[%s771_s27 + $0x10] sm:$0xff] (%p735_p5)  ;;  %v514_v26 = vld [vmem:[%s771_s27 + $0x18] sm:$0xff] (%p735_p5) }
  0x5b   : > { %615 = vst.msk [vmem:[%s771_s27 + $0x22] ss:$8 sm:$0xf] %vm766_vm0, %v365_v3  ;;  %v447_v33 = vsel %vm237_vm3, %v445_v14, %v446_v17 }
  0x5c   : > { %v456_v19 = vrot.slane %v424_v16, 7  ;;  %621 = vst.msk [vmem:[%s771_s27 + $0x41] ss:$8 sm:$0xf] %vm766_vm0, %v447_v33 }
  0x5d   : > { %511 = vst [vmem:[%s495_s2 + $0x8] sm:$0xff] (%p735_p5), %v510_v25 }
  0x5e   : > { %v471_v12 = vld [vmem:[#allocation1 + $0x2] ss:$4 sm:$0xff]  ;;  %v459_v21 = vsel %vm233_vm1, %v423_v32, %v456_v19  ;;  %513 = vst [vmem:[%s495_s2 + $0x10] sm:$0xff] (%p735_p5), %v512_v23 }
  0x5f   : > { %623 = vst.msk [vmem:[%s771_s27 + $0x43] ss:$8 sm:$0xf] %vm766_vm0, %v471_v12  ;;  %v461_v24 = vsel %vm237_vm3, %v459_v21, %v460_v22 }
  0x60   : > { %478 = vst [vmem:[#allocation1] sm:$0xff] %v784_v49 }
  0x61   : > { %479 = vst [vmem:[#allocation1 + $0x8] sm:$0xff] %v786_v53  ;;  %v508_v53 = vld [vmem:[%s771_s27] sm:$0xff] (%p735_p5) }
  0x62   : > { %622 = vst.msk [vmem:[%s771_s27 + $0x42] ss:$8 sm:$0xf] %vm766_vm0, %v461_v24  ;;  %v516_v27 = vld [vmem:[%s771_s27 + $0x20] sm:$0xff] (%p735_p5)  ;;  %v518_v28 = vld [vmem:[%s771_s27 + $0x28] sm:$0xff] (%p735_p5)  ;;  %v520_v29 = vld [vmem:[%s771_s27 + $0x30] sm:$0xff] (%p735_p5) }
  0x63   : > { %509 = vst [vmem:[%s495_s2] sm:$0xff] (%p735_p5), %v508_v53  ;;  %v522_v30 = vld [vmem:[%s771_s27 + $0x38] sm:$0xff] (%p735_p5) }
  0x64   : > { %515 = vst [vmem:[%s495_s2 + $0x18] sm:$0xff] (%p735_p5), %v514_v26 }
  0x65   : > { %492 = sbr.rel (!%p735_p5) target bundleno = 117 (0x75), region = 51  ;;  %517 = vst [vmem:[%s495_s2 + $0x80] sm:$0xff] (%p735_p5), %v516_v27 }
  0x66   : > { %519 = vst [vmem:[%s495_s2 + $0x88] sm:$0xff] (%p735_p5), %v518_v28 }
  0x67   : > { %521 = vst [vmem:[%s495_s2 + $0x90] sm:$0xff] (%p735_p5), %v520_v29 }
  0x68   : > { %v481_v49 = vld [vmem:[#allocation1 + $0x3] ss:$4 sm:$0xff]  ;;  %523 = vst [vmem:[%s495_s2 + $0x98] sm:$0xff] (%p735_p5), %v522_v30 }
  0x69   : > { %624 = vst.msk [vmem:[%s771_s27 + $0x44] ss:$8 sm:$0xf] %vm766_vm0, %v481_v49 }
  0x70   : > { %v524_v31 = vld [vmem:[%s771_s27 + $0x40] sm:$0xff]  ;;  %v526_v34 = vld [vmem:[%s771_s27 + $0x48] sm:$0xff]  ;;  %v528_v35 = vld [vmem:[%s771_s27 + $0x50] sm:$0xff] }
  0x71   : > { %525 = vst [vmem:[%s495_s2 + $0x100] sm:$0xff] %v524_v31  ;;  %v530_v36 = vld [vmem:[%s771_s27 + $0x58] sm:$0xff] }
  0x72   : > { %527 = vst [vmem:[%s495_s2 + $0x108] sm:$0xff] %v526_v34 }
  0x73   : > { %529 = vst [vmem:[%s495_s2 + $0x110] sm:$0xff] %v528_v35 }
  0x74   : > { %531 = vst [vmem:[%s495_s2 + $0x118] sm:$0xff] %v530_v36 }
  0x75 PF: > { %p8_p10 = scmp.ge.s32.totalorder %s723_s10, 6   ;;  %s954_s6 = smov %s688_s7 }
  0x76   : > { %s955_s7 = smov %s733_s13  ;;  %s956_s8 = smov %s723_s10 }
  0x77   :  { %10 = sbr.rel (!%p8_p10) target bundleno = 2 (0x2), region = 127 }

// kernel: _detector_dense.9
= control target key start
LH: loop header
LB: loop body
LE: loop exit
PB: predicated region body
PF: predicated region fallthrough
CT: control target
= control target key end

     0   :  { %v9_v16 = vlaneseq  ;;  %vm98_vm1 = vcmask 1040384   ;;  %vm100_vm2 = vcmask 1042434   ;;  %vm102_vm3 = vcmask 1041408   ;;  %s621_s0 = inlined_call_operand.vmem [shape: f32[3,4,512], index: 0, kind: input, shape index: {}]   ;;  %s622_s1 = inlined_call_operand.vmem [shape: f32[3,5,512], index: 1, kind: output, shape index: {}]  }
   0x1   :  { %v406_v0 = vld [vmem:[%s621_s0] sm:$0xff]  ;;  %v411_v1 = vld [vmem:[%s621_s0 + $0x8] sm:$0xff]  ;;  %v418_v4 = vld [vmem:[%s621_s0 + $0x10] sm:$0xff] }
   0x2   :  { %v83_v2 = vmul.f32 1.442695, %v406_v0  ;;  %v85_v3 = vmul.f32 1.442695, %v411_v1  ;;  %v423_v5 = vld [vmem:[%s621_s0 + $0x18] sm:$0xff]  ;;  %v428_v7 = vld [vmem:[%s621_s0 + $0x20] sm:$0xff] }
   0x3   :  { %v196_v10 = vmul.f32 1.442695, %v418_v4  ;;  %v434_v11 = vld [vmem:[%s621_s0 + $0x28] sm:$0xff]  ;;  %v198_v13 = vmul.f32 1.442695, %v423_v5  ;;  %vm439_vm0 = vcmp.lt.s32.totalorder %v9_v16, 512 }
   0x4   :  { %381 = vpow2.f32 %v83_v2  ;;  %v292_v14 = vmul.f32 1.442695, %v428_v7  ;;  %v294_v15 = vmul.f32 1.442695, %v434_v11  ;;  %v10_v23 = vand.u32 127, %v9_v16 }
   0x5   :  { %383 = vpow2.f32 %v85_v3  ;;  %v52_v51 = vperm.slane %v406_v0, 4  ;;  %v53_v52 = vperm.slane %v411_v1, 0  ;;  %v54_v53 = vperm.slane %v411_v1, 4 }
   0x6   :  { %385 = vpow2.f32 %v196_v10  ;;  %v11_v26 = vadd.s32 128, %v10_v23  ;;  %v12_v27 = vadd.s32 256, %v10_v23  ;;  %v13_v28 = vadd.s32 384, %v10_v23 }
   0x7   :  { %387 = vpow2.f32 %v198_v13  ;;  %v23_v43 = vshra.s32 %v10_v23, 4  ;;  %v19_v46 = vand.u32 15, %v10_v23  ;;  %v31_v55 = vshra.s32 %v10_v23, 8 }
   0x8   :  { %389 = vpow2.f32 %v292_v14  ;;  %v24_v32 = vshra.s32 %v11_v26, 4  ;;  %v25_v33 = vshra.s32 %v12_v27, 4  ;;  %v26_v37 = vshra.s32 %v13_v28, 4 }
   0x9   :  { %391 = vpow2.f32 %v294_v15  ;;  %v20_v39 = vand.u32 15, %v11_v26  ;;  %v21_v40 = vand.u32 15, %v12_v27  ;;  %v22_v41 = vand.u32 15, %v13_v28 }
   0xa   :  { %v382_v6 = vpop.eup %381  ;;  %v28_v44 = vand.u32 15, %v24_v32  ;;  %v29_v45 = vand.u32 15, %v25_v33  ;;  %v27_v54 = vand.u32 15, %v23_v43  ;;  %v32_v56 = vshra.s32 %v11_v26, 8 }
   0xb   :  { %v384_v8 = vpop.eup %383  ;;  %v87_v9 = vmul.f32 8.0, %v382_v6  ;;  %v89_v18 = vmul.f32 10.0, %v382_v6  ;;  %v460_v47 = vcvt.s32.f32 %v20_v39  ;;  %v462_v48 = vcvt.s32.f32 %v21_v40 }
   0xc   :  { %v88_v12 = vmul.f32 8.0, %v384_v8  ;;  %v90_v19 = vmul.f32 10.0, %v384_v8  ;;  %v386_v20 = vpop.eup %385  ;;  %v464_v49 = vcvt.s32.f32 %v22_v41  ;;  %v33_v57 = vshra.s32 %v12_v27, 8 }
   0xd   :  { %141 = vst [vmem:[#allocation1] sm:$0xff] %v87_v9  ;;  %v388_v22 = vpop.eup %387  ;;  %v200_v29 = vmul.f32 12.0, %v386_v20  ;;  %v448_v31 = vmul.f32 16.0, %v386_v20  ;;  %v474_v58 = vcvt.s32.f32 %v19_v46  ;;  %v34_v59 = vshra.s32 %v13_v28, 8 }
   0xe   :  { %142 = vst [vmem:[#allocation1 + $0x8] sm:$0xff] %v88_v12  ;;  %v390_v24 = vpop.eup %389  ;;  %v201_v30 = vmul.f32 12.0, %v388_v22  ;;  %v450_v34 = vmul.f32 16.0, %v388_v22  ;;  %v43_v60 = vcvt.s32.f32 %v31_v55  ;;  %v44_v61 = vcvt.s32.f32 %v32_v56 }
   0xf   :  { %v392_v25 = vpop.eup %391  ;;  %v452_v35 = vmul.f32 18.0, %v390_v24  ;;  %v456_v38 = vmul.f32 24.0, %v390_v24  ;;  %v45_v62 = vcvt.s32.f32 %v33_v57  ;;  %v51_v63 = vperm.slane %v406_v0, 0 }
  0x10   :  { %v454_v36 = vmul.f32 18.0, %v392_v25  ;;  %v458_v42 = vmul.f32 24.0, %v392_v25  ;;  %v46_v2 = vcvt.s32.f32 %v34_v59  ;;  %v60_v3 = vadd.f32 %v52_v51, %v460_v47 }
  0x11   :  { %v61_v6 = vadd.f32 %v53_v52, %v462_v48  ;;  %v62_v8 = vadd.f32 %v54_v53, %v464_v49  ;;  %v95_v9 = vrot.slane %v44_v61, 7  ;;  %v96_v10 = vrot.slane %v45_v62, 6 }
  0x12   :  { %v59_v12 = vadd.f32 %v51_v63, %v474_v58  ;;  %v30_v13 = vand.u32 15, %v26_v37  ;;  %v97_v14 = vrot.slane %v46_v2, 5  ;;  %v64_v15 = vmul.f32 4.0, %v60_v3 }
  0x13   :  { %v65_v16 = vmul.f32 4.0, %v61_v6  ;;  %v484_v22 = vcvt.s32.f32 %v28_v44  ;;  %v488_v28 = vcvt.s32.f32 %v29_v45  ;;  %v68_v39 = vperm.slane %v406_v0, 5 }
  0x14   :  { %v63_v20 = vmul.f32 4.0, %v59_v12  ;;  %v101_v23 = vsel %vm100_vm2, %v96_v10, %v97_v14  ;;  %v115_v24 = vrot.slane %v64_v15, 7  ;;  %v69_v41 = vperm.slane %v411_v1, 1 }
  0x15   :  { %v144_v21 = vld [vmem:[#allocation1 + $0x2] ss:$4 sm:$0xff]  ;;  %v116_v25 = vrot.slane %v65_v16, 6  ;;  %v70_v43 = vperm.slane %v411_v1, 5  ;;  %v76_v45 = vadd.f32 %v68_v39, %v484_v22  ;;  %v165_v46 = vperm.slane %v418_v4, 4 }
  0x16   :  { %365 = vst.msk [vmem:[%s622_s1 + $0x3] ss:$8 sm:$0xf] %vm439_vm0, %v144_v21  ;;  %v482_v21 = vcvt.s32.f32 %v27_v54  ;;  %v118_v33 = vsel %vm98_vm1, %v63_v20, %v115_v24  ;;  %v77_v51 = vadd.f32 %v69_v41, %v488_v28  ;;  %v167_v1 = vperm.slane %v423_v5, 4 }
  0x17   :  { %151 = vst [vmem:[#allocation1] sm:$0xff] %v89_v18  ;;  %v66_v18 = vmul.f32 4.0, %v62_v8  ;;  %v173_v55 = vadd.f32 %v165_v46, %v460_v47  ;;  %v181_v12 = vperm.slane %v418_v4, 5  ;;  %v262_v41 = vperm.slane %v434_v11, 0 }
  0x18   :  { %152 = vst [vmem:[#allocation1 + $0x8] sm:$0xff] %v90_v19  ;;  %v99_v19 = vsel %vm98_vm1, %v43_v60, %v95_v9  ;;  %v81_v56 = vmul.f32 4.0, %v77_v51  ;;  %v175_v59 = vadd.f32 %v167_v1, %v464_v49  ;;  %v180_v60 = vperm.slane %v418_v4, 1 }
  0x19   :  { %v117_v26 = vrot.slane %v66_v18, 5  ;;  %v103_v27 = vsel %vm102_vm3, %v99_v19, %v101_v23  ;;  %v177_v63 = vmul.f32 4.0, %v173_v55  ;;  %v183_v18 = vperm.slane %v423_v5, 5 }
  0x1a   :  { %109 = vst.msk [vmem:[%s622_s1] ss:$8 sm:$0xf] %vm439_vm0, %v103_v27  ;;  %v130_v2 = vrot.slane %v81_v56, 6  ;;  %v179_v8 = vmul.f32 4.0, %v175_v59  ;;  %v188_v24 = vadd.f32 %v180_v60, %v482_v21  ;;  %v278_v55 = vperm.slane %v434_v11, 1 }
  0x1b   :  { %v119_v37 = vsel %vm100_vm2, %v116_v25, %v117_v26  ;;  %369 = vst.msk [vmem:[%s622_s1 + $0x20] ss:$8 sm:$0xf] %vm439_vm0, %v103_v27  ;;  %v211_v10 = vrot.slane %v177_v63, 7  ;;  %v189_v25 = vadd.f32 %v181_v12, %v484_v22 }
  0x1c   :  { %v120_v40 = vsel %vm102_vm3, %v118_v33, %v119_v37  ;;  %376 = vst.msk [vmem:[%s622_s1 + $0x40] ss:$8 sm:$0xf] %vm439_vm0, %v103_v27  ;;  %v213_v16 = vrot.slane %v179_v8, 5  ;;  %v260_v27 = vperm.slane %v428_v7, 0  ;;  %v261_v37 = vperm.slane %v428_v7, 4 }
  0x1d   :  { %363 = vst.msk [vmem:[%s622_s1 + $0x1] ss:$8 sm:$0xf] %vm439_vm0, %v120_v40  ;;  %v193_v33 = vmul.f32 4.0, %v189_v25  ;;  %v286_v60 = vadd.f32 %v278_v55, %v488_v28 }
  0x1f   :  { %v154_v50 = vld [vmem:[#allocation1 + $0x3] ss:$4 sm:$0xff] }
  0x20   :  { %366 = vst.msk [vmem:[%s622_s1 + $0x4] ss:$8 sm:$0xf] %vm439_vm0, %v154_v50  ;;  %v166_v50 = vperm.slane %v423_v5, 0 }
  0x21   :  { %237 = vst [vmem:[#allocation1] sm:$0xff] %v200_v29  ;;  %v490_v29 = vcvt.s32.f32 %v30_v13  ;;  %v182_v13 = vperm.slane %v423_v5, 1 }
  0x22   :  { %238 = vst [vmem:[#allocation1 + $0x8] sm:$0xff] %v201_v30  ;;  %v67_v30 = vperm.slane %v406_v0, 1  ;;  %v164_v0 = vperm.slane %v418_v4, 0 }
  0x23   :  { %v78_v52 = vadd.f32 %v70_v43, %v490_v29  ;;  %v190_v26 = vadd.f32 %v182_v13, %v488_v28  ;;  %v191_v5 = vadd.f32 %v183_v18, %v490_v29  ;;  %v263_v43 = vperm.slane %v434_v11, 4 }
  0x24   :  { %v75_v44 = vadd.f32 %v67_v30, %v482_v21  ;;  %v172_v54 = vadd.f32 %v164_v0, %v474_v58  ;;  %v276_v0 = vperm.slane %v428_v7, 1 }
  0x25   :  { %v82_v57 = vmul.f32 4.0, %v78_v52  ;;  %v194_v39 = vmul.f32 4.0, %v190_v26  ;;  %v195_v40 = vmul.f32 4.0, %v191_v5  ;;  %v271_v51 = vadd.f32 %v263_v43, %v464_v49 }
  0x26   :  { %v79_v53 = vmul.f32 4.0, %v75_v44  ;;  %v176_v62 = vmul.f32 4.0, %v172_v54  ;;  %v268_v44 = vadd.f32 %v260_v27, %v474_v58 }
  0x27   :  { %v131_v3 = vrot.slane %v82_v57, 5  ;;  %v227_v46 = vrot.slane %v195_v40, 5  ;;  %v275_v54 = vmul.f32 4.0, %v271_v51  ;;  %v279_v57 = vperm.slane %v434_v11, 5 }
  0x28   :  { %v214_v23 = vsel %vm98_vm1, %v176_v62, %v211_v10 }
  0x29   :  { %v240_v32 = vld [vmem:[#allocation1 + $0x2] ss:$4 sm:$0xff]  ;;  %v133_v14 = vsel %vm100_vm2, %v130_v2, %v131_v3  ;;  %v309_v49 = vrot.slane %v275_v54, 5  ;;  %v287_v63 = vadd.f32 %v279_v57, %v490_v29  ;;  %v290_v3 = vmul.f32 4.0, %v286_v60 }
  0x2a   :  { %372 = vst.msk [vmem:[%s622_s1 + $0x23] ss:$8 sm:$0xf] %vm439_vm0, %v240_v32  ;;  %v192_v32 = vmul.f32 4.0, %v188_v24 }
  0x2b   :  { %247 = vst [vmem:[#allocation1] sm:$0xff] %v448_v31  ;;  %v80_v31 = vmul.f32 4.0, %v76_v45  ;;  %v269_v45 = vadd.f32 %v261_v37, %v460_v47  ;;  %v277_v47 = vperm.slane %v428_v7, 5  ;;  %v291_v28 = vmul.f32 4.0, %v287_v63 }
  0x2c   :  { %248 = vst [vmem:[#allocation1 + $0x8] sm:$0xff] %v450_v34  ;;  %v174_v34 = vadd.f32 %v166_v50, %v462_v48  ;;  %v270_v50 = vadd.f32 %v262_v41, %v462_v48  ;;  %v284_v48 = vadd.f32 %v276_v0, %v482_v21  ;;  %v322_v29 = vrot.slane %v290_v3, 6 }
  0x2d   :  { %v129_v61 = vrot.slane %v80_v31, 7  ;;  %v273_v58 = vmul.f32 4.0, %v269_v45  ;;  %v285_v59 = vadd.f32 %v277_v47, %v484_v22  ;;  %v323_v8 = vrot.slane %v291_v28, 5 }
  0x2e   :  { %v178_v6 = vmul.f32 4.0, %v174_v34  ;;  %v274_v31 = vmul.f32 4.0, %v270_v50  ;;  %v288_v21 = vmul.f32 4.0, %v284_v48 }
  0x2f   :  { %v132_v9 = vsel %vm98_vm1, %v79_v53, %v129_v61  ;;  %v272_v53 = vmul.f32 4.0, %v268_v44  ;;  %v307_v56 = vrot.slane %v273_v58, 7  ;;  %v289_v2 = vmul.f32 4.0, %v285_v59 }
  0x30   :  { %v212_v15 = vrot.slane %v178_v6, 6  ;;  %v134_v20 = vsel %vm102_vm3, %v132_v9, %v133_v14  ;;  %v308_v7 = vrot.slane %v274_v31, 6  ;;  %v325_v10 = vsel %vm100_vm2, %v322_v29, %v323_v8 }
  0x31   :  { %364 = vst.msk [vmem:[%s622_s1 + $0x2] ss:$8 sm:$0xf] %vm439_vm0, %v134_v20  ;;  %v310_v62 = vsel %vm98_vm1, %v272_v53, %v307_v56  ;;  %v321_v6 = vrot.slane %v289_v2, 7 }
  0x32   :  { %v215_v4 = vsel %vm100_vm2, %v212_v15, %v213_v16  ;;  %v311_v11 = vsel %vm100_vm2, %v308_v7, %v309_v49 }
  0x33   :  { %v250_v19 = vld [vmem:[#allocation1 + $0x3] ss:$4 sm:$0xff]  ;;  %v216_v30 = vsel %vm102_vm3, %v214_v23, %v215_v4  ;;  %v312_v22 = vsel %vm102_vm3, %v310_v62, %v311_v11  ;;  %v324_v9 = vsel %vm98_vm1, %v288_v21, %v321_v6 }
  0x34   :  { %373 = vst.msk [vmem:[%s622_s1 + $0x24] ss:$8 sm:$0xf] %vm439_vm0, %v250_v19 }
  0x35   :  { %333 = vst [vmem:[#allocation1] sm:$0xff] %v452_v35  ;;  %v225_v35 = vrot.slane %v193_v33, 7 }
  0x36   :  { %334 = vst [vmem:[#allocation1 + $0x8] sm:$0xff] %v454_v36  ;;  %v226_v36 = vrot.slane %v194_v39, 6 }
  0x37   :  { %370 = vst.msk [vmem:[%s622_s1 + $0x21] ss:$8 sm:$0xf] %vm439_vm0, %v216_v30  ;;  %v228_v52 = vsel %vm98_vm1, %v192_v32, %v225_v35 }
  0x38   :  { %v229_v1 = vsel %vm100_vm2, %v226_v36, %v227_v46  ;;  %377 = vst.msk [vmem:[%s622_s1 + $0x41] ss:$8 sm:$0xf] %vm439_vm0, %v312_v22 }
  0x39   :  { %v230_v34 = vsel %vm102_vm3, %v228_v52, %v229_v1 }
  0x3a   :  { %371 = vst.msk [vmem:[%s622_s1 + $0x22] ss:$8 sm:$0xf] %vm439_vm0, %v230_v34 }
  0x3d   :  { %v336_v61 = vld [vmem:[#allocation1 + $0x2] ss:$4 sm:$0xff] }
  0x3e   :  { %379 = vst.msk [vmem:[%s622_s1 + $0x43] ss:$8 sm:$0xf] %vm439_vm0, %v336_v61 }
  0x3f   :  { %343 = vst [vmem:[#allocation1] sm:$0xff] %v456_v38  ;;  %v326_v38 = vsel %vm102_vm3, %v324_v9, %v325_v10 }
  0x40   :  { %344 = vst [vmem:[#allocation1 + $0x8] sm:$0xff] %v458_v42 }
  0x41   :  { %378 = vst.msk [vmem:[%s622_s1 + $0x42] ss:$8 sm:$0xf] %vm439_vm0, %v326_v38 }
  0x47   :  { %v346_v42 = vld [vmem:[#allocation1 + $0x3] ss:$4 sm:$0xff] }
  0x48   :  { %380 = vst.msk [vmem:[%s622_s1 + $0x44] ss:$8 sm:$0xf] %vm439_vm0, %v346_v42 }

// kernel: _detector_dense.8
= control target key start
LH: loop header
LB: loop body
LE: loop exit
PB: predicated region body
PF: predicated region fallthrough
CT: control target
= control target key end

     0   :  { %v9_v0 = vlaneseq  ;;  %s152_s0 = inlined_call_operand.vmem [shape: f32[3,4,128], index: 0, kind: input, shape index: {}]   ;;  %s153_s1 = inlined_call_operand.vmem [shape: f32[3,5,128], index: 1, kind: output, shape index: {}]  }
   0x1   :  { %v20_v1 = vld [vmem:[%s152_s0] sm:$0xf]  ;;  %v70_v2 = vld [vmem:[%s152_s0 + $0x4] sm:$0xf]  ;;  %v76_v3 = vld [vmem:[%s152_s0 + $0x8] sm:$0xf] }
   0x2   :  { %v10_v4 = vand.u32 127, %v9_v0  ;;  %v25_v5 = vmul.f32 1.442695, %v20_v1  ;;  %v40_v6 = vmul.f32 1.442695, %v70_v2 }
   0x3   :  { %v56_v10 = vmul.f32 1.442695, %v76_v3 }
   0x4   :  { %v16_v7 = vshra.s32 %v10_v4, 6  ;;  %v13_v8 = vand.u32 7, %v10_v4  ;;  %82 = vpow2.f32 %v25_v5  ;;  %v14_v9 = vshra.s32 %v10_v4, 3 }
   0x5   :  { %84 = vpow2.f32 %v40_v6 }
   0x6   :  { %v19_v11 = vcvt.s32.f32 %v16_v7  ;;  %v17_v12 = vcvt.s32.f32 %v13_v8  ;;  %v15_v13 = vand.u32 7, %v14_v9  ;;  %86 = vpow2.f32 %v56_v10 }
   0x8   :  { %29 = vst [vmem:[%s153_s1] sm:$0x1] %v19_v11  ;;  %v21_v14 = vadd.f32 %v20_v1, %v17_v12  ;;  %v18_v15 = vcvt.s32.f32 %v15_v13  ;;  %v36_v16 = vadd.f32 %v70_v2, %v17_v12  ;;  %v52_v26 = vadd.f32 %v76_v3, %v17_v12 }
   0x9   :  { %71 = vst [vmem:[%s153_s1 + $0x8] sm:$0x1] %v19_v11 }
   0xa   :  { %v83_v17 = vpop.eup %82  ;;  %77 = vst [vmem:[%s153_s1 + $0x10] sm:$0x1] %v19_v11  ;;  %v22_v18 = vmul.f32 8.0, %v21_v14  ;;  %v23_v19 = vadd.f32 %v20_v1, %v18_v15  ;;  %v38_v20 = vadd.f32 %v70_v2, %v18_v15  ;;  %v37_v25 = vmul.f32 8.0, %v36_v16 }
   0xb   :  { %v85_v21 = vpop.eup %84  ;;  %v27_v22 = vmul.f32 14.0, %v83_v17  ;;  %v28_v23 = vmul.f32 18.0, %v83_v17  ;;  %v54_v28 = vadd.f32 %v76_v3, %v18_v15  ;;  %v53_v32 = vmul.f32 8.0, %v52_v26 }
   0xc   :  { %30 = vst [vmem:[%s153_s1 + $0x1] sm:$0x1] %v22_v18  ;;  %v24_v24 = vmul.f32 8.0, %v23_v19  ;;  %v39_v27 = vmul.f32 8.0, %v38_v20  ;;  %v42_v29 = vmul.f32 22.0, %v85_v21  ;;  %v87_v30 = vpop.eup %86  ;;  %v43_v31 = vmul.f32 30.0, %v85_v21 }
   0xd   :  { %32 = vst [vmem:[%s153_s1 + $0x1] sm:$0x4] %v27_v22  ;;  %v55_v33 = vmul.f32 8.0, %v54_v28  ;;  %v58_v34 = vmul.f32 36.0, %v87_v30  ;;  %v59_v35 = vmul.f32 42.0, %v87_v30 }
   0xe   :  { %31 = vst [vmem:[%s153_s1 + $0x1] sm:$0x2] %v24_v24 }
   0xf   :  { %33 = vst [vmem:[%s153_s1 + $0x1] sm:$0x8] %v28_v23 }
  0x10   :  { %72 = vst [vmem:[%s153_s1 + $0x9] sm:$0x1] %v37_v25 }
  0x11   :  { %73 = vst [vmem:[%s153_s1 + $0x9] sm:$0x2] %v39_v27 }
  0x12   :  { %74 = vst [vmem:[%s153_s1 + $0x9] sm:$0x4] %v42_v29 }
  0x13   :  { %75 = vst [vmem:[%s153_s1 + $0x9] sm:$0x8] %v43_v31 }
  0x14   :  { %78 = vst [vmem:[%s153_s1 + $0x11] sm:$0x1] %v53_v32 }
  0x15   :  { %79 = vst [vmem:[%s153_s1 + $0x11] sm:$0x2] %v55_v33 }
  0x16   :  { %80 = vst [vmem:[%s153_s1 + $0x11] sm:$0x4] %v58_v34 }
  0x17   :  { %81 = vst [vmem:[%s153_s1 + $0x11] sm:$0x8] %v59_v35 }

// kernel: _detector_dense.11
= control target key start
LH: loop header
LB: loop body
LE: loop exit
PB: predicated region body
PF: predicated region fallthrough
CT: control target
= control target key end

     0   :  { %s2928_s21 = smov 0   ;;  %s4061_s0 = inlined_call_operand.vmem [shape: f32[2048,3], index: 0, kind: input, shape index: {}]   ;;  %s4062_s1 = inlined_call_operand.vmem [shape: f32[3,32], index: 1, kind: input, shape index: {}]   ;;  %s4063_s2 = inlined_call_operand.vmem [shape: f32[1,32], index: 2, kind: input, shape index: {}]   ;;  %s4064_s3 = inlined_call_operand.vmem [shape: f32[32,24], index: 3, kind: input, shape index: {}]   ;;  %s4065_s4 = inlined_call_operand.vmem [shape: f32[1,24], index: 4, kind: input, shape index: {}]   ;;  %s4066_s5 = inlined_call_operand.vmem [shape: f32[2048,32], index: 5, kind: output, shape index: {0}]   ;;  %s4067_s6 = inlined_call_operand.vmem [shape: f32[2048,3], index: 6, kind: output, shape index: {1}]  }
   0x1 LB: > { %s2335_s22 = sadd.s32 4294967295, %s2888_s21   ;;  %p2339_p0 = scmp.ge.s32.totalorder %s2888_s21, 1  ;;  %s2888_s21 = sphi %s2928_s21, %s17_s21  }
   0x2   : > { %p216_p1 = scmp.lt.s32.totalorder %s2888_s21, 5 }
   0x4   : > { %p217_p2 = pnand %p2339_p0, %p216_p1 }
   0x5   : > { %s2340_s25 = sshll.u32 (!%p217_p2), %s2335_s22, 6 }
   0x6   : > { %220 = sbr.rel (%p217_p2) target bundleno = 915 (0x393), region = 40  ;;  %p252_p3 = scmp.lt.s32.totalorder (!%p217_p2), %s2340_s25, 255 }
   0xb   : > { %v333_v0 = vld [vmem:[%s4062_s1] sm:$0x7]  ;;  %vm531_vm0 = vcmask 1042432   ;;  %s4069_s25 = smov (!%p252_p3, %s2340_s25), 255  ;;  %vm338_vm1 = vcmask 23552   ;;  %v1004_v13 = vld [vmem:[%s4064_s3 + $0x18] sm:$0xff] }
   0xc   : > { %2346 = vmatpush.msk.msra.mxu0 %vm531_vm0, %v333_v0  ;;  %2541 = vmatpush.msk.msra.mxu3 %vm531_vm0, %v333_v0  ;;  %s2939_s26 = sshll.u32 %s4069_s25, 3  ;;  %v1003_v15 = vld [vmem:[%s4064_s3 + $0x10] sm:$0xff]  ;;  %v1002_v16 = vld [vmem:[%s4064_s3 + $0x8] sm:$0xff]  ;;  %v1001_v17 = vld [vmem:[%s4064_s3] sm:$0xff]  ;;  %vm936_vm3 = vcmask 261120   ;;  %s2891_s25 = smov 114  }
   0xd   : > { %s2945_s29 = scalar_lea.vmem %s4061_s0, %s2939_s26  ;;  %1213 = vmatpush.msra.mxu1 %v1004_v13  ;;  %2542 = vmatpush.msra.mxu2 %v1004_v13  ;;  %v2994_v21 = vld [vmem:[%s4063_s2] ss:$0 sm:$0xff]  ;;  %s3003_s18 = scalar_lea.vmem %s4066_s5, %s2939_s26 }
   0xe   : > { %v269_v1 = vld [vmem:[%s2945_s29] sm:$0xff]  ;;  %v270_v2 = vld [vmem:[%s2945_s29 + $0x8] sm:$0xff]  ;;  %v271_v3 = vld [vmem:[%s2945_s29 + $0x10] sm:$0xff]  ;;  %s3121_s24 = scalar_lea.vmem %s4067_s6, %s2939_s26  ;;  %s2892_s26 = smov 121  }
   0xf   : > { %2347 = vmatmul.msk.f32.vlgmr.msra.gmra.mxu0 %vm338_vm1, %v269_v1  ;;  %v272_v4 = vld [vmem:[%s2945_s29 + $0x18] sm:$0xff]  ;;  %v273_v5 = vld [vmem:[%s2945_s29 + $0x20] sm:$0xff]  ;;  %v274_v6 = vld [vmem:[%s2945_s29 + $0x28] sm:$0xff]  ;;  %1214 = vmatpush.msra.mxu1 %v1003_v15 }
  0x10   : > { %v275_v7 = vld [vmem:[%s2945_s29 + $0x30] sm:$0xff]  ;;  %v276_v8 = vld [vmem:[%s2945_s29 + $0x38] sm:$0xff]  ;;  %v277_v9 = vld [vmem:[%s2945_s29 + $0x40] sm:$0xff]  ;;  %2543 = vmatpush.msra.mxu2 %v1003_v15 }
  0x11   : > { %v278_v10 = vld [vmem:[%s2945_s29 + $0x48] sm:$0xff]  ;;  %v279_v11 = vld [vmem:[%s2945_s29 + $0x50] sm:$0xff]  ;;  %v280_v12 = vld [vmem:[%s2945_s29 + $0x58] sm:$0xff]  ;;  %1215 = vmatpush.msra.mxu1 %v1002_v16 }
  0x12   : > { %v281_v14 = vld [vmem:[%s2945_s29 + $0x60] sm:$0xff]  ;;  %2544 = vmatpush.msra.mxu2 %v1002_v16  ;;  %v282_v18 = vld [vmem:[%s2945_s29 + $0x68] sm:$0xff]  ;;  %v283_v19 = vld [vmem:[%s2945_s29 + $0x70] sm:$0xff] }
  0x13   : > { %1216 = vmatpush.msra.mxu1 %v1001_v17  ;;  %v284_v20 = vld [vmem:[%s2945_s29 + $0x78] sm:$0xff]  ;;  %v285_v23 = vld [vmem:[%s2945_s29 + $0x80] sm:$0xff]  ;;  %v286_v28 = vld [vmem:[%s2945_s29 + $0x88] sm:$0xff] }
  0x14   : > { %2545 = vmatpush.msra.mxu2 %v1001_v17  ;;  %v287_v33 = vld [vmem:[%s2945_s29 + $0x90] sm:$0xff]  ;;  %v288_v38 = vld [vmem:[%s2945_s29 + $0x98] sm:$0xff]  ;;  %v289_v43 = vld [vmem:[%s2945_s29 + $0xa0] sm:$0xff] }
  0x15   : > { %v290_v48 = vld [vmem:[%s2945_s29 + $0xa8] sm:$0xff]  ;;  %v291_v53 = vld [vmem:[%s2945_s29 + $0xb0] sm:$0xff]  ;;  %v292_v58 = vld [vmem:[%s2945_s29 + $0xb8] sm:$0xff] }
  0x16   : > { %v293_v63 = vld [vmem:[%s2945_s29 + $0xc0] sm:$0xff] }
  0x17   : > { %2348 = vmatmul.msk.f32.gmra.mxu0 %vm338_vm1, %v270_v2 }
  0x1f   : > { %2349 = vmatmul.msk.f32.gmra.mxu0 %vm338_vm1, %v271_v3 }
  0x27   : > { %2350 = vmatmul.msk.f32.gmra.mxu0 %vm338_vm1, %v272_v4  ;;  %v294_v4 = vld [vmem:[%s2945_s29 + $0xc8] sm:$0xff] }
  0x2f   : > { %2351 = vmatmul.msk.f32.gmra.mxu0 %vm338_vm1, %v273_v5 }
  0x37   : > { %2352 = vmatmul.msk.f32.gmra.mxu0 %vm338_vm1, %v274_v6 }
  0x3f   : > { %2353 = vmatmul.msk.f32.gmra.mxu0 %vm338_vm1, %v275_v7 }
  0x47   : > { %2354 = vmatmul.msk.f32.gmra.mxu0 %vm338_vm1, %v276_v8 }
  0x4f   : > { %2355 = vmatmul.msk.f32.gmra.mxu0 %vm338_vm1, %v277_v9  ;;  %v295_v9 = vld [vmem:[%s2945_s29 + $0xd0] sm:$0xff] }
  0x57   : > { %2356 = vmatmul.msk.f32.gmra.mxu0 %vm338_vm1, %v278_v10 }
  0x5f   : > { %2357 = vmatmul.msk.f32.gmra.mxu0 %vm338_vm1, %v279_v11 }
  0x67   : > { %2358 = vmatmul.msk.f32.gmra.mxu0 %vm338_vm1, %v280_v12 }
  0x6f   : > { %2359 = vmatmul.msk.f32.gmra.mxu0 %vm338_vm1, %v281_v14  ;;  %v296_v14 = vld [vmem:[%s2945_s29 + $0xd8] sm:$0xff] }
  0x77   : > { %2360 = vmatmul.msk.f32.gmra.mxu0 %vm338_vm1, %v282_v18 }
  0x7f   : > { %2361 = vmatmul.msk.f32.gmra.mxu0 %vm338_vm1, %v283_v19  ;;  %v297_v19 = vld [vmem:[%s2945_s29 + $0xe0] sm:$0xff] }
  0x87   : > { %2362 = vmatmul.msk.f32.gmra.mxu0 %vm338_vm1, %v284_v20 }
  0x8c   : > { %v552_v22 = vpop.f32.mrf.mxu0 }
  0x8d   : > { %v553_v24 = vadd.f32 %v2994_v21, %v552_v22  ;;  %v302_v22 = vld [vmem:[%s2945_s29 + $0x108] sm:$0xff] }
  0x8e   : > { %2380 = vmatmul.msk.f32.vlgmr.msra.gmra.mxu3 %vm338_vm1, %v302_v22 }
  0x8f   : > { %2363 = vmatmul.msk.f32.gmra.mxu0 %vm338_vm1, %v285_v23  ;;  %vm744_vm2 = vcmp.gt.f32.partialorder %v553_v24, 0.0  ;;  %v808_v25 = vmul.f32 0.1, %v553_v24 }
  0x91   : > { %v872_v26 = vsel %vm744_vm2, %v553_v24, %v808_v25 }
  0x92   : > { %937 = vst.msk [vmem:[%s3003_s18] sm:$0xff] %vm936_vm3, %v872_v26  ;;  %2411 = vmatmul.msk.f32.vlgmr.msra.gmra.mxu1 %vm936_vm3, %v872_v26  ;;  %v298_v26 = vld [vmem:[%s2945_s29 + $0xe8] sm:$0xff] }
  0x94   : > { %v555_v27 = vpop.f32.mrf.mxu0 }
  0x95   : > { %v556_v29 = vadd.f32 %v2994_v21, %v555_v27 }
  0x97   : > { %2364 = vmatmul.msk.f32.gmra.mxu0 %vm338_vm1, %v286_v28  ;;  %vm745_vm4 = vcmp.gt.f32.partialorder %v556_v29, 0.0  ;;  %v809_v30 = vmul.f32 0.1, %v556_v29  ;;  %v303_v28 = vld [vmem:[%s2945_s29 + $0x110] sm:$0xff] }
  0x98   : > { %2381 = vmatmul.msk.f32.gmra.mxu3 %vm338_vm1, %v303_v28 }
  0x99   : > { %v873_v31 = vsel %vm745_vm4, %v556_v29, %v809_v30 }
  0x9a   : > { %938 = vst.msk [vmem:[%s3003_s18 + $0x8] sm:$0xff] %vm936_vm3, %v873_v31  ;;  %2412 = vmatmul.msk.f32.gmra.mxu1 %vm936_vm3, %v873_v31 }
  0x9c   : > { %v558_v32 = vpop.f32.mrf.mxu0 }
  0x9d   : > { %v559_v34 = vadd.f32 %v2994_v21, %v558_v32  ;;  %v299_v32 = vld [vmem:[%s2945_s29 + $0xf0] sm:$0xff] }
  0x9f   : > { %2365 = vmatmul.msk.f32.gmra.mxu0 %vm338_vm1, %v287_v33  ;;  %vm746_vm5 = vcmp.gt.f32.partialorder %v559_v34, 0.0  ;;  %v810_v35 = vmul.f32 0.1, %v559_v34 }
  0xa1   : > { %v874_v36 = vsel %vm746_vm5, %v559_v34, %v810_v35  ;;  %v304_v34 = vld [vmem:[%s2945_s29 + $0x118] sm:$0xff] }
  0xa2   : > { %939 = vst.msk [vmem:[%s3003_s18 + $0x10] sm:$0xff] %vm936_vm3, %v874_v36  ;;  %2413 = vmatmul.msk.f32.gmra.mxu1 %vm936_vm3, %v874_v36  ;;  %2382 = vmatmul.msk.f32.gmra.mxu3 %vm338_vm1, %v304_v34 }
  0xa4   : > { %v561_v37 = vpop.f32.mrf.mxu0 }
  0xa5   : > { %v562_v39 = vadd.f32 %v2994_v21, %v561_v37 }
  0xa7   : > { %2366 = vmatmul.msk.f32.gmra.mxu0 %vm338_vm1, %v288_v38  ;;  %vm747_vm6 = vcmp.gt.f32.partialorder %v562_v39, 0.0  ;;  %v811_v40 = vmul.f32 0.1, %v562_v39  ;;  %v300_v38 = vld [vmem:[%s2945_s29 + $0xf8] sm:$0xff] }
  0xa9   : > { %v875_v41 = vsel %vm747_vm6, %v562_v39, %v811_v40  ;;  %v305_v40 = vld [vmem:[%s2945_s29 + $0x120] sm:$0xff]  ;;  %vm1602_vm6 = vcmask 7168  }
  0xaa   : > { %940 = vst.msk [vmem:[%s3003_s18 + $0x18] sm:$0xff] %vm936_vm3, %v875_v41  ;;  %2414 = vmatmul.msk.f32.gmra.mxu1 %vm936_vm3, %v875_v41  ;;  %2383 = vmatmul.msk.f32.gmra.mxu3 %vm338_vm1, %v305_v40 }
  0xac   : > { %v564_v42 = vpop.f32.mrf.mxu0 }
  0xad   : > { %v565_v44 = vadd.f32 %v2994_v21, %v564_v42 }
  0xaf   : > { %2367 = vmatmul.msk.f32.gmra.mxu0 %vm338_vm1, %v289_v43  ;;  %vm748_vm7 = vcmp.gt.f32.partialorder %v565_v44, 0.0  ;;  %v812_v45 = vmul.f32 0.1, %v565_v44 }
  0xb1   : > { %v876_v46 = vsel %vm748_vm7, %v565_v44, %v812_v45  ;;  %v301_v44 = vld [vmem:[%s2945_s29 + $0x100] sm:$0xff] }
  0xb2   : > { %941 = vst.msk [vmem:[%s3003_s18 + $0x20] sm:$0xff] %vm936_vm3, %v876_v46  ;;  %2415 = vmatmul.msk.f32.gmra.mxu1 %vm936_vm3, %v876_v46  ;;  %v3110_v45 = vld [vmem:[%s4065_s4] ss:$0 sm:$0xff] }
  0xb4   : > { %v567_v47 = vpop.f32.mrf.mxu0 }
  0xb5   : > { %v568_v49 = vadd.f32 %v2994_v21, %v567_v47  ;;  %v306_v47 = vld [vmem:[%s2945_s29 + $0x128] sm:$0xff] }
  0xb6   : > { %2384 = vmatmul.msk.f32.gmra.mxu3 %vm338_vm1, %v306_v47 }
  0xb7   : > { %2368 = vmatmul.msk.f32.gmra.mxu0 %vm338_vm1, %v290_v48  ;;  %vm749_vm8 = vcmp.gt.f32.partialorder %v568_v49, 0.0  ;;  %v813_v50 = vmul.f32 0.1, %v568_v49 }
  0xb9   : > { %v877_v51 = vsel %vm749_vm8, %v568_v49, %v813_v50 }
  0xba   : > { %942 = vst.msk [vmem:[%s3003_s18 + $0x28] sm:$0xff] %vm936_vm3, %v877_v51  ;;  %2416 = vmatmul.msk.f32.gmra.mxu1 %vm936_vm3, %v877_v51 }
  0xbc   : > { %v570_v52 = vpop.f32.mrf.mxu0 }
  0xbd   : > { %v571_v54 = vadd.f32 %v2994_v21, %v570_v52  ;;  %v2890_v52 = vmov 0.0  }
  0xbf   : > { %2369 = vmatmul.msk.f32.gmra.mxu0 %vm338_vm1, %v291_v53  ;;  %vm750_vm9 = vcmp.gt.f32.partialorder %v571_v54, 0.0  ;;  %v814_v55 = vmul.f32 0.1, %v571_v54 }
  0xc1   : > { %v878_v56 = vsel %vm750_vm9, %v571_v54, %v814_v55 }
  0xc2   : > { %943 = vst.msk [vmem:[%s3003_s18 + $0x30] sm:$0xff] %vm936_vm3, %v878_v56  ;;  %2417 = vmatmul.msk.f32.gmra.mxu1 %vm936_vm3, %v878_v56  ;;  %v307_v56 = vld [vmem:[%s2945_s29 + $0x130] sm:$0xff] }
  0xc3   : > { %2385 = vmatmul.msk.f32.gmra.mxu3 %vm338_vm1, %v307_v56 }
  0xc4   : > { %v573_v57 = vpop.f32.mrf.mxu0 }
  0xc5   : > { %v574_v59 = vadd.f32 %v2994_v21, %v573_v57 }
  0xc7   : > { %2370 = vmatmul.msk.f32.gmra.mxu0 %vm338_vm1, %v292_v58  ;;  %vm751_vm10 = vcmp.gt.f32.partialorder %v574_v59, 0.0  ;;  %v815_v60 = vmul.f32 0.1, %v574_v59 }
  0xc9   : > { %v879_v61 = vsel %vm751_vm10, %v574_v59, %v815_v60 }
  0xca   : > { %944 = vst.msk [vmem:[%s3003_s18 + $0x38] sm:$0xff] %vm936_vm3, %v879_v61  ;;  %2418 = vmatmul.msk.f32.gmra.mxu1 %vm936_vm3, %v879_v61 }
  0xcc   : > { %v576_v62 = vpop.f32.mrf.mxu0 }
  0xcd   : > { %v577_v0 = vadd.f32 %v2994_v21, %v576_v62 }
  0xcf   : > { %2371 = vmatmul.msk.f32.gmra.mxu0 %vm338_vm1, %v293_v63  ;;  %vm752_vm11 = vcmp.gt.f32.partialorder %v577_v0, 0.0  ;;  %v816_v1 = vmul.f32 0.1, %v577_v0 }
  0xd1   : > { %v880_v2 = vsel %vm752_vm11, %v577_v0, %v816_v1  ;;  %v308_v1 = vld [vmem:[%s2945_s29 + $0x138] sm:$0xff] }
  0xd2   : > { %945 = vst.msk [vmem:[%s3003_s18 + $0x40] sm:$0xff] %vm936_vm3, %v880_v2  ;;  %2419 = vmatmul.msk.f32.gmra.mxu1 %vm936_vm3, %v880_v2  ;;  %2386 = vmatmul.msk.f32.gmra.mxu3 %vm338_vm1, %v308_v1 }
  0xd4   : > { %v579_v3 = vpop.f32.mrf.mxu0 }
  0xd5   : > { %v580_v5 = vadd.f32 %v2994_v21, %v579_v3 }
  0xd7   : > { %v817_v6 = vmul.f32 0.1, %v580_v5  ;;  %2372 = vmatmul.msk.f32.gmra.mxu0 %vm338_vm1, %v294_v4  ;;  %vm753_vm12 = vcmp.gt.f32.partialorder %v580_v5, 0.0 }
  0xd9   : > { %v881_v7 = vsel %vm753_vm12, %v580_v5, %v817_v6 }
  0xda   : > { %946 = vst.msk [vmem:[%s3003_s18 + $0x48] sm:$0xff] %vm936_vm3, %v881_v7  ;;  %2420 = vmatmul.msk.f32.gmra.mxu1 %vm936_vm3, %v881_v7 }
  0xdc   : > { %v582_v8 = vpop.f32.mrf.mxu0 }
  0xdd   : > { %v583_v10 = vadd.f32 %v2994_v21, %v582_v8 }
  0xdf   : > { %v818_v11 = vmul.f32 0.1, %v583_v10  ;;  %2373 = vmatmul.msk.f32.gmra.mxu0 %vm338_vm1, %v295_v9  ;;  %vm754_vm13 = vcmp.gt.f32.partialorder %v583_v10, 0.0  ;;  %v309_v9 = vld [vmem:[%s2945_s29 + $0x140] sm:$0xff] }
  0xe0   : > { %2387 = vmatmul.msk.f32.gmra.mxu3 %vm338_vm1, %v309_v9 }
  0xe1   : > { %v882_v12 = vsel %vm754_vm13, %v583_v10, %v818_v11 }
  0xe2   : > { %947 = vst.msk [vmem:[%s3003_s18 + $0x50] sm:$0xff] %vm936_vm3, %v882_v12  ;;  %2421 = vmatmul.msk.f32.gmra.mxu1 %vm936_vm3, %v882_v12 }
  0xe4   : > { %v585_v13 = vpop.f32.mrf.mxu0 }
  0xe5   : > { %v586_v15 = vadd.f32 %v2994_v21, %v585_v13 }
  0xe7   : > { %v819_v16 = vmul.f32 0.1, %v586_v15  ;;  %2374 = vmatmul.msk.f32.gmra.mxu0 %vm338_vm1, %v296_v14  ;;  %vm755_vm14 = vcmp.gt.f32.partialorder %v586_v15, 0.0 }
  0xe9   : > { %v883_v17 = vsel %vm755_vm14, %v586_v15, %v819_v16 }
  0xea   : > { %948 = vst.msk [vmem:[%s3003_s18 + $0x58] sm:$0xff] %vm936_vm3, %v883_v17  ;;  %2422 = vmatmul.msk.f32.gmra.mxu1 %vm936_vm3, %v883_v17 }
  0xec   : > { %v588_v18 = vpop.f32.mrf.mxu0 }
  0xed   : > { %v589_v20 = vadd.f32 %v2994_v21, %v588_v18  ;;  %v310_v18 = vld [vmem:[%s2945_s29 + $0x148] sm:$0xff] }
  0xee   : > { %2388 = vmatmul.msk.f32.gmra.mxu3 %vm338_vm1, %v310_v18 }
  0xef   : > { %v820_v23 = vmul.f32 0.1, %v589_v20  ;;  %2375 = vmatmul.msk.f32.gmra.mxu0 %vm338_vm1, %v297_v19  ;;  %vm756_vm15 = vcmp.gt.f32.partialorder %v589_v20, 0.0 }
  0xf1   : > { %v884_v24 = vsel %vm756_vm15, %v589_v20, %v820_v23 }
  0xf2   : > { %949 = vst.msk [vmem:[%s3003_s18 + $0x60] sm:$0xff] %vm936_vm3, %v884_v24  ;;  %2423 = vmatmul.msk.f32.gmra.mxu1 %vm936_vm3, %v884_v24 }
  0xf4   : > { %v591_v25 = vpop.f32.mrf.mxu0 }
  0xf5   : > { %v592_v27 = vadd.f32 %v2994_v21, %v591_v25 }
  0xf7   : > { %v821_v29 = vmul.f32 0.1, %v592_v27  ;;  %2376 = vmatmul.msk.f32.gmra.mxu0 %vm338_vm1, %v298_v26  ;;  %vm757_vm0 = vcmp.gt.f32.partialorder %v592_v27, 0.0 }
  0xf9   : > { %v885_v30 = vsel %vm757_vm0, %v592_v27, %v821_v29  ;;  %v311_v27 = vld [vmem:[%s2945_s29 + $0x150] sm:$0xff] }
  0xfa   : > { %950 = vst.msk [vmem:[%s3003_s18 + $0x68] sm:$0xff] %vm936_vm3, %v885_v30  ;;  %2424 = vmatmul.msk.f32.gmra.mxu1 %vm936_vm3, %v885_v30  ;;  %2389 = vmatmul.msk.f32.gmra.mxu3 %vm338_vm1, %v311_v27 }
  0xfc   : > { %v594_v31 = vpop.f32.mrf.mxu0 }
  0xfd   : > { %v595_v33 = vadd.f32 %v2994_v21, %v594_v31 }
  0xff   : > { %v822_v35 = vmul.f32 0.1, %v595_v33  ;;  %2377 = vmatmul.msk.f32.gmra.mxu0 %vm338_vm1, %v299_v32  ;;  %vm758_vm2 = vcmp.gt.f32.partialorder %v595_v33, 0.0 }
 0x101   : > { %v886_v36 = vsel %vm758_vm2, %v595_v33, %v822_v35 }
 0x102   : > { %951 = vst.msk [vmem:[%s3003_s18 + $0x70] sm:$0xff] %vm936_vm3, %v886_v36  ;;  %2425 = vmatmul.msk.f32.gmra.mxu1 %vm936_vm3, %v886_v36  ;;  %v312_v36 = vld [vmem:[%s2945_s29 + $0x158] sm:$0xff] }
 0x103   : > { %2390 = vmatmul.msk.f32.gmra.mxu3 %vm338_vm1, %v312_v36 }
 0x104   : > { %v597_v37 = vpop.f32.mrf.mxu0 }
 0x105   : > { %v598_v39 = vadd.f32 %v2994_v21, %v597_v37 }
 0x107   : > { %v823_v41 = vmul.f32 0.1, %v598_v39  ;;  %2378 = vmatmul.msk.f32.gmra.mxu0 %vm338_vm1, %v300_v38  ;;  %vm759_vm4 = vcmp.gt.f32.partialorder %v598_v39, 0.0 }
 0x109   : > { %v887_v42 = vsel %vm759_vm4, %v598_v39, %v823_v41 }
 0x10a   : > { %952 = vst.msk [vmem:[%s3003_s18 + $0x78] sm:$0xff] %vm936_vm3, %v887_v42  ;;  %2426 = vmatmul.msk.f32.gmra.mxu1 %vm936_vm3, %v887_v42 }
 0x10c   : > { %v600_v43 = vpop.f32.mrf.mxu0 }
 0x10d   : > { %v601_v46 = vadd.f32 %v2994_v21, %v600_v43 }
 0x10f   : > { %v824_v48 = vmul.f32 0.1, %v601_v46  ;;  %2379 = vmatmul.msk.f32.gmra.mxu0 %vm338_vm1, %v301_v44  ;;  %v1218_v49 = vpop.f32.mrf.mxu1  ;;  %vm760_vm5 = vcmp.gt.f32.partialorder %v601_v46, 0.0  ;;  %v313_v44 = vld [vmem:[%s2945_s29 + $0x160] sm:$0xff] }
 0x110   : > { %v1219_v50 = vadd.f32 %v3110_v45, %v1218_v49  ;;  %2391 = vmatmul.msk.f32.gmra.mxu3 %vm338_vm1, %v313_v44 }
 0x111   : > { %v888_v51 = vsel %vm760_vm5, %v601_v46, %v824_v48 }
 0x112   : > { %vm1410_vm7 = vcmp.gt.f32.partialorder %v1219_v50, 0.0  ;;  %953 = vst.msk [vmem:[%s3003_s18 + $0x80] sm:$0xff] %vm936_vm3, %v888_v51  ;;  %2427 = vmatmul.msk.f32.gmra.mxu1 %vm936_vm3, %v888_v51 }
 0x113   : > { %v2475_v53 = vsel %vm1410_vm7, 1.0, %v2890_v52 }
 0x114   : > { %1603 = vst.msk [vmem:[%s3121_s24] sm:$0xff] %vm1602_vm6, %v2475_v53  ;;  %v603_v54 = vpop.f32.mrf.mxu0 }
 0x115   : > { %v604_v55 = vadd.f32 %v2994_v21, %v603_v54 }
 0x117   : > { %v825_v57 = vmul.f32 0.1, %v604_v55  ;;  %v1221_v58 = vpop.f32.mrf.mxu1  ;;  %vm761_vm8 = vcmp.gt.f32.partialorder %v604_v55, 0.0 }
 0x118   : > { %v1222_v59 = vadd.f32 %v3110_v45, %v1221_v58 }
 0x119   : > { %v889_v60 = vsel %vm761_vm8, %v604_v55, %v825_v57  ;;  %v314_v55 = vld [vmem:[%s2945_s29 + $0x168] sm:$0xff] }
 0x11a   : > { %vm1411_vm9 = vcmp.gt.f32.partialorder %v1222_v59, 0.0  ;;  %954 = vst.msk [vmem:[%s3003_s18 + $0x88] sm:$0xff] %vm936_vm3, %v889_v60  ;;  %2428 = vmatmul.msk.f32.gmra.mxu1 %vm936_vm3, %v889_v60  ;;  %2392 = vmatmul.msk.f32.gmra.mxu3 %vm338_vm1, %v314_v55 }
 0x11b   : > { %v2476_v61 = vsel %vm1411_vm9, 1.0, %v2890_v52 }
 0x11c   : > { %1604 = vst.msk [vmem:[%s3121_s24 + $0x8] sm:$0xff] %vm1602_vm6, %v2476_v61  ;;  %v606_v62 = vpop.f32.mrf.mxu0  ;;  %v2562_v63 = vpack.i.bf16 %v2476_v61, %v2475_v53 }
 0x11d   : > { %v607_v0 = vadd.f32 %v2994_v21, %v606_v62 }
 0x11e   : > { %2563 = vrot.lane.b32.xlu2 %v2562_v63, %s2891_s25  ;;  %2558 = vrot.lane.b32.xlu0 %v2562_v63, %s2892_s26  ;;  %v315_v63 = vld [vmem:[%s2945_s29 + $0x170] sm:$0xff] }
 0x11f   : > { %v826_v2 = vmul.f32 0.1, %v607_v0  ;;  %v1224_v3 = vpop.f32.mrf.mxu1  ;;  %vm762_vm10 = vcmp.gt.f32.partialorder %v607_v0, 0.0 }
 0x120   : > { %v1225_v4 = vadd.f32 %v3110_v45, %v1224_v3 }
 0x121   : > { %v890_v5 = vsel %vm762_vm10, %v607_v0, %v826_v2 }
 0x122   : > { %vm1412_vm11 = vcmp.gt.f32.partialorder %v1225_v4, 0.0  ;;  %955 = vst.msk [vmem:[%s3003_s18 + $0x90] sm:$0xff] %vm936_vm3, %v890_v5  ;;  %2429 = vmatmul.msk.f32.gmra.mxu1 %vm936_vm3, %v890_v5  ;;  %2393 = vmatmul.msk.f32.gmra.mxu3 %vm338_vm1, %v315_v63 }
 0x123   : > { %v2477_v6 = vsel %vm1412_vm11, 1.0, %v2890_v52 }
 0x124   : > { %1605 = vst.msk [vmem:[%s3121_s24 + $0x10] sm:$0xff] %vm1602_vm6, %v2477_v6  ;;  %v609_v7 = vpop.f32.mrf.mxu0 }
 0x125   : > { %v610_v8 = vadd.f32 %v2994_v21, %v609_v7 }
 0x127   : > { %v827_v10 = vmul.f32 0.1, %v610_v8  ;;  %v1227_v11 = vpop.f32.mrf.mxu1  ;;  %vm763_vm12 = vcmp.gt.f32.partialorder %v610_v8, 0.0 }
 0x128   : > { %v1228_v12 = vadd.f32 %v3110_v45, %v1227_v11 }
 0x129   : > { %v891_v13 = vsel %vm763_vm12, %v610_v8, %v827_v10  ;;  %v316_v8 = vld [vmem:[%s2945_s29 + $0x178] sm:$0xff] }
 0x12a   : > { %vm1413_vm13 = vcmp.gt.f32.partialorder %v1228_v12, 0.0  ;;  %956 = vst.msk [vmem:[%s3003_s18 + $0x98] sm:$0xff] %vm936_vm3, %v891_v13  ;;  %2430 = vmatmul.msk.f32.gmra.mxu1 %vm936_vm3, %v891_v13  ;;  %2394 = vmatmul.msk.f32.gmra.mxu3 %vm338_vm1, %v316_v8 }
 0x12b   : > { %v2478_v14 = vsel %vm1413_vm13, 1.0, %v2890_v52 }
 0x12c   : > { %1606 = vst.msk [vmem:[%s3121_s24 + $0x18] sm:$0xff] %vm1602_vm6, %v2478_v14  ;;  %v612_v15 = vpop.f32.mrf.mxu0  ;;  %v2567_v16 = vpack.i.bf16 %v2478_v14, %v2477_v6 }
 0x12d   : > { %v613_v17 = vadd.f32 %v2994_v21, %v612_v15 }
 0x12e   : > { %2568 = vrot.lane.b32.xlu0 %v2567_v16, %s2892_s26 }
 0x12f   : > { %v828_v19 = vmul.f32 0.1, %v613_v17  ;;  %v1230_v20 = vpop.f32.mrf.mxu1  ;;  %vm764_vm14 = vcmp.gt.f32.partialorder %v613_v17, 0.0 }
 0x130   : > { %v1231_v22 = vadd.f32 %v3110_v45, %v1230_v20 }
 0x131   : > { %v892_v23 = vsel %vm764_vm14, %v613_v17, %v828_v19 }
 0x132   : > { %vm1414_vm15 = vcmp.gt.f32.partialorder %v1231_v22, 0.0  ;;  %957 = vst.msk [vmem:[%s3003_s18 + $0xa0] sm:$0xff] %vm936_vm3, %v892_v23  ;;  %2431 = vmatmul.msk.f32.gmra.mxu1 %vm936_vm3, %v892_v23 }
 0x133   : > { %v2479_v24 = vsel %vm1414_vm15, 1.0, %v2890_v52 }
 0x134   : > { %1607 = vst.msk [vmem:[%s3121_s24 + $0x20] sm:$0xff] %vm1602_vm6, %v2479_v24  ;;  %v615_v25 = vpop.f32.mrf.mxu0 }
 0x135   : > { %v616_v26 = vadd.f32 %v2994_v21, %v615_v25 }
 0x136   : > { %2573 = vrot.lane.b32.xlu0 %v2567_v16, %s2891_s25  ;;  %v317_v16 = vld [vmem:[%s2945_s29 + $0x180] sm:$0xff] }
 0x137   : > { %v829_v28 = vmul.f32 0.1, %v616_v26  ;;  %v1233_v29 = vpop.f32.mrf.mxu1  ;;  %vm765_vm0 = vcmp.gt.f32.partialorder %v616_v26, 0.0  ;;  %2395 = vmatmul.msk.f32.gmra.mxu3 %vm338_vm1, %v317_v16 }
 0x138   : > { %v1234_v30 = vadd.f32 %v3110_v45, %v1233_v29 }
 0x139   : > { %v893_v31 = vsel %vm765_vm0, %v616_v26, %v829_v28  ;;  %v318_v26 = vld [vmem:[%s2945_s29 + $0x188] sm:$0xff] }
 0x13a   : > { %vm1415_vm2 = vcmp.gt.f32.partialorder %v1234_v30, 0.0  ;;  %958 = vst.msk [vmem:[%s3003_s18 + $0xa8] sm:$0xff] %vm936_vm3, %v893_v31  ;;  %2432 = vmatmul.msk.f32.gmra.mxu1 %vm936_vm3, %v893_v31 }
 0x13b   : > { %v2480_v32 = vsel %vm1415_vm2, 1.0, %v2890_v52 }
 0x13c   : > { %1608 = vst.msk [vmem:[%s3121_s24 + $0x28] sm:$0xff] %vm1602_vm6, %v2480_v32  ;;  %v618_v33 = vpop.f32.mrf.mxu0  ;;  %v2577_v34 = vpack.i.bf16 %v2480_v32, %v2479_v24 }
 0x13d   : > { %v619_v35 = vadd.f32 %v2994_v21, %v618_v33 }
 0x13e   : > { %2578 = vrot.lane.b32.xlu1 %v2577_v34, %s2892_s26 }
 0x13f   : > { %v830_v37 = vmul.f32 0.1, %v619_v35  ;;  %v1236_v38 = vpop.f32.mrf.mxu1  ;;  %vm766_vm4 = vcmp.gt.f32.partialorder %v619_v35, 0.0  ;;  %2396 = vmatmul.msk.f32.gmra.mxu3 %vm338_vm1, %v318_v26 }
 0x140   : > { %v1237_v39 = vadd.f32 %v3110_v45, %v1236_v38  ;;  %v319_v38 = vld [vmem:[%s2945_s29 + $0x190] sm:$0xff] }
 0x141   : > { %v894_v40 = vsel %vm766_vm4, %v619_v35, %v830_v37 }
 0x142   : > { %vm1416_vm5 = vcmp.gt.f32.partialorder %v1237_v39, 0.0  ;;  %959 = vst.msk [vmem:[%s3003_s18 + $0xb0] sm:$0xff] %vm936_vm3, %v894_v40  ;;  %2433 = vmatmul.msk.f32.gmra.mxu1 %vm936_vm3, %v894_v40 }
 0x143   : > { %v2481_v41 = vsel %vm1416_vm5, 1.0, %v2890_v52 }
 0x144   : > { %1609 = vst.msk [vmem:[%s3121_s24 + $0x30] sm:$0xff] %vm1602_vm6, %v2481_v41  ;;  %v621_v42 = vpop.f32.mrf.mxu0 }
 0x145   : > { %v622_v43 = vadd.f32 %v2994_v21, %v621_v42 }
 0x146   : > { %2583 = vrot.lane.b32.xlu1 %v2577_v34, %s2891_s25  ;;  %v651_v34 = vpop.f32.mrf.mxu3 }
 0x147   : > { %v831_v46 = vmul.f32 0.1, %v622_v43  ;;  %v1239_v47 = vpop.f32.mrf.mxu1  ;;  %vm767_vm7 = vcmp.gt.f32.partialorder %v622_v43, 0.0  ;;  %v652_v35 = vadd.f32 %v2994_v21, %v651_v34  ;;  %2397 = vmatmul.msk.f32.gmra.mxu3 %vm338_vm1, %v319_v38 }
 0x148   : > { %v1240_v48 = vadd.f32 %v3110_v45, %v1239_v47 }
 0x149   : > { %v895_v49 = vsel %vm767_vm7, %v622_v43, %v831_v46  ;;  %v841_v40 = vmul.f32 0.1, %v652_v35  ;;  %vm777_vm7 = vcmp.gt.f32.partialorder %v652_v35, 0.0 }
 0x14a   : > { %vm1417_vm8 = vcmp.gt.f32.partialorder %v1240_v48, 0.0  ;;  %960 = vst.msk [vmem:[%s3003_s18 + $0xb8] sm:$0xff] %vm936_vm3, %v895_v49  ;;  %2434 = vmatmul.msk.f32.gmra.mxu1 %vm936_vm3, %v895_v49 }
 0x14b   : > { %v2482_v50 = vsel %vm1417_vm8, 1.0, %v2890_v52  ;;  %v3269_v42 = vsel %vm777_vm7, %v652_v35, %v841_v40 }
 0x14c   : > { %1610 = vst.msk [vmem:[%s3121_s24 + $0x38] sm:$0xff] %vm1602_vm6, %v2482_v50  ;;  %v624_v51 = vpop.f32.mrf.mxu0  ;;  %v2587_v53 = vpack.i.bf16 %v2482_v50, %v2481_v41  ;;  %v320_v50 = vld [vmem:[%s2945_s29 + $0x198] sm:$0xff] }
 0x14d   : > { %v625_v54 = vadd.f32 %v2994_v21, %v624_v51  ;;  %970 = vst.msk [vmem:[%s3003_s18 + $0x108] sm:$0xff] %vm936_vm3, %v3269_v42 }
 0x14e   : > { %2588 = vrot.lane.b32.xlu1 %v2587_v53, %s2892_s26  ;;  %2593 = vrot.lane.b32.xlu2 %v2587_v53, %s2891_s25  ;;  %v654_v48 = vpop.f32.mrf.mxu3 }
 0x14f   : > { %vm768_vm9 = vcmp.gt.f32.partialorder %v625_v54, 0.0  ;;  %v832_v56 = vmul.f32 0.1, %v625_v54  ;;  %v1242_v57 = vpop.f32.mrf.mxu1  ;;  %v655_v49 = vadd.f32 %v2994_v21, %v654_v48  ;;  %2398 = vmatmul.msk.f32.gmra.mxu3 %vm338_vm1, %v320_v50 }
 0x150   : > { %v1243_v58 = vadd.f32 %v3110_v45, %v1242_v57 }
 0x151   : > { %v896_v59 = vsel %vm768_vm9, %v625_v54, %v832_v56  ;;  %v842_v55 = vmul.f32 0.1, %v655_v49 }
 0x152   : > { %vm1418_vm10 = vcmp.gt.f32.partialorder %v1243_v58, 0.0  ;;  %961 = vst.msk [vmem:[%s3003_s18 + $0xc0] sm:$0xff] %vm936_vm3, %v896_v59  ;;  %2435 = vmatmul.msk.f32.gmra.mxu1 %vm936_vm3, %v896_v59 }
 0x153   : > { %v2483_v60 = vsel %vm1418_vm10, 1.0, %v2890_v52  ;;  %vm778_vm10 = vcmp.gt.f32.partialorder %v655_v49, 0.0 }
 0x154   : > { %1611 = vst.msk [vmem:[%s3121_s24 + $0x40] sm:$0xff] %vm1602_vm6, %v2483_v60  ;;  %v627_v61 = vpop.f32.mrf.mxu0  ;;  %v3287_v57 = vsel %vm778_vm10, %v655_v49, %v842_v55 }
 0x155   : > { %v628_v62 = vadd.f32 %v2994_v21, %v627_v61  ;;  %971 = vst.msk [vmem:[%s3003_s18 + $0x110] sm:$0xff] %vm936_vm3, %v3287_v57 }
 0x156   : > { %v657_v61 = vpop.f32.mrf.mxu3 }
 0x157   : > { %vm769_vm11 = vcmp.gt.f32.partialorder %v628_v62, 0.0  ;;  %v833_v0 = vmul.f32 0.1, %v628_v62  ;;  %v1245_v1 = vpop.f32.mrf.mxu1  ;;  %v658_v63 = vadd.f32 %v2994_v21, %v657_v61  ;;  %v326_v61 = vld [vmem:[%s2945_s29 + $0x1c8] sm:$0xff] }
 0x158   : > { %v1246_v2 = vadd.f32 %v3110_v45, %v1245_v1 }
 0x159   : > { %v897_v3 = vsel %vm769_vm11, %v628_v62, %v833_v0  ;;  %v321_v62 = vld [vmem:[%s2945_s29 + $0x1a0] sm:$0xff] }
 0x15a   : > { %vm1419_vm12 = vcmp.gt.f32.partialorder %v1246_v2, 0.0  ;;  %962 = vst.msk [vmem:[%s3003_s18 + $0xc8] sm:$0xff] %vm936_vm3, %v897_v3  ;;  %2436 = vmatmul.msk.f32.gmra.mxu1 %vm936_vm3, %v897_v3  ;;  %2399 = vmatmul.msk.f32.gmra.mxu3 %vm338_vm1, %v321_v62  ;;  %v843_v3 = vmul.f32 0.1, %v658_v63 }
 0x15b   : > { %v2484_v4 = vsel %vm1419_vm12, 1.0, %v2890_v52 }
 0x15c   : > { %1612 = vst.msk [vmem:[%s3121_s24 + $0x48] sm:$0xff] %vm1602_vm6, %v2484_v4  ;;  %v630_v5 = vpop.f32.mrf.mxu0  ;;  %v2597_v6 = vpack.i.bf16 %v2484_v4, %v2483_v60 }
 0x15d   : > { %v631_v7 = vadd.f32 %v2994_v21, %v630_v5 }
 0x15e   : > { %2598 = vrot.lane.b32.xlu2 %v2597_v6, %s2892_s26  ;;  %2603 = vrot.lane.b32.xlu0 %v2597_v6, %s2891_s25 }
 0x15f   : > { %vm770_vm13 = vcmp.gt.f32.partialorder %v631_v7, 0.0  ;;  %v834_v9 = vmul.f32 0.1, %v631_v7  ;;  %v1248_v10 = vpop.f32.mrf.mxu1 }
 0x160   : > { %v1249_v11 = vadd.f32 %v3110_v45, %v1248_v10  ;;  %v660_v10 = vpop.f32.mrf.mxu3 }
 0x161   : > { %v898_v12 = vsel %vm770_vm13, %v631_v7, %v834_v9  ;;  %vm779_vm13 = vcmp.gt.f32.partialorder %v658_v63, 0.0 }
 0x162   : > { %vm1420_vm14 = vcmp.gt.f32.partialorder %v1249_v11, 0.0  ;;  %963 = vst.msk [vmem:[%s3003_s18 + $0xd0] sm:$0xff] %vm936_vm3, %v898_v12  ;;  %2437 = vmatmul.msk.f32.gmra.mxu1 %vm936_vm3, %v898_v12  ;;  %v3303_v5 = vsel %vm779_vm13, %v658_v63, %v843_v3  ;;  %v661_v11 = vadd.f32 %v2994_v21, %v660_v10  ;;  %v322_v12 = vld [vmem:[%s2945_s29 + $0x1a8] sm:$0xff]  ;;  %v3395_v63 = vld [vmem:[%s4063_s2] ss:$0 sm:$0xff] }
 0x163   : > { %v2485_v13 = vsel %vm1420_vm14, 1.0, %v2890_v52  ;;  %972 = vst.msk [vmem:[%s3003_s18 + $0x118] sm:$0xff] %vm936_vm3, %v3303_v5  ;;  %2400 = vmatmul.msk.f32.gmra.mxu3 %vm338_vm1, %v322_v12 }
 0x164   : > { %1613 = vst.msk [vmem:[%s3121_s24 + $0x50] sm:$0xff] %vm1602_vm6, %v2485_v13  ;;  %v633_v14 = vpop.f32.mrf.mxu0 }
 0x165   : > { %v634_v15 = vadd.f32 %v2994_v21, %v633_v14 }
 0x167   : > { %vm771_vm15 = vcmp.gt.f32.partialorder %v634_v15, 0.0  ;;  %v835_v17 = vmul.f32 0.1, %v634_v15  ;;  %v1251_v18 = vpop.f32.mrf.mxu1 }
 0x168   : > { %v1252_v19 = vadd.f32 %v3110_v45, %v1251_v18  ;;  %v663_v26 = vpop.f32.mrf.mxu3 }
 0x169   : > { %v899_v20 = vsel %vm771_vm15, %v634_v15, %v835_v17 }
 0x16a   : > { %vm1421_vm0 = vcmp.gt.f32.partialorder %v1252_v19, 0.0  ;;  %964 = vst.msk [vmem:[%s3003_s18 + $0xd8] sm:$0xff] %vm936_vm3, %v899_v20  ;;  %2438 = vmatmul.msk.f32.gmra.mxu1 %vm936_vm3, %v899_v20  ;;  %v844_v20 = vmul.f32 0.1, %v661_v11 }
 0x16b   : > { %v2486_v22 = vsel %vm1421_vm0, 1.0, %v2890_v52  ;;  %vm1923_vm0 = vcmask 15368  }
 0x16c   : > { %1614 = vst.msk [vmem:[%s3121_s24 + $0x58] sm:$0xff] %vm1602_vm6, %v2486_v22  ;;  %v636_v23 = vpop.f32.mrf.mxu0  ;;  %v2612_v24 = vpack.i.bf16 %v2486_v22, %v2485_v13 }
 0x16d   : > { %v637_v25 = vadd.f32 %v2994_v21, %v636_v23 }
 0x16e   : > { %2613 = vrot.lane.b32.xlu1 %v2612_v24, %s2891_s25  ;;  %2608 = vrot.lane.b32.xlu2 %v2612_v24, %s2892_s26 }
 0x16f   : > { %vm772_vm2 = vcmp.gt.f32.partialorder %v637_v25, 0.0  ;;  %v836_v27 = vmul.f32 0.1, %v637_v25  ;;  %v1254_v28 = vpop.f32.mrf.mxu1 }
 0x170   : > { %v1255_v29 = vadd.f32 %v3110_v45, %v1254_v28  ;;  %v323_v28 = vld [vmem:[%s2945_s29 + $0x1b0] sm:$0xff] }
 0x171   : > { %v900_v30 = vsel %vm772_vm2, %v637_v25, %v836_v27  ;;  %2401 = vmatmul.msk.f32.gmra.mxu3 %vm338_vm1, %v323_v28 }
 0x172   : > { %vm1422_vm4 = vcmp.gt.f32.partialorder %v1255_v29, 0.0  ;;  %965 = vst.msk [vmem:[%s3003_s18 + $0xe0] sm:$0xff] %vm936_vm3, %v900_v30  ;;  %2439 = vmatmul.msk.f32.gmra.mxu1 %vm936_vm3, %v900_v30  ;;  %v664_v29 = vadd.f32 %v2994_v21, %v663_v26  ;;  %v328_v26 = vld [vmem:[%s2945_s29 + $0x1d8] sm:$0xff] }
 0x173   : > { %v2487_v31 = vsel %vm1422_vm4, 1.0, %v2890_v52  ;;  %vm2180_vm4 = vcmask 23568  }
 0x174   : > { %1615 = vst.msk [vmem:[%s3121_s24 + $0x60] sm:$0xff] %vm1602_vm6, %v2487_v31  ;;  %v639_v32 = vpop.f32.mrf.mxu0 }
 0x175   : > { %v640_v33 = vadd.f32 %v2994_v21, %v639_v32  ;;  %v845_v32 = vmul.f32 0.1, %v664_v29 }
 0x177   : > { %vm773_vm5 = vcmp.gt.f32.partialorder %v640_v33, 0.0  ;;  %v837_v36 = vmul.f32 0.1, %v640_v33  ;;  %v1257_v37 = vpop.f32.mrf.mxu1 }
 0x178   : > { %v1258_v39 = vadd.f32 %v3110_v45, %v1257_v37  ;;  %v2564_v15 = vpop.permute.xlu2 %2563 }
 0x179   : > { %v901_v41 = vsel %vm773_vm5, %v640_v33, %v837_v36  ;;  %vm780_vm5 = vcmp.gt.f32.partialorder %v661_v11, 0.0  ;;  %v2566_v23 = vunpack.i.h.bf16 %v2564_v15  ;;  %v2565_v25 = vunpack.i.l.bf16 %v2564_v15  ;;  %v666_v36 = vpop.f32.mrf.mxu3 }
 0x17a   : > { %vm1423_vm8 = vcmp.gt.f32.partialorder %v1258_v39, 0.0  ;;  %966 = vst.msk [vmem:[%s3003_s18 + $0xe8] sm:$0xff] %vm936_vm3, %v901_v41  ;;  %2440 = vmatmul.msk.f32.gmra.mxu1 %vm936_vm3, %v901_v41  ;;  %v3328_v27 = vsel %vm780_vm5, %v661_v11, %v844_v20  ;;  %v667_v38 = vadd.f32 %v2994_v21, %v666_v36  ;;  %v324_v39 = vld [vmem:[%s2945_s29 + $0x1b8] sm:$0xff] }
 0x17b   : > { %v2488_v43 = vsel %vm1423_vm8, 1.0, %v2890_v52  ;;  %973 = vst.msk [vmem:[%s3003_s18 + $0x120] sm:$0xff] %vm936_vm3, %v3328_v27  ;;  %vm781_vm8 = vcmp.gt.f32.partialorder %v664_v29, 0.0  ;;  %2402 = vmatmul.msk.f32.gmra.mxu3 %vm338_vm1, %v324_v39 }
 0x17c   : > { %1616 = vst.msk [vmem:[%s3121_s24 + $0x68] sm:$0xff] %vm1602_vm6, %v2488_v43  ;;  %v642_v44 = vpop.f32.mrf.mxu0  ;;  %v2622_v46 = vpack.i.bf16 %v2488_v43, %v2487_v31  ;;  %v3344_v34 = vsel %vm781_vm8, %v664_v29, %v845_v32  ;;  %vm782_vm10 = vcmp.gt.f32.partialorder %v667_v38, 0.0 }
 0x17d   : > { %v643_v47 = vadd.f32 %v2994_v21, %v642_v44  ;;  %974 = vst.msk [vmem:[%s3003_s18 + $0x128] sm:$0xff] %vm936_vm3, %v3344_v34  ;;  %v846_v44 = vmul.f32 0.1, %v667_v38 }
 0x17e   : > { %2623 = vrot.lane.b32.xlu2 %v2622_v46, %s2891_s25  ;;  %2618 = vrot.lane.b32.xlu0 %v2622_v46, %s2892_s26 }
 0x17f   : > { %vm774_vm9 = vcmp.gt.f32.partialorder %v643_v47, 0.0  ;;  %v838_v51 = vmul.f32 0.1, %v643_v47  ;;  %v1260_v53 = vpop.f32.mrf.mxu1 }
 0x180   : > { %v1261_v54 = vadd.f32 %v3110_v45, %v1260_v53 }
 0x181   : > { %v902_v56 = vsel %vm774_vm9, %v643_v47, %v838_v51  ;;  %v3362_v47 = vsel %vm782_vm10, %v667_v38, %v846_v44  ;;  %v669_v48 = vpop.f32.mrf.mxu3  ;;  %v325_v51 = vld [vmem:[%s2945_s29 + $0x1c0] sm:$0xff] }
 0x182   : > { %vm1424_vm11 = vcmp.gt.f32.partialorder %v1261_v54, 0.0  ;;  %967 = vst.msk [vmem:[%s3003_s18 + $0xf0] sm:$0xff] %vm936_vm3, %v902_v56  ;;  %2441 = vmatmul.msk.f32.gmra.mxu1 %vm936_vm3, %v902_v56  ;;  %v670_v50 = vadd.f32 %v2994_v21, %v669_v48  ;;  %v329_v38 = vld [vmem:[%s2945_s29 + $0x1e0] sm:$0xff] }
 0x183   : > { %v2489_v58 = vsel %vm1424_vm11, 1.0, %v2890_v52  ;;  %975 = vst.msk [vmem:[%s3003_s18 + $0x130] sm:$0xff] %vm936_vm3, %v3362_v47  ;;  %2403 = vmatmul.msk.f32.gmra.mxu3 %vm338_vm1, %v325_v51 }
 0x184   : > { %1617 = vst.msk [vmem:[%s3121_s24 + $0x70] sm:$0xff] %vm1602_vm6, %v2489_v58  ;;  %v645_v59 = vpop.f32.mrf.mxu0 }
 0x185   : > { %v646_v60 = vadd.f32 %v2994_v21, %v645_v59 }
 0x187   : > { %vm775_vm12 = vcmp.gt.f32.partialorder %v646_v60, 0.0  ;;  %v839_v0 = vmul.f32 0.1, %v646_v60  ;;  %v1263_v1 = vpop.f32.mrf.mxu1 }
 0x188   : > { %v1264_v2 = vadd.f32 %v3110_v45, %v1263_v1 }
 0x189   : > { %v903_v4 = vsel %vm775_vm12, %v646_v60, %v839_v0  ;;  %vm783_vm12 = vcmp.gt.f32.partialorder %v670_v50, 0.0  ;;  %v672_v60 = vpop.f32.mrf.mxu3 }
 0x18a   : > { %vm1425_vm14 = vcmp.gt.f32.partialorder %v1264_v2, 0.0  ;;  %968 = vst.msk [vmem:[%s3003_s18 + $0xf8] sm:$0xff] %vm936_vm3, %v903_v4  ;;  %2442 = vmatmul.msk.f32.gmra.mxu1 %vm936_vm3, %v903_v4  ;;  %v673_v0 = vadd.f32 %v3395_v63, %v672_v60 }
 0x18b   : > { %v2490_v6 = vsel %vm1425_vm14, 1.0, %v2890_v52  ;;  %2404 = vmatmul.msk.f32.gmra.mxu3 %vm338_vm1, %v326_v61 }
 0x18c   : > { %1618 = vst.msk [vmem:[%s3121_s24 + $0x78] sm:$0xff] %vm1602_vm6, %v2490_v6  ;;  %v648_v7 = vpop.f32.mrf.mxu0  ;;  %v2627_v8 = vpack.i.bf16 %v2490_v6, %v2489_v58  ;;  %v848_v6 = vmul.f32 0.1, %v673_v0  ;;  %vm784_vm14 = vcmp.gt.f32.partialorder %v673_v0, 0.0 }
 0x18d   : > { %v649_v9 = vadd.f32 %v2994_v21, %v648_v7 }
 0x18e   : > { %2628 = vrot.lane.b32.xlu1 %v2627_v8, %s2892_s26  ;;  %2633 = vrot.lane.b32.xlu0 %v2627_v8, %s2891_s25  ;;  %v3407_v8 = vsel %vm784_vm14, %v673_v0, %v848_v6 }
 0x18f   : > { %v840_v13 = vmul.f32 0.1, %v649_v9  ;;  %v1266_v14 = vpop.f32.mrf.mxu1  ;;  %vm776_vm15 = vcmp.gt.f32.partialorder %v649_v9, 0.0  ;;  %977 = vst.msk [vmem:[%s3003_s18 + $0x140] sm:$0xff] %vm936_vm3, %v3407_v8 }
 0x190   : > { %v1267_v16 = vadd.f32 %v3110_v45, %v1266_v14  ;;  %v2559_v17 = vpop.permute.xlu0 %2558 }
 0x191   : > { %v2561_v18 = vunpack.i.h.bf16 %v2559_v17  ;;  %v904_v19 = vsel %vm776_vm15, %v649_v9, %v840_v13  ;;  %v2560_v22 = vunpack.i.l.bf16 %v2559_v17  ;;  %v327_v9 = vld [vmem:[%s2945_s29 + $0x1d0] sm:$0xff]  ;;  %v675_v10 = vpop.f32.mrf.mxu3 }
 0x192   : > { %vm1426_vm2 = vcmp.gt.f32.partialorder %v1267_v16, 0.0  ;;  %969 = vst.msk [vmem:[%s3003_s18 + $0x100] sm:$0xff] %vm936_vm3, %v904_v19  ;;  %2443 = vmatmul.msk.f32.vlgmr.msra.gmra.mxu2 %vm936_vm3, %v904_v19  ;;  %v676_v12 = vadd.f32 %v3395_v63, %v675_v10 }
 0x193   : > { %v2491_v24 = vsel %vm1426_vm2, 1.0, %v2890_v52  ;;  %1925 = vst.msk [vmem:[%s3121_s24 + $0x8] sm:$0xff] %vm1923_vm0, %v2561_v18  ;;  %2405 = vmatmul.msk.f32.gmra.mxu3 %vm338_vm1, %v327_v9  ;;  %v332_v9 = vld [vmem:[%s2945_s29 + $0x1f8] sm:$0xff] }
 0x194   : > { %1619 = vst.msk [vmem:[%s3121_s24 + $0x80] sm:$0xff] %vm1602_vm6, %v2491_v24  ;;  %v849_v19 = vmul.f32 0.1, %v676_v12  ;;  %vm785_vm2 = vcmp.gt.f32.partialorder %v676_v12, 0.0 }
 0x195   : > { %2182 = vst.msk [vmem:[%s3121_s24 + $0x8] sm:$0xff] %vm2180_vm4, %v2566_v23 }
 0x196   : > { %1924 = vst.msk [vmem:[%s3121_s24] sm:$0xff] %vm1923_vm0, %v2560_v22 }
 0x197   : > { %2181 = vst.msk [vmem:[%s3121_s24] sm:$0xff] %vm2180_vm4, %v2565_v25  ;;  %v1269_v30 = vpop.f32.mrf.mxu1 }
 0x198   : > { %v1270_v31 = vadd.f32 %v3110_v45, %v1269_v30 }
 0x199   : > { %v678_v25 = vpop.f32.mrf.mxu3 }
 0x19a   : > { %vm1427_vm7 = vcmp.gt.f32.partialorder %v1270_v31, 0.0  ;;  %2444 = vmatmul.msk.f32.gmra.mxu2 %vm936_vm3, %v3269_v42  ;;  %v679_v28 = vadd.f32 %v3395_v63, %v678_v25 }
 0x19b   : > { %v2492_v33 = vsel %vm1427_vm7, 1.0, %v2890_v52  ;;  %2406 = vmatmul.msk.f32.gmra.mxu3 %vm338_vm1, %v328_v26 }
 0x19c   : > { %1620 = vst.msk [vmem:[%s3121_s24 + $0x88] sm:$0xff] %vm1602_vm6, %v2492_v33  ;;  %v2642_v35 = vpack.i.bf16 %v2492_v33, %v2491_v24  ;;  %v3429_v24 = vsel %vm785_vm2, %v676_v12, %v849_v19  ;;  %v850_v33 = vmul.f32 0.1, %v679_v28  ;;  %vm786_vm7 = vcmp.gt.f32.partialorder %v679_v28, 0.0 }
 0x19d   : > { %978 = vst.msk [vmem:[%s3003_s18 + $0x148] sm:$0xff] %vm936_vm3, %v3429_v24 }
 0x19e   : > { %2643 = vrot.lane.b32.xlu1 %v2642_v35, %s2891_s25  ;;  %2638 = vrot.lane.b32.xlu2 %v2642_v35, %s2892_s26 }
 0x19f   : > { %v1272_v37 = vpop.f32.mrf.mxu1 }
 0x1a0   : > { %v1273_v40 = vadd.f32 %v3110_v45, %v1272_v37  ;;  %v2569_v41 = vpop.permute.xlu0 %2568  ;;  %v3455_v37 = vsel %vm786_vm7, %v679_v28, %v850_v33 }
 0x1a1   : > { %v2571_v42 = vunpack.i.h.bf16 %v2569_v41  ;;  %v2570_v43 = vunpack.i.l.bf16 %v2569_v41  ;;  %v681_v39 = vpop.f32.mrf.mxu3  ;;  %979 = vst.msk [vmem:[%s3003_s18 + $0x150] sm:$0xff] %vm936_vm3, %v3455_v37 }
 0x1a2   : > { %vm1428_vm9 = vcmp.gt.f32.partialorder %v1273_v40, 0.0  ;;  %2445 = vmatmul.msk.f32.gmra.mxu2 %vm936_vm3, %v3287_v57  ;;  %v847_v57 = vmul.f32 0.1, %v670_v50  ;;  %v682_v41 = vadd.f32 %v3395_v63, %v681_v39 }
 0x1a3   : > { %v2493_v46 = vsel %vm1428_vm9, 1.0, %v2890_v52  ;;  %1927 = vst.msk [vmem:[%s3121_s24 + $0x18] sm:$0xff] %vm1923_vm0, %v2571_v42  ;;  %2407 = vmatmul.msk.f32.gmra.mxu3 %vm338_vm1, %v329_v38 }
 0x1a4   : > { %1621 = vst.msk [vmem:[%s3121_s24 + $0x90] sm:$0xff] %vm1602_vm6, %v2493_v46  ;;  %v3382_v59 = vsel %vm783_vm12, %v670_v50, %v847_v57  ;;  %vm787_vm9 = vcmp.gt.f32.partialorder %v682_v41, 0.0 }
 0x1a5   : > { %1926 = vst.msk [vmem:[%s3121_s24 + $0x10] sm:$0xff] %vm1923_vm0, %v2570_v43 }
 0x1a6   : > { %976 = vst.msk [vmem:[%s3003_s18 + $0x138] sm:$0xff] %vm936_vm3, %v3382_v59 }
 0x1a7   : > { %v1275_v49 = vpop.f32.mrf.mxu1 }
 0x1a8   : > { %v1276_v53 = vadd.f32 %v3110_v45, %v1275_v49  ;;  %v2574_v54 = vpop.permute.xlu0 %2573  ;;  %v3398_v1 = vpop.permute.xlu2 %2593 }
 0x1a9   : > { %v2576_v55 = vunpack.i.h.bf16 %v2574_v54  ;;  %v2575_v56 = vunpack.i.l.bf16 %v2574_v54  ;;  %v2595_v35 = vunpack.i.l.bf16 %v3398_v1  ;;  %v2596_v36 = vunpack.i.h.bf16 %v3398_v1  ;;  %v684_v51 = vpop.f32.mrf.mxu3 }
 0x1aa   : > { %vm1429_vm11 = vcmp.gt.f32.partialorder %v1276_v53, 0.0  ;;  %2446 = vmatmul.msk.f32.gmra.mxu2 %vm936_vm3, %v3303_v5  ;;  %v330_v53 = vld [vmem:[%s2945_s29 + $0x1e8] sm:$0xff] }
 0x1ab   : > { %v2494_v58 = vsel %vm1429_vm11, 1.0, %v2890_v52  ;;  %2183 = vst.msk [vmem:[%s3121_s24 + $0x10] sm:$0xff] %vm2180_vm4, %v2575_v56  ;;  %2408 = vmatmul.msk.f32.gmra.mxu3 %vm338_vm1, %v330_v53 }
 0x1ac   : > { %1622 = vst.msk [vmem:[%s3121_s24 + $0x98] sm:$0xff] %vm1602_vm6, %v2494_v58  ;;  %v2652_v21 = vpack.i.bf16 %v2494_v58, %v2493_v46 }
 0x1ad   : > { %2184 = vst.msk [vmem:[%s3121_s24 + $0x18] sm:$0xff] %vm2180_vm4, %v2576_v55  ;;  %v685_v55 = vadd.f32 %v3395_v63, %v684_v51 }
 0x1ae   : > { %2653 = vrot.lane.b32.xlu2 %v2652_v21, %s2891_s25  ;;  %2648 = vrot.lane.b32.xlu0 %v2652_v21, %s2892_s26 }
 0x1af   : > { %v1278_v62 = vpop.f32.mrf.mxu1  ;;  %vm788_vm11 = vcmp.gt.f32.partialorder %v685_v55, 0.0 }
 0x1b0   : > { %v1279_v2 = vadd.f32 %v3110_v45, %v1278_v62  ;;  %v2579_v3 = vpop.permute.xlu1 %2578 }
 0x1b1   : > { %v2581_v4 = vunpack.i.h.bf16 %v2579_v3  ;;  %v2580_v5 = vunpack.i.l.bf16 %v2579_v3  ;;  %v687_v62 = vpop.f32.mrf.mxu3 }
 0x1b2   : > { %vm1430_vm13 = vcmp.gt.f32.partialorder %v1279_v2, 0.0  ;;  %2447 = vmatmul.msk.f32.gmra.mxu2 %vm936_vm3, %v3328_v27  ;;  %v688_v1 = vadd.f32 %v3395_v63, %v687_v62  ;;  %v331_v2 = vld [vmem:[%s2945_s29 + $0x1f0] sm:$0xff] }
 0x1b3   : > { %v2495_v7 = vsel %vm1430_vm13, 1.0, %v2890_v52  ;;  %1929 = vst.msk [vmem:[%s3121_s24 + $0x28] sm:$0xff] %vm1923_vm0, %v2581_v4  ;;  %2409 = vmatmul.msk.f32.gmra.mxu3 %vm338_vm1, %v331_v2 }
 0x1b4   : > { %1623 = vst.msk [vmem:[%s3121_s24 + $0xa0] sm:$0xff] %vm1602_vm6, %v2495_v7  ;;  %v853_v4 = vmul.f32 0.1, %v688_v1  ;;  %vm789_vm13 = vcmp.gt.f32.partialorder %v688_v1, 0.0 }
 0x1b5   : > { %1928 = vst.msk [vmem:[%s3121_s24 + $0x20] sm:$0xff] %vm1923_vm0, %v2580_v5 }
 0x1b6   : > { %v3509_v6 = vsel %vm789_vm13, %v688_v1, %v853_v4 }
 0x1b7   : > { %v1281_v11 = vpop.f32.mrf.mxu1  ;;  %982 = vst.msk [vmem:[%s3003_s18 + $0x168] sm:$0xff] %vm936_vm3, %v3509_v6 }
 0x1b8   : > { %v1282_v13 = vadd.f32 %v3110_v45, %v1281_v11  ;;  %v2584_v14 = vpop.permute.xlu1 %2583  ;;  %v2599_v15 = vpop.permute.xlu2 %2598 }
 0x1b9   : > { %v2586_v16 = vunpack.i.h.bf16 %v2584_v14  ;;  %v2585_v17 = vunpack.i.l.bf16 %v2584_v14  ;;  %v2601_v18 = vunpack.i.h.bf16 %v2599_v15  ;;  %v2600_v22 = vunpack.i.l.bf16 %v2599_v15 }
 0x1ba   : > { %vm1431_vm15 = vcmp.gt.f32.partialorder %v1282_v13, 0.0  ;;  %2448 = vmatmul.msk.f32.gmra.mxu2 %vm936_vm3, %v3344_v34 }
 0x1bb   : > { %v2496_v20 = vsel %vm1431_vm15, 1.0, %v2890_v52  ;;  %2185 = vst.msk [vmem:[%s3121_s24 + $0x20] sm:$0xff] %vm2180_vm4, %v2585_v17  ;;  %2410 = vmatmul.msk.f32.gmra.mxu3 %vm338_vm1, %v332_v9 }
 0x1bc   : > { %1624 = vst.msk [vmem:[%s3121_s24 + $0xa8] sm:$0xff] %vm1602_vm6, %v2496_v20  ;;  %v2657_v23 = vpack.i.bf16 %v2496_v20, %v2495_v7 }
 0x1bd   : > { %2186 = vst.msk [vmem:[%s3121_s24 + $0x28] sm:$0xff] %vm2180_vm4, %v2586_v16 }
 0x1be   : > { %1933 = vst.msk [vmem:[%s3121_s24 + $0x48] sm:$0xff] %vm1923_vm0, %v2601_v18  ;;  %2658 = vrot.lane.b32.xlu1 %v2657_v23, %s2892_s26  ;;  %2663 = vrot.lane.b32.xlu0 %v2657_v23, %s2891_s25 }
 0x1bf   : > { %1932 = vst.msk [vmem:[%s3121_s24 + $0x40] sm:$0xff] %vm1923_vm0, %v2600_v22  ;;  %v1284_v27 = vpop.f32.mrf.mxu1  ;;  %v3540_v22 = vld [vmem:[%s4065_s4] ss:$0 sm:$0xff] }
 0x1c0   : > { %v1285_v29 = vadd.f32 %v3110_v45, %v1284_v27  ;;  %v2589_v30 = vpop.permute.xlu1 %2588 }
 0x1c1   : > { %v2591_v31 = vunpack.i.h.bf16 %v2589_v30  ;;  %v2590_v32 = vunpack.i.l.bf16 %v2589_v30 }
 0x1c2   : > { %vm1432_vm5 = vcmp.gt.f32.partialorder %v1285_v29, 0.0  ;;  %2449 = vmatmul.msk.f32.gmra.mxu2 %vm936_vm3, %v3362_v47  ;;  %v851_v47 = vmul.f32 0.1, %v682_v41 }
 0x1c3   : > { %v2497_v34 = vsel %vm1432_vm5, 1.0, %v2890_v52  ;;  %1931 = vst.msk [vmem:[%s3121_s24 + $0x38] sm:$0xff] %vm1923_vm0, %v2591_v31 }
 0x1c4   : > { %1625 = vst.msk [vmem:[%s3121_s24 + $0xb0] sm:$0xff] %vm1602_vm6, %v2497_v34  ;;  %v3473_v49 = vsel %vm787_vm9, %v682_v41, %v851_v47 }
 0x1c5   : > { %1930 = vst.msk [vmem:[%s3121_s24 + $0x30] sm:$0xff] %vm1923_vm0, %v2590_v32 }
 0x1c6   : > { %2187 = vst.msk [vmem:[%s3121_s24 + $0x30] sm:$0xff] %vm2180_vm4, %v2595_v35 }
 0x1c7   : > { %2188 = vst.msk [vmem:[%s3121_s24 + $0x38] sm:$0xff] %vm2180_vm4, %v2596_v36  ;;  %v1287_v40 = vpop.f32.mrf.mxu1 }
 0x1c8   : > { %v1288_v42 = vadd.f32 %v3110_v45, %v1287_v40  ;;  %v2609_v43 = vpop.permute.xlu2 %2608  ;;  %980 = vst.msk [vmem:[%s3003_s18 + $0x158] sm:$0xff] %vm936_vm3, %v3473_v49 }
 0x1c9   : > { %v2611_v44 = vunpack.i.h.bf16 %v2609_v43  ;;  %v2610_v46 = vunpack.i.l.bf16 %v2609_v43 }
 0x1ca   : > { %vm1433_vm8 = vcmp.gt.f32.partialorder %v1288_v42, 0.0  ;;  %2450 = vmatmul.msk.f32.gmra.mxu2 %vm936_vm3, %v3382_v59  ;;  %v852_v59 = vmul.f32 0.1, %v685_v55 }
 0x1cb   : > { %v2498_v48 = vsel %vm1433_vm8, 1.0, %v2890_v52  ;;  %1935 = vst.msk [vmem:[%s3121_s24 + $0x58] sm:$0xff] %vm1923_vm0, %v2611_v44 }
 0x1cc   : > { %1626 = vst.msk [vmem:[%s3121_s24 + $0xb8] sm:$0xff] %vm1602_vm6, %v2498_v48  ;;  %v2672_v50 = vpack.i.bf16 %v2498_v48, %v2497_v34  ;;  %v3493_v61 = vsel %vm788_vm11, %v685_v55, %v852_v59 }
 0x1cd   : > { %1934 = vst.msk [vmem:[%s3121_s24 + $0x50] sm:$0xff] %vm1923_vm0, %v2610_v46 }
 0x1ce   : > { %2673 = vrot.lane.b32.xlu1 %v2672_v50, %s2891_s25  ;;  %2668 = vrot.lane.b32.xlu2 %v2672_v50, %s2892_s26  ;;  %981 = vst.msk [vmem:[%s3003_s18 + $0x160] sm:$0xff] %vm936_vm3, %v3493_v61 }
 0x1cf   : > { %v1290_v54 = vpop.f32.mrf.mxu1 }
 0x1d0   : > { %v1291_v56 = vadd.f32 %v3110_v45, %v1290_v54  ;;  %v2604_v57 = vpop.permute.xlu0 %2603 }
 0x1d1   : > { %v2606_v58 = vunpack.i.h.bf16 %v2604_v57  ;;  %v2605_v21 = vunpack.i.l.bf16 %v2604_v57 }
 0x1d2   : > { %vm1434_vm10 = vcmp.gt.f32.partialorder %v1291_v56, 0.0  ;;  %2451 = vmatmul.msk.f32.gmra.mxu2 %vm936_vm3, %v3407_v8  ;;  %v690_v8 = vpop.f32.mrf.mxu3 }
 0x1d3   : > { %v2499_v60 = vsel %vm1434_vm10, 1.0, %v2890_v52  ;;  %2190 = vst.msk [vmem:[%s3121_s24 + $0x48] sm:$0xff] %vm2180_vm4, %v2606_v58  ;;  %v691_v11 = vadd.f32 %v3395_v63, %v690_v8 }
 0x1d4   : > { %1627 = vst.msk [vmem:[%s3121_s24 + $0xc0] sm:$0xff] %vm1602_vm6, %v2499_v60 }
 0x1d5   : > { %2189 = vst.msk [vmem:[%s3121_s24 + $0x40] sm:$0xff] %vm2180_vm4, %v2605_v21  ;;  %v854_v16 = vmul.f32 0.1, %v691_v11  ;;  %vm790_vm15 = vcmp.gt.f32.partialorder %v691_v11, 0.0 }
 0x1d7   : > { %v1293_v0 = vpop.f32.mrf.mxu1  ;;  %v3527_v18 = vsel %vm790_vm15, %v691_v11, %v854_v16 }
 0x1d8   : > { %v1294_v3 = vadd.f32 %v3110_v45, %v1293_v0  ;;  %983 = vst.msk [vmem:[%s3003_s18 + $0x170] sm:$0xff] %vm936_vm3, %v3527_v18  ;;  %v2624_v31 = vpop.permute.xlu2 %2623 }
 0x1d9   : > { %v2625_v39 = vunpack.i.l.bf16 %v2624_v31 }
 0x1da   : > { %vm1435_vm12 = vcmp.gt.f32.partialorder %v1294_v3, 0.0  ;;  %2452 = vmatmul.msk.f32.gmra.mxu2 %vm936_vm3, %v3429_v24 }
 0x1db   : > { %v2500_v5 = vsel %vm1435_vm12, 1.0, %v2890_v52 }
 0x1dc   : > { %1628 = vst.msk [vmem:[%s3121_s24 + $0xc8] sm:$0xff] %vm1602_vm6, %v2500_v5  ;;  %v2682_v7 = vpack.i.bf16 %v2500_v5, %v2499_v60 }
 0x1de   : > { %2683 = vrot.lane.b32.xlu2 %v2682_v7, %s2891_s25  ;;  %2678 = vrot.lane.b32.xlu0 %v2682_v7, %s2892_s26 }
 0x1df   : > { %v1296_v10 = vpop.f32.mrf.mxu1 }
 0x1e0   : > { %v1297_v12 = vadd.f32 %v3110_v45, %v1296_v10  ;;  %v2614_v13 = vpop.permute.xlu1 %2613  ;;  %v693_v45 = vpop.f32.mrf.mxu3 }
 0x1e1   : > { %v2616_v14 = vunpack.i.h.bf16 %v2614_v13  ;;  %v2615_v15 = vunpack.i.l.bf16 %v2614_v13  ;;  %v694_v20 = vadd.f32 %v3395_v63, %v693_v45 }
 0x1e2   : > { %vm1436_vm14 = vcmp.gt.f32.partialorder %v1297_v12, 0.0  ;;  %2453 = vmatmul.msk.f32.gmra.mxu2 %vm936_vm3, %v3455_v37  ;;  %v2626_v37 = vunpack.i.h.bf16 %v2624_v31 }
 0x1e3   : > { %v2501_v17 = vsel %vm1436_vm14, 1.0, %v2890_v52  ;;  %2191 = vst.msk [vmem:[%s3121_s24 + $0x50] sm:$0xff] %vm2180_vm4, %v2615_v15  ;;  %v855_v24 = vmul.f32 0.1, %v694_v20  ;;  %vm791_vm2 = vcmp.gt.f32.partialorder %v694_v20, 0.0 }
 0x1e4   : > { %1629 = vst.msk [vmem:[%s3121_s24 + $0xd0] sm:$0xff] %vm1602_vm6, %v2501_v17 }
 0x1e5   : > { %2192 = vst.msk [vmem:[%s3121_s24 + $0x58] sm:$0xff] %vm2180_vm4, %v2616_v14  ;;  %v3546_v26 = vsel %vm791_vm2, %v694_v20, %v855_v24 }
 0x1e6   : > { %984 = vst.msk [vmem:[%s3003_s18 + $0x178] sm:$0xff] %vm936_vm3, %v3546_v26 }
 0x1e7   : > { %v1299_v19 = vpop.f32.mrf.mxu1 }
 0x1e8   : > { %v1300_v23 = vadd.f32 %v3540_v22, %v1299_v19  ;;  %v696_v28 = vpop.f32.mrf.mxu3 }
 0x1e9   : > { %v697_v30 = vadd.f32 %v3395_v63, %v696_v28 }
 0x1ea   : > { %vm1437_vm1 = vcmp.gt.f32.partialorder %v1300_v23, 0.0  ;;  %2454 = vmatmul.msk.f32.gmra.mxu2 %vm936_vm3, %v3473_v49 }
 0x1eb   : > { %v2502_v25 = vsel %vm1437_vm1, 1.0, %v2890_v52  ;;  %v856_v35 = vmul.f32 0.1, %v697_v30  ;;  %vm792_vm7 = vcmp.gt.f32.partialorder %v697_v30, 0.0 }
 0x1ec   : > { %1630 = vst.msk [vmem:[%s3121_s24 + $0xd8] sm:$0xff] %vm1602_vm6, %v2502_v25  ;;  %v2687_v27 = vpack.i.bf16 %v2502_v25, %v2501_v17 }
 0x1ed   : > { %v3566_v40 = vsel %vm792_vm7, %v697_v30, %v856_v35 }
 0x1ee   : > { %2688 = vrot.lane.b32.xlu1 %v2687_v27, %s2892_s26  ;;  %2693 = vrot.lane.b32.xlu0 %v2687_v27, %s2891_s25  ;;  %985 = vst.msk [vmem:[%s3003_s18 + $0x180] sm:$0xff] %vm936_vm3, %v3566_v40 }
 0x1ef   : > { %v1302_v29 = vpop.f32.mrf.mxu1 }
 0x1f0   : > { %v1303_v32 = vadd.f32 %v3540_v22, %v1302_v29  ;;  %v2619_v33 = vpop.permute.xlu0 %2618  ;;  %v699_v41 = vpop.f32.mrf.mxu3 }
 0x1f1   : > { %v2621_v34 = vunpack.i.h.bf16 %v2619_v33  ;;  %v2620_v36 = vunpack.i.l.bf16 %v2619_v33  ;;  %v700_v43 = vadd.f32 %v3395_v63, %v699_v41 }
 0x1f2   : > { %vm1438_vm5 = vcmp.gt.f32.partialorder %v1303_v32, 0.0  ;;  %2455 = vmatmul.msk.f32.gmra.mxu2 %vm936_vm3, %v3493_v61 }
 0x1f3   : > { %v2503_v38 = vsel %vm1438_vm5, 1.0, %v2890_v52  ;;  %1937 = vst.msk [vmem:[%s3121_s24 + $0x68] sm:$0xff] %vm1923_vm0, %v2621_v34  ;;  %v857_v49 = vmul.f32 0.1, %v700_v43  ;;  %vm793_vm9 = vcmp.gt.f32.partialorder %v700_v43, 0.0 }
 0x1f4   : > { %1631 = vst.msk [vmem:[%s3121_s24 + $0xe0] sm:$0xff] %vm1602_vm6, %v2503_v38 }
 0x1f5   : > { %2194 = vst.msk [vmem:[%s3121_s24 + $0x68] sm:$0xff] %vm2180_vm4, %v2626_v37  ;;  %v3582_v51 = vsel %vm793_vm9, %v700_v43, %v857_v49 }
 0x1f6   : > { %1936 = vst.msk [vmem:[%s3121_s24 + $0x60] sm:$0xff] %vm1923_vm0, %v2620_v36 }
 0x1f7   : > { %2193 = vst.msk [vmem:[%s3121_s24 + $0x60] sm:$0xff] %vm2180_vm4, %v2625_v39  ;;  %v1305_v42 = vpop.f32.mrf.mxu1 }
 0x1f8   : > { %v1306_v44 = vadd.f32 %v3540_v22, %v1305_v42  ;;  %v2639_v46 = vpop.permute.xlu2 %2638  ;;  %v702_v54 = vpop.f32.mrf.mxu3  ;;  %986 = vst.msk [vmem:[%s3003_s18 + $0x188] sm:$0xff] %vm936_vm3, %v3582_v51 }
 0x1f9   : > { %v2641_v47 = vunpack.i.h.bf16 %v2639_v46  ;;  %v2640_v48 = vunpack.i.l.bf16 %v2639_v46  ;;  %v703_v56 = vadd.f32 %v3395_v63, %v702_v54 }
 0x1fa   : > { %vm1439_vm8 = vcmp.gt.f32.partialorder %v1306_v44, 0.0  ;;  %2456 = vmatmul.msk.f32.gmra.mxu2 %vm936_vm3, %v3509_v6 }
 0x1fb   : > { %v2504_v50 = vsel %vm1439_vm8, 1.0, %v2890_v52  ;;  %1941 = vst.msk [vmem:[%s3121_s24 + $0x88] sm:$0xff] %vm1923_vm0, %v2641_v47  ;;  %v858_v62 = vmul.f32 0.1, %v703_v56  ;;  %vm794_vm11 = vcmp.gt.f32.partialorder %v703_v56, 0.0 }
 0x1fc   : > { %1632 = vst.msk [vmem:[%s3121_s24 + $0xe8] sm:$0xff] %vm1602_vm6, %v2504_v50  ;;  %v2702_v53 = vpack.i.bf16 %v2504_v50, %v2503_v38 }
 0x1fd   : > { %1940 = vst.msk [vmem:[%s3121_s24 + $0x80] sm:$0xff] %vm1923_vm0, %v2640_v48  ;;  %v922_v2 = vsel %vm794_vm11, %v703_v56, %v858_v62 }
 0x1fe   : > { %2703 = vrot.lane.b32.xlu1 %v2702_v53, %s2891_s25  ;;  %2698 = vrot.lane.b32.xlu2 %v2702_v53, %s2892_s26  ;;  %987 = vst.msk [vmem:[%s3003_s18 + $0x190] sm:$0xff] %vm936_vm3, %v922_v2 }
 0x1ff   : > { %v1308_v55 = vpop.f32.mrf.mxu1 }
 0x200   : > { %v1309_v57 = vadd.f32 %v3540_v22, %v1308_v55  ;;  %v2629_v58 = vpop.permute.xlu1 %2628  ;;  %v2634_v21 = vpop.permute.xlu0 %2633 }
 0x201   : > { %v2631_v59 = vunpack.i.h.bf16 %v2629_v58  ;;  %v2630_v60 = vunpack.i.l.bf16 %v2629_v58  ;;  %v2636_v61 = vunpack.i.h.bf16 %v2634_v21  ;;  %v2635_v1 = vunpack.i.l.bf16 %v2634_v21  ;;  %v705_v3 = vpop.f32.mrf.mxu3 }
 0x202   : > { %vm1440_vm10 = vcmp.gt.f32.partialorder %v1309_v57, 0.0  ;;  %2457 = vmatmul.msk.f32.gmra.mxu2 %vm936_vm3, %v3527_v18  ;;  %v706_v5 = vadd.f32 %v3395_v63, %v705_v3 }
 0x203   : > { %v2505_v0 = vsel %vm1440_vm10, 1.0, %v2890_v52  ;;  %1939 = vst.msk [vmem:[%s3121_s24 + $0x78] sm:$0xff] %vm1923_vm0, %v2631_v59 }
 0x204   : > { %1633 = vst.msk [vmem:[%s3121_s24 + $0xf0] sm:$0xff] %vm1602_vm6, %v2505_v0  ;;  %v859_v7 = vmul.f32 0.1, %v706_v5  ;;  %vm795_vm13 = vcmp.gt.f32.partialorder %v706_v5, 0.0 }
 0x205   : > { %1938 = vst.msk [vmem:[%s3121_s24 + $0x70] sm:$0xff] %vm1923_vm0, %v2630_v60 }
 0x206   : > { %2196 = vst.msk [vmem:[%s3121_s24 + $0x78] sm:$0xff] %vm2180_vm4, %v2636_v61  ;;  %v3615_v9 = vsel %vm795_vm13, %v706_v5, %v859_v7 }
 0x207   : > { %2195 = vst.msk [vmem:[%s3121_s24 + $0x70] sm:$0xff] %vm2180_vm4, %v2635_v1  ;;  %v1311_v4 = vpop.f32.mrf.mxu1 }
 0x208   : > { %v1312_v6 = vadd.f32 %v3540_v22, %v1311_v4  ;;  %988 = vst.msk [vmem:[%s3003_s18 + $0x198] sm:$0xff] %vm936_vm3, %v3615_v9  ;;  %v2654_v29 = vpop.permute.xlu2 %2653 }
 0x209   : > { %v708_v11 = vpop.f32.mrf.mxu3  ;;  %v2656_v36 = vunpack.i.h.bf16 %v2654_v29  ;;  %v2655_v38 = vunpack.i.l.bf16 %v2654_v29 }
 0x20a   : > { %vm1441_vm12 = vcmp.gt.f32.partialorder %v1312_v6, 0.0  ;;  %2458 = vmatmul.msk.f32.gmra.mxu2 %vm936_vm3, %v3546_v26  ;;  %v709_v12 = vadd.f32 %v3395_v63, %v708_v11 }
 0x20b   : > { %v2506_v8 = vsel %vm1441_vm12, 1.0, %v2890_v52 }
 0x20c   : > { %1634 = vst.msk [vmem:[%s3121_s24 + $0xf8] sm:$0xff] %vm1602_vm6, %v2506_v8  ;;  %v2712_v10 = vpack.i.bf16 %v2506_v8, %v2505_v0  ;;  %v860_v16 = vmul.f32 0.1, %v709_v12  ;;  %vm796_vm14 = vcmp.gt.f32.partialorder %v709_v12, 0.0 }
 0x20e   : > { %2713 = vrot.lane.b32.xlu2 %v2712_v10, %s2891_s25  ;;  %2708 = vrot.lane.b32.xlu0 %v2712_v10, %s2892_s26  ;;  %v3629_v17 = vsel %vm796_vm14, %v709_v12, %v860_v16 }
 0x20f   : > { %989 = vst.msk [vmem:[%s3003_s18 + $0x1a0] sm:$0xff] %vm936_vm3, %v3629_v17 }
 0x210   : > { %v2644_v13 = vpop.permute.xlu1 %2643 }
 0x211   : > { %v2646_v14 = vunpack.i.h.bf16 %v2644_v13  ;;  %v2645_v15 = vunpack.i.l.bf16 %v2644_v13  ;;  %v711_v19 = vpop.f32.mrf.mxu3 }
 0x212   : > { %2459 = vmatmul.msk.f32.gmra.mxu2 %vm936_vm3, %v3566_v40  ;;  %v712_v20 = vadd.f32 %v3395_v63, %v711_v19 }
 0x213   : > { %2197 = vst.msk [vmem:[%s3121_s24 + $0x80] sm:$0xff] %vm2180_vm4, %v2645_v15 }
 0x214   : > { %2198 = vst.msk [vmem:[%s3121_s24 + $0x88] sm:$0xff] %vm2180_vm4, %v2646_v14  ;;  %v861_v24 = vmul.f32 0.1, %v712_v20  ;;  %vm797_vm1 = vcmp.gt.f32.partialorder %v712_v20, 0.0 }
 0x215   : > { %v1314_v18 = vpop.f32.mrf.mxu2 }
 0x216   : > { %v1315_v45 = vadd.f32 %v3540_v22, %v1314_v18  ;;  %v3643_v25 = vsel %vm797_vm1, %v712_v20, %v861_v24 }
 0x217   : > { %990 = vst.msk [vmem:[%s3003_s18 + $0x1a8] sm:$0xff] %vm936_vm3, %v3643_v25 }
 0x218   : > { %vm1442_vm15 = vcmp.gt.f32.partialorder %v1315_v45, 0.0 }
 0x219   : > { %v2507_v23 = vsel %vm1442_vm15, 1.0, %v2890_v52  ;;  %v714_v28 = vpop.f32.mrf.mxu3 }
 0x21a   : > { %1635 = vst.msk [vmem:[%s3121_s24 + $0x100] sm:$0xff] %vm1602_vm6, %v2507_v23  ;;  %2460 = vmatmul.msk.f32.gmra.mxu2 %vm936_vm3, %v3582_v51  ;;  %v715_v30 = vadd.f32 %v3395_v63, %v714_v28 }
 0x21c   : > { %v862_v35 = vmul.f32 0.1, %v715_v30  ;;  %vm798_vm5 = vcmp.gt.f32.partialorder %v715_v30, 0.0 }
 0x21d   : > { %v1317_v26 = vpop.f32.mrf.mxu2 }
 0x21e   : > { %v1318_v27 = vadd.f32 %v3540_v22, %v1317_v26  ;;  %v3660_v39 = vsel %vm798_vm5, %v715_v30, %v862_v35 }
 0x21f   : > { %991 = vst.msk [vmem:[%s3003_s18 + $0x1b0] sm:$0xff] %vm936_vm3, %v3660_v39 }
 0x220   : > { %vm1443_vm2 = vcmp.gt.f32.partialorder %v1318_v27, 0.0  ;;  %v2649_v31 = vpop.permute.xlu0 %2648 }
 0x221   : > { %v2508_v32 = vsel %vm1443_vm2, 1.0, %v2890_v52  ;;  %v2651_v33 = vunpack.i.h.bf16 %v2649_v31  ;;  %v2650_v34 = vunpack.i.l.bf16 %v2649_v31  ;;  %v717_v42 = vpop.f32.mrf.mxu3 }
 0x222   : > { %1636 = vst.msk [vmem:[%s3121_s24 + $0x108] sm:$0xff] %vm1602_vm6, %v2508_v32  ;;  %2461 = vmatmul.msk.f32.gmra.mxu2 %vm936_vm3, %v922_v2  ;;  %v2717_v37 = vpack.i.bf16 %v2508_v32, %v2507_v23  ;;  %v718_v43 = vadd.f32 %v3395_v63, %v717_v42 }
 0x223   : > { %1943 = vst.msk [vmem:[%s3121_s24 + $0x98] sm:$0xff] %vm1923_vm0, %v2651_v33 }
 0x224   : > { %2200 = vst.msk [vmem:[%s3121_s24 + $0x98] sm:$0xff] %vm2180_vm4, %v2656_v36  ;;  %2718 = vrot.lane.b32.xlu1 %v2717_v37, %s2892_s26  ;;  %2723 = vrot.lane.b32.xlu0 %v2717_v37, %s2891_s25  ;;  %v863_v49 = vmul.f32 0.1, %v718_v43  ;;  %vm799_vm8 = vcmp.gt.f32.partialorder %v718_v43, 0.0 }
 0x225   : > { %1942 = vst.msk [vmem:[%s3121_s24 + $0x90] sm:$0xff] %vm1923_vm0, %v2650_v34  ;;  %v1320_v40 = vpop.f32.mrf.mxu2 }
 0x226   : > { %2199 = vst.msk [vmem:[%s3121_s24 + $0x90] sm:$0xff] %vm2180_vm4, %v2655_v38  ;;  %v1321_v41 = vadd.f32 %v3540_v22, %v1320_v40  ;;  %v3678_v50 = vsel %vm799_vm8, %v718_v43, %v863_v49 }
 0x227   : > { %992 = vst.msk [vmem:[%s3003_s18 + $0x1b8] sm:$0xff] %vm936_vm3, %v3678_v50 }
 0x228   : > { %vm1444_vm7 = vcmp.gt.f32.partialorder %v1321_v41, 0.0  ;;  %v2669_v44 = vpop.permute.xlu2 %2668 }
 0x229   : > { %v2509_v46 = vsel %vm1444_vm7, 1.0, %v2890_v52  ;;  %v2671_v47 = vunpack.i.h.bf16 %v2669_v44  ;;  %v2670_v48 = vunpack.i.l.bf16 %v2669_v44  ;;  %v720_v54 = vpop.f32.mrf.mxu3 }
 0x22a   : > { %1637 = vst.msk [vmem:[%s3121_s24 + $0x110] sm:$0xff] %vm1602_vm6, %v2509_v46  ;;  %2462 = vmatmul.msk.f32.gmra.mxu2 %vm936_vm3, %v3615_v9  ;;  %v721_v55 = vadd.f32 %v3395_v63, %v720_v54 }
 0x22b   : > { %1947 = vst.msk [vmem:[%s3121_s24 + $0xb8] sm:$0xff] %vm1923_vm0, %v2671_v47 }
 0x22c   : > { %1946 = vst.msk [vmem:[%s3121_s24 + $0xb0] sm:$0xff] %vm1923_vm0, %v2670_v48  ;;  %vm800_vm10 = vcmp.gt.f32.partialorder %v721_v55, 0.0  ;;  %v864_v0 = vmul.f32 0.1, %v721_v55 }
 0x22d   : > { %v1323_v51 = vpop.f32.mrf.mxu2 }
 0x22e   : > { %v1324_v53 = vadd.f32 %v3540_v22, %v1323_v51  ;;  %v928_v2 = vsel %vm800_vm10, %v721_v55, %v864_v0 }
 0x22f   : > { %993 = vst.msk [vmem:[%s3003_s18 + $0x1c0] sm:$0xff] %vm936_vm3, %v928_v2 }
 0x230   : > { %vm1445_vm9 = vcmp.gt.f32.partialorder %v1324_v53, 0.0  ;;  %v2659_v56 = vpop.permute.xlu1 %2658  ;;  %v2664_v57 = vpop.permute.xlu0 %2663 }
 0x231   : > { %v2510_v58 = vsel %vm1445_vm9, 1.0, %v2890_v52  ;;  %v2661_v21 = vunpack.i.h.bf16 %v2659_v56  ;;  %v2660_v59 = vunpack.i.l.bf16 %v2659_v56  ;;  %v2666_v60 = vunpack.i.h.bf16 %v2664_v57  ;;  %v723_v4 = vpop.f32.mrf.mxu3 }
 0x232   : > { %1638 = vst.msk [vmem:[%s3121_s24 + $0x118] sm:$0xff] %vm1602_vm6, %v2510_v58  ;;  %v2665_v61 = vunpack.i.l.bf16 %v2664_v57  ;;  %2463 = vmatmul.msk.f32.gmra.mxu2 %vm936_vm3, %v3629_v17  ;;  %v2732_v62 = vpack.i.bf16 %v2510_v58, %v2509_v46  ;;  %v724_v5 = vadd.f32 %v3395_v63, %v723_v4 }
 0x233   : > { %1945 = vst.msk [vmem:[%s3121_s24 + $0xa8] sm:$0xff] %vm1923_vm0, %v2661_v21 }
 0x234   : > { %1944 = vst.msk [vmem:[%s3121_s24 + $0xa0] sm:$0xff] %vm1923_vm0, %v2660_v59  ;;  %2733 = vrot.lane.b32.xlu1 %v2732_v62, %s2891_s25  ;;  %2728 = vrot.lane.b32.xlu2 %v2732_v62, %s2892_s26  ;;  %vm801_vm12 = vcmp.gt.f32.partialorder %v724_v5, 0.0  ;;  %v865_v7 = vmul.f32 0.1, %v724_v5 }
 0x235   : > { %2202 = vst.msk [vmem:[%s3121_s24 + $0xa8] sm:$0xff] %vm2180_vm4, %v2666_v60  ;;  %v1326_v1 = vpop.f32.mrf.mxu2 }
 0x236   : > { %2201 = vst.msk [vmem:[%s3121_s24 + $0xa0] sm:$0xff] %vm2180_vm4, %v2665_v61  ;;  %v1327_v3 = vadd.f32 %v3540_v22, %v1326_v1  ;;  %v3711_v8 = vsel %vm801_vm12, %v724_v5, %v865_v7 }
 0x237   : > { %994 = vst.msk [vmem:[%s3003_s18 + $0x1c8] sm:$0xff] %vm936_vm3, %v3711_v8 }
 0x238   : > { %vm1446_vm11 = vcmp.gt.f32.partialorder %v1327_v3, 0.0  ;;  %v2684_v31 = vpop.permute.xlu2 %2683 }
 0x239   : > { %v2511_v6 = vsel %vm1446_vm11, 1.0, %v2890_v52  ;;  %v726_v11 = vpop.f32.mrf.mxu3  ;;  %v2686_v37 = vunpack.i.h.bf16 %v2684_v31  ;;  %v2685_v40 = vunpack.i.l.bf16 %v2684_v31 }
 0x23a   : > { %1639 = vst.msk [vmem:[%s3121_s24 + $0x120] sm:$0xff] %vm1602_vm6, %v2511_v6  ;;  %2464 = vmatmul.msk.f32.gmra.mxu2 %vm936_vm3, %v3643_v25  ;;  %v727_v12 = vadd.f32 %v3395_v63, %v726_v11 }
 0x23c   : > { %vm802_vm14 = vcmp.gt.f32.partialorder %v727_v12, 0.0  ;;  %v866_v18 = vmul.f32 0.1, %v727_v12 }
 0x23d   : > { %v1329_v9 = vpop.f32.mrf.mxu2 }
 0x23e   : > { %v1330_v10 = vadd.f32 %v3540_v22, %v1329_v9  ;;  %v3729_v45 = vsel %vm802_vm14, %v727_v12, %v866_v18 }
 0x23f   : > { %995 = vst.msk [vmem:[%s3003_s18 + $0x1d0] sm:$0xff] %vm936_vm3, %v3729_v45 }
 0x240   : > { %vm1447_vm13 = vcmp.gt.f32.partialorder %v1330_v10, 0.0  ;;  %v2674_v13 = vpop.permute.xlu1 %2673 }
 0x241   : > { %v2512_v14 = vsel %vm1447_vm13, 1.0, %v2890_v52  ;;  %v2676_v15 = vunpack.i.h.bf16 %v2674_v13  ;;  %v2675_v16 = vunpack.i.l.bf16 %v2674_v13  ;;  %v729_v23 = vpop.f32.mrf.mxu3 }
 0x242   : > { %1640 = vst.msk [vmem:[%s3121_s24 + $0x128] sm:$0xff] %vm1602_vm6, %v2512_v14  ;;  %2465 = vmatmul.msk.f32.gmra.mxu2 %vm936_vm3, %v3660_v39  ;;  %v2742_v17 = vpack.i.bf16 %v2512_v14, %v2511_v6  ;;  %v730_v24 = vadd.f32 %v3395_v63, %v729_v23 }
 0x243   : > { %2203 = vst.msk [vmem:[%s3121_s24 + $0xb0] sm:$0xff] %vm2180_vm4, %v2675_v16 }
 0x244   : > { %2204 = vst.msk [vmem:[%s3121_s24 + $0xb8] sm:$0xff] %vm2180_vm4, %v2676_v15  ;;  %2743 = vrot.lane.b32.xlu2 %v2742_v17, %s2891_s25  ;;  %2738 = vrot.lane.b32.xlu0 %v2742_v17, %s2892_s26  ;;  %vm803_vm1 = vcmp.gt.f32.partialorder %v730_v24, 0.0  ;;  %v867_v26 = vmul.f32 0.1, %v730_v24 }
 0x245   : > { %v1332_v19 = vpop.f32.mrf.mxu2 }
 0x246   : > { %v1333_v20 = vadd.f32 %v3540_v22, %v1332_v19  ;;  %v3741_v27 = vsel %vm803_vm1, %v730_v24, %v867_v26 }
 0x247   : > { %996 = vst.msk [vmem:[%s3003_s18 + $0x1d8] sm:$0xff] %vm936_vm3, %v3741_v27 }
 0x248   : > { %vm1448_vm15 = vcmp.gt.f32.partialorder %v1333_v20, 0.0 }
 0x249   : > { %v2513_v25 = vsel %vm1448_vm15, 1.0, %v2890_v52  ;;  %v732_v30 = vpop.f32.mrf.mxu3 }
 0x24a   : > { %1641 = vst.msk [vmem:[%s3121_s24 + $0x130] sm:$0xff] %vm1602_vm6, %v2513_v25  ;;  %2466 = vmatmul.msk.f32.gmra.mxu2 %vm936_vm3, %v3678_v50  ;;  %v733_v32 = vadd.f32 %v3395_v63, %v732_v30 }
 0x24c   : > { %vm804_vm5 = vcmp.gt.f32.partialorder %v733_v32, 0.0  ;;  %v868_v39 = vmul.f32 0.1, %v733_v32 }
 0x24d   : > { %v1335_v28 = vpop.f32.mrf.mxu2 }
 0x24e   : > { %v1336_v29 = vadd.f32 %v3540_v22, %v1335_v28  ;;  %v3758_v41 = vsel %vm804_vm5, %v733_v32, %v868_v39 }
 0x24f   : > { %997 = vst.msk [vmem:[%s3003_s18 + $0x1e0] sm:$0xff] %vm936_vm3, %v3758_v41 }
 0x250   : > { %vm1449_vm2 = vcmp.gt.f32.partialorder %v1336_v29, 0.0  ;;  %v2679_v33 = vpop.permute.xlu0 %2678 }
 0x251   : > { %v2514_v34 = vsel %vm1449_vm2, 1.0, %v2890_v52  ;;  %v2681_v35 = vunpack.i.h.bf16 %v2679_v33  ;;  %v2680_v36 = vunpack.i.l.bf16 %v2679_v33  ;;  %v735_v44 = vpop.f32.mrf.mxu3 }
 0x252   : > { %1642 = vst.msk [vmem:[%s3121_s24 + $0x138] sm:$0xff] %vm1602_vm6, %v2514_v34  ;;  %2467 = vmatmul.msk.f32.gmra.mxu2 %vm936_vm3, %v928_v2  ;;  %v2747_v38 = vpack.i.bf16 %v2514_v34, %v2513_v25  ;;  %v736_v46 = vadd.f32 %v3395_v63, %v735_v44 }
 0x253   : > { %1949 = vst.msk [vmem:[%s3121_s24 + $0xc8] sm:$0xff] %vm1923_vm0, %v2681_v35 }
 0x254   : > { %2206 = vst.msk [vmem:[%s3121_s24 + $0xc8] sm:$0xff] %vm2180_vm4, %v2686_v37  ;;  %2748 = vrot.lane.b32.xlu1 %v2747_v38, %s2892_s26  ;;  %2753 = vrot.lane.b32.xlu0 %v2747_v38, %s2891_s25  ;;  %vm805_vm8 = vcmp.gt.f32.partialorder %v736_v46, 0.0  ;;  %v869_v51 = vmul.f32 0.1, %v736_v46 }
 0x255   : > { %1948 = vst.msk [vmem:[%s3121_s24 + $0xc0] sm:$0xff] %vm1923_vm0, %v2680_v36  ;;  %v1338_v42 = vpop.f32.mrf.mxu2 }
 0x256   : > { %2205 = vst.msk [vmem:[%s3121_s24 + $0xc0] sm:$0xff] %vm2180_vm4, %v2685_v40  ;;  %v1339_v43 = vadd.f32 %v3540_v22, %v1338_v42  ;;  %v933_v53 = vsel %vm805_vm8, %v736_v46, %v869_v51 }
 0x257   : > { %998 = vst.msk [vmem:[%s3003_s18 + $0x1e8] sm:$0xff] %vm936_vm3, %v933_v53 }
 0x258   : > { %vm1450_vm7 = vcmp.gt.f32.partialorder %v1339_v43, 0.0  ;;  %v2699_v47 = vpop.permute.xlu2 %2698 }
 0x259   : > { %v2515_v48 = vsel %vm1450_vm7, 1.0, %v2890_v52  ;;  %v2701_v49 = vunpack.i.h.bf16 %v2699_v47  ;;  %v2700_v50 = vunpack.i.l.bf16 %v2699_v47  ;;  %v738_v56 = vpop.f32.mrf.mxu3 }
 0x25a   : > { %1643 = vst.msk [vmem:[%s3121_s24 + $0x140] sm:$0xff] %vm1602_vm6, %v2515_v48  ;;  %2468 = vmatmul.msk.f32.gmra.mxu2 %vm936_vm3, %v3711_v8  ;;  %v739_v57 = vadd.f32 %v3395_v63, %v738_v56 }
 0x25b   : > { %1953 = vst.msk [vmem:[%s3121_s24 + $0xe8] sm:$0xff] %vm1923_vm0, %v2701_v49 }
 0x25c   : > { %1952 = vst.msk [vmem:[%s3121_s24 + $0xe0] sm:$0xff] %vm1923_vm0, %v2700_v50  ;;  %vm806_vm10 = vcmp.gt.f32.partialorder %v739_v57, 0.0  ;;  %v870_v2 = vmul.f32 0.1, %v739_v57 }
 0x25d   : > { %v1341_v54 = vpop.f32.mrf.mxu2 }
 0x25e   : > { %v1342_v55 = vadd.f32 %v3540_v22, %v1341_v54  ;;  %v934_v4 = vsel %vm806_vm10, %v739_v57, %v870_v2 }
 0x25f   : > { %999 = vst.msk [vmem:[%s3003_s18 + $0x1f0] sm:$0xff] %vm936_vm3, %v934_v4 }
 0x260   : > { %vm1451_vm9 = vcmp.gt.f32.partialorder %v1342_v55, 0.0  ;;  %v2689_v58 = vpop.permute.xlu1 %2688  ;;  %v2694_v21 = vpop.permute.xlu0 %2693 }
 0x261   : > { %v2516_v59 = vsel %vm1451_vm9, 1.0, %v2890_v52  ;;  %v2691_v60 = vunpack.i.h.bf16 %v2689_v58  ;;  %v2690_v61 = vunpack.i.l.bf16 %v2689_v58  ;;  %v2696_v62 = vunpack.i.h.bf16 %v2694_v21  ;;  %v741_v6 = vpop.f32.mrf.mxu3 }
 0x262   : > { %1644 = vst.msk [vmem:[%s3121_s24 + $0x148] sm:$0xff] %vm1602_vm6, %v2516_v59  ;;  %v2695_v0 = vunpack.i.l.bf16 %v2694_v21  ;;  %2469 = vmatmul.msk.f32.gmra.mxu2 %vm936_vm3, %v3729_v45  ;;  %v2762_v1 = vpack.i.bf16 %v2516_v59, %v2515_v48  ;;  %v742_v7 = vadd.f32 %v3395_v63, %v741_v6 }
 0x263   : > { %1951 = vst.msk [vmem:[%s3121_s24 + $0xd8] sm:$0xff] %vm1923_vm0, %v2691_v60 }
 0x264   : > { %1950 = vst.msk [vmem:[%s3121_s24 + $0xd0] sm:$0xff] %vm1923_vm0, %v2690_v61  ;;  %2763 = vrot.lane.b32.xlu1 %v2762_v1, %s2891_s25  ;;  %2758 = vrot.lane.b32.xlu2 %v2762_v1, %s2892_s26  ;;  %vm807_vm12 = vcmp.gt.f32.partialorder %v742_v7, 0.0  ;;  %v871_v9 = vmul.f32 0.1, %v742_v7 }
 0x265   : > { %2208 = vst.msk [vmem:[%s3121_s24 + $0xd8] sm:$0xff] %vm2180_vm4, %v2696_v62  ;;  %v1344_v3 = vpop.f32.mrf.mxu2 }
 0x266   : > { %2207 = vst.msk [vmem:[%s3121_s24 + $0xd0] sm:$0xff] %vm2180_vm4, %v2695_v0  ;;  %v1345_v5 = vadd.f32 %v3540_v22, %v1344_v3  ;;  %v935_v10 = vsel %vm807_vm12, %v742_v7, %v871_v9 }
 0x267   : > { %1000 = vst.msk [vmem:[%s3003_s18 + $0x1f8] sm:$0xff] %vm936_vm3, %v935_v10 }
 0x268   : > { %vm1452_vm11 = vcmp.gt.f32.partialorder %v1345_v5, 0.0  ;;  %v2714_v23 = vpop.permute.xlu2 %2713 }
 0x269   : > { %v2517_v8 = vsel %vm1452_vm11, 1.0, %v2890_v52  ;;  %v2716_v28 = vunpack.i.h.bf16 %v2714_v23  ;;  %v2715_v30 = vunpack.i.l.bf16 %v2714_v23 }
 0x26a   : > { %1645 = vst.msk [vmem:[%s3121_s24 + $0x150] sm:$0xff] %vm1602_vm6, %v2517_v8  ;;  %2470 = vmatmul.msk.f32.gmra.mxu2 %vm936_vm3, %v3741_v27 }
 0x26d   : > { %v1347_v11 = vpop.f32.mrf.mxu2 }
 0x26e   : > { %v1348_v63 = vadd.f32 %v3540_v22, %v1347_v11 }
 0x270   : > { %vm1453_vm13 = vcmp.gt.f32.partialorder %v1348_v63, 0.0  ;;  %v2704_v12 = vpop.permute.xlu1 %2703 }
 0x271   : > { %v2518_v13 = vsel %vm1453_vm13, 1.0, %v2890_v52  ;;  %v2706_v14 = vunpack.i.h.bf16 %v2704_v12  ;;  %v2705_v15 = vunpack.i.l.bf16 %v2704_v12 }
 0x272   : > { %1646 = vst.msk [vmem:[%s3121_s24 + $0x158] sm:$0xff] %vm1602_vm6, %v2518_v13  ;;  %2471 = vmatmul.msk.f32.gmra.mxu2 %vm936_vm3, %v3758_v41  ;;  %v2772_v16 = vpack.i.bf16 %v2518_v13, %v2517_v8 }
 0x273   : > { %2209 = vst.msk [vmem:[%s3121_s24 + $0xe0] sm:$0xff] %vm2180_vm4, %v2705_v15 }
 0x274   : > { %2210 = vst.msk [vmem:[%s3121_s24 + $0xe8] sm:$0xff] %vm2180_vm4, %v2706_v14  ;;  %2773 = vrot.lane.b32.xlu2 %v2772_v16, %s2891_s25  ;;  %2768 = vrot.lane.b32.xlu0 %v2772_v16, %s2892_s26 }
 0x275   : > { %v1350_v17 = vpop.f32.mrf.mxu2 }
 0x276   : > { %v1351_v18 = vadd.f32 %v3540_v22, %v1350_v17 }
 0x278   : > { %vm1454_vm14 = vcmp.gt.f32.partialorder %v1351_v18, 0.0 }
 0x279   : > { %v2519_v45 = vsel %vm1454_vm14, 1.0, %v2890_v52 }
 0x27a   : > { %1647 = vst.msk [vmem:[%s3121_s24 + $0x160] sm:$0xff] %vm1602_vm6, %v2519_v45  ;;  %2472 = vmatmul.msk.f32.gmra.mxu2 %vm936_vm3, %v933_v53 }
 0x27d   : > { %v1353_v19 = vpop.f32.mrf.mxu2 }
 0x27e   : > { %v1354_v20 = vadd.f32 %v3540_v22, %v1353_v19 }
 0x280   : > { %vm1455_vm15 = vcmp.gt.f32.partialorder %v1354_v20, 0.0  ;;  %v2709_v24 = vpop.permute.xlu0 %2708 }
 0x281   : > { %v2520_v25 = vsel %vm1455_vm15, 1.0, %v2890_v52  ;;  %v2711_v26 = vunpack.i.h.bf16 %v2709_v24  ;;  %v2710_v27 = vunpack.i.l.bf16 %v2709_v24 }
 0x282   : > { %1648 = vst.msk [vmem:[%s3121_s24 + $0x168] sm:$0xff] %vm1602_vm6, %v2520_v25  ;;  %2473 = vmatmul.msk.f32.gmra.mxu2 %vm936_vm3, %v934_v4  ;;  %v2777_v29 = vpack.i.bf16 %v2520_v25, %v2519_v45 }
 0x283   : > { %1955 = vst.msk [vmem:[%s3121_s24 + $0xf8] sm:$0xff] %vm1923_vm0, %v2711_v26 }
 0x284   : > { %2212 = vst.msk [vmem:[%s3121_s24 + $0xf8] sm:$0xff] %vm2180_vm4, %v2716_v28  ;;  %2778 = vrot.lane.b32.xlu1 %v2777_v29, %s2892_s26  ;;  %2783 = vrot.lane.b32.xlu0 %v2777_v29, %s2891_s25 }
 0x285   : > { %1954 = vst.msk [vmem:[%s3121_s24 + $0xf0] sm:$0xff] %vm1923_vm0, %v2710_v27  ;;  %v1356_v31 = vpop.f32.mrf.mxu2 }
 0x286   : > { %2211 = vst.msk [vmem:[%s3121_s24 + $0xf0] sm:$0xff] %vm2180_vm4, %v2715_v30  ;;  %v1357_v32 = vadd.f32 %v3540_v22, %v1356_v31 }
 0x288   : > { %vm1456_vm1 = vcmp.gt.f32.partialorder %v1357_v32, 0.0 }
 0x289   : > { %v2521_v33 = vsel %vm1456_vm1, 1.0, %v2890_v52 }
 0x28a   : > { %1649 = vst.msk [vmem:[%s3121_s24 + $0x170] sm:$0xff] %vm1602_vm6, %v2521_v33  ;;  %2474 = vmatmul.msk.f32.gmra.mxu2 %vm936_vm3, %v935_v10 }
 0x28d   : > { %v1359_v34 = vpop.f32.mrf.mxu2 }
 0x28e   : > { %v1360_v35 = vadd.f32 %v3540_v22, %v1359_v34  ;;  %v2729_v36 = vpop.permute.xlu2 %2728 }
 0x28f   : > { %v2731_v37 = vunpack.i.h.bf16 %v2729_v36  ;;  %v2730_v38 = vunpack.i.l.bf16 %v2729_v36 }
 0x290   : > { %vm1457_vm2 = vcmp.gt.f32.partialorder %v1360_v35, 0.0 }
 0x291   : > { %v2522_v39 = vsel %vm1457_vm2, 1.0, %v2890_v52  ;;  %1959 = vst.msk [vmem:[%s3121_s24 + $0x118] sm:$0xff] %vm1923_vm0, %v2731_v37 }
 0x292   : > { %1650 = vst.msk [vmem:[%s3121_s24 + $0x178] sm:$0xff] %vm1602_vm6, %v2522_v39  ;;  %v2792_v40 = vpack.i.bf16 %v2522_v39, %v2521_v33 }
 0x293   : > { %1958 = vst.msk [vmem:[%s3121_s24 + $0x110] sm:$0xff] %vm1923_vm0, %v2730_v38 }
 0x294   : > { %2793 = vrot.lane.b32.xlu1 %v2792_v40, %s2891_s25  ;;  %2788 = vrot.lane.b32.xlu2 %v2792_v40, %s2892_s26 }
 0x295   : > { %v1362_v41 = vpop.f32.mrf.mxu2 }
 0x296   : > { %v1363_v42 = vadd.f32 %v3540_v22, %v1362_v41  ;;  %v2719_v43 = vpop.permute.xlu1 %2718  ;;  %v2724_v44 = vpop.permute.xlu0 %2723 }
 0x297   : > { %v2721_v46 = vunpack.i.h.bf16 %v2719_v43  ;;  %v2720_v47 = vunpack.i.l.bf16 %v2719_v43  ;;  %v2726_v48 = vunpack.i.h.bf16 %v2724_v44  ;;  %v2725_v50 = vunpack.i.l.bf16 %v2724_v44 }
 0x298   : > { %vm1458_vm3 = vcmp.gt.f32.partialorder %v1363_v42, 0.0 }
 0x299   : > { %v2523_v49 = vsel %vm1458_vm3, 1.0, %v2890_v52  ;;  %1957 = vst.msk [vmem:[%s3121_s24 + $0x108] sm:$0xff] %vm1923_vm0, %v2721_v46 }
 0x29a   : > { %1651 = vst.msk [vmem:[%s3121_s24 + $0x180] sm:$0xff] %vm1602_vm6, %v2523_v49 }
 0x29b   : > { %1956 = vst.msk [vmem:[%s3121_s24 + $0x100] sm:$0xff] %vm1923_vm0, %v2720_v47 }
 0x29c   : > { %2214 = vst.msk [vmem:[%s3121_s24 + $0x108] sm:$0xff] %vm2180_vm4, %v2726_v48 }
 0x29d   : > { %2213 = vst.msk [vmem:[%s3121_s24 + $0x100] sm:$0xff] %vm2180_vm4, %v2725_v50  ;;  %v1365_v51 = vpop.f32.mrf.mxu2 }
 0x29e   : > { %v1366_v53 = vadd.f32 %v3540_v22, %v1365_v51  ;;  %v2744_v3 = vpop.permute.xlu2 %2743 }
 0x29f   : > { %v2746_v8 = vunpack.i.h.bf16 %v2744_v3  ;;  %v2745_v10 = vunpack.i.l.bf16 %v2744_v3 }
 0x2a0   : > { %vm1459_vm5 = vcmp.gt.f32.partialorder %v1366_v53, 0.0 }
 0x2a1   : > { %v2524_v54 = vsel %vm1459_vm5, 1.0, %v2890_v52 }
 0x2a2   : > { %1652 = vst.msk [vmem:[%s3121_s24 + $0x188] sm:$0xff] %vm1602_vm6, %v2524_v54  ;;  %v2802_v55 = vpack.i.bf16 %v2524_v54, %v2523_v49 }
 0x2a4   : > { %2803 = vrot.lane.b32.xlu2 %v2802_v55, %s2891_s25  ;;  %2798 = vrot.lane.b32.xlu0 %v2802_v55, %s2892_s26 }
 0x2a5   : > { %v1368_v56 = vpop.f32.mrf.mxu2 }
 0x2a6   : > { %v1369_v57 = vadd.f32 %v3540_v22, %v1368_v56  ;;  %v2734_v58 = vpop.permute.xlu1 %2733 }
 0x2a7   : > { %v2736_v21 = vunpack.i.h.bf16 %v2734_v58  ;;  %v2735_v59 = vunpack.i.l.bf16 %v2734_v58 }
 0x2a8   : > { %vm1460_vm7 = vcmp.gt.f32.partialorder %v1369_v57, 0.0 }
 0x2a9   : > { %v2525_v60 = vsel %vm1460_vm7, 1.0, %v2890_v52  ;;  %2215 = vst.msk [vmem:[%s3121_s24 + $0x110] sm:$0xff] %vm2180_vm4, %v2735_v59 }
 0x2aa   : > { %1653 = vst.msk [vmem:[%s3121_s24 + $0x190] sm:$0xff] %vm1602_vm6, %v2525_v60 }
 0x2ab   : > { %2216 = vst.msk [vmem:[%s3121_s24 + $0x118] sm:$0xff] %vm2180_vm4, %v2736_v21  ;;  %v2881_v21 = vld [vmem:[%s4065_s4] ss:$0 sm:$0xff] }
 0x2ad   : > { %v1371_v61 = vpop.f32.mrf.mxu2 }
 0x2ae   : > { %v1372_v62 = vadd.f32 %v3540_v22, %v1371_v61 }
 0x2b0   : > { %vm1461_vm8 = vcmp.gt.f32.partialorder %v1372_v62, 0.0 }
 0x2b1   : > { %v2526_v0 = vsel %vm1461_vm8, 1.0, %v2890_v52 }
 0x2b2   : > { %1654 = vst.msk [vmem:[%s3121_s24 + $0x198] sm:$0xff] %vm1602_vm6, %v2526_v0  ;;  %v2807_v1 = vpack.i.bf16 %v2526_v0, %v2525_v60 }
 0x2b4   : > { %2808 = vrot.lane.b32.xlu1 %v2807_v1, %s2892_s26  ;;  %2813 = vrot.lane.b32.xlu0 %v2807_v1, %s2891_s25 }
 0x2b5   : > { %v1374_v2 = vpop.f32.mrf.mxu2 }
 0x2b6   : > { %v1375_v4 = vadd.f32 %v3540_v22, %v1374_v2  ;;  %v2739_v5 = vpop.permute.xlu0 %2738 }
 0x2b7   : > { %v2741_v6 = vunpack.i.h.bf16 %v2739_v5  ;;  %v2740_v7 = vunpack.i.l.bf16 %v2739_v5 }
 0x2b8   : > { %vm1462_vm9 = vcmp.gt.f32.partialorder %v1375_v4, 0.0 }
 0x2b9   : > { %v2527_v9 = vsel %vm1462_vm9, 1.0, %v2890_v52  ;;  %1961 = vst.msk [vmem:[%s3121_s24 + $0x128] sm:$0xff] %vm1923_vm0, %v2741_v6 }
 0x2ba   : > { %1655 = vst.msk [vmem:[%s3121_s24 + $0x1a0] sm:$0xff] %vm1602_vm6, %v2527_v9 }
 0x2bb   : > { %2218 = vst.msk [vmem:[%s3121_s24 + $0x128] sm:$0xff] %vm2180_vm4, %v2746_v8 }
 0x2bc   : > { %1960 = vst.msk [vmem:[%s3121_s24 + $0x120] sm:$0xff] %vm1923_vm0, %v2740_v7 }
 0x2bd   : > { %2217 = vst.msk [vmem:[%s3121_s24 + $0x120] sm:$0xff] %vm2180_vm4, %v2745_v10  ;;  %v1377_v11 = vpop.f32.mrf.mxu2 }
 0x2be   : > { %v1378_v63 = vadd.f32 %v3540_v22, %v1377_v11  ;;  %v2759_v12 = vpop.permute.xlu2 %2758 }
 0x2bf   : > { %v2761_v13 = vunpack.i.h.bf16 %v2759_v12  ;;  %v2760_v14 = vunpack.i.l.bf16 %v2759_v12 }
 0x2c0   : > { %vm1463_vm10 = vcmp.gt.f32.partialorder %v1378_v63, 0.0 }
 0x2c1   : > { %v2528_v15 = vsel %vm1463_vm10, 1.0, %v2890_v52  ;;  %1965 = vst.msk [vmem:[%s3121_s24 + $0x148] sm:$0xff] %vm1923_vm0, %v2761_v13 }
 0x2c2   : > { %1656 = vst.msk [vmem:[%s3121_s24 + $0x1a8] sm:$0xff] %vm1602_vm6, %v2528_v15  ;;  %v2822_v16 = vpack.i.bf16 %v2528_v15, %v2527_v9 }
 0x2c3   : > { %1964 = vst.msk [vmem:[%s3121_s24 + $0x140] sm:$0xff] %vm1923_vm0, %v2760_v14 }
 0x2c4   : > { %2823 = vrot.lane.b32.xlu1 %v2822_v16, %s2891_s25  ;;  %2818 = vrot.lane.b32.xlu2 %v2822_v16, %s2892_s26 }
 0x2c5   : > { %v1380_v17 = vpop.f32.mrf.mxu2 }
 0x2c6   : > { %v1381_v18 = vadd.f32 %v3540_v22, %v1380_v17  ;;  %v2749_v45 = vpop.permute.xlu1 %2748  ;;  %v2754_v19 = vpop.permute.xlu0 %2753 }
 0x2c7   : > { %v2751_v20 = vunpack.i.h.bf16 %v2749_v45  ;;  %v2750_v23 = vunpack.i.l.bf16 %v2749_v45  ;;  %v2756_v24 = vunpack.i.h.bf16 %v2754_v19  ;;  %v2755_v26 = vunpack.i.l.bf16 %v2754_v19 }
 0x2c8   : > { %vm1464_vm11 = vcmp.gt.f32.partialorder %v1381_v18, 0.0 }
 0x2c9   : > { %v2529_v25 = vsel %vm1464_vm11, 1.0, %v2890_v52  ;;  %1963 = vst.msk [vmem:[%s3121_s24 + $0x138] sm:$0xff] %vm1923_vm0, %v2751_v20 }
 0x2ca   : > { %1657 = vst.msk [vmem:[%s3121_s24 + $0x1b0] sm:$0xff] %vm1602_vm6, %v2529_v25 }
 0x2cb   : > { %1962 = vst.msk [vmem:[%s3121_s24 + $0x130] sm:$0xff] %vm1923_vm0, %v2750_v23 }
 0x2cc   : > { %2220 = vst.msk [vmem:[%s3121_s24 + $0x138] sm:$0xff] %vm2180_vm4, %v2756_v24 }
 0x2cd   : > { %2219 = vst.msk [vmem:[%s3121_s24 + $0x130] sm:$0xff] %vm2180_vm4, %v2755_v26  ;;  %v1383_v27 = vpop.f32.mrf.mxu2 }
 0x2ce   : > { %v1384_v28 = vadd.f32 %v3540_v22, %v1383_v27  ;;  %v2774_v42 = vpop.permute.xlu2 %2773 }
 0x2cf   : > { %v2776_v48 = vunpack.i.h.bf16 %v2774_v42  ;;  %v2775_v50 = vunpack.i.l.bf16 %v2774_v42 }
 0x2d0   : > { %vm1465_vm12 = vcmp.gt.f32.partialorder %v1384_v28, 0.0 }
 0x2d1   : > { %v2530_v29 = vsel %vm1465_vm12, 1.0, %v2890_v52 }
 0x2d2   : > { %1658 = vst.msk [vmem:[%s3121_s24 + $0x1b8] sm:$0xff] %vm1602_vm6, %v2530_v29  ;;  %v2832_v30 = vpack.i.bf16 %v2530_v29, %v2529_v25 }
 0x2d4   : > { %2833 = vrot.lane.b32.xlu2 %v2832_v30, %s2891_s25  ;;  %2828 = vrot.lane.b32.xlu0 %v2832_v30, %s2892_s26 }
 0x2d5   : > { %v1386_v31 = vpop.f32.mrf.mxu2 }
 0x2d6   : > { %v1387_v32 = vadd.f32 %v3540_v22, %v1386_v31  ;;  %v2764_v33 = vpop.permute.xlu1 %2763 }
 0x2d7   : > { %v2766_v34 = vunpack.i.h.bf16 %v2764_v33  ;;  %v2765_v35 = vunpack.i.l.bf16 %v2764_v33 }
 0x2d8   : > { %vm1466_vm13 = vcmp.gt.f32.partialorder %v1387_v32, 0.0 }
 0x2d9   : > { %v2531_v36 = vsel %vm1466_vm13, 1.0, %v2890_v52  ;;  %2221 = vst.msk [vmem:[%s3121_s24 + $0x140] sm:$0xff] %vm2180_vm4, %v2765_v35 }
 0x2da   : > { %1659 = vst.msk [vmem:[%s3121_s24 + $0x1c0] sm:$0xff] %vm1602_vm6, %v2531_v36 }
 0x2db   : > { %2222 = vst.msk [vmem:[%s3121_s24 + $0x148] sm:$0xff] %vm2180_vm4, %v2766_v34 }
 0x2dd   : > { %v1389_v37 = vpop.f32.mrf.mxu2 }
 0x2de   : > { %v1390_v38 = vadd.f32 %v3540_v22, %v1389_v37 }
 0x2e0   : > { %vm1467_vm14 = vcmp.gt.f32.partialorder %v1390_v38, 0.0 }
 0x2e1   : > { %v2532_v39 = vsel %vm1467_vm14, 1.0, %v2890_v52 }
 0x2e2   : > { %1660 = vst.msk [vmem:[%s3121_s24 + $0x1c8] sm:$0xff] %vm1602_vm6, %v2532_v39  ;;  %v2837_v40 = vpack.i.bf16 %v2532_v39, %v2531_v36 }
 0x2e4   : > { %2838 = vrot.lane.b32.xlu1 %v2837_v40, %s2892_s26  ;;  %2843 = vrot.lane.b32.xlu0 %v2837_v40, %s2891_s25 }
 0x2e5   : > { %v1392_v41 = vpop.f32.mrf.mxu2 }
 0x2e6   : > { %v1393_v43 = vadd.f32 %v3540_v22, %v1392_v41  ;;  %v2769_v44 = vpop.permute.xlu0 %2768 }
 0x2e7   : > { %v2771_v46 = vunpack.i.h.bf16 %v2769_v44  ;;  %v2770_v47 = vunpack.i.l.bf16 %v2769_v44 }
 0x2e8   : > { %vm1468_vm15 = vcmp.gt.f32.partialorder %v1393_v43, 0.0 }
 0x2e9   : > { %v2533_v49 = vsel %vm1468_vm15, 1.0, %v2890_v52  ;;  %1967 = vst.msk [vmem:[%s3121_s24 + $0x158] sm:$0xff] %vm1923_vm0, %v2771_v46 }
 0x2ea   : > { %1661 = vst.msk [vmem:[%s3121_s24 + $0x1d0] sm:$0xff] %vm1602_vm6, %v2533_v49 }
 0x2eb   : > { %2224 = vst.msk [vmem:[%s3121_s24 + $0x158] sm:$0xff] %vm2180_vm4, %v2776_v48 }
 0x2ec   : > { %1966 = vst.msk [vmem:[%s3121_s24 + $0x150] sm:$0xff] %vm1923_vm0, %v2770_v47 }
 0x2ed   : > { %2223 = vst.msk [vmem:[%s3121_s24 + $0x150] sm:$0xff] %vm2180_vm4, %v2775_v50  ;;  %v1395_v51 = vpop.f32.mrf.mxu2 }
 0x2ee   : > { %v1396_v53 = vadd.f32 %v3540_v22, %v1395_v51  ;;  %v2789_v54 = vpop.permute.xlu2 %2788 }
 0x2ef   : > { %v2791_v55 = vunpack.i.h.bf16 %v2789_v54  ;;  %v2790_v56 = vunpack.i.l.bf16 %v2789_v54 }
 0x2f0   : > { %vm1469_vm1 = vcmp.gt.f32.partialorder %v1396_v53, 0.0 }
 0x2f1   : > { %v2534_v57 = vsel %vm1469_vm1, 1.0, %v2890_v52  ;;  %1971 = vst.msk [vmem:[%s3121_s24 + $0x178] sm:$0xff] %vm1923_vm0, %v2791_v55 }
 0x2f2   : > { %1662 = vst.msk [vmem:[%s3121_s24 + $0x1d8] sm:$0xff] %vm1602_vm6, %v2534_v57  ;;  %v2847_v58 = vpack.i.bf16 %v2534_v57, %v2533_v49 }
 0x2f3   : > { %1970 = vst.msk [vmem:[%s3121_s24 + $0x170] sm:$0xff] %vm1923_vm0, %v2790_v56 }
 0x2f4   : > { %2848 = vrot.lane.b32.xlu2 %v2847_v58, %s2892_s26 }
 0x2f5   : > { %v1398_v22 = vpop.f32.mrf.mxu2 }
 0x2f6   : > { %v1399_v59 = vadd.f32 %v2881_v21, %v1398_v22  ;;  %v2779_v60 = vpop.permute.xlu1 %2778  ;;  %v2784_v61 = vpop.permute.xlu0 %2783 }
 0x2f7   : > { %v2781_v62 = vunpack.i.h.bf16 %v2779_v60  ;;  %v2780_v0 = vunpack.i.l.bf16 %v2779_v60  ;;  %v2786_v1 = vunpack.i.h.bf16 %v2784_v61  ;;  %v2785_v3 = vunpack.i.l.bf16 %v2784_v61 }
 0x2f8   : > { %vm1470_vm2 = vcmp.gt.f32.partialorder %v1399_v59, 0.0 }
 0x2f9   : > { %v2535_v2 = vsel %vm1470_vm2, 1.0, %v2890_v52  ;;  %1969 = vst.msk [vmem:[%s3121_s24 + $0x168] sm:$0xff] %vm1923_vm0, %v2781_v62 }
 0x2fa   : > { %1663 = vst.msk [vmem:[%s3121_s24 + $0x1e0] sm:$0xff] %vm1602_vm6, %v2535_v2 }
 0x2fb   : > { %1968 = vst.msk [vmem:[%s3121_s24 + $0x160] sm:$0xff] %vm1923_vm0, %v2780_v0 }
 0x2fc   : > { %2226 = vst.msk [vmem:[%s3121_s24 + $0x168] sm:$0xff] %vm2180_vm4, %v2786_v1 }
 0x2fd   : > { %2225 = vst.msk [vmem:[%s3121_s24 + $0x160] sm:$0xff] %vm2180_vm4, %v2785_v3  ;;  %v1401_v4 = vpop.f32.mrf.mxu2 }
 0x2fe   : > { %v1402_v5 = vadd.f32 %v2881_v21, %v1401_v4  ;;  %v2804_v17 = vpop.permute.xlu2 %2803 }
 0x2ff   : > { %v2806_v20 = vunpack.i.h.bf16 %v2804_v17  ;;  %v2805_v23 = vunpack.i.l.bf16 %v2804_v17 }
 0x300   : > { %vm1471_vm3 = vcmp.gt.f32.partialorder %v1402_v5, 0.0 }
 0x301   : > { %v2536_v6 = vsel %vm1471_vm3, 1.0, %v2890_v52 }
 0x302   : > { %1664 = vst.msk [vmem:[%s3121_s24 + $0x1e8] sm:$0xff] %vm1602_vm6, %v2536_v6  ;;  %v2867_v7 = vpack.i.bf16 %v2536_v6, %v2535_v2 }
 0x304   : > { %2868 = vrot.lane.b32.xlu2 %v2867_v7, %s2891_s25  ;;  %2853 = vrot.lane.b32.xlu0 %v2867_v7, %s2892_s26 }
 0x305   : > { %v1404_v8 = vpop.f32.mrf.mxu2 }
 0x306   : > { %v1405_v9 = vadd.f32 %v2881_v21, %v1404_v8  ;;  %v2794_v10 = vpop.permute.xlu1 %2793 }
 0x307   : > { %v2796_v11 = vunpack.i.h.bf16 %v2794_v10  ;;  %v2795_v63 = vunpack.i.l.bf16 %v2794_v10 }
 0x308   : > { %vm1472_vm5 = vcmp.gt.f32.partialorder %v1405_v9, 0.0 }
 0x309   : > { %v2537_v12 = vsel %vm1472_vm5, 1.0, %v2890_v52  ;;  %2227 = vst.msk [vmem:[%s3121_s24 + $0x170] sm:$0xff] %vm2180_vm4, %v2795_v63 }
 0x30a   : > { %1665 = vst.msk [vmem:[%s3121_s24 + $0x1f0] sm:$0xff] %vm1602_vm6, %v2537_v12 }
 0x30b   : > { %2228 = vst.msk [vmem:[%s3121_s24 + $0x178] sm:$0xff] %vm2180_vm4, %v2796_v11 }
 0x30d   : > { %v1407_v13 = vpop.f32.mrf.mxu2 }
 0x30e   : > { %v1408_v14 = vadd.f32 %v2881_v21, %v1407_v13 }
 0x310   : > { %vm1473_vm7 = vcmp.gt.f32.partialorder %v1408_v14, 0.0 }
 0x311   : > { %v2538_v15 = vsel %vm1473_vm7, 1.0, %v2890_v52 }
 0x312   : > { %1666 = vst.msk [vmem:[%s3121_s24 + $0x1f8] sm:$0xff] %vm1602_vm6, %v2538_v15  ;;  %v2857_v16 = vpack.i.bf16 %v2538_v15, %v2537_v12 }
 0x314   : > { %2858 = vrot.lane.b32.xlu1 %v2857_v16, %s2892_s26  ;;  %2873 = vrot.lane.b32.xlu0 %v2857_v16, %s2891_s25 }
 0x316   : > { %v2799_v18 = vpop.permute.xlu0 %2798 }
 0x317   : > { %v2801_v45 = vunpack.i.h.bf16 %v2799_v18  ;;  %v2800_v19 = vunpack.i.l.bf16 %v2799_v18 }
 0x319   : > { %1973 = vst.msk [vmem:[%s3121_s24 + $0x188] sm:$0xff] %vm1923_vm0, %v2801_v45 }
 0x31a   : > { %2230 = vst.msk [vmem:[%s3121_s24 + $0x188] sm:$0xff] %vm2180_vm4, %v2806_v20 }
 0x31b   : > { %1972 = vst.msk [vmem:[%s3121_s24 + $0x180] sm:$0xff] %vm1923_vm0, %v2800_v19 }
 0x31c   : > { %2229 = vst.msk [vmem:[%s3121_s24 + $0x180] sm:$0xff] %vm2180_vm4, %v2805_v23  ;;  %2863 = vrot.lane.b32.xlu1 %v2847_v58, %s2891_s25 }
 0x31e   : > { %v2819_v52 = vpop.permute.xlu2 %2818 }
 0x31f   : > { %v2821_v24 = vunpack.i.h.bf16 %v2819_v52  ;;  %v2820_v25 = vunpack.i.l.bf16 %v2819_v52 }
 0x321   : > { %1977 = vst.msk [vmem:[%s3121_s24 + $0x1a8] sm:$0xff] %vm1923_vm0, %v2821_v24 }
 0x322   : > { %1976 = vst.msk [vmem:[%s3121_s24 + $0x1a0] sm:$0xff] %vm1923_vm0, %v2820_v25 }
 0x326   : > { %v2809_v26 = vpop.permute.xlu1 %2808  ;;  %v2814_v27 = vpop.permute.xlu0 %2813 }
 0x327   : > { %v2811_v28 = vunpack.i.h.bf16 %v2809_v26  ;;  %v2810_v29 = vunpack.i.l.bf16 %v2809_v26  ;;  %v2816_v30 = vunpack.i.h.bf16 %v2814_v27  ;;  %v2815_v31 = vunpack.i.l.bf16 %v2814_v27 }
 0x329   : > { %1975 = vst.msk [vmem:[%s3121_s24 + $0x198] sm:$0xff] %vm1923_vm0, %v2811_v28 }
 0x32a   : > { %1974 = vst.msk [vmem:[%s3121_s24 + $0x190] sm:$0xff] %vm1923_vm0, %v2810_v29 }
 0x32b   : > { %2232 = vst.msk [vmem:[%s3121_s24 + $0x198] sm:$0xff] %vm2180_vm4, %v2816_v30 }
 0x32c   : > { %2231 = vst.msk [vmem:[%s3121_s24 + $0x190] sm:$0xff] %vm2180_vm4, %v2815_v31 }
 0x32e   : > { %v2834_v35 = vpop.permute.xlu2 %2833 }
 0x32f   : > { %v2836_v39 = vunpack.i.h.bf16 %v2834_v35  ;;  %v2835_v40 = vunpack.i.l.bf16 %v2834_v35 }
 0x336   : > { %v2824_v32 = vpop.permute.xlu1 %2823 }
 0x337   : > { %v2826_v33 = vunpack.i.h.bf16 %v2824_v32  ;;  %v2825_v34 = vunpack.i.l.bf16 %v2824_v32 }
 0x339   : > { %2233 = vst.msk [vmem:[%s3121_s24 + $0x1a0] sm:$0xff] %vm2180_vm4, %v2825_v34 }
 0x33a   : > { %2234 = vst.msk [vmem:[%s3121_s24 + $0x1a8] sm:$0xff] %vm2180_vm4, %v2826_v33 }
 0x346   : > { %v2829_v36 = vpop.permute.xlu0 %2828 }
 0x347   : > { %v2831_v37 = vunpack.i.h.bf16 %v2829_v36  ;;  %v2830_v38 = vunpack.i.l.bf16 %v2829_v36 }
 0x349   : > { %1979 = vst.msk [vmem:[%s3121_s24 + $0x1b8] sm:$0xff] %vm1923_vm0, %v2831_v37 }
 0x34a   : > { %2236 = vst.msk [vmem:[%s3121_s24 + $0x1b8] sm:$0xff] %vm2180_vm4, %v2836_v39 }
 0x34b   : > { %1978 = vst.msk [vmem:[%s3121_s24 + $0x1b0] sm:$0xff] %vm1923_vm0, %v2830_v38 }
 0x34c   : > { %2235 = vst.msk [vmem:[%s3121_s24 + $0x1b0] sm:$0xff] %vm2180_vm4, %v2835_v40 }
 0x34e   : > { %v2849_v41 = vpop.permute.xlu2 %2848 }
 0x34f   : > { %v2851_v42 = vunpack.i.h.bf16 %v2849_v41  ;;  %v2850_v43 = vunpack.i.l.bf16 %v2849_v41 }
 0x351   : > { %1983 = vst.msk [vmem:[%s3121_s24 + $0x1d8] sm:$0xff] %vm1923_vm0, %v2851_v42 }
 0x352   : > { %1982 = vst.msk [vmem:[%s3121_s24 + $0x1d0] sm:$0xff] %vm1923_vm0, %v2850_v43 }
 0x356   : > { %v2839_v44 = vpop.permute.xlu1 %2838  ;;  %v2844_v46 = vpop.permute.xlu0 %2843 }
 0x357   : > { %v2841_v47 = vunpack.i.h.bf16 %v2839_v44  ;;  %v2840_v48 = vunpack.i.l.bf16 %v2839_v44  ;;  %v2846_v49 = vunpack.i.h.bf16 %v2844_v46  ;;  %v2845_v50 = vunpack.i.l.bf16 %v2844_v46 }
 0x359   : > { %1981 = vst.msk [vmem:[%s3121_s24 + $0x1c8] sm:$0xff] %vm1923_vm0, %v2841_v47 }
 0x35a   : > { %1980 = vst.msk [vmem:[%s3121_s24 + $0x1c0] sm:$0xff] %vm1923_vm0, %v2840_v48 }
 0x35b   : > { %2238 = vst.msk [vmem:[%s3121_s24 + $0x1c8] sm:$0xff] %vm2180_vm4, %v2846_v49 }
 0x35c   : > { %2237 = vst.msk [vmem:[%s3121_s24 + $0x1c0] sm:$0xff] %vm2180_vm4, %v2845_v50 }
 0x35e   : > { %v2869_v51 = vpop.permute.xlu2 %2868 }
 0x35f   : > { %v2871_v56 = vunpack.i.h.bf16 %v2869_v51  ;;  %v2870_v57 = vunpack.i.l.bf16 %v2869_v51 }
 0x376   : > { %v2854_v53 = vpop.permute.xlu0 %2853 }
 0x377   : > { %v2856_v54 = vunpack.i.h.bf16 %v2854_v53  ;;  %v2855_v55 = vunpack.i.l.bf16 %v2854_v53 }
 0x379   : > { %1985 = vst.msk [vmem:[%s3121_s24 + $0x1e8] sm:$0xff] %vm1923_vm0, %v2856_v54 }
 0x37a   : > { %2242 = vst.msk [vmem:[%s3121_s24 + $0x1e8] sm:$0xff] %vm2180_vm4, %v2871_v56 }
 0x37b   : > { %1984 = vst.msk [vmem:[%s3121_s24 + $0x1e0] sm:$0xff] %vm1923_vm0, %v2855_v55 }
 0x37c   : > { %2241 = vst.msk [vmem:[%s3121_s24 + $0x1e0] sm:$0xff] %vm2180_vm4, %v2870_v57 }
 0x386   : > { %v2859_v58 = vpop.permute.xlu1 %2858  ;;  %v2874_v22 = vpop.permute.xlu0 %2873 }
 0x387   : > { %v2861_v21 = vunpack.i.h.bf16 %v2859_v58  ;;  %v2860_v59 = vunpack.i.l.bf16 %v2859_v58  ;;  %v2876_v60 = vunpack.i.h.bf16 %v2874_v22  ;;  %v2875_v61 = vunpack.i.l.bf16 %v2874_v22 }
 0x389   : > { %1987 = vst.msk [vmem:[%s3121_s24 + $0x1f8] sm:$0xff] %vm1923_vm0, %v2861_v21 }
 0x38a   : > { %1986 = vst.msk [vmem:[%s3121_s24 + $0x1f0] sm:$0xff] %vm1923_vm0, %v2860_v59 }
 0x38b   : > { %2244 = vst.msk [vmem:[%s3121_s24 + $0x1f8] sm:$0xff] %vm2180_vm4, %v2876_v60 }
 0x38c   : > { %2243 = vst.msk [vmem:[%s3121_s24 + $0x1f0] sm:$0xff] %vm2180_vm4, %v2875_v61 }
 0x38e   : > { %v2864_v62 = vpop.permute.xlu1 %2863 }
 0x38f   : > { %v2866_v0 = vunpack.i.h.bf16 %v2864_v62  ;;  %v2865_v1 = vunpack.i.l.bf16 %v2864_v62 }
 0x391   : > { %2239 = vst.msk [vmem:[%s3121_s24 + $0x1d0] sm:$0xff] %vm2180_vm4, %v2865_v1 }
 0x392   : > { %2240 = vst.msk [vmem:[%s3121_s24 + $0x1d8] sm:$0xff] %vm2180_vm4, %v2866_v0 }
 0x393 PF: > { %s17_s21 = sadd.s32 1, %s2888_s21  }
 0x394   : > { %p14_p4 = scmp.ge.s32.totalorder %s17_s21, 6  }
 0x396   :  { %16 = sbr.rel (!%p14_p4) target bundleno = 1 (0x1), region = 82 }

// kernel: _detector_dense.12
= control target key start
LH: loop header
LB: loop body
LE: loop exit
PB: predicated region body
PF: predicated region fallthrough
CT: control target
= control target key end

     0   :  { %vm94_vm0 = vcmask 261120   ;;  %s2532_s11 = smov 121   ;;  %s2533_s12 = smov 114   ;;  %s4225_s1 = inlined_call_operand.vmem [shape: f32[32,32], index: 1, kind: input, shape index: {}]   ;;  %s4226_s0 = inlined_call_operand.vmem [shape: f32[512,32], index: 0, kind: input, shape index: {}]   ;;  %s4227_s2 = inlined_call_operand.vmem [shape: f32[1,32], index: 2, kind: input, shape index: {}]   ;;  %s4228_s3 = inlined_call_operand.vmem [shape: f32[32,24], index: 3, kind: input, shape index: {}]   ;;  %s4229_s4 = inlined_call_operand.vmem [shape: f32[1,24], index: 4, kind: input, shape index: {}]   ;;  %s4230_s5 = inlined_call_operand.vmem [shape: f32[512,32], index: 5, kind: output, shape index: {0}]   ;;  %s4231_s6 = inlined_call_operand.vmem [shape: f32[512,3], index: 6, kind: output, shape index: {1}]  }
   0x1   :  { %v89_v0 = vld [vmem:[%s4225_s1 + $0x18] sm:$0xff]  ;;  %v88_v1 = vld [vmem:[%s4225_s1 + $0x10] sm:$0xff]  ;;  %v87_v2 = vld [vmem:[%s4225_s1 + $0x8] sm:$0xff] }
   0x2   :  { %299 = vmatpush.msra.mxu0 %v89_v0  ;;  %2196 = vmatpush.msra.mxu2 %v89_v0  ;;  %v86_v3 = vld [vmem:[%s4225_s1] sm:$0xff]  ;;  %v23_v6 = vld [vmem:[%s4226_s0 + $0x8] sm:$0xff]  ;;  %v24_v8 = vld [vmem:[%s4226_s0 + $0x10] sm:$0xff] }
   0x3   :  { %v22_v4 = vld [vmem:[%s4226_s0] sm:$0xff]  ;;  %v55_v7 = vld [vmem:[%s4226_s0 + $0x108] sm:$0xff]  ;;  %v56_v9 = vld [vmem:[%s4226_s0 + $0x110] sm:$0xff] }
   0x4   :  { %300 = vmatpush.msra.mxu0 %v88_v1  ;;  %2197 = vmatpush.msra.mxu2 %v88_v1  ;;  %v54_v5 = vld [vmem:[%s4226_s0 + $0x100] sm:$0xff]  ;;  %v25_v10 = vld [vmem:[%s4226_s0 + $0x18] sm:$0xff]  ;;  %v27_v14 = vld [vmem:[%s4226_s0 + $0x28] sm:$0xff] }
   0x5   :  { %v57_v11 = vld [vmem:[%s4226_s0 + $0x118] sm:$0xff]  ;;  %v26_v12 = vld [vmem:[%s4226_s0 + $0x20] sm:$0xff]  ;;  %v59_v15 = vld [vmem:[%s4226_s0 + $0x128] sm:$0xff] }
   0x6   :  { %301 = vmatpush.msra.mxu0 %v87_v2  ;;  %2198 = vmatpush.msra.mxu2 %v87_v2  ;;  %v58_v13 = vld [vmem:[%s4226_s0 + $0x120] sm:$0xff]  ;;  %v28_v16 = vld [vmem:[%s4226_s0 + $0x30] sm:$0xff]  ;;  %v29_v18 = vld [vmem:[%s4226_s0 + $0x38] sm:$0xff] }
   0x7   :  { %v60_v17 = vld [vmem:[%s4226_s0 + $0x130] sm:$0xff]  ;;  %v61_v19 = vld [vmem:[%s4226_s0 + $0x138] sm:$0xff]  ;;  %v30_v20 = vld [vmem:[%s4226_s0 + $0x40] sm:$0xff] }
   0x8   :  { %302 = vmatpush.msra.mxu0 %v86_v3  ;;  %2199 = vmatpush.msra.mxu2 %v86_v3  ;;  %v62_v21 = vld [vmem:[%s4226_s0 + $0x140] sm:$0xff]  ;;  %v31_v22 = vld [vmem:[%s4226_s0 + $0x48] sm:$0xff]  ;;  %v32_v24 = vld [vmem:[%s4226_s0 + $0x50] sm:$0xff] }
   0x9   :  { %2004 = vmatmul.msk.f32.vlgmr.msra.gmra.mxu0 %vm94_vm0, %v22_v4  ;;  %2036 = vmatmul.msk.f32.vlgmr.msra.gmra.mxu2 %vm94_vm0, %v54_v5  ;;  %v63_v23 = vld [vmem:[%s4226_s0 + $0x148] sm:$0xff]  ;;  %v64_v25 = vld [vmem:[%s4226_s0 + $0x150] sm:$0xff]  ;;  %v33_v26 = vld [vmem:[%s4226_s0 + $0x58] sm:$0xff] }
   0xa   :  { %v65_v27 = vld [vmem:[%s4226_s0 + $0x158] sm:$0xff]  ;;  %v34_v29 = vld [vmem:[%s4226_s0 + $0x60] sm:$0xff]  ;;  %v754_v31 = vld [vmem:[%s4228_s3 + $0x10] sm:$0xff] }
   0xb   :  { %v755_v28 = vld [vmem:[%s4228_s3 + $0x18] sm:$0xff]  ;;  %v66_v30 = vld [vmem:[%s4226_s0 + $0x160] sm:$0xff]  ;;  %v753_v32 = vld [vmem:[%s4228_s3 + $0x8] sm:$0xff] }
   0xc   :  { %964 = vmatpush.msra.mxu1 %v755_v28  ;;  %2200 = vmatpush.msra.mxu3 %v755_v28  ;;  %v752_v33 = vld [vmem:[%s4228_s3] sm:$0xff]  ;;  %v35_v34 = vld [vmem:[%s4226_s0 + $0x68] sm:$0xff]  ;;  %v36_v36 = vld [vmem:[%s4226_s0 + $0x70] sm:$0xff] }
   0xd   :  { %v67_v35 = vld [vmem:[%s4226_s0 + $0x168] sm:$0xff]  ;;  %v68_v37 = vld [vmem:[%s4226_s0 + $0x170] sm:$0xff]  ;;  %v37_v38 = vld [vmem:[%s4226_s0 + $0x78] sm:$0xff] }
   0xe   :  { %965 = vmatpush.msra.mxu1 %v754_v31  ;;  %2201 = vmatpush.msra.mxu3 %v754_v31  ;;  %v69_v39 = vld [vmem:[%s4226_s0 + $0x178] sm:$0xff]  ;;  %v2724_v40 = vld [vmem:[%s4227_s2] ss:$0 sm:$0xff]  ;;  %v39_v50 = vld [vmem:[%s4226_s0 + $0x88] sm:$0xff] }
   0xf   :  { %v38_v42 = vld [vmem:[%s4226_s0 + $0x80] sm:$0xff]  ;;  %v71_v51 = vld [vmem:[%s4226_s0 + $0x188] sm:$0xff]  ;;  %v40_v60 = vld [vmem:[%s4226_s0 + $0x90] sm:$0xff] }
  0x10   :  { %966 = vmatpush.msra.mxu1 %v753_v32  ;;  %2202 = vmatpush.msra.mxu3 %v753_v32  ;;  %v70_v43 = vld [vmem:[%s4226_s0 + $0x180] sm:$0xff]  ;;  %v72_v61 = vld [vmem:[%s4226_s0 + $0x190] sm:$0xff] }
  0x11   :  { %2005 = vmatmul.msk.f32.gmra.mxu0 %vm94_vm0, %v23_v6  ;;  %2037 = vmatmul.msk.f32.gmra.mxu2 %vm94_vm0, %v55_v7  ;;  %v41_v6 = vld [vmem:[%s4226_s0 + $0x98] sm:$0xff] }
  0x12   :  { %967 = vmatpush.msra.mxu1 %v752_v33  ;;  %2203 = vmatpush.msra.mxu3 %v752_v33  ;;  %v73_v7 = vld [vmem:[%s4226_s0 + $0x198] sm:$0xff] }
  0x19   :  { %2006 = vmatmul.msk.f32.gmra.mxu0 %vm94_vm0, %v24_v8  ;;  %2038 = vmatmul.msk.f32.gmra.mxu2 %vm94_vm0, %v56_v9 }
  0x21   :  { %2007 = vmatmul.msk.f32.gmra.mxu0 %vm94_vm0, %v25_v10  ;;  %2039 = vmatmul.msk.f32.gmra.mxu2 %vm94_vm0, %v57_v11 }
  0x29   :  { %2008 = vmatmul.msk.f32.gmra.mxu0 %vm94_vm0, %v26_v12  ;;  %2040 = vmatmul.msk.f32.gmra.mxu2 %vm94_vm0, %v58_v13 }
  0x31   :  { %2009 = vmatmul.msk.f32.gmra.mxu0 %vm94_vm0, %v27_v14  ;;  %2041 = vmatmul.msk.f32.gmra.mxu2 %vm94_vm0, %v59_v15 }
  0x39   :  { %2010 = vmatmul.msk.f32.gmra.mxu0 %vm94_vm0, %v28_v16  ;;  %2042 = vmatmul.msk.f32.gmra.mxu2 %vm94_vm0, %v60_v17  ;;  %v42_v16 = vld [vmem:[%s4226_s0 + $0xa0] sm:$0xff] }
  0x3a   :  { %v74_v17 = vld [vmem:[%s4226_s0 + $0x1a0] sm:$0xff] }
  0x41   :  { %2011 = vmatmul.msk.f32.gmra.mxu0 %vm94_vm0, %v29_v18  ;;  %2043 = vmatmul.msk.f32.gmra.mxu2 %vm94_vm0, %v61_v19 }
  0x49   :  { %2012 = vmatmul.msk.f32.gmra.mxu0 %vm94_vm0, %v30_v20  ;;  %2044 = vmatmul.msk.f32.gmra.mxu2 %vm94_vm0, %v62_v21 }
  0x51   :  { %2013 = vmatmul.msk.f32.gmra.mxu0 %vm94_vm0, %v31_v22  ;;  %2045 = vmatmul.msk.f32.gmra.mxu2 %vm94_vm0, %v63_v23 }
  0x59   :  { %2014 = vmatmul.msk.f32.gmra.mxu0 %vm94_vm0, %v32_v24  ;;  %2046 = vmatmul.msk.f32.gmra.mxu2 %vm94_vm0, %v64_v25 }
  0x61   :  { %2015 = vmatmul.msk.f32.gmra.mxu0 %vm94_vm0, %v33_v26  ;;  %2047 = vmatmul.msk.f32.gmra.mxu2 %vm94_vm0, %v65_v27  ;;  %v43_v26 = vld [vmem:[%s4226_s0 + $0xa8] sm:$0xff] }
  0x62   :  { %v75_v27 = vld [vmem:[%s4226_s0 + $0x1a8] sm:$0xff] }
  0x69   :  { %2016 = vmatmul.msk.f32.gmra.mxu0 %vm94_vm0, %v34_v29  ;;  %2048 = vmatmul.msk.f32.gmra.mxu2 %vm94_vm0, %v66_v30 }
  0x71   :  { %2017 = vmatmul.msk.f32.gmra.mxu0 %vm94_vm0, %v35_v34  ;;  %2049 = vmatmul.msk.f32.gmra.mxu2 %vm94_vm0, %v67_v35 }
  0x79   :  { %2018 = vmatmul.msk.f32.gmra.mxu0 %vm94_vm0, %v36_v36  ;;  %2050 = vmatmul.msk.f32.gmra.mxu2 %vm94_vm0, %v68_v37  ;;  %v44_v36 = vld [vmem:[%s4226_s0 + $0xb0] sm:$0xff] }
  0x7a   :  { %v76_v37 = vld [vmem:[%s4226_s0 + $0x1b0] sm:$0xff] }
  0x81   :  { %2019 = vmatmul.msk.f32.gmra.mxu0 %vm94_vm0, %v37_v38  ;;  %2051 = vmatmul.msk.f32.gmra.mxu2 %vm94_vm0, %v69_v39 }
  0x86   :  { %v304_v41 = vpop.f32.mrf.mxu0 }
  0x87   :  { %v305_v44 = vadd.f32 %v2724_v40, %v304_v41 }
  0x89   :  { %2020 = vmatmul.msk.f32.gmra.mxu0 %vm94_vm0, %v38_v42  ;;  %2052 = vmatmul.msk.f32.gmra.mxu2 %vm94_vm0, %v70_v43  ;;  %vm496_vm1 = vcmp.gt.f32.partialorder %v305_v44, 0.0  ;;  %v560_v45 = vmul.f32 0.1, %v305_v44 }
  0x8b   :  { %v624_v46 = vsel %vm496_vm1, %v305_v44, %v560_v45 }
  0x8c   :  { %v400_v47 = vpop.f32.mrf.mxu2  ;;  %688 = vst.msk [vmem:[%s4230_s5] sm:$0xff] %vm94_vm0, %v624_v46  ;;  %2068 = vmatmul.msk.f32.vlgmr.msra.gmra.mxu1 %vm94_vm0, %v624_v46 }
  0x8d   :  { %v401_v48 = vadd.f32 %v2724_v40, %v400_v47  ;;  %v45_v47 = vld [vmem:[%s4226_s0 + $0xb8] sm:$0xff] }
  0x8e   :  { %v307_v49 = vpop.f32.mrf.mxu0 }
  0x8f   :  { %v308_v52 = vadd.f32 %v2724_v40, %v307_v49  ;;  %vm528_vm2 = vcmp.gt.f32.partialorder %v401_v48, 0.0  ;;  %v592_v53 = vmul.f32 0.1, %v401_v48 }
  0x91   :  { %2021 = vmatmul.msk.f32.gmra.mxu0 %vm94_vm0, %v39_v50  ;;  %2053 = vmatmul.msk.f32.gmra.mxu2 %vm94_vm0, %v71_v51  ;;  %v656_v54 = vsel %vm528_vm2, %v401_v48, %v592_v53  ;;  %vm497_vm3 = vcmp.gt.f32.partialorder %v308_v52, 0.0  ;;  %v561_v55 = vmul.f32 0.1, %v308_v52  ;;  %v77_v48 = vld [vmem:[%s4226_s0 + $0x1b8] sm:$0xff] }
  0x92   :  { %720 = vst.msk [vmem:[%s4230_s5 + $0x100] sm:$0xff] %vm94_vm0, %v656_v54  ;;  %2100 = vmatmul.msk.f32.vlgmr.msra.gmra.mxu3 %vm94_vm0, %v656_v54 }
  0x93   :  { %v625_v56 = vsel %vm497_vm3, %v308_v52, %v561_v55 }
  0x94   :  { %v403_v57 = vpop.f32.mrf.mxu2  ;;  %689 = vst.msk [vmem:[%s4230_s5 + $0x8] sm:$0xff] %vm94_vm0, %v625_v56  ;;  %2069 = vmatmul.msk.f32.gmra.mxu1 %vm94_vm0, %v625_v56 }
  0x95   :  { %v404_v58 = vadd.f32 %v2724_v40, %v403_v57  ;;  %v46_v57 = vld [vmem:[%s4226_s0 + $0xc0] sm:$0xff] }
  0x96   :  { %v310_v59 = vpop.f32.mrf.mxu0 }
  0x97   :  { %v311_v62 = vadd.f32 %v2724_v40, %v310_v59  ;;  %vm529_vm4 = vcmp.gt.f32.partialorder %v404_v58, 0.0  ;;  %v593_v63 = vmul.f32 0.1, %v404_v58 }
  0x99   :  { %2022 = vmatmul.msk.f32.gmra.mxu0 %vm94_vm0, %v40_v60  ;;  %2054 = vmatmul.msk.f32.gmra.mxu2 %vm94_vm0, %v72_v61  ;;  %v657_v0 = vsel %vm529_vm4, %v404_v58, %v593_v63  ;;  %vm498_vm5 = vcmp.gt.f32.partialorder %v311_v62, 0.0  ;;  %v562_v1 = vmul.f32 0.1, %v311_v62  ;;  %v78_v58 = vld [vmem:[%s4226_s0 + $0x1c0] sm:$0xff] }
  0x9a   :  { %721 = vst.msk [vmem:[%s4230_s5 + $0x108] sm:$0xff] %vm94_vm0, %v657_v0  ;;  %2101 = vmatmul.msk.f32.gmra.mxu3 %vm94_vm0, %v657_v0 }
  0x9b   :  { %v626_v2 = vsel %vm498_vm5, %v311_v62, %v562_v1 }
  0x9c   :  { %v406_v3 = vpop.f32.mrf.mxu2  ;;  %690 = vst.msk [vmem:[%s4230_s5 + $0x10] sm:$0xff] %vm94_vm0, %v626_v2  ;;  %2070 = vmatmul.msk.f32.gmra.mxu1 %vm94_vm0, %v626_v2 }
  0x9d   :  { %v407_v4 = vadd.f32 %v2724_v40, %v406_v3  ;;  %v47_v3 = vld [vmem:[%s4226_s0 + $0xc8] sm:$0xff] }
  0x9e   :  { %v313_v5 = vpop.f32.mrf.mxu0 }
  0x9f   :  { %v314_v8 = vadd.f32 %v2724_v40, %v313_v5  ;;  %vm530_vm6 = vcmp.gt.f32.partialorder %v407_v4, 0.0  ;;  %v594_v9 = vmul.f32 0.1, %v407_v4 }
  0xa1   :  { %2023 = vmatmul.msk.f32.gmra.mxu0 %vm94_vm0, %v41_v6  ;;  %2055 = vmatmul.msk.f32.gmra.mxu2 %vm94_vm0, %v73_v7  ;;  %v658_v10 = vsel %vm530_vm6, %v407_v4, %v594_v9  ;;  %vm499_vm7 = vcmp.gt.f32.partialorder %v314_v8, 0.0  ;;  %v563_v11 = vmul.f32 0.1, %v314_v8  ;;  %v79_v4 = vld [vmem:[%s4226_s0 + $0x1c8] sm:$0xff] }
  0xa2   :  { %722 = vst.msk [vmem:[%s4230_s5 + $0x110] sm:$0xff] %vm94_vm0, %v658_v10  ;;  %2102 = vmatmul.msk.f32.gmra.mxu3 %vm94_vm0, %v658_v10 }
  0xa3   :  { %v627_v12 = vsel %vm499_vm7, %v314_v8, %v563_v11 }
  0xa4   :  { %v409_v13 = vpop.f32.mrf.mxu2  ;;  %691 = vst.msk [vmem:[%s4230_s5 + $0x18] sm:$0xff] %vm94_vm0, %v627_v12  ;;  %2071 = vmatmul.msk.f32.gmra.mxu1 %vm94_vm0, %v627_v12 }
  0xa5   :  { %v410_v14 = vadd.f32 %v2724_v40, %v409_v13  ;;  %v48_v13 = vld [vmem:[%s4226_s0 + $0xd0] sm:$0xff] }
  0xa6   :  { %v316_v15 = vpop.f32.mrf.mxu0 }
  0xa7   :  { %v317_v18 = vadd.f32 %v2724_v40, %v316_v15  ;;  %vm531_vm8 = vcmp.gt.f32.partialorder %v410_v14, 0.0  ;;  %v595_v19 = vmul.f32 0.1, %v410_v14 }
  0xa9   :  { %2024 = vmatmul.msk.f32.gmra.mxu0 %vm94_vm0, %v42_v16  ;;  %2056 = vmatmul.msk.f32.gmra.mxu2 %vm94_vm0, %v74_v17  ;;  %v659_v20 = vsel %vm531_vm8, %v410_v14, %v595_v19  ;;  %vm500_vm9 = vcmp.gt.f32.partialorder %v317_v18, 0.0  ;;  %v564_v21 = vmul.f32 0.1, %v317_v18  ;;  %v80_v14 = vld [vmem:[%s4226_s0 + $0x1d0] sm:$0xff] }
  0xaa   :  { %723 = vst.msk [vmem:[%s4230_s5 + $0x118] sm:$0xff] %vm94_vm0, %v659_v20  ;;  %2103 = vmatmul.msk.f32.gmra.mxu3 %vm94_vm0, %v659_v20 }
  0xab   :  { %v628_v22 = vsel %vm500_vm9, %v317_v18, %v564_v21 }
  0xac   :  { %v412_v23 = vpop.f32.mrf.mxu2  ;;  %692 = vst.msk [vmem:[%s4230_s5 + $0x20] sm:$0xff] %vm94_vm0, %v628_v22  ;;  %2072 = vmatmul.msk.f32.gmra.mxu1 %vm94_vm0, %v628_v22 }
  0xad   :  { %v413_v24 = vadd.f32 %v2724_v40, %v412_v23  ;;  %v49_v23 = vld [vmem:[%s4226_s0 + $0xd8] sm:$0xff] }
  0xae   :  { %v319_v25 = vpop.f32.mrf.mxu0 }
  0xaf   :  { %v320_v28 = vadd.f32 %v2724_v40, %v319_v25  ;;  %vm532_vm10 = vcmp.gt.f32.partialorder %v413_v24, 0.0  ;;  %v596_v29 = vmul.f32 0.1, %v413_v24 }
  0xb1   :  { %2025 = vmatmul.msk.f32.gmra.mxu0 %vm94_vm0, %v43_v26  ;;  %2057 = vmatmul.msk.f32.gmra.mxu2 %vm94_vm0, %v75_v27  ;;  %v660_v30 = vsel %vm532_vm10, %v413_v24, %v596_v29  ;;  %vm501_vm11 = vcmp.gt.f32.partialorder %v320_v28, 0.0  ;;  %v565_v31 = vmul.f32 0.1, %v320_v28  ;;  %v81_v24 = vld [vmem:[%s4226_s0 + $0x1d8] sm:$0xff] }
  0xb2   :  { %724 = vst.msk [vmem:[%s4230_s5 + $0x120] sm:$0xff] %vm94_vm0, %v660_v30  ;;  %2104 = vmatmul.msk.f32.gmra.mxu3 %vm94_vm0, %v660_v30 }
  0xb3   :  { %v629_v32 = vsel %vm501_vm11, %v320_v28, %v565_v31 }
  0xb4   :  { %v415_v33 = vpop.f32.mrf.mxu2  ;;  %693 = vst.msk [vmem:[%s4230_s5 + $0x28] sm:$0xff] %vm94_vm0, %v629_v32  ;;  %2073 = vmatmul.msk.f32.gmra.mxu1 %vm94_vm0, %v629_v32 }
  0xb5   :  { %v416_v34 = vadd.f32 %v2724_v40, %v415_v33  ;;  %v50_v33 = vld [vmem:[%s4226_s0 + $0xe0] sm:$0xff] }
  0xb6   :  { %v322_v35 = vpop.f32.mrf.mxu0 }
  0xb7   :  { %v323_v38 = vadd.f32 %v2724_v40, %v322_v35  ;;  %vm533_vm12 = vcmp.gt.f32.partialorder %v416_v34, 0.0  ;;  %v597_v39 = vmul.f32 0.1, %v416_v34 }
  0xb9   :  { %2026 = vmatmul.msk.f32.gmra.mxu0 %vm94_vm0, %v44_v36  ;;  %2058 = vmatmul.msk.f32.gmra.mxu2 %vm94_vm0, %v76_v37  ;;  %v661_v41 = vsel %vm533_vm12, %v416_v34, %v597_v39  ;;  %vm502_vm13 = vcmp.gt.f32.partialorder %v323_v38, 0.0  ;;  %v566_v42 = vmul.f32 0.1, %v323_v38  ;;  %v82_v34 = vld [vmem:[%s4226_s0 + $0x1e0] sm:$0xff] }
  0xba   :  { %725 = vst.msk [vmem:[%s4230_s5 + $0x128] sm:$0xff] %vm94_vm0, %v661_v41  ;;  %2105 = vmatmul.msk.f32.gmra.mxu3 %vm94_vm0, %v661_v41 }
  0xbb   :  { %v630_v43 = vsel %vm502_vm13, %v323_v38, %v566_v42 }
  0xbc   :  { %v418_v44 = vpop.f32.mrf.mxu2  ;;  %694 = vst.msk [vmem:[%s4230_s5 + $0x30] sm:$0xff] %vm94_vm0, %v630_v43  ;;  %2074 = vmatmul.msk.f32.gmra.mxu1 %vm94_vm0, %v630_v43 }
  0xbd   :  { %v419_v45 = vadd.f32 %v2724_v40, %v418_v44  ;;  %v51_v44 = vld [vmem:[%s4226_s0 + $0xe8] sm:$0xff] }
  0xbe   :  { %v325_v46 = vpop.f32.mrf.mxu0 }
  0xbf   :  { %v326_v49 = vadd.f32 %v2724_v40, %v325_v46  ;;  %vm534_vm14 = vcmp.gt.f32.partialorder %v419_v45, 0.0  ;;  %v598_v50 = vmul.f32 0.1, %v419_v45 }
  0xc1   :  { %2027 = vmatmul.msk.f32.gmra.mxu0 %vm94_vm0, %v45_v47  ;;  %2059 = vmatmul.msk.f32.gmra.mxu2 %vm94_vm0, %v77_v48  ;;  %v662_v51 = vsel %vm534_vm14, %v419_v45, %v598_v50  ;;  %vm503_vm15 = vcmp.gt.f32.partialorder %v326_v49, 0.0  ;;  %v567_v52 = vmul.f32 0.1, %v326_v49  ;;  %v83_v45 = vld [vmem:[%s4226_s0 + $0x1e8] sm:$0xff] }
  0xc2   :  { %726 = vst.msk [vmem:[%s4230_s5 + $0x130] sm:$0xff] %vm94_vm0, %v662_v51  ;;  %2106 = vmatmul.msk.f32.gmra.mxu3 %vm94_vm0, %v662_v51 }
  0xc3   :  { %v631_v53 = vsel %vm503_vm15, %v326_v49, %v567_v52 }
  0xc4   :  { %v421_v54 = vpop.f32.mrf.mxu2  ;;  %695 = vst.msk [vmem:[%s4230_s5 + $0x38] sm:$0xff] %vm94_vm0, %v631_v53  ;;  %2075 = vmatmul.msk.f32.gmra.mxu1 %vm94_vm0, %v631_v53 }
  0xc5   :  { %v422_v55 = vadd.f32 %v2724_v40, %v421_v54  ;;  %v52_v54 = vld [vmem:[%s4226_s0 + $0xf0] sm:$0xff] }
  0xc6   :  { %v328_v56 = vpop.f32.mrf.mxu0 }
  0xc7   :  { %v329_v59 = vadd.f32 %v2724_v40, %v328_v56  ;;  %vm535_vm1 = vcmp.gt.f32.partialorder %v422_v55, 0.0  ;;  %v599_v60 = vmul.f32 0.1, %v422_v55 }
  0xc9   :  { %v568_v61 = vmul.f32 0.1, %v329_v59  ;;  %2028 = vmatmul.msk.f32.gmra.mxu0 %vm94_vm0, %v46_v57  ;;  %2060 = vmatmul.msk.f32.gmra.mxu2 %vm94_vm0, %v78_v58  ;;  %v663_v62 = vsel %vm535_vm1, %v422_v55, %v599_v60  ;;  %vm504_vm2 = vcmp.gt.f32.partialorder %v329_v59, 0.0  ;;  %v84_v55 = vld [vmem:[%s4226_s0 + $0x1f0] sm:$0xff] }
  0xca   :  { %727 = vst.msk [vmem:[%s4230_s5 + $0x138] sm:$0xff] %vm94_vm0, %v663_v62  ;;  %2107 = vmatmul.msk.f32.gmra.mxu3 %vm94_vm0, %v663_v62 }
  0xcb   :  { %v632_v63 = vsel %vm504_vm2, %v329_v59, %v568_v61 }
  0xcc   :  { %v424_v0 = vpop.f32.mrf.mxu2  ;;  %696 = vst.msk [vmem:[%s4230_s5 + $0x40] sm:$0xff] %vm94_vm0, %v632_v63  ;;  %2076 = vmatmul.msk.f32.gmra.mxu1 %vm94_vm0, %v632_v63 }
  0xcd   :  { %v425_v1 = vadd.f32 %v2724_v40, %v424_v0  ;;  %v53_v0 = vld [vmem:[%s4226_s0 + $0xf8] sm:$0xff] }
  0xce   :  { %v331_v2 = vpop.f32.mrf.mxu0 }
  0xcf   :  { %v600_v5 = vmul.f32 0.1, %v425_v1  ;;  %v332_v6 = vadd.f32 %v2724_v40, %v331_v2  ;;  %vm536_vm3 = vcmp.gt.f32.partialorder %v425_v1, 0.0 }
  0xd1   :  { %v569_v7 = vmul.f32 0.1, %v332_v6  ;;  %2029 = vmatmul.msk.f32.gmra.mxu0 %vm94_vm0, %v47_v3  ;;  %2061 = vmatmul.msk.f32.gmra.mxu2 %vm94_vm0, %v79_v4  ;;  %v664_v8 = vsel %vm536_vm3, %v425_v1, %v600_v5  ;;  %vm505_vm4 = vcmp.gt.f32.partialorder %v332_v6, 0.0  ;;  %v85_v1 = vld [vmem:[%s4226_s0 + $0x1f8] sm:$0xff] }
  0xd2   :  { %728 = vst.msk [vmem:[%s4230_s5 + $0x140] sm:$0xff] %vm94_vm0, %v664_v8  ;;  %2108 = vmatmul.msk.f32.gmra.mxu3 %vm94_vm0, %v664_v8 }
  0xd3   :  { %v633_v9 = vsel %vm505_vm4, %v332_v6, %v569_v7  ;;  %vm1353_vm4 = vcmask 7168  }
  0xd4   :  { %v427_v10 = vpop.f32.mrf.mxu2  ;;  %697 = vst.msk [vmem:[%s4230_s5 + $0x48] sm:$0xff] %vm94_vm0, %v633_v9  ;;  %2077 = vmatmul.msk.f32.gmra.mxu1 %vm94_vm0, %v633_v9 }
  0xd5   :  { %v428_v11 = vadd.f32 %v2724_v40, %v427_v10  ;;  %v3044_v10 = vld [vmem:[%s4229_s4] ss:$0 sm:$0xff] }
  0xd6   :  { %v334_v12 = vpop.f32.mrf.mxu0 }
  0xd7   :  { %v601_v15 = vmul.f32 0.1, %v428_v11  ;;  %v335_v16 = vadd.f32 %v2724_v40, %v334_v12  ;;  %vm537_vm5 = vcmp.gt.f32.partialorder %v428_v11, 0.0 }
  0xd9   :  { %v570_v17 = vmul.f32 0.1, %v335_v16  ;;  %2030 = vmatmul.msk.f32.gmra.mxu0 %vm94_vm0, %v48_v13  ;;  %2062 = vmatmul.msk.f32.gmra.mxu2 %vm94_vm0, %v80_v14  ;;  %v665_v18 = vsel %vm537_vm5, %v428_v11, %v601_v15  ;;  %vm506_vm6 = vcmp.gt.f32.partialorder %v335_v16, 0.0 }
  0xda   :  { %729 = vst.msk [vmem:[%s4230_s5 + $0x148] sm:$0xff] %vm94_vm0, %v665_v18  ;;  %2109 = vmatmul.msk.f32.gmra.mxu3 %vm94_vm0, %v665_v18 }
  0xdb   :  { %v634_v19 = vsel %vm506_vm6, %v335_v16, %v570_v17 }
  0xdc   :  { %v430_v20 = vpop.f32.mrf.mxu2  ;;  %698 = vst.msk [vmem:[%s4230_s5 + $0x50] sm:$0xff] %vm94_vm0, %v634_v19  ;;  %2078 = vmatmul.msk.f32.gmra.mxu1 %vm94_vm0, %v634_v19  ;;  %v2531_v19 = vmov 0.0  }
  0xdd   :  { %v431_v21 = vadd.f32 %v2724_v40, %v430_v20 }
  0xde   :  { %v337_v22 = vpop.f32.mrf.mxu0 }
  0xdf   :  { %v602_v25 = vmul.f32 0.1, %v431_v21  ;;  %v338_v26 = vadd.f32 %v2724_v40, %v337_v22  ;;  %vm538_vm7 = vcmp.gt.f32.partialorder %v431_v21, 0.0 }
  0xe1   :  { %v571_v27 = vmul.f32 0.1, %v338_v26  ;;  %2031 = vmatmul.msk.f32.gmra.mxu0 %vm94_vm0, %v49_v23  ;;  %2063 = vmatmul.msk.f32.gmra.mxu2 %vm94_vm0, %v81_v24  ;;  %v666_v28 = vsel %vm538_vm7, %v431_v21, %v602_v25  ;;  %vm507_vm8 = vcmp.gt.f32.partialorder %v338_v26, 0.0 }
  0xe2   :  { %730 = vst.msk [vmem:[%s4230_s5 + $0x150] sm:$0xff] %vm94_vm0, %v666_v28  ;;  %2110 = vmatmul.msk.f32.gmra.mxu3 %vm94_vm0, %v666_v28 }
  0xe3   :  { %v635_v29 = vsel %vm507_vm8, %v338_v26, %v571_v27 }
  0xe4   :  { %v433_v30 = vpop.f32.mrf.mxu2  ;;  %699 = vst.msk [vmem:[%s4230_s5 + $0x58] sm:$0xff] %vm94_vm0, %v635_v29  ;;  %2079 = vmatmul.msk.f32.gmra.mxu1 %vm94_vm0, %v635_v29 }
  0xe5   :  { %v434_v31 = vadd.f32 %v2724_v40, %v433_v30 }
  0xe6   :  { %v340_v32 = vpop.f32.mrf.mxu0 }
  0xe7   :  { %v603_v35 = vmul.f32 0.1, %v434_v31  ;;  %v341_v36 = vadd.f32 %v2724_v40, %v340_v32  ;;  %vm539_vm9 = vcmp.gt.f32.partialorder %v434_v31, 0.0 }
  0xe9   :  { %v572_v37 = vmul.f32 0.1, %v341_v36  ;;  %2032 = vmatmul.msk.f32.gmra.mxu0 %vm94_vm0, %v50_v33  ;;  %2064 = vmatmul.msk.f32.gmra.mxu2 %vm94_vm0, %v82_v34  ;;  %v667_v38 = vsel %vm539_vm9, %v434_v31, %v603_v35  ;;  %vm508_vm10 = vcmp.gt.f32.partialorder %v341_v36, 0.0 }
  0xea   :  { %731 = vst.msk [vmem:[%s4230_s5 + $0x158] sm:$0xff] %vm94_vm0, %v667_v38  ;;  %2111 = vmatmul.msk.f32.gmra.mxu3 %vm94_vm0, %v667_v38 }
  0xeb   :  { %v636_v39 = vsel %vm508_vm10, %v341_v36, %v572_v37 }
  0xec   :  { %v436_v41 = vpop.f32.mrf.mxu2  ;;  %700 = vst.msk [vmem:[%s4230_s5 + $0x60] sm:$0xff] %vm94_vm0, %v636_v39  ;;  %2080 = vmatmul.msk.f32.gmra.mxu1 %vm94_vm0, %v636_v39 }
  0xed   :  { %v437_v42 = vadd.f32 %v2724_v40, %v436_v41 }
  0xee   :  { %v343_v43 = vpop.f32.mrf.mxu0 }
  0xef   :  { %v604_v46 = vmul.f32 0.1, %v437_v42  ;;  %v344_v47 = vadd.f32 %v2724_v40, %v343_v43  ;;  %vm540_vm11 = vcmp.gt.f32.partialorder %v437_v42, 0.0 }
  0xf1   :  { %v573_v48 = vmul.f32 0.1, %v344_v47  ;;  %2033 = vmatmul.msk.f32.gmra.mxu0 %vm94_vm0, %v51_v44  ;;  %2065 = vmatmul.msk.f32.gmra.mxu2 %vm94_vm0, %v83_v45  ;;  %v668_v49 = vsel %vm540_vm11, %v437_v42, %v604_v46  ;;  %vm509_vm12 = vcmp.gt.f32.partialorder %v344_v47, 0.0 }
  0xf2   :  { %732 = vst.msk [vmem:[%s4230_s5 + $0x160] sm:$0xff] %vm94_vm0, %v668_v49  ;;  %2112 = vmatmul.msk.f32.gmra.mxu3 %vm94_vm0, %v668_v49 }
  0xf3   :  { %v637_v50 = vsel %vm509_vm12, %v344_v47, %v573_v48 }
  0xf4   :  { %v439_v51 = vpop.f32.mrf.mxu2  ;;  %701 = vst.msk [vmem:[%s4230_s5 + $0x68] sm:$0xff] %vm94_vm0, %v637_v50  ;;  %2081 = vmatmul.msk.f32.gmra.mxu1 %vm94_vm0, %v637_v50 }
  0xf5   :  { %v440_v52 = vadd.f32 %v2724_v40, %v439_v51 }
  0xf6   :  { %v346_v53 = vpop.f32.mrf.mxu0 }
  0xf7   :  { %v605_v56 = vmul.f32 0.1, %v440_v52  ;;  %v347_v57 = vadd.f32 %v2724_v40, %v346_v53  ;;  %vm541_vm13 = vcmp.gt.f32.partialorder %v440_v52, 0.0 }
  0xf9   :  { %v574_v58 = vmul.f32 0.1, %v347_v57  ;;  %2034 = vmatmul.msk.f32.gmra.mxu0 %vm94_vm0, %v52_v54  ;;  %2066 = vmatmul.msk.f32.gmra.mxu2 %vm94_vm0, %v84_v55  ;;  %v669_v59 = vsel %vm541_vm13, %v440_v52, %v605_v56  ;;  %vm510_vm14 = vcmp.gt.f32.partialorder %v347_v57, 0.0 }
  0xfa   :  { %733 = vst.msk [vmem:[%s4230_s5 + $0x168] sm:$0xff] %vm94_vm0, %v669_v59  ;;  %2113 = vmatmul.msk.f32.gmra.mxu3 %vm94_vm0, %v669_v59 }
  0xfb   :  { %v638_v60 = vsel %vm510_vm14, %v347_v57, %v574_v58 }
  0xfc   :  { %v442_v61 = vpop.f32.mrf.mxu2  ;;  %702 = vst.msk [vmem:[%s4230_s5 + $0x70] sm:$0xff] %vm94_vm0, %v638_v60  ;;  %2082 = vmatmul.msk.f32.gmra.mxu1 %vm94_vm0, %v638_v60 }
  0xfd   :  { %v443_v62 = vadd.f32 %v2724_v40, %v442_v61 }
  0xfe   :  { %v349_v63 = vpop.f32.mrf.mxu0 }
  0xff   :  { %v606_v2 = vmul.f32 0.1, %v443_v62  ;;  %v350_v3 = vadd.f32 %v2724_v40, %v349_v63  ;;  %vm542_vm15 = vcmp.gt.f32.partialorder %v443_v62, 0.0 }
 0x101   :  { %v575_v4 = vmul.f32 0.1, %v350_v3  ;;  %2035 = vmatmul.msk.f32.gmra.mxu0 %vm94_vm0, %v53_v0  ;;  %2067 = vmatmul.msk.f32.gmra.mxu2 %vm94_vm0, %v85_v1  ;;  %v670_v5 = vsel %vm542_vm15, %v443_v62, %v606_v2  ;;  %vm511_vm1 = vcmp.gt.f32.partialorder %v350_v3, 0.0 }
 0x102   :  { %734 = vst.msk [vmem:[%s4230_s5 + $0x170] sm:$0xff] %vm94_vm0, %v670_v5  ;;  %2114 = vmatmul.msk.f32.gmra.mxu3 %vm94_vm0, %v670_v5 }
 0x103   :  { %v639_v6 = vsel %vm511_vm1, %v350_v3, %v575_v4 }
 0x104   :  { %v445_v7 = vpop.f32.mrf.mxu2  ;;  %703 = vst.msk [vmem:[%s4230_s5 + $0x78] sm:$0xff] %vm94_vm0, %v639_v6  ;;  %2083 = vmatmul.msk.f32.gmra.mxu1 %vm94_vm0, %v639_v6 }
 0x105   :  { %v446_v8 = vadd.f32 %v2724_v40, %v445_v7 }
 0x106   :  { %v352_v9 = vpop.f32.mrf.mxu0 }
 0x107   :  { %v607_v11 = vmul.f32 0.1, %v446_v8  ;;  %v353_v12 = vadd.f32 %v2724_v40, %v352_v9  ;;  %vm543_vm2 = vcmp.gt.f32.partialorder %v446_v8, 0.0 }
 0x109   :  { %v576_v13 = vmul.f32 0.1, %v353_v12  ;;  %v969_v14 = vpop.f32.mrf.mxu1  ;;  %v671_v15 = vsel %vm543_vm2, %v446_v8, %v607_v11  ;;  %vm512_vm3 = vcmp.gt.f32.partialorder %v353_v12, 0.0 }
 0x10a   :  { %v970_v16 = vadd.f32 %v3044_v10, %v969_v14  ;;  %735 = vst.msk [vmem:[%s4230_s5 + $0x178] sm:$0xff] %vm94_vm0, %v671_v15  ;;  %2115 = vmatmul.msk.f32.gmra.mxu3 %vm94_vm0, %v671_v15 }
 0x10b   :  { %v640_v17 = vsel %vm512_vm3, %v353_v12, %v576_v13 }
 0x10c   :  { %vm1161_vm5 = vcmp.gt.f32.partialorder %v970_v16, 0.0  ;;  %v448_v18 = vpop.f32.mrf.mxu2  ;;  %704 = vst.msk [vmem:[%s4230_s5 + $0x80] sm:$0xff] %vm94_vm0, %v640_v17  ;;  %2084 = vmatmul.msk.f32.gmra.mxu1 %vm94_vm0, %v640_v17 }
 0x10d   :  { %v2132_v20 = vsel %vm1161_vm5, 1.0, %v2531_v19  ;;  %v449_v21 = vadd.f32 %v2724_v40, %v448_v18 }
 0x10e   :  { %1354 = vst.msk [vmem:[%s4231_s6] sm:$0xff] %vm1353_vm4, %v2132_v20  ;;  %v355_v22 = vpop.f32.mrf.mxu0 }
 0x10f   :  { %v608_v23 = vmul.f32 0.1, %v449_v21  ;;  %v356_v24 = vadd.f32 %v2724_v40, %v355_v22  ;;  %vm544_vm6 = vcmp.gt.f32.partialorder %v449_v21, 0.0 }
 0x111   :  { %v577_v25 = vmul.f32 0.1, %v356_v24  ;;  %v972_v26 = vpop.f32.mrf.mxu1  ;;  %v672_v27 = vsel %vm544_vm6, %v449_v21, %v608_v23  ;;  %vm513_vm7 = vcmp.gt.f32.partialorder %v356_v24, 0.0 }
 0x112   :  { %v973_v28 = vadd.f32 %v3044_v10, %v972_v26  ;;  %736 = vst.msk [vmem:[%s4230_s5 + $0x180] sm:$0xff] %vm94_vm0, %v672_v27  ;;  %2116 = vmatmul.msk.f32.gmra.mxu3 %vm94_vm0, %v672_v27 }
 0x113   :  { %v641_v29 = vsel %vm513_vm7, %v356_v24, %v577_v25 }
 0x114   :  { %vm1162_vm8 = vcmp.gt.f32.partialorder %v973_v28, 0.0  ;;  %v451_v30 = vpop.f32.mrf.mxu2  ;;  %705 = vst.msk [vmem:[%s4230_s5 + $0x88] sm:$0xff] %vm94_vm0, %v641_v29  ;;  %2085 = vmatmul.msk.f32.gmra.mxu1 %vm94_vm0, %v641_v29 }
 0x115   :  { %v2133_v31 = vsel %vm1162_vm8, 1.0, %v2531_v19  ;;  %v452_v32 = vadd.f32 %v2724_v40, %v451_v30  ;;  %v1065_v33 = vpop.f32.mrf.mxu3 }
 0x116   :  { %1355 = vst.msk [vmem:[%s4231_s6 + $0x8] sm:$0xff] %vm1353_vm4, %v2133_v31  ;;  %v1066_v34 = vadd.f32 %v3044_v10, %v1065_v33  ;;  %v358_v35 = vpop.f32.mrf.mxu0  ;;  %v2207_v36 = vpack.i.bf16 %v2133_v31, %v2132_v20 }
 0x117   :  { %v609_v37 = vmul.f32 0.1, %v452_v32  ;;  %v359_v38 = vadd.f32 %v2724_v40, %v358_v35  ;;  %vm545_vm9 = vcmp.gt.f32.partialorder %v452_v32, 0.0 }
 0x118   :  { %vm1193_vm10 = vcmp.gt.f32.partialorder %v1066_v34, 0.0  ;;  %2208 = vrot.lane.b32.xlu0 %v2207_v36, %s2532_s11  ;;  %2213 = vrot.lane.b32.xlu2 %v2207_v36, %s2533_s12 }
 0x119   :  { %v2164_v39 = vsel %vm1193_vm10, 1.0, %v2531_v19  ;;  %v578_v41 = vmul.f32 0.1, %v359_v38  ;;  %v975_v42 = vpop.f32.mrf.mxu1  ;;  %v673_v43 = vsel %vm545_vm9, %v452_v32, %v609_v37  ;;  %vm514_vm11 = vcmp.gt.f32.partialorder %v359_v38, 0.0 }
 0x11a   :  { %1386 = vst.msk [vmem:[%s4231_s6 + $0x100] sm:$0xff] %vm1353_vm4, %v2164_v39  ;;  %v976_v44 = vadd.f32 %v3044_v10, %v975_v42  ;;  %2117 = vmatmul.msk.f32.gmra.mxu3 %vm94_vm0, %v673_v43 }
 0x11b   :  { %737 = vst.msk [vmem:[%s4230_s5 + $0x188] sm:$0xff] %vm94_vm0, %v673_v43  ;;  %v642_v45 = vsel %vm514_vm11, %v359_v38, %v578_v41 }
 0x11c   :  { %vm1163_vm12 = vcmp.gt.f32.partialorder %v976_v44, 0.0  ;;  %v454_v46 = vpop.f32.mrf.mxu2  ;;  %706 = vst.msk [vmem:[%s4230_s5 + $0x90] sm:$0xff] %vm94_vm0, %v642_v45  ;;  %2086 = vmatmul.msk.f32.gmra.mxu1 %vm94_vm0, %v642_v45 }
 0x11d   :  { %v2134_v47 = vsel %vm1163_vm12, 1.0, %v2531_v19  ;;  %v455_v48 = vadd.f32 %v2724_v40, %v454_v46  ;;  %v1068_v49 = vpop.f32.mrf.mxu3 }
 0x11e   :  { %1356 = vst.msk [vmem:[%s4231_s6 + $0x10] sm:$0xff] %vm1353_vm4, %v2134_v47  ;;  %v1069_v50 = vadd.f32 %v3044_v10, %v1068_v49  ;;  %v361_v51 = vpop.f32.mrf.mxu0 }
 0x11f   :  { %v610_v52 = vmul.f32 0.1, %v455_v48  ;;  %v362_v53 = vadd.f32 %v2724_v40, %v361_v51  ;;  %vm546_vm13 = vcmp.gt.f32.partialorder %v455_v48, 0.0 }
 0x120   :  { %vm1194_vm14 = vcmp.gt.f32.partialorder %v1069_v50, 0.0 }
 0x121   :  { %v2165_v54 = vsel %vm1194_vm14, 1.0, %v2531_v19  ;;  %v579_v55 = vmul.f32 0.1, %v362_v53  ;;  %v978_v56 = vpop.f32.mrf.mxu1  ;;  %v674_v57 = vsel %vm546_vm13, %v455_v48, %v610_v52  ;;  %vm515_vm15 = vcmp.gt.f32.partialorder %v362_v53, 0.0 }
 0x122   :  { %1387 = vst.msk [vmem:[%s4231_s6 + $0x108] sm:$0xff] %vm1353_vm4, %v2165_v54  ;;  %v979_v58 = vadd.f32 %v3044_v10, %v978_v56  ;;  %2118 = vmatmul.msk.f32.gmra.mxu3 %vm94_vm0, %v674_v57  ;;  %v2217_v59 = vpack.i.bf16 %v2165_v54, %v2164_v39 }
 0x123   :  { %738 = vst.msk [vmem:[%s4230_s5 + $0x190] sm:$0xff] %vm94_vm0, %v674_v57  ;;  %v643_v60 = vsel %vm515_vm15, %v362_v53, %v579_v55 }
 0x124   :  { %vm1164_vm1 = vcmp.gt.f32.partialorder %v979_v58, 0.0  ;;  %v457_v61 = vpop.f32.mrf.mxu2  ;;  %2218 = vrot.lane.b32.xlu1 %v2217_v59, %s2532_s11  ;;  %707 = vst.msk [vmem:[%s4230_s5 + $0x98] sm:$0xff] %vm94_vm0, %v643_v60  ;;  %2087 = vmatmul.msk.f32.gmra.mxu1 %vm94_vm0, %v643_v60 }
 0x125   :  { %v2135_v62 = vsel %vm1164_vm1, 1.0, %v2531_v19  ;;  %v458_v63 = vadd.f32 %v2724_v40, %v457_v61  ;;  %2223 = vrot.lane.b32.xlu0 %v2217_v59, %s2533_s12  ;;  %v1071_v0 = vpop.f32.mrf.mxu3 }
 0x126   :  { %1357 = vst.msk [vmem:[%s4231_s6 + $0x18] sm:$0xff] %vm1353_vm4, %v2135_v62  ;;  %v1072_v1 = vadd.f32 %v3044_v10, %v1071_v0  ;;  %v364_v2 = vpop.f32.mrf.mxu0  ;;  %v2227_v12 = vpack.i.bf16 %v2135_v62, %v2134_v47 }
 0x127   :  { %v611_v3 = vmul.f32 0.1, %v458_v63  ;;  %v365_v4 = vadd.f32 %v2724_v40, %v364_v2  ;;  %vm547_vm2 = vcmp.gt.f32.partialorder %v458_v63, 0.0 }
 0x128   :  { %vm1195_vm3 = vcmp.gt.f32.partialorder %v1072_v1, 0.0 }
 0x129   :  { %v2166_v5 = vsel %vm1195_vm3, 1.0, %v2531_v19  ;;  %v580_v6 = vmul.f32 0.1, %v365_v4  ;;  %v981_v7 = vpop.f32.mrf.mxu1  ;;  %v675_v8 = vsel %vm547_vm2, %v458_v63, %v611_v3  ;;  %vm516_vm5 = vcmp.gt.f32.partialorder %v365_v4, 0.0 }
 0x12a   :  { %1388 = vst.msk [vmem:[%s4231_s6 + $0x110] sm:$0xff] %vm1353_vm4, %v2166_v5  ;;  %v982_v9 = vadd.f32 %v3044_v10, %v981_v7  ;;  %2119 = vmatmul.msk.f32.gmra.mxu3 %vm94_vm0, %v675_v8 }
 0x12b   :  { %739 = vst.msk [vmem:[%s4230_s5 + $0x198] sm:$0xff] %vm94_vm0, %v675_v8  ;;  %v644_v11 = vsel %vm516_vm5, %v365_v4, %v580_v6 }
 0x12c   :  { %vm1165_vm6 = vcmp.gt.f32.partialorder %v982_v9, 0.0  ;;  %v460_v13 = vpop.f32.mrf.mxu2  ;;  %708 = vst.msk [vmem:[%s4230_s5 + $0xa0] sm:$0xff] %vm94_vm0, %v644_v11  ;;  %2088 = vmatmul.msk.f32.gmra.mxu1 %vm94_vm0, %v644_v11 }
 0x12d   :  { %v2136_v14 = vsel %vm1165_vm6, 1.0, %v2531_v19  ;;  %v461_v15 = vadd.f32 %v2724_v40, %v460_v13  ;;  %2228 = vrot.lane.b32.xlu0 %v2227_v12, %s2532_s11  ;;  %v1074_v16 = vpop.f32.mrf.mxu3  ;;  %v3261_v13 = vld [vmem:[%s4227_s2] ss:$0 sm:$0xff] }
 0x12e   :  { %1358 = vst.msk [vmem:[%s4231_s6 + $0x20] sm:$0xff] %vm1353_vm4, %v2136_v14  ;;  %v1075_v17 = vadd.f32 %v3044_v10, %v1074_v16  ;;  %v367_v18 = vpop.f32.mrf.mxu0 }
 0x12f   :  { %v612_v20 = vmul.f32 0.1, %v461_v15  ;;  %v368_v21 = vadd.f32 %v2724_v40, %v367_v18  ;;  %vm548_vm7 = vcmp.gt.f32.partialorder %v461_v15, 0.0 }
 0x130   :  { %vm1196_vm8 = vcmp.gt.f32.partialorder %v1075_v17, 0.0 }
 0x131   :  { %v2167_v22 = vsel %vm1196_vm8, 1.0, %v2531_v19  ;;  %v581_v23 = vmul.f32 0.1, %v368_v21  ;;  %v984_v24 = vpop.f32.mrf.mxu1  ;;  %v676_v25 = vsel %vm548_vm7, %v461_v15, %v612_v20  ;;  %vm517_vm9 = vcmp.gt.f32.partialorder %v368_v21, 0.0 }
 0x132   :  { %1389 = vst.msk [vmem:[%s4231_s6 + $0x118] sm:$0xff] %vm1353_vm4, %v2167_v22  ;;  %v985_v26 = vadd.f32 %v3044_v10, %v984_v24  ;;  %2120 = vmatmul.msk.f32.gmra.mxu3 %vm94_vm0, %v676_v25  ;;  %v2242_v27 = vpack.i.bf16 %v2167_v22, %v2166_v5 }
 0x133   :  { %740 = vst.msk [vmem:[%s4230_s5 + $0x1a0] sm:$0xff] %vm94_vm0, %v676_v25  ;;  %v645_v28 = vsel %vm517_vm9, %v368_v21, %v581_v23 }
 0x134   :  { %vm1166_vm10 = vcmp.gt.f32.partialorder %v985_v26, 0.0  ;;  %v463_v29 = vpop.f32.mrf.mxu2  ;;  %2243 = vrot.lane.b32.xlu1 %v2242_v27, %s2533_s12  ;;  %709 = vst.msk [vmem:[%s4230_s5 + $0xa8] sm:$0xff] %vm94_vm0, %v645_v28  ;;  %2089 = vmatmul.msk.f32.gmra.mxu1 %vm94_vm0, %v645_v28 }
 0x135   :  { %v2137_v30 = vsel %vm1166_vm10, 1.0, %v2531_v19  ;;  %v464_v31 = vadd.f32 %v2724_v40, %v463_v29  ;;  %2238 = vrot.lane.b32.xlu2 %v2242_v27, %s2532_s11  ;;  %2233 = vrot.lane.b32.xlu0 %v2227_v12, %s2533_s12  ;;  %v1077_v32 = vpop.f32.mrf.mxu3 }
 0x136   :  { %1359 = vst.msk [vmem:[%s4231_s6 + $0x28] sm:$0xff] %vm1353_vm4, %v2137_v30  ;;  %v1078_v33 = vadd.f32 %v3044_v10, %v1077_v32  ;;  %v370_v34 = vpop.f32.mrf.mxu0  ;;  %v2247_v43 = vpack.i.bf16 %v2137_v30, %v2136_v14 }
 0x137   :  { %v613_v35 = vmul.f32 0.1, %v464_v31  ;;  %v371_v36 = vadd.f32 %v2724_v40, %v370_v34  ;;  %vm549_vm11 = vcmp.gt.f32.partialorder %v464_v31, 0.0 }
 0x138   :  { %vm1197_vm12 = vcmp.gt.f32.partialorder %v1078_v33, 0.0 }
 0x139   :  { %v2168_v37 = vsel %vm1197_vm12, 1.0, %v2531_v19  ;;  %v582_v38 = vmul.f32 0.1, %v371_v36  ;;  %v987_v39 = vpop.f32.mrf.mxu1  ;;  %v677_v41 = vsel %vm549_vm11, %v464_v31, %v613_v35  ;;  %vm518_vm13 = vcmp.gt.f32.partialorder %v371_v36, 0.0 }
 0x13a   :  { %1390 = vst.msk [vmem:[%s4231_s6 + $0x120] sm:$0xff] %vm1353_vm4, %v2168_v37  ;;  %v988_v42 = vadd.f32 %v3044_v10, %v987_v39  ;;  %2121 = vmatmul.msk.f32.gmra.mxu3 %vm94_vm0, %v677_v41 }
 0x13b   :  { %741 = vst.msk [vmem:[%s4230_s5 + $0x1a8] sm:$0xff] %vm94_vm0, %v677_v41  ;;  %v646_v44 = vsel %vm518_vm13, %v371_v36, %v582_v38 }
 0x13c   :  { %vm1167_vm14 = vcmp.gt.f32.partialorder %v988_v42, 0.0  ;;  %v466_v45 = vpop.f32.mrf.mxu2  ;;  %710 = vst.msk [vmem:[%s4230_s5 + $0xb0] sm:$0xff] %vm94_vm0, %v646_v44  ;;  %2090 = vmatmul.msk.f32.gmra.mxu1 %vm94_vm0, %v646_v44  ;;  %2248 = vrot.lane.b32.xlu1 %v2247_v43, %s2532_s11 }
 0x13d   :  { %v2138_v46 = vsel %vm1167_vm14, 1.0, %v2531_v19  ;;  %v467_v47 = vadd.f32 %v2724_v40, %v466_v45  ;;  %v1080_v48 = vpop.f32.mrf.mxu3 }
 0x13e   :  { %1360 = vst.msk [vmem:[%s4231_s6 + $0x30] sm:$0xff] %vm1353_vm4, %v2138_v46  ;;  %v1081_v49 = vadd.f32 %v3044_v10, %v1080_v48  ;;  %v373_v50 = vpop.f32.mrf.mxu0 }
 0x13f   :  { %v614_v51 = vmul.f32 0.1, %v467_v47  ;;  %v374_v52 = vadd.f32 %v2724_v40, %v373_v50  ;;  %vm550_vm15 = vcmp.gt.f32.partialorder %v467_v47, 0.0 }
 0x140   :  { %vm1198_vm1 = vcmp.gt.f32.partialorder %v1081_v49, 0.0 }
 0x141   :  { %v2169_v53 = vsel %vm1198_vm1, 1.0, %v2531_v19  ;;  %v583_v54 = vmul.f32 0.1, %v374_v52  ;;  %v990_v55 = vpop.f32.mrf.mxu1  ;;  %v678_v56 = vsel %vm550_vm15, %v467_v47, %v614_v51  ;;  %vm519_vm2 = vcmp.gt.f32.partialorder %v374_v52, 0.0 }
 0x142   :  { %1391 = vst.msk [vmem:[%s4231_s6 + $0x128] sm:$0xff] %vm1353_vm4, %v2169_v53  ;;  %v991_v57 = vadd.f32 %v3044_v10, %v990_v55  ;;  %2122 = vmatmul.msk.f32.gmra.mxu3 %vm94_vm0, %v678_v56  ;;  %v2262_v58 = vpack.i.bf16 %v2169_v53, %v2168_v37 }
 0x143   :  { %742 = vst.msk [vmem:[%s4230_s5 + $0x1b0] sm:$0xff] %vm94_vm0, %v678_v56  ;;  %v647_v59 = vsel %vm519_vm2, %v374_v52, %v583_v54 }
 0x144   :  { %vm1168_vm3 = vcmp.gt.f32.partialorder %v991_v57, 0.0  ;;  %v469_v60 = vpop.f32.mrf.mxu2  ;;  %711 = vst.msk [vmem:[%s4230_s5 + $0xb8] sm:$0xff] %vm94_vm0, %v647_v59  ;;  %2091 = vmatmul.msk.f32.gmra.mxu1 %vm94_vm0, %v647_v59  ;;  %2253 = vrot.lane.b32.xlu1 %v2247_v43, %s2533_s12 }
 0x145   :  { %v2139_v61 = vsel %vm1168_vm3, 1.0, %v2531_v19  ;;  %v470_v62 = vadd.f32 %v2724_v40, %v469_v60  ;;  %2263 = vrot.lane.b32.xlu2 %v2262_v58, %s2533_s12  ;;  %2258 = vrot.lane.b32.xlu0 %v2262_v58, %s2532_s11  ;;  %v1083_v63 = vpop.f32.mrf.mxu3 }
 0x146   :  { %1361 = vst.msk [vmem:[%s4231_s6 + $0x38] sm:$0xff] %vm1353_vm4, %v2139_v61  ;;  %v1084_v0 = vadd.f32 %v3044_v10, %v1083_v63  ;;  %v376_v1 = vpop.f32.mrf.mxu0  ;;  %v2267_v9 = vpack.i.bf16 %v2139_v61, %v2138_v46 }
 0x147   :  { %v615_v2 = vmul.f32 0.1, %v470_v62  ;;  %v377_v3 = vadd.f32 %v2724_v40, %v376_v1  ;;  %vm551_vm5 = vcmp.gt.f32.partialorder %v470_v62, 0.0 }
 0x148   :  { %vm1199_vm6 = vcmp.gt.f32.partialorder %v1084_v0, 0.0 }
 0x149   :  { %v2170_v4 = vsel %vm1199_vm6, 1.0, %v2531_v19  ;;  %vm520_vm7 = vcmp.gt.f32.partialorder %v377_v3, 0.0  ;;  %v584_v5 = vmul.f32 0.1, %v377_v3  ;;  %v993_v6 = vpop.f32.mrf.mxu1  ;;  %v679_v7 = vsel %vm551_vm5, %v470_v62, %v615_v2 }
 0x14a   :  { %1392 = vst.msk [vmem:[%s4231_s6 + $0x130] sm:$0xff] %vm1353_vm4, %v2170_v4  ;;  %v994_v8 = vadd.f32 %v3044_v10, %v993_v6  ;;  %2123 = vmatmul.msk.f32.gmra.mxu3 %vm94_vm0, %v679_v7 }
 0x14b   :  { %743 = vst.msk [vmem:[%s4230_s5 + $0x1b8] sm:$0xff] %vm94_vm0, %v679_v7  ;;  %v648_v40 = vsel %vm520_vm7, %v377_v3, %v584_v5 }
 0x14c   :  { %vm1169_vm8 = vcmp.gt.f32.partialorder %v994_v8, 0.0  ;;  %v472_v11 = vpop.f32.mrf.mxu2  ;;  %712 = vst.msk [vmem:[%s4230_s5 + $0xc0] sm:$0xff] %vm94_vm0, %v648_v40  ;;  %2092 = vmatmul.msk.f32.gmra.mxu1 %vm94_vm0, %v648_v40  ;;  %2268 = vrot.lane.b32.xlu1 %v2267_v9, %s2532_s11 }
 0x14d   :  { %v2140_v12 = vsel %vm1169_vm8, 1.0, %v2531_v19  ;;  %v473_v14 = vadd.f32 %v3261_v13, %v472_v11  ;;  %2273 = vrot.lane.b32.xlu2 %v2267_v9, %s2533_s12  ;;  %v1086_v15 = vpop.f32.mrf.mxu3 }
 0x14e   :  { %1362 = vst.msk [vmem:[%s4231_s6 + $0x40] sm:$0xff] %vm1353_vm4, %v2140_v12  ;;  %v1087_v16 = vadd.f32 %v3044_v10, %v1086_v15  ;;  %v379_v17 = vpop.f32.mrf.mxu0 }
 0x14f   :  { %vm552_vm9 = vcmp.gt.f32.partialorder %v473_v14, 0.0  ;;  %v616_v18 = vmul.f32 0.1, %v473_v14  ;;  %v380_v20 = vadd.f32 %v3261_v13, %v379_v17 }
 0x150   :  { %vm1200_vm10 = vcmp.gt.f32.partialorder %v1087_v16, 0.0 }
 0x151   :  { %v2171_v21 = vsel %vm1200_vm10, 1.0, %v2531_v19  ;;  %vm521_vm11 = vcmp.gt.f32.partialorder %v380_v20, 0.0  ;;  %v585_v22 = vmul.f32 0.1, %v380_v20  ;;  %v996_v23 = vpop.f32.mrf.mxu1  ;;  %v680_v24 = vsel %vm552_vm9, %v473_v14, %v616_v18 }
 0x152   :  { %1393 = vst.msk [vmem:[%s4231_s6 + $0x138] sm:$0xff] %vm1353_vm4, %v2171_v21  ;;  %v997_v25 = vadd.f32 %v3044_v10, %v996_v23  ;;  %2124 = vmatmul.msk.f32.gmra.mxu3 %vm94_vm0, %v680_v24  ;;  %v2277_v26 = vpack.i.bf16 %v2171_v21, %v2170_v4 }
 0x153   :  { %744 = vst.msk [vmem:[%s4230_s5 + $0x1c0] sm:$0xff] %vm94_vm0, %v680_v24  ;;  %v649_v27 = vsel %vm521_vm11, %v380_v20, %v585_v22 }
 0x154   :  { %vm1170_vm12 = vcmp.gt.f32.partialorder %v997_v25, 0.0  ;;  %v475_v28 = vpop.f32.mrf.mxu2  ;;  %713 = vst.msk [vmem:[%s4230_s5 + $0xc8] sm:$0xff] %vm94_vm0, %v649_v27  ;;  %2093 = vmatmul.msk.f32.gmra.mxu1 %vm94_vm0, %v649_v27  ;;  %2278 = vrot.lane.b32.xlu1 %v2277_v26, %s2532_s11 }
 0x155   :  { %v2141_v29 = vsel %vm1170_vm12, 1.0, %v2531_v19  ;;  %v476_v30 = vadd.f32 %v3261_v13, %v475_v28  ;;  %2283 = vrot.lane.b32.xlu0 %v2277_v26, %s2533_s12  ;;  %v1089_v31 = vpop.f32.mrf.mxu3 }
 0x156   :  { %1363 = vst.msk [vmem:[%s4231_s6 + $0x48] sm:$0xff] %vm1353_vm4, %v2141_v29  ;;  %v1090_v32 = vadd.f32 %v3044_v10, %v1089_v31  ;;  %v382_v33 = vpop.f32.mrf.mxu0  ;;  %v2287_v34 = vpack.i.bf16 %v2141_v29, %v2140_v12 }
 0x157   :  { %vm553_vm13 = vcmp.gt.f32.partialorder %v476_v30, 0.0  ;;  %v617_v35 = vmul.f32 0.1, %v476_v30  ;;  %v383_v36 = vadd.f32 %v3261_v13, %v382_v33 }
 0x158   :  { %vm1201_vm14 = vcmp.gt.f32.partialorder %v1090_v32, 0.0  ;;  %2288 = vrot.lane.b32.xlu2 %v2287_v34, %s2532_s11 }
 0x159   :  { %v2172_v37 = vsel %vm1201_vm14, 1.0, %v2531_v19  ;;  %vm522_vm15 = vcmp.gt.f32.partialorder %v383_v36, 0.0  ;;  %v586_v38 = vmul.f32 0.1, %v383_v36  ;;  %v999_v39 = vpop.f32.mrf.mxu1  ;;  %v681_v41 = vsel %vm553_vm13, %v476_v30, %v617_v35 }
 0x15a   :  { %1394 = vst.msk [vmem:[%s4231_s6 + $0x140] sm:$0xff] %vm1353_vm4, %v2172_v37  ;;  %v1000_v42 = vadd.f32 %v3044_v10, %v999_v39  ;;  %2125 = vmatmul.msk.f32.gmra.mxu3 %vm94_vm0, %v681_v41 }
 0x15b   :  { %745 = vst.msk [vmem:[%s4230_s5 + $0x1c8] sm:$0xff] %vm94_vm0, %v681_v41  ;;  %v650_v43 = vsel %vm522_vm15, %v383_v36, %v586_v38 }
 0x15c   :  { %vm1171_vm1 = vcmp.gt.f32.partialorder %v1000_v42, 0.0  ;;  %v478_v44 = vpop.f32.mrf.mxu2  ;;  %714 = vst.msk [vmem:[%s4230_s5 + $0xd0] sm:$0xff] %vm94_vm0, %v650_v43  ;;  %2094 = vmatmul.msk.f32.gmra.mxu1 %vm94_vm0, %v650_v43 }
 0x15d   :  { %v2142_v45 = vsel %vm1171_vm1, 1.0, %v2531_v19  ;;  %v479_v46 = vadd.f32 %v3261_v13, %v478_v44  ;;  %2293 = vrot.lane.b32.xlu0 %v2287_v34, %s2533_s12  ;;  %v1092_v47 = vpop.f32.mrf.mxu3 }
 0x15e   :  { %1364 = vst.msk [vmem:[%s4231_s6 + $0x50] sm:$0xff] %vm1353_vm4, %v2142_v45  ;;  %v1093_v48 = vadd.f32 %v3044_v10, %v1092_v47  ;;  %v385_v49 = vpop.f32.mrf.mxu0 }
 0x15f   :  { %vm554_vm2 = vcmp.gt.f32.partialorder %v479_v46, 0.0  ;;  %v618_v50 = vmul.f32 0.1, %v479_v46  ;;  %v386_v51 = vadd.f32 %v3261_v13, %v385_v49 }
 0x160   :  { %vm1202_vm3 = vcmp.gt.f32.partialorder %v1093_v48, 0.0 }
 0x161   :  { %v2173_v52 = vsel %vm1202_vm3, 1.0, %v2531_v19  ;;  %vm523_vm5 = vcmp.gt.f32.partialorder %v386_v51, 0.0  ;;  %v587_v53 = vmul.f32 0.1, %v386_v51  ;;  %v1002_v54 = vpop.f32.mrf.mxu1  ;;  %v682_v55 = vsel %vm554_vm2, %v479_v46, %v618_v50 }
 0x162   :  { %1395 = vst.msk [vmem:[%s4231_s6 + $0x148] sm:$0xff] %vm1353_vm4, %v2173_v52  ;;  %v1003_v56 = vadd.f32 %v3044_v10, %v1002_v54  ;;  %2126 = vmatmul.msk.f32.gmra.mxu3 %vm94_vm0, %v682_v55  ;;  %v2302_v57 = vpack.i.bf16 %v2173_v52, %v2172_v37 }
 0x163   :  { %746 = vst.msk [vmem:[%s4230_s5 + $0x1d0] sm:$0xff] %vm94_vm0, %v682_v55  ;;  %v651_v58 = vsel %vm523_vm5, %v386_v51, %v587_v53 }
 0x164   :  { %vm1172_vm6 = vcmp.gt.f32.partialorder %v1003_v56, 0.0  ;;  %v481_v59 = vpop.f32.mrf.mxu2  ;;  %715 = vst.msk [vmem:[%s4230_s5 + $0xd8] sm:$0xff] %vm94_vm0, %v651_v58  ;;  %2095 = vmatmul.msk.f32.gmra.mxu1 %vm94_vm0, %v651_v58  ;;  %2303 = vrot.lane.b32.xlu1 %v2302_v57, %s2533_s12 }
 0x165   :  { %v2143_v60 = vsel %vm1172_vm6, 1.0, %v2531_v19  ;;  %v482_v61 = vadd.f32 %v3261_v13, %v481_v59  ;;  %2298 = vrot.lane.b32.xlu2 %v2302_v57, %s2532_s11  ;;  %v1095_v62 = vpop.f32.mrf.mxu3 }
 0x166   :  { %1365 = vst.msk [vmem:[%s4231_s6 + $0x58] sm:$0xff] %vm1353_vm4, %v2143_v60  ;;  %v1096_v63 = vadd.f32 %v3044_v10, %v1095_v62  ;;  %v388_v0 = vpop.f32.mrf.mxu0  ;;  %v2312_v8 = vpack.i.bf16 %v2143_v60, %v2142_v45 }
 0x167   :  { %vm555_vm7 = vcmp.gt.f32.partialorder %v482_v61, 0.0  ;;  %v619_v1 = vmul.f32 0.1, %v482_v61  ;;  %v389_v2 = vadd.f32 %v3261_v13, %v388_v0 }
 0x168   :  { %vm1203_vm8 = vcmp.gt.f32.partialorder %v1096_v63, 0.0 }
 0x169   :  { %v2174_v3 = vsel %vm1203_vm8, 1.0, %v2531_v19  ;;  %vm524_vm9 = vcmp.gt.f32.partialorder %v389_v2, 0.0  ;;  %v588_v4 = vmul.f32 0.1, %v389_v2  ;;  %v1005_v5 = vpop.f32.mrf.mxu1  ;;  %v683_v6 = vsel %vm555_vm7, %v482_v61, %v619_v1 }
 0x16a   :  { %1396 = vst.msk [vmem:[%s4231_s6 + $0x150] sm:$0xff] %vm1353_vm4, %v2174_v3  ;;  %v1006_v7 = vadd.f32 %v3044_v10, %v1005_v5  ;;  %2127 = vmatmul.msk.f32.gmra.mxu3 %vm94_vm0, %v683_v6 }
 0x16b   :  { %747 = vst.msk [vmem:[%s4230_s5 + $0x1d8] sm:$0xff] %vm94_vm0, %v683_v6  ;;  %v652_v9 = vsel %vm524_vm9, %v389_v2, %v588_v4 }
 0x16c   :  { %vm1173_vm10 = vcmp.gt.f32.partialorder %v1006_v7, 0.0  ;;  %v484_v40 = vpop.f32.mrf.mxu2  ;;  %716 = vst.msk [vmem:[%s4230_s5 + $0xe0] sm:$0xff] %vm94_vm0, %v652_v9  ;;  %2096 = vmatmul.msk.f32.gmra.mxu1 %vm94_vm0, %v652_v9  ;;  %2313 = vrot.lane.b32.xlu1 %v2312_v8, %s2533_s12 }
 0x16d   :  { %v2144_v11 = vsel %vm1173_vm10, 1.0, %v2531_v19  ;;  %v485_v12 = vadd.f32 %v3261_v13, %v484_v40  ;;  %2308 = vrot.lane.b32.xlu2 %v2312_v8, %s2532_s11  ;;  %v1098_v14 = vpop.f32.mrf.mxu3 }
 0x16e   :  { %1366 = vst.msk [vmem:[%s4231_s6 + $0x60] sm:$0xff] %vm1353_vm4, %v2144_v11  ;;  %v1099_v15 = vadd.f32 %v3044_v10, %v1098_v14  ;;  %v391_v16 = vpop.f32.mrf.mxu0 }
 0x16f   :  { %vm556_vm11 = vcmp.gt.f32.partialorder %v485_v12, 0.0  ;;  %v620_v17 = vmul.f32 0.1, %v485_v12  ;;  %v392_v18 = vadd.f32 %v3261_v13, %v391_v16 }
 0x170   :  { %vm1204_vm12 = vcmp.gt.f32.partialorder %v1099_v15, 0.0 }
 0x171   :  { %v2175_v20 = vsel %vm1204_vm12, 1.0, %v2531_v19  ;;  %vm525_vm13 = vcmp.gt.f32.partialorder %v392_v18, 0.0  ;;  %v589_v21 = vmul.f32 0.1, %v392_v18  ;;  %v1008_v22 = vpop.f32.mrf.mxu1  ;;  %v684_v23 = vsel %vm556_vm11, %v485_v12, %v620_v17 }
 0x172   :  { %1397 = vst.msk [vmem:[%s4231_s6 + $0x158] sm:$0xff] %vm1353_vm4, %v2175_v20  ;;  %v1009_v24 = vadd.f32 %v3044_v10, %v1008_v22  ;;  %2128 = vmatmul.msk.f32.gmra.mxu3 %vm94_vm0, %v684_v23  ;;  %v2322_v25 = vpack.i.bf16 %v2175_v20, %v2174_v3  ;;  %v2214_v63 = vpop.permute.xlu2 %2213  ;;  %vm1674_vm11 = vcmask 15368  }
 0x173   :  { %748 = vst.msk [vmem:[%s4230_s5 + $0x1e0] sm:$0xff] %vm94_vm0, %v684_v23  ;;  %v653_v26 = vsel %vm525_vm13, %v392_v18, %v589_v21  ;;  %vm1931_vm13 = vcmask 23568   ;;  %v2216_v8 = vunpack.i.h.bf16 %v2214_v63  ;;  %v2215_v12 = vunpack.i.l.bf16 %v2214_v63 }
 0x174   :  { %vm1174_vm14 = vcmp.gt.f32.partialorder %v1009_v24, 0.0  ;;  %v487_v27 = vpop.f32.mrf.mxu2  ;;  %717 = vst.msk [vmem:[%s4230_s5 + $0xe8] sm:$0xff] %vm94_vm0, %v653_v26  ;;  %2097 = vmatmul.msk.f32.gmra.mxu1 %vm94_vm0, %v653_v26  ;;  %2318 = vrot.lane.b32.xlu0 %v2322_v25, %s2532_s11 }
 0x175   :  { %v2145_v28 = vsel %vm1174_vm14, 1.0, %v2531_v19  ;;  %v488_v29 = vadd.f32 %v3261_v13, %v487_v27  ;;  %2323 = vrot.lane.b32.xlu2 %v2322_v25, %s2533_s12  ;;  %v1101_v30 = vpop.f32.mrf.mxu3 }
 0x176   :  { %1367 = vst.msk [vmem:[%s4231_s6 + $0x68] sm:$0xff] %vm1353_vm4, %v2145_v28  ;;  %v1102_v31 = vadd.f32 %v3044_v10, %v1101_v30  ;;  %v394_v32 = vpop.f32.mrf.mxu0  ;;  %v2327_v41 = vpack.i.bf16 %v2145_v28, %v2144_v11 }
 0x177   :  { %vm557_vm15 = vcmp.gt.f32.partialorder %v488_v29, 0.0  ;;  %v621_v33 = vmul.f32 0.1, %v488_v29  ;;  %v395_v34 = vadd.f32 %v3261_v13, %v394_v32 }
 0x178   :  { %vm1205_vm1 = vcmp.gt.f32.partialorder %v1102_v31, 0.0 }
 0x179   :  { %v2176_v35 = vsel %vm1205_vm1, 1.0, %v2531_v19  ;;  %vm526_vm2 = vcmp.gt.f32.partialorder %v395_v34, 0.0  ;;  %v590_v36 = vmul.f32 0.1, %v395_v34  ;;  %v1011_v37 = vpop.f32.mrf.mxu1  ;;  %v685_v38 = vsel %vm557_vm15, %v488_v29, %v621_v33 }
 0x17a   :  { %1398 = vst.msk [vmem:[%s4231_s6 + $0x160] sm:$0xff] %vm1353_vm4, %v2176_v35  ;;  %v1012_v39 = vadd.f32 %v3044_v10, %v1011_v37  ;;  %2129 = vmatmul.msk.f32.gmra.mxu3 %vm94_vm0, %v685_v38 }
 0x17b   :  { %749 = vst.msk [vmem:[%s4230_s5 + $0x1e8] sm:$0xff] %vm94_vm0, %v685_v38  ;;  %v654_v42 = vsel %vm526_vm2, %v395_v34, %v590_v36 }
 0x17c   :  { %vm1175_vm3 = vcmp.gt.f32.partialorder %v1012_v39, 0.0  ;;  %v490_v43 = vpop.f32.mrf.mxu2  ;;  %718 = vst.msk [vmem:[%s4230_s5 + $0xf0] sm:$0xff] %vm94_vm0, %v654_v42  ;;  %2098 = vmatmul.msk.f32.gmra.mxu1 %vm94_vm0, %v654_v42  ;;  %2328 = vrot.lane.b32.xlu0 %v2327_v41, %s2532_s11 }
 0x17d   :  { %v2146_v44 = vsel %vm1175_vm3, 1.0, %v2531_v19  ;;  %v491_v45 = vadd.f32 %v3261_v13, %v490_v43  ;;  %2333 = vrot.lane.b32.xlu2 %v2327_v41, %s2533_s12  ;;  %v1104_v46 = vpop.f32.mrf.mxu3 }
 0x17e   :  { %1368 = vst.msk [vmem:[%s4231_s6 + $0x70] sm:$0xff] %vm1353_vm4, %v2146_v44  ;;  %v1105_v47 = vadd.f32 %v3044_v10, %v1104_v46  ;;  %v397_v48 = vpop.f32.mrf.mxu0 }
 0x17f   :  { %vm558_vm5 = vcmp.gt.f32.partialorder %v491_v45, 0.0  ;;  %v622_v49 = vmul.f32 0.1, %v491_v45  ;;  %v398_v50 = vadd.f32 %v3261_v13, %v397_v48 }
 0x180   :  { %vm1206_vm6 = vcmp.gt.f32.partialorder %v1105_v47, 0.0 }
 0x181   :  { %v2177_v51 = vsel %vm1206_vm6, 1.0, %v2531_v19  ;;  %vm527_vm7 = vcmp.gt.f32.partialorder %v398_v50, 0.0  ;;  %v591_v52 = vmul.f32 0.1, %v398_v50  ;;  %v1014_v53 = vpop.f32.mrf.mxu1  ;;  %v686_v54 = vsel %vm558_vm5, %v491_v45, %v622_v49  ;;  %v3549_v45 = vld [vmem:[%s4229_s4] ss:$0 sm:$0xff] }
 0x182   :  { %1399 = vst.msk [vmem:[%s4231_s6 + $0x168] sm:$0xff] %vm1353_vm4, %v2177_v51  ;;  %v1015_v55 = vadd.f32 %v3044_v10, %v1014_v53  ;;  %2130 = vmatmul.msk.f32.gmra.mxu3 %vm94_vm0, %v686_v54  ;;  %v2337_v56 = vpack.i.bf16 %v2177_v51, %v2176_v35 }
 0x183   :  { %750 = vst.msk [vmem:[%s4230_s5 + $0x1f0] sm:$0xff] %vm94_vm0, %v686_v54  ;;  %v655_v57 = vsel %vm527_vm7, %v398_v50, %v591_v52 }
 0x184   :  { %vm1176_vm8 = vcmp.gt.f32.partialorder %v1015_v55, 0.0  ;;  %v493_v58 = vpop.f32.mrf.mxu2  ;;  %719 = vst.msk [vmem:[%s4230_s5 + $0xf8] sm:$0xff] %vm94_vm0, %v655_v57  ;;  %2099 = vmatmul.msk.f32.gmra.mxu1 %vm94_vm0, %v655_v57  ;;  %2338 = vrot.lane.b32.xlu1 %v2337_v56, %s2532_s11 }
 0x185   :  { %v2147_v59 = vsel %vm1176_vm8, 1.0, %v2531_v19  ;;  %v494_v60 = vadd.f32 %v3261_v13, %v493_v58  ;;  %2343 = vrot.lane.b32.xlu0 %v2337_v56, %s2533_s12  ;;  %v1107_v61 = vpop.f32.mrf.mxu3 }
 0x186   :  { %1369 = vst.msk [vmem:[%s4231_s6 + $0x78] sm:$0xff] %vm1353_vm4, %v2147_v59  ;;  %v1108_v62 = vadd.f32 %v3044_v10, %v1107_v61  ;;  %v2347_v5 = vpack.i.bf16 %v2147_v59, %v2146_v44 }
 0x187   :  { %vm559_vm9 = vcmp.gt.f32.partialorder %v494_v60, 0.0  ;;  %v623_v0 = vmul.f32 0.1, %v494_v60 }
 0x188   :  { %vm1207_vm10 = vcmp.gt.f32.partialorder %v1108_v62, 0.0 }
 0x189   :  { %v2178_v1 = vsel %vm1207_vm10, 1.0, %v2531_v19  ;;  %v1017_v2 = vpop.f32.mrf.mxu1  ;;  %v687_v3 = vsel %vm559_vm9, %v494_v60, %v623_v0 }
 0x18a   :  { %1400 = vst.msk [vmem:[%s4231_s6 + $0x170] sm:$0xff] %vm1353_vm4, %v2178_v1  ;;  %v1018_v13 = vadd.f32 %v3044_v10, %v1017_v2  ;;  %2131 = vmatmul.msk.f32.gmra.mxu3 %vm94_vm0, %v687_v3  ;;  %v2209_v4 = vpop.permute.xlu0 %2208 }
 0x18b   :  { %751 = vst.msk [vmem:[%s4230_s5 + $0x1f8] sm:$0xff] %vm94_vm0, %v687_v3  ;;  %v2211_v6 = vunpack.i.h.bf16 %v2209_v4  ;;  %v2210_v7 = vunpack.i.l.bf16 %v2209_v4 }
 0x18c   :  { %vm1177_vm12 = vcmp.gt.f32.partialorder %v1018_v13, 0.0  ;;  %2348 = vrot.lane.b32.xlu1 %v2347_v5, %s2532_s11 }
 0x18d   :  { %v2148_v9 = vsel %vm1177_vm12, 1.0, %v2531_v19  ;;  %1676 = vst.msk [vmem:[%s4231_s6 + $0x8] sm:$0xff] %vm1674_vm11, %v2211_v6  ;;  %2353 = vrot.lane.b32.xlu0 %v2347_v5, %s2533_s12  ;;  %v1110_v40 = vpop.f32.mrf.mxu3 }
 0x18e   :  { %1370 = vst.msk [vmem:[%s4231_s6 + $0x80] sm:$0xff] %vm1353_vm4, %v2148_v9  ;;  %v1111_v11 = vadd.f32 %v3044_v10, %v1110_v40 }
 0x18f   :  { %1933 = vst.msk [vmem:[%s4231_s6 + $0x8] sm:$0xff] %vm1931_vm13, %v2216_v8  ;;  %v2239_v14 = vpop.permute.xlu2 %2238 }
 0x190   :  { %1675 = vst.msk [vmem:[%s4231_s6] sm:$0xff] %vm1674_vm11, %v2210_v7  ;;  %vm1208_vm0 = vcmp.gt.f32.partialorder %v1111_v11, 0.0  ;;  %v2241_v15 = vunpack.i.h.bf16 %v2239_v14  ;;  %v2240_v16 = vunpack.i.l.bf16 %v2239_v14 }
 0x191   :  { %1932 = vst.msk [vmem:[%s4231_s6] sm:$0xff] %vm1931_vm13, %v2215_v12  ;;  %v2179_v17 = vsel %vm1208_vm0, 1.0, %v2531_v19  ;;  %v1020_v18 = vpop.f32.mrf.mxu1 }
 0x192   :  { %1401 = vst.msk [vmem:[%s4231_s6 + $0x178] sm:$0xff] %vm1353_vm4, %v2179_v17  ;;  %v1021_v20 = vadd.f32 %v3044_v10, %v1020_v18  ;;  %v2362_v21 = vpack.i.bf16 %v2179_v17, %v2178_v1 }
 0x193   :  { %1710 = vst.msk [vmem:[%s4231_s6 + $0x118] sm:$0xff] %vm1674_vm11, %v2241_v15 }
 0x194   :  { %1709 = vst.msk [vmem:[%s4231_s6 + $0x110] sm:$0xff] %vm1674_vm11, %v2240_v16  ;;  %vm1178_vm14 = vcmp.gt.f32.partialorder %v1021_v20, 0.0  ;;  %2363 = vrot.lane.b32.xlu1 %v2362_v21, %s2533_s12  ;;  %2358 = vrot.lane.b32.xlu2 %v2362_v21, %s2532_s11 }
 0x195   :  { %v2149_v22 = vsel %vm1178_vm14, 1.0, %v2531_v19  ;;  %v1113_v23 = vpop.f32.mrf.mxu3 }
 0x196   :  { %1371 = vst.msk [vmem:[%s4231_s6 + $0x88] sm:$0xff] %vm1353_vm4, %v2149_v22  ;;  %v1114_v24 = vadd.f32 %v3044_v10, %v1113_v23  ;;  %v2219_v25 = vpop.permute.xlu1 %2218  ;;  %v2372_v34 = vpack.i.bf16 %v2149_v22, %v2148_v9 }
 0x197   :  { %v2221_v26 = vunpack.i.h.bf16 %v2219_v25  ;;  %v2220_v27 = vunpack.i.l.bf16 %v2219_v25  ;;  %v2224_v28 = vpop.permute.xlu0 %2223 }
 0x198   :  { %vm1209_vm15 = vcmp.gt.f32.partialorder %v1114_v24, 0.0  ;;  %v2226_v29 = vunpack.i.h.bf16 %v2224_v28  ;;  %v2225_v31 = vunpack.i.l.bf16 %v2224_v28 }
 0x199   :  { %v2180_v30 = vsel %vm1209_vm15, 1.0, %v2531_v19  ;;  %1708 = vst.msk [vmem:[%s4231_s6 + $0x108] sm:$0xff] %vm1674_vm11, %v2221_v26  ;;  %v1023_v32 = vpop.f32.mrf.mxu1 }
 0x19a   :  { %1402 = vst.msk [vmem:[%s4231_s6 + $0x180] sm:$0xff] %vm1353_vm4, %v2180_v30  ;;  %v1024_v33 = vadd.f32 %v3044_v10, %v1023_v32 }
 0x19b   :  { %1707 = vst.msk [vmem:[%s4231_s6 + $0x100] sm:$0xff] %vm1674_vm11, %v2220_v27 }
 0x19c   :  { %1965 = vst.msk [vmem:[%s4231_s6 + $0x108] sm:$0xff] %vm1931_vm13, %v2226_v29  ;;  %vm1179_vm1 = vcmp.gt.f32.partialorder %v1024_v33, 0.0  ;;  %2373 = vrot.lane.b32.xlu1 %v2372_v34, %s2533_s12  ;;  %2368 = vrot.lane.b32.xlu2 %v2372_v34, %s2532_s11 }
 0x19d   :  { %1964 = vst.msk [vmem:[%s4231_s6 + $0x100] sm:$0xff] %vm1931_vm13, %v2225_v31  ;;  %v2150_v35 = vsel %vm1179_vm1, 1.0, %v2531_v19  ;;  %v1116_v36 = vpop.f32.mrf.mxu3 }
 0x19e   :  { %1372 = vst.msk [vmem:[%s4231_s6 + $0x90] sm:$0xff] %vm1353_vm4, %v2150_v35  ;;  %v1117_v37 = vadd.f32 %v3044_v10, %v1116_v36 }
 0x19f   :  { %v2229_v38 = vpop.permute.xlu0 %2228  ;;  %v3539_v39 = vpop.permute.xlu2 %2263 }
 0x1a0   :  { %vm1210_vm2 = vcmp.gt.f32.partialorder %v1117_v37, 0.0  ;;  %v2231_v41 = vunpack.i.h.bf16 %v2229_v38  ;;  %v2230_v43 = vunpack.i.l.bf16 %v2229_v38  ;;  %v2266_v24 = vunpack.i.h.bf16 %v3539_v39 }
 0x1a1   :  { %v2181_v42 = vsel %vm1210_vm2, 1.0, %v2531_v19  ;;  %v1026_v44 = vpop.f32.mrf.mxu1  ;;  %v2265_v25 = vunpack.i.l.bf16 %v3539_v39 }
 0x1a2   :  { %1403 = vst.msk [vmem:[%s4231_s6 + $0x188] sm:$0xff] %vm1353_vm4, %v2181_v42  ;;  %v1027_v10 = vadd.f32 %v3549_v45, %v1026_v44  ;;  %v2382_v46 = vpack.i.bf16 %v2181_v42, %v2180_v30 }
 0x1a3   :  { %1678 = vst.msk [vmem:[%s4231_s6 + $0x18] sm:$0xff] %vm1674_vm11, %v2231_v41 }
 0x1a4   :  { %1677 = vst.msk [vmem:[%s4231_s6 + $0x10] sm:$0xff] %vm1674_vm11, %v2230_v43  ;;  %vm1180_vm3 = vcmp.gt.f32.partialorder %v1027_v10, 0.0  ;;  %2383 = vrot.lane.b32.xlu2 %v2382_v46, %s2533_s12  ;;  %2378 = vrot.lane.b32.xlu0 %v2382_v46, %s2532_s11 }
 0x1a5   :  { %v2151_v47 = vsel %vm1180_vm3, 1.0, %v2531_v19  ;;  %v1119_v48 = vpop.f32.mrf.mxu3 }
 0x1a6   :  { %1373 = vst.msk [vmem:[%s4231_s6 + $0x98] sm:$0xff] %vm1353_vm4, %v2151_v47  ;;  %v1120_v49 = vadd.f32 %v3549_v45, %v1119_v48  ;;  %v2244_v50 = vpop.permute.xlu1 %2243  ;;  %v2392_v60 = vpack.i.bf16 %v2151_v47, %v2150_v35 }
 0x1a7   :  { %v2246_v51 = vunpack.i.h.bf16 %v2244_v50  ;;  %v2245_v52 = vunpack.i.l.bf16 %v2244_v50  ;;  %v2234_v53 = vpop.permute.xlu0 %2233  ;;  %v3577_v58 = vpop.permute.xlu2 %2273 }
 0x1a8   :  { %vm1211_vm5 = vcmp.gt.f32.partialorder %v1120_v49, 0.0  ;;  %v2236_v55 = vunpack.i.h.bf16 %v2234_v53  ;;  %v2235_v56 = vunpack.i.l.bf16 %v2234_v53  ;;  %v2275_v33 = vunpack.i.l.bf16 %v3577_v58 }
 0x1a9   :  { %v2182_v54 = vsel %vm1211_vm5, 1.0, %v2531_v19  ;;  %1966 = vst.msk [vmem:[%s4231_s6 + $0x110] sm:$0xff] %vm1931_vm13, %v2245_v52  ;;  %v1029_v57 = vpop.f32.mrf.mxu1  ;;  %v2276_v39 = vunpack.i.h.bf16 %v3577_v58 }
 0x1aa   :  { %1404 = vst.msk [vmem:[%s4231_s6 + $0x190] sm:$0xff] %vm1353_vm4, %v2182_v54  ;;  %v1030_v59 = vadd.f32 %v3549_v45, %v1029_v57 }
 0x1ab   :  { %1967 = vst.msk [vmem:[%s4231_s6 + $0x118] sm:$0xff] %vm1931_vm13, %v2246_v51 }
 0x1ac   :  { %1934 = vst.msk [vmem:[%s4231_s6 + $0x10] sm:$0xff] %vm1931_vm13, %v2235_v56  ;;  %vm1181_vm6 = vcmp.gt.f32.partialorder %v1030_v59, 0.0  ;;  %2393 = vrot.lane.b32.xlu2 %v2392_v60, %s2533_s12  ;;  %2388 = vrot.lane.b32.xlu0 %v2392_v60, %s2532_s11 }
 0x1ad   :  { %1935 = vst.msk [vmem:[%s4231_s6 + $0x18] sm:$0xff] %vm1931_vm13, %v2236_v55  ;;  %v2152_v61 = vsel %vm1181_vm6, 1.0, %v2531_v19  ;;  %v1122_v62 = vpop.f32.mrf.mxu3 }
 0x1ae   :  { %1374 = vst.msk [vmem:[%s4231_s6 + $0xa0] sm:$0xff] %vm1353_vm4, %v2152_v61  ;;  %v1123_v63 = vadd.f32 %v3549_v45, %v1122_v62  ;;  %v2249_v0 = vpop.permute.xlu1 %2248 }
 0x1af   :  { %v2251_v1 = vunpack.i.h.bf16 %v2249_v0  ;;  %v2250_v2 = vunpack.i.l.bf16 %v2249_v0 }
 0x1b0   :  { %vm1212_vm7 = vcmp.gt.f32.partialorder %v1123_v63, 0.0 }
 0x1b1   :  { %v2183_v3 = vsel %vm1212_vm7, 1.0, %v2531_v19  ;;  %1680 = vst.msk [vmem:[%s4231_s6 + $0x28] sm:$0xff] %vm1674_vm11, %v2251_v1  ;;  %v1032_v13 = vpop.f32.mrf.mxu1 }
 0x1b2   :  { %1405 = vst.msk [vmem:[%s4231_s6 + $0x198] sm:$0xff] %vm1353_vm4, %v2183_v3  ;;  %v1033_v4 = vadd.f32 %v3549_v45, %v1032_v13  ;;  %v2397_v5 = vpack.i.bf16 %v2183_v3, %v2182_v54  ;;  %v2289_v6 = vpop.permute.xlu2 %2288 }
 0x1b3   :  { %1679 = vst.msk [vmem:[%s4231_s6 + $0x20] sm:$0xff] %vm1674_vm11, %v2250_v2  ;;  %v2291_v7 = vunpack.i.h.bf16 %v2289_v6  ;;  %v2290_v8 = vunpack.i.l.bf16 %v2289_v6 }
 0x1b4   :  { %vm1182_vm8 = vcmp.gt.f32.partialorder %v1033_v4, 0.0  ;;  %2398 = vrot.lane.b32.xlu1 %v2397_v5, %s2532_s11  ;;  %2403 = vrot.lane.b32.xlu0 %v2397_v5, %s2533_s12 }
 0x1b5   :  { %v2153_v9 = vsel %vm1182_vm8, 1.0, %v2531_v19  ;;  %1684 = vst.msk [vmem:[%s4231_s6 + $0x48] sm:$0xff] %vm1674_vm11, %v2291_v7  ;;  %v1125_v40 = vpop.f32.mrf.mxu3 }
 0x1b6   :  { %1375 = vst.msk [vmem:[%s4231_s6 + $0xa8] sm:$0xff] %vm1353_vm4, %v2153_v9  ;;  %v1126_v11 = vadd.f32 %v3549_v45, %v1125_v40  ;;  %v2254_v12 = vpop.permute.xlu1 %2253  ;;  %v2407_v23 = vpack.i.bf16 %v2153_v9, %v2152_v61 }
 0x1b7   :  { %1683 = vst.msk [vmem:[%s4231_s6 + $0x40] sm:$0xff] %vm1674_vm11, %v2290_v8  ;;  %v2256_v14 = vunpack.i.h.bf16 %v2254_v12  ;;  %v2255_v15 = vunpack.i.l.bf16 %v2254_v12  ;;  %v2259_v16 = vpop.permute.xlu0 %2258 }
 0x1b8   :  { %vm1213_vm9 = vcmp.gt.f32.partialorder %v1126_v11, 0.0  ;;  %v2261_v17 = vunpack.i.h.bf16 %v2259_v16  ;;  %v2260_v21 = vunpack.i.l.bf16 %v2259_v16 }
 0x1b9   :  { %v2184_v18 = vsel %vm1213_vm9, 1.0, %v2531_v19  ;;  %1936 = vst.msk [vmem:[%s4231_s6 + $0x20] sm:$0xff] %vm1931_vm13, %v2255_v15  ;;  %v1035_v20 = vpop.f32.mrf.mxu1 }
 0x1ba   :  { %1406 = vst.msk [vmem:[%s4231_s6 + $0x1a0] sm:$0xff] %vm1353_vm4, %v2184_v18  ;;  %v1036_v22 = vadd.f32 %v3549_v45, %v1035_v20 }
 0x1bb   :  { %1937 = vst.msk [vmem:[%s4231_s6 + $0x28] sm:$0xff] %vm1931_vm13, %v2256_v14 }
 0x1bc   :  { %1712 = vst.msk [vmem:[%s4231_s6 + $0x128] sm:$0xff] %vm1674_vm11, %v2261_v17  ;;  %vm1183_vm10 = vcmp.gt.f32.partialorder %v1036_v22, 0.0  ;;  %2408 = vrot.lane.b32.xlu1 %v2407_v23, %s2532_s11  ;;  %2413 = vrot.lane.b32.xlu0 %v2407_v23, %s2533_s12 }
 0x1bd   :  { %1969 = vst.msk [vmem:[%s4231_s6 + $0x128] sm:$0xff] %vm1931_vm13, %v2266_v24  ;;  %v2154_v26 = vsel %vm1183_vm10, 1.0, %v2531_v19  ;;  %v1128_v27 = vpop.f32.mrf.mxu3 }
 0x1be   :  { %1711 = vst.msk [vmem:[%s4231_s6 + $0x120] sm:$0xff] %vm1674_vm11, %v2260_v21  ;;  %v1129_v28 = vadd.f32 %v3549_v45, %v1128_v27  ;;  %v2269_v29 = vpop.permute.xlu1 %2268 }
 0x1bf   :  { %1968 = vst.msk [vmem:[%s4231_s6 + $0x120] sm:$0xff] %vm1931_vm13, %v2265_v25  ;;  %v2271_v30 = vunpack.i.h.bf16 %v2269_v29  ;;  %v2270_v31 = vunpack.i.l.bf16 %v2269_v29  ;;  %v2299_v32 = vpop.permute.xlu2 %2298 }
 0x1c0   :  { %1376 = vst.msk [vmem:[%s4231_s6 + $0xb0] sm:$0xff] %vm1353_vm4, %v2154_v26  ;;  %vm1214_vm12 = vcmp.gt.f32.partialorder %v1129_v28, 0.0  ;;  %v2301_v36 = vunpack.i.h.bf16 %v2299_v32  ;;  %v2300_v41 = vunpack.i.l.bf16 %v2299_v32 }
 0x1c1   :  { %v2185_v34 = vsel %vm1214_vm12, 1.0, %v2531_v19  ;;  %1682 = vst.msk [vmem:[%s4231_s6 + $0x38] sm:$0xff] %vm1674_vm11, %v2271_v30  ;;  %v1038_v35 = vpop.f32.mrf.mxu1 }
 0x1c2   :  { %1407 = vst.msk [vmem:[%s4231_s6 + $0x1a8] sm:$0xff] %vm1353_vm4, %v2185_v34  ;;  %v1039_v37 = vadd.f32 %v3549_v45, %v1038_v35  ;;  %v2422_v38 = vpack.i.bf16 %v2185_v34, %v2184_v18 }
 0x1c3   :  { %1681 = vst.msk [vmem:[%s4231_s6 + $0x30] sm:$0xff] %vm1674_vm11, %v2270_v31 }
 0x1c4   :  { %1938 = vst.msk [vmem:[%s4231_s6 + $0x30] sm:$0xff] %vm1931_vm13, %v2275_v33  ;;  %vm1184_vm0 = vcmp.gt.f32.partialorder %v1039_v37, 0.0  ;;  %2423 = vrot.lane.b32.xlu1 %v2422_v38, %s2533_s12  ;;  %2418 = vrot.lane.b32.xlu2 %v2422_v38, %s2532_s11 }
 0x1c5   :  { %1939 = vst.msk [vmem:[%s4231_s6 + $0x38] sm:$0xff] %vm1931_vm13, %v2276_v39  ;;  %v1131_v42 = vpop.f32.mrf.mxu3  ;;  %v2155_v10 = vsel %vm1184_vm0, 1.0, %v2531_v19 }
 0x1c6   :  { %1716 = vst.msk [vmem:[%s4231_s6 + $0x148] sm:$0xff] %vm1674_vm11, %v2301_v36  ;;  %v1132_v43 = vadd.f32 %v3549_v45, %v1131_v42  ;;  %v2279_v44 = vpop.permute.xlu1 %2278  ;;  %v2432_v56 = vpack.i.bf16 %v2155_v10, %v2154_v26 }
 0x1c7   :  { %1715 = vst.msk [vmem:[%s4231_s6 + $0x140] sm:$0xff] %vm1674_vm11, %v2300_v41  ;;  %v2281_v46 = vunpack.i.h.bf16 %v2279_v44  ;;  %v2280_v47 = vunpack.i.l.bf16 %v2279_v44  ;;  %v2309_v48 = vpop.permute.xlu2 %2308  ;;  %v2284_v49 = vpop.permute.xlu0 %2283 }
 0x1c8   :  { %1377 = vst.msk [vmem:[%s4231_s6 + $0xb8] sm:$0xff] %vm1353_vm4, %v2155_v10  ;;  %vm1215_vm14 = vcmp.gt.f32.partialorder %v1132_v43, 0.0  ;;  %v2311_v50 = vunpack.i.h.bf16 %v2309_v48  ;;  %v2310_v52 = vunpack.i.l.bf16 %v2309_v48  ;;  %v2286_v54 = vunpack.i.h.bf16 %v2284_v49 }
 0x1c9   :  { %v2186_v51 = vsel %vm1215_vm14, 1.0, %v2531_v19  ;;  %1714 = vst.msk [vmem:[%s4231_s6 + $0x138] sm:$0xff] %vm1674_vm11, %v2281_v46  ;;  %v1041_v53 = vpop.f32.mrf.mxu1  ;;  %v2285_v57 = vunpack.i.l.bf16 %v2284_v49 }
 0x1ca   :  { %1408 = vst.msk [vmem:[%s4231_s6 + $0x1b0] sm:$0xff] %vm1353_vm4, %v2186_v51  ;;  %v1042_v55 = vadd.f32 %v3549_v45, %v1041_v53 }
 0x1cb   :  { %1713 = vst.msk [vmem:[%s4231_s6 + $0x130] sm:$0xff] %vm1674_vm11, %v2280_v47 }
 0x1cc   :  { %1686 = vst.msk [vmem:[%s4231_s6 + $0x58] sm:$0xff] %vm1674_vm11, %v2311_v50  ;;  %vm1185_vm15 = vcmp.gt.f32.partialorder %v1042_v55, 0.0  ;;  %2433 = vrot.lane.b32.xlu1 %v2432_v56, %s2533_s12  ;;  %2428 = vrot.lane.b32.xlu2 %v2432_v56, %s2532_s11 }
 0x1cd   :  { %1685 = vst.msk [vmem:[%s4231_s6 + $0x50] sm:$0xff] %vm1674_vm11, %v2310_v52  ;;  %v2156_v58 = vsel %vm1185_vm15, 1.0, %v2531_v19  ;;  %v1134_v59 = vpop.f32.mrf.mxu3 }
 0x1ce   :  { %1971 = vst.msk [vmem:[%s4231_s6 + $0x138] sm:$0xff] %vm1931_vm13, %v2286_v54  ;;  %v1135_v60 = vadd.f32 %v3549_v45, %v1134_v59 }
 0x1cf   :  { %1970 = vst.msk [vmem:[%s4231_s6 + $0x130] sm:$0xff] %vm1931_vm13, %v2285_v57  ;;  %v2294_v61 = vpop.permute.xlu0 %2293  ;;  %v2324_v14 = vpop.permute.xlu2 %2323 }
 0x1d0   :  { %1378 = vst.msk [vmem:[%s4231_s6 + $0xc0] sm:$0xff] %vm1353_vm4, %v2156_v58  ;;  %vm1216_vm1 = vcmp.gt.f32.partialorder %v1135_v60, 0.0  ;;  %v2296_v62 = vunpack.i.h.bf16 %v2294_v61  ;;  %v2295_v0 = vunpack.i.l.bf16 %v2294_v61  ;;  %v2326_v33 = vunpack.i.h.bf16 %v2324_v14 }
 0x1d1   :  { %v2187_v63 = vsel %vm1216_vm1, 1.0, %v2531_v19  ;;  %v1044_v1 = vpop.f32.mrf.mxu1  ;;  %v2325_v38 = vunpack.i.l.bf16 %v2324_v14 }
 0x1d2   :  { %1409 = vst.msk [vmem:[%s4231_s6 + $0x1b8] sm:$0xff] %vm1353_vm4, %v2187_v63  ;;  %v1045_v2 = vadd.f32 %v3549_v45, %v1044_v1  ;;  %v2442_v3 = vpack.i.bf16 %v2187_v63, %v2186_v51 }
 0x1d3   :  { %1941 = vst.msk [vmem:[%s4231_s6 + $0x48] sm:$0xff] %vm1931_vm13, %v2296_v62 }
 0x1d4   :  { %1940 = vst.msk [vmem:[%s4231_s6 + $0x40] sm:$0xff] %vm1931_vm13, %v2295_v0  ;;  %vm1186_vm2 = vcmp.gt.f32.partialorder %v1045_v2, 0.0  ;;  %2443 = vrot.lane.b32.xlu2 %v2442_v3, %s2533_s12  ;;  %2438 = vrot.lane.b32.xlu0 %v2442_v3, %s2532_s11 }
 0x1d5   :  { %v2157_v13 = vsel %vm1186_vm2, 1.0, %v2531_v19  ;;  %v1137_v4 = vpop.f32.mrf.mxu3 }
 0x1d6   :  { %1379 = vst.msk [vmem:[%s4231_s6 + $0xc8] sm:$0xff] %vm1353_vm4, %v2157_v13  ;;  %v1138_v5 = vadd.f32 %v3549_v45, %v1137_v4  ;;  %v2304_v6 = vpop.permute.xlu1 %2303  ;;  %v2452_v12 = vpack.i.bf16 %v2157_v13, %v2156_v58 }
 0x1d7   :  { %v2306_v7 = vunpack.i.h.bf16 %v2304_v6  ;;  %v2305_v8 = vunpack.i.l.bf16 %v2304_v6  ;;  %v2334_v28 = vpop.permute.xlu2 %2333 }
 0x1d8   :  { %vm1217_vm3 = vcmp.gt.f32.partialorder %v1138_v5, 0.0  ;;  %v2336_v53 = vunpack.i.h.bf16 %v2334_v28  ;;  %v2335_v54 = vunpack.i.l.bf16 %v2334_v28 }
 0x1d9   :  { %v2188_v9 = vsel %vm1217_vm3, 1.0, %v2531_v19  ;;  %1972 = vst.msk [vmem:[%s4231_s6 + $0x140] sm:$0xff] %vm1931_vm13, %v2305_v8  ;;  %v1047_v40 = vpop.f32.mrf.mxu1 }
 0x1da   :  { %1410 = vst.msk [vmem:[%s4231_s6 + $0x1c0] sm:$0xff] %vm1353_vm4, %v2188_v9  ;;  %v1048_v11 = vadd.f32 %v3549_v45, %v1047_v40 }
 0x1db   :  { %1973 = vst.msk [vmem:[%s4231_s6 + $0x148] sm:$0xff] %vm1931_vm13, %v2306_v7 }
 0x1dc   :  { %vm1187_vm5 = vcmp.gt.f32.partialorder %v1048_v11, 0.0  ;;  %2453 = vrot.lane.b32.xlu2 %v2452_v12, %s2533_s12  ;;  %2448 = vrot.lane.b32.xlu0 %v2452_v12, %s2532_s11 }
 0x1dd   :  { %v2158_v15 = vsel %vm1187_vm5, 1.0, %v2531_v19  ;;  %v1140_v16 = vpop.f32.mrf.mxu3 }
 0x1de   :  { %1380 = vst.msk [vmem:[%s4231_s6 + $0xd0] sm:$0xff] %vm1353_vm4, %v2158_v15  ;;  %v1141_v17 = vadd.f32 %v3549_v45, %v1140_v16  ;;  %v2314_v18 = vpop.permute.xlu1 %2313 }
 0x1df   :  { %v2316_v20 = vunpack.i.h.bf16 %v2314_v18  ;;  %v2315_v21 = vunpack.i.l.bf16 %v2314_v18 }
 0x1e0   :  { %vm1218_vm6 = vcmp.gt.f32.partialorder %v1141_v17, 0.0 }
 0x1e1   :  { %v2189_v22 = vsel %vm1218_vm6, 1.0, %v2531_v19  ;;  %1942 = vst.msk [vmem:[%s4231_s6 + $0x50] sm:$0xff] %vm1931_vm13, %v2315_v21  ;;  %v1050_v23 = vpop.f32.mrf.mxu1 }
 0x1e2   :  { %1411 = vst.msk [vmem:[%s4231_s6 + $0x1c8] sm:$0xff] %vm1353_vm4, %v2189_v22  ;;  %v1051_v24 = vadd.f32 %v3549_v45, %v1050_v23  ;;  %v2457_v25 = vpack.i.bf16 %v2189_v22, %v2188_v9 }
 0x1e3   :  { %1943 = vst.msk [vmem:[%s4231_s6 + $0x58] sm:$0xff] %vm1931_vm13, %v2316_v20 }
 0x1e4   :  { %vm1188_vm7 = vcmp.gt.f32.partialorder %v1051_v24, 0.0  ;;  %2458 = vrot.lane.b32.xlu1 %v2457_v25, %s2532_s11  ;;  %2463 = vrot.lane.b32.xlu0 %v2457_v25, %s2533_s12 }
 0x1e5   :  { %v2159_v26 = vsel %vm1188_vm7, 1.0, %v2531_v19  ;;  %v1143_v27 = vpop.f32.mrf.mxu3 }
 0x1e6   :  { %1381 = vst.msk [vmem:[%s4231_s6 + $0xd8] sm:$0xff] %vm1353_vm4, %v2159_v26  ;;  %v1144_v29 = vadd.f32 %v3549_v45, %v1143_v27  ;;  %v2319_v30 = vpop.permute.xlu0 %2318  ;;  %v2467_v37 = vpack.i.bf16 %v2159_v26, %v2158_v15 }
 0x1e7   :  { %v2321_v31 = vunpack.i.h.bf16 %v2319_v30  ;;  %v2320_v32 = vunpack.i.l.bf16 %v2319_v30 }
 0x1e8   :  { %vm1219_vm8 = vcmp.gt.f32.partialorder %v1144_v29, 0.0 }
 0x1e9   :  { %v2190_v34 = vsel %vm1219_vm8, 1.0, %v2531_v19  ;;  %1718 = vst.msk [vmem:[%s4231_s6 + $0x158] sm:$0xff] %vm1674_vm11, %v2321_v31  ;;  %v1053_v35 = vpop.f32.mrf.mxu1 }
 0x1ea   :  { %1412 = vst.msk [vmem:[%s4231_s6 + $0x1d0] sm:$0xff] %vm1353_vm4, %v2190_v34  ;;  %v1054_v36 = vadd.f32 %v3549_v45, %v1053_v35 }
 0x1eb   :  { %1975 = vst.msk [vmem:[%s4231_s6 + $0x158] sm:$0xff] %vm1931_vm13, %v2326_v33 }
 0x1ec   :  { %1717 = vst.msk [vmem:[%s4231_s6 + $0x150] sm:$0xff] %vm1674_vm11, %v2320_v32  ;;  %vm1189_vm9 = vcmp.gt.f32.partialorder %v1054_v36, 0.0  ;;  %2468 = vrot.lane.b32.xlu1 %v2467_v37, %s2532_s11  ;;  %2473 = vrot.lane.b32.xlu0 %v2467_v37, %s2533_s12 }
 0x1ed   :  { %1974 = vst.msk [vmem:[%s4231_s6 + $0x150] sm:$0xff] %vm1931_vm13, %v2325_v38  ;;  %v2160_v39 = vsel %vm1189_vm9, 1.0, %v2531_v19  ;;  %v1146_v41 = vpop.f32.mrf.mxu3 }
 0x1ee   :  { %1382 = vst.msk [vmem:[%s4231_s6 + $0xe0] sm:$0xff] %vm1353_vm4, %v2160_v39  ;;  %v1147_v42 = vadd.f32 %v3549_v45, %v1146_v41  ;;  %v2359_v43 = vpop.permute.xlu2 %2358  ;;  %v2329_v44 = vpop.permute.xlu0 %2328 }
 0x1ef   :  { %v2361_v10 = vunpack.i.h.bf16 %v2359_v43  ;;  %v2360_v46 = vunpack.i.l.bf16 %v2359_v43  ;;  %v2331_v47 = vunpack.i.h.bf16 %v2329_v44  ;;  %v2330_v50 = vunpack.i.l.bf16 %v2329_v44 }
 0x1f0   :  { %vm1220_vm10 = vcmp.gt.f32.partialorder %v1147_v42, 0.0 }
 0x1f1   :  { %v2191_v48 = vsel %vm1220_vm10, 1.0, %v2531_v19  ;;  %1722 = vst.msk [vmem:[%s4231_s6 + $0x178] sm:$0xff] %vm1674_vm11, %v2361_v10  ;;  %v1056_v49 = vpop.f32.mrf.mxu1 }
 0x1f2   :  { %1413 = vst.msk [vmem:[%s4231_s6 + $0x1d8] sm:$0xff] %vm1353_vm4, %v2191_v48  ;;  %v1057_v51 = vadd.f32 %v3549_v45, %v1056_v49  ;;  %v3854_v52 = vpack.i.bf16 %v2191_v48, %v2190_v34 }
 0x1f3   :  { %1721 = vst.msk [vmem:[%s4231_s6 + $0x170] sm:$0xff] %vm1674_vm11, %v2360_v46 }
 0x1f4   :  { %1688 = vst.msk [vmem:[%s4231_s6 + $0x68] sm:$0xff] %vm1674_vm11, %v2331_v47  ;;  %vm1190_vm12 = vcmp.gt.f32.partialorder %v1057_v51, 0.0  ;;  %2478 = vrot.lane.b32.xlu2 %v3854_v52, %s2532_s11 }
 0x1f5   :  { %1945 = vst.msk [vmem:[%s4231_s6 + $0x68] sm:$0xff] %vm1931_vm13, %v2336_v53  ;;  %v2161_v55 = vsel %vm1190_vm12, 1.0, %v2531_v19  ;;  %v1149_v56 = vpop.f32.mrf.mxu3 }
 0x1f6   :  { %1687 = vst.msk [vmem:[%s4231_s6 + $0x60] sm:$0xff] %vm1674_vm11, %v2330_v50  ;;  %v1150_v57 = vadd.f32 %v3549_v45, %v1149_v56  ;;  %v2339_v58 = vpop.permute.xlu1 %2338  ;;  %v2369_v59 = vpop.permute.xlu2 %2368  ;;  %v2487_v60 = vpack.i.bf16 %v2161_v55, %v2160_v39 }
 0x1f7   :  { %1944 = vst.msk [vmem:[%s4231_s6 + $0x60] sm:$0xff] %vm1931_vm13, %v2335_v54  ;;  %v2341_v61 = vunpack.i.h.bf16 %v2339_v58  ;;  %v2340_v62 = vunpack.i.l.bf16 %v2339_v58  ;;  %v2344_v63 = vpop.permute.xlu0 %2343  ;;  %v2371_v0 = vunpack.i.h.bf16 %v2369_v59  ;;  %v2370_v2 = vunpack.i.l.bf16 %v2369_v59 }
 0x1f8   :  { %1383 = vst.msk [vmem:[%s4231_s6 + $0xe8] sm:$0xff] %vm1353_vm4, %v2161_v55  ;;  %vm1221_vm0 = vcmp.gt.f32.partialorder %v1150_v57, 0.0  ;;  %2488 = vrot.lane.b32.xlu1 %v2487_v60, %s2533_s12  ;;  %v2346_v13 = vunpack.i.h.bf16 %v2344_v63  ;;  %v2345_v5 = vunpack.i.l.bf16 %v2344_v63 }
 0x1f9   :  { %v2192_v1 = vsel %vm1221_vm0, 1.0, %v2531_v19  ;;  %1720 = vst.msk [vmem:[%s4231_s6 + $0x168] sm:$0xff] %vm1674_vm11, %v2341_v61  ;;  %v1059_v3 = vpop.f32.mrf.mxu1 }
 0x1fa   :  { %1414 = vst.msk [vmem:[%s4231_s6 + $0x1e0] sm:$0xff] %vm1353_vm4, %v2192_v1  ;;  %v1060_v4 = vadd.f32 %v3549_v45, %v1059_v3 }
 0x1fb   :  { %1719 = vst.msk [vmem:[%s4231_s6 + $0x160] sm:$0xff] %vm1674_vm11, %v2340_v62 }
 0x1fc   :  { %1692 = vst.msk [vmem:[%s4231_s6 + $0x88] sm:$0xff] %vm1674_vm11, %v2371_v0  ;;  %vm1191_vm14 = vcmp.gt.f32.partialorder %v1060_v4, 0.0  ;;  %2483 = vrot.lane.b32.xlu2 %v2487_v60, %s2532_s11 }
 0x1fd   :  { %1691 = vst.msk [vmem:[%s4231_s6 + $0x80] sm:$0xff] %vm1674_vm11, %v2370_v2  ;;  %v1152_v6 = vpop.f32.mrf.mxu3  ;;  %v2162_v9 = vsel %vm1191_vm14, 1.0, %v2531_v19 }
 0x1fe   :  { %1977 = vst.msk [vmem:[%s4231_s6 + $0x168] sm:$0xff] %vm1931_vm13, %v2346_v13  ;;  %v1153_v7 = vadd.f32 %v3549_v45, %v1152_v6  ;;  %v2349_v8 = vpop.permute.xlu1 %2348  ;;  %v2384_v29 = vpop.permute.xlu2 %2383 }
 0x1ff   :  { %1976 = vst.msk [vmem:[%s4231_s6 + $0x160] sm:$0xff] %vm1931_vm13, %v2345_v5  ;;  %v2351_v40 = vunpack.i.h.bf16 %v2349_v8  ;;  %v2350_v11 = vunpack.i.l.bf16 %v2349_v8  ;;  %v2354_v12 = vpop.permute.xlu0 %2353  ;;  %v2386_v39 = vunpack.i.h.bf16 %v2384_v29  ;;  %v2385_v41 = vunpack.i.l.bf16 %v2384_v29 }
 0x200   :  { %1384 = vst.msk [vmem:[%s4231_s6 + $0xf0] sm:$0xff] %vm1353_vm4, %v2162_v9  ;;  %vm1222_vm15 = vcmp.gt.f32.partialorder %v1153_v7, 0.0  ;;  %v2356_v14 = vunpack.i.h.bf16 %v2354_v12  ;;  %v2355_v16 = vunpack.i.l.bf16 %v2354_v12 }
 0x201   :  { %v2193_v15 = vsel %vm1222_vm15, 1.0, %v2531_v19  ;;  %1690 = vst.msk [vmem:[%s4231_s6 + $0x78] sm:$0xff] %vm1674_vm11, %v2351_v40  ;;  %v1062_v17 = vpop.f32.mrf.mxu1 }
 0x202   :  { %1415 = vst.msk [vmem:[%s4231_s6 + $0x1e8] sm:$0xff] %vm1353_vm4, %v2193_v15  ;;  %v1063_v18 = vadd.f32 %v3549_v45, %v1062_v17  ;;  %v2492_v20 = vpack.i.bf16 %v2193_v15, %v2192_v1 }
 0x203   :  { %1689 = vst.msk [vmem:[%s4231_s6 + $0x70] sm:$0xff] %vm1674_vm11, %v2350_v11 }
 0x204   :  { %1947 = vst.msk [vmem:[%s4231_s6 + $0x78] sm:$0xff] %vm1931_vm13, %v2356_v14  ;;  %vm1192_vm1 = vcmp.gt.f32.partialorder %v1063_v18, 0.0  ;;  %2493 = vrot.lane.b32.xlu0 %v2492_v20, %s2532_s11 }
 0x205   :  { %1946 = vst.msk [vmem:[%s4231_s6 + $0x70] sm:$0xff] %vm1931_vm13, %v2355_v16  ;;  %v2163_v21 = vsel %vm1192_vm1, 1.0, %v2531_v19  ;;  %v1155_v22 = vpop.f32.mrf.mxu3 }
 0x206   :  { %1385 = vst.msk [vmem:[%s4231_s6 + $0xf8] sm:$0xff] %vm1353_vm4, %v2163_v21  ;;  %v1156_v23 = vadd.f32 %v3549_v45, %v1155_v22  ;;  %v2364_v24 = vpop.permute.xlu1 %2363  ;;  %v2502_v25 = vpack.i.bf16 %v2163_v21, %v2162_v9 }
 0x207   :  { %v2366_v26 = vunpack.i.h.bf16 %v2364_v24  ;;  %v2365_v27 = vunpack.i.l.bf16 %v2364_v24 }
 0x208   :  { %vm1223_vm2 = vcmp.gt.f32.partialorder %v1156_v23, 0.0  ;;  %2503 = vrot.lane.b32.xlu2 %v2502_v25, %s2533_s12 }
 0x209   :  { %v2194_v28 = vsel %vm1223_vm2, 1.0, %v2531_v19  ;;  %1978 = vst.msk [vmem:[%s4231_s6 + $0x170] sm:$0xff] %vm1931_vm13, %v2365_v27 }
 0x20a   :  { %1416 = vst.msk [vmem:[%s4231_s6 + $0x1f0] sm:$0xff] %vm1353_vm4, %v2194_v28 }
 0x20b   :  { %1979 = vst.msk [vmem:[%s4231_s6 + $0x178] sm:$0xff] %vm1931_vm13, %v2366_v26 }
 0x20c   :  { %2498 = vrot.lane.b32.xlu0 %v2502_v25, %s2532_s11 }
 0x20d   :  { %v1158_v30 = vpop.f32.mrf.mxu3 }
 0x20e   :  { %v1159_v31 = vadd.f32 %v3549_v45, %v1158_v30  ;;  %v2374_v32 = vpop.permute.xlu1 %2373 }
 0x20f   :  { %v2376_v33 = vunpack.i.h.bf16 %v2374_v32  ;;  %v2375_v34 = vunpack.i.l.bf16 %v2374_v32 }
 0x210   :  { %vm1224_vm3 = vcmp.gt.f32.partialorder %v1159_v31, 0.0  ;;  %2518 = vrot.lane.b32.xlu2 %v2492_v20, %s2533_s12 }
 0x211   :  { %v2195_v35 = vsel %vm1224_vm3, 1.0, %v2531_v19  ;;  %1948 = vst.msk [vmem:[%s4231_s6 + $0x80] sm:$0xff] %vm1931_vm13, %v2375_v34  ;;  %v2394_v19 = vpop.permute.xlu2 %2393 }
 0x212   :  { %1417 = vst.msk [vmem:[%s4231_s6 + $0x1f8] sm:$0xff] %vm1353_vm4, %v2195_v35  ;;  %v2507_v36 = vpack.i.bf16 %v2195_v35, %v2194_v28  ;;  %v2396_v48 = vunpack.i.h.bf16 %v2394_v19  ;;  %v2395_v49 = vunpack.i.l.bf16 %v2394_v19 }
 0x213   :  { %1949 = vst.msk [vmem:[%s4231_s6 + $0x88] sm:$0xff] %vm1931_vm13, %v2376_v33 }
 0x214   :  { %2508 = vrot.lane.b32.xlu1 %v2507_v36, %s2532_s11  ;;  %2523 = vrot.lane.b32.xlu0 %v2507_v36, %s2533_s12 }
 0x216   :  { %v2379_v45 = vpop.permute.xlu0 %2378 }
 0x217   :  { %v2381_v37 = vunpack.i.h.bf16 %v2379_v45  ;;  %v2380_v38 = vunpack.i.l.bf16 %v2379_v45 }
 0x219   :  { %1724 = vst.msk [vmem:[%s4231_s6 + $0x188] sm:$0xff] %vm1674_vm11, %v2381_v37 }
 0x21a   :  { %1981 = vst.msk [vmem:[%s4231_s6 + $0x188] sm:$0xff] %vm1931_vm13, %v2386_v39 }
 0x21b   :  { %1723 = vst.msk [vmem:[%s4231_s6 + $0x180] sm:$0xff] %vm1674_vm11, %v2380_v38 }
 0x21c   :  { %1980 = vst.msk [vmem:[%s4231_s6 + $0x180] sm:$0xff] %vm1931_vm13, %v2385_v41  ;;  %2513 = vrot.lane.b32.xlu1 %v3854_v52, %s2533_s12 }
 0x21e   :  { %v2419_v42 = vpop.permute.xlu2 %2418  ;;  %v2389_v43 = vpop.permute.xlu0 %2388 }
 0x21f   :  { %v2421_v44 = vunpack.i.h.bf16 %v2419_v42  ;;  %v2420_v10 = vunpack.i.l.bf16 %v2419_v42  ;;  %v2391_v46 = vunpack.i.h.bf16 %v2389_v43  ;;  %v2390_v47 = vunpack.i.l.bf16 %v2389_v43 }
 0x221   :  { %1728 = vst.msk [vmem:[%s4231_s6 + $0x1a8] sm:$0xff] %vm1674_vm11, %v2421_v44 }
 0x222   :  { %1727 = vst.msk [vmem:[%s4231_s6 + $0x1a0] sm:$0xff] %vm1674_vm11, %v2420_v10 }
 0x223   :  { %1694 = vst.msk [vmem:[%s4231_s6 + $0x98] sm:$0xff] %vm1674_vm11, %v2391_v46 }
 0x224   :  { %1951 = vst.msk [vmem:[%s4231_s6 + $0x98] sm:$0xff] %vm1931_vm13, %v2396_v48 }
 0x225   :  { %1693 = vst.msk [vmem:[%s4231_s6 + $0x90] sm:$0xff] %vm1674_vm11, %v2390_v47 }
 0x226   :  { %1950 = vst.msk [vmem:[%s4231_s6 + $0x90] sm:$0xff] %vm1931_vm13, %v2395_v49  ;;  %v2399_v50 = vpop.permute.xlu1 %2398  ;;  %v2429_v51 = vpop.permute.xlu2 %2428 }
 0x227   :  { %v2401_v52 = vunpack.i.h.bf16 %v2399_v50  ;;  %v2400_v53 = vunpack.i.l.bf16 %v2399_v50  ;;  %v2431_v54 = vunpack.i.h.bf16 %v2429_v51  ;;  %v2404_v55 = vpop.permute.xlu0 %2403  ;;  %v2430_v56 = vunpack.i.l.bf16 %v2429_v51 }
 0x228   :  { %v2406_v57 = vunpack.i.h.bf16 %v2404_v55  ;;  %v2405_v58 = vunpack.i.l.bf16 %v2404_v55 }
 0x229   :  { %1726 = vst.msk [vmem:[%s4231_s6 + $0x198] sm:$0xff] %vm1674_vm11, %v2401_v52 }
 0x22a   :  { %1725 = vst.msk [vmem:[%s4231_s6 + $0x190] sm:$0xff] %vm1674_vm11, %v2400_v53 }
 0x22b   :  { %1698 = vst.msk [vmem:[%s4231_s6 + $0xb8] sm:$0xff] %vm1674_vm11, %v2431_v54 }
 0x22c   :  { %1697 = vst.msk [vmem:[%s4231_s6 + $0xb0] sm:$0xff] %vm1674_vm11, %v2430_v56 }
 0x22d   :  { %1983 = vst.msk [vmem:[%s4231_s6 + $0x198] sm:$0xff] %vm1931_vm13, %v2406_v57 }
 0x22e   :  { %1982 = vst.msk [vmem:[%s4231_s6 + $0x190] sm:$0xff] %vm1931_vm13, %v2405_v58  ;;  %v2409_v59 = vpop.permute.xlu1 %2408  ;;  %v2444_v13 = vpop.permute.xlu2 %2443 }
 0x22f   :  { %v2411_v60 = vunpack.i.h.bf16 %v2409_v59  ;;  %v2410_v61 = vunpack.i.l.bf16 %v2409_v59  ;;  %v2414_v62 = vpop.permute.xlu0 %2413  ;;  %v2446_v11 = vunpack.i.h.bf16 %v2444_v13  ;;  %v2445_v12 = vunpack.i.l.bf16 %v2444_v13 }
 0x230   :  { %v2416_v63 = vunpack.i.h.bf16 %v2414_v62  ;;  %v2415_v0 = vunpack.i.l.bf16 %v2414_v62 }
 0x231   :  { %1696 = vst.msk [vmem:[%s4231_s6 + $0xa8] sm:$0xff] %vm1674_vm11, %v2411_v60 }
 0x232   :  { %1695 = vst.msk [vmem:[%s4231_s6 + $0xa0] sm:$0xff] %vm1674_vm11, %v2410_v61 }
 0x233   :  { %1953 = vst.msk [vmem:[%s4231_s6 + $0xa8] sm:$0xff] %vm1931_vm13, %v2416_v63 }
 0x234   :  { %1952 = vst.msk [vmem:[%s4231_s6 + $0xa0] sm:$0xff] %vm1931_vm13, %v2415_v0 }
 0x236   :  { %v2424_v1 = vpop.permute.xlu1 %2423  ;;  %v2454_v7 = vpop.permute.xlu2 %2453 }
 0x237   :  { %v2426_v2 = vunpack.i.h.bf16 %v2424_v1  ;;  %v2425_v3 = vunpack.i.l.bf16 %v2424_v1  ;;  %v2456_v21 = vunpack.i.h.bf16 %v2454_v7  ;;  %v2455_v22 = vunpack.i.l.bf16 %v2454_v7 }
 0x239   :  { %1984 = vst.msk [vmem:[%s4231_s6 + $0x1a0] sm:$0xff] %vm1931_vm13, %v2425_v3 }
 0x23a   :  { %1985 = vst.msk [vmem:[%s4231_s6 + $0x1a8] sm:$0xff] %vm1931_vm13, %v2426_v2 }
 0x23e   :  { %v2434_v4 = vpop.permute.xlu1 %2433 }
 0x23f   :  { %v2436_v5 = vunpack.i.h.bf16 %v2434_v4  ;;  %v2435_v6 = vunpack.i.l.bf16 %v2434_v4 }
 0x241   :  { %1954 = vst.msk [vmem:[%s4231_s6 + $0xb0] sm:$0xff] %vm1931_vm13, %v2435_v6 }
 0x242   :  { %1955 = vst.msk [vmem:[%s4231_s6 + $0xb8] sm:$0xff] %vm1931_vm13, %v2436_v5 }
 0x246   :  { %v2439_v8 = vpop.permute.xlu0 %2438 }
 0x247   :  { %v2441_v9 = vunpack.i.h.bf16 %v2439_v8  ;;  %v2440_v40 = vunpack.i.l.bf16 %v2439_v8 }
 0x249   :  { %1730 = vst.msk [vmem:[%s4231_s6 + $0x1b8] sm:$0xff] %vm1674_vm11, %v2441_v9 }
 0x24a   :  { %1987 = vst.msk [vmem:[%s4231_s6 + $0x1b8] sm:$0xff] %vm1931_vm13, %v2446_v11 }
 0x24b   :  { %1729 = vst.msk [vmem:[%s4231_s6 + $0x1b0] sm:$0xff] %vm1674_vm11, %v2440_v40 }
 0x24c   :  { %1986 = vst.msk [vmem:[%s4231_s6 + $0x1b0] sm:$0xff] %vm1931_vm13, %v2445_v12 }
 0x24e   :  { %v2479_v14 = vpop.permute.xlu2 %2478  ;;  %v2449_v15 = vpop.permute.xlu0 %2448 }
 0x24f   :  { %v2481_v16 = vunpack.i.h.bf16 %v2479_v14  ;;  %v2480_v17 = vunpack.i.l.bf16 %v2479_v14  ;;  %v2451_v18 = vunpack.i.h.bf16 %v2449_v15  ;;  %v2450_v20 = vunpack.i.l.bf16 %v2449_v15 }
 0x251   :  { %1734 = vst.msk [vmem:[%s4231_s6 + $0x1d8] sm:$0xff] %vm1674_vm11, %v2481_v16 }
 0x252   :  { %1733 = vst.msk [vmem:[%s4231_s6 + $0x1d0] sm:$0xff] %vm1674_vm11, %v2480_v17 }
 0x253   :  { %1700 = vst.msk [vmem:[%s4231_s6 + $0xc8] sm:$0xff] %vm1674_vm11, %v2451_v18 }
 0x254   :  { %1957 = vst.msk [vmem:[%s4231_s6 + $0xc8] sm:$0xff] %vm1931_vm13, %v2456_v21 }
 0x255   :  { %1699 = vst.msk [vmem:[%s4231_s6 + $0xc0] sm:$0xff] %vm1674_vm11, %v2450_v20 }
 0x256   :  { %1956 = vst.msk [vmem:[%s4231_s6 + $0xc0] sm:$0xff] %vm1931_vm13, %v2455_v22  ;;  %v2459_v23 = vpop.permute.xlu1 %2458  ;;  %v2484_v24 = vpop.permute.xlu2 %2483 }
 0x257   :  { %v2461_v25 = vunpack.i.h.bf16 %v2459_v23  ;;  %v2460_v26 = vunpack.i.l.bf16 %v2459_v23  ;;  %v2486_v27 = vunpack.i.h.bf16 %v2484_v24  ;;  %v2464_v28 = vpop.permute.xlu0 %2463  ;;  %v2485_v29 = vunpack.i.l.bf16 %v2484_v24 }
 0x258   :  { %v2466_v30 = vunpack.i.h.bf16 %v2464_v28  ;;  %v2465_v31 = vunpack.i.l.bf16 %v2464_v28 }
 0x259   :  { %1732 = vst.msk [vmem:[%s4231_s6 + $0x1c8] sm:$0xff] %vm1674_vm11, %v2461_v25 }
 0x25a   :  { %1731 = vst.msk [vmem:[%s4231_s6 + $0x1c0] sm:$0xff] %vm1674_vm11, %v2460_v26 }
 0x25b   :  { %1704 = vst.msk [vmem:[%s4231_s6 + $0xe8] sm:$0xff] %vm1674_vm11, %v2486_v27 }
 0x25c   :  { %1703 = vst.msk [vmem:[%s4231_s6 + $0xe0] sm:$0xff] %vm1674_vm11, %v2485_v29 }
 0x25d   :  { %1989 = vst.msk [vmem:[%s4231_s6 + $0x1c8] sm:$0xff] %vm1931_vm13, %v2466_v30 }
 0x25e   :  { %1988 = vst.msk [vmem:[%s4231_s6 + $0x1c0] sm:$0xff] %vm1931_vm13, %v2465_v31  ;;  %v2469_v32 = vpop.permute.xlu1 %2468 }
 0x25f   :  { %v2471_v33 = vunpack.i.h.bf16 %v2469_v32  ;;  %v2470_v34 = vunpack.i.l.bf16 %v2469_v32  ;;  %v2474_v35 = vpop.permute.xlu0 %2473 }
 0x260   :  { %v2476_v36 = vunpack.i.h.bf16 %v2474_v35  ;;  %v2475_v19 = vunpack.i.l.bf16 %v2474_v35 }
 0x261   :  { %1702 = vst.msk [vmem:[%s4231_s6 + $0xd8] sm:$0xff] %vm1674_vm11, %v2471_v33 }
 0x262   :  { %1701 = vst.msk [vmem:[%s4231_s6 + $0xd0] sm:$0xff] %vm1674_vm11, %v2470_v34  ;;  %v2504_v37 = vpop.permute.xlu2 %2503 }
 0x263   :  { %1959 = vst.msk [vmem:[%s4231_s6 + $0xd8] sm:$0xff] %vm1931_vm13, %v2476_v36  ;;  %v2506_v50 = vunpack.i.h.bf16 %v2504_v37  ;;  %v2505_v51 = vunpack.i.l.bf16 %v2504_v37 }
 0x264   :  { %1958 = vst.msk [vmem:[%s4231_s6 + $0xd0] sm:$0xff] %vm1931_vm13, %v2475_v19 }
 0x26a   :  { %v2489_v45 = vpop.permute.xlu1 %2488  ;;  %v2519_v41 = vpop.permute.xlu2 %2518 }
 0x26b   :  { %v2491_v38 = vunpack.i.h.bf16 %v2489_v45  ;;  %v2490_v39 = vunpack.i.l.bf16 %v2489_v45  ;;  %v2521_v10 = vunpack.i.h.bf16 %v2519_v41  ;;  %v2520_v46 = vunpack.i.l.bf16 %v2519_v41 }
 0x26d   :  { %1960 = vst.msk [vmem:[%s4231_s6 + $0xe0] sm:$0xff] %vm1931_vm13, %v2490_v39 }
 0x26e   :  { %1961 = vst.msk [vmem:[%s4231_s6 + $0xe8] sm:$0xff] %vm1931_vm13, %v2491_v38 }
 0x276   :  { %v2494_v42 = vpop.permute.xlu0 %2493 }
 0x277   :  { %v2496_v43 = vunpack.i.h.bf16 %v2494_v42  ;;  %v2495_v44 = vunpack.i.l.bf16 %v2494_v42 }
 0x279   :  { %1736 = vst.msk [vmem:[%s4231_s6 + $0x1e8] sm:$0xff] %vm1674_vm11, %v2496_v43 }
 0x27a   :  { %1993 = vst.msk [vmem:[%s4231_s6 + $0x1e8] sm:$0xff] %vm1931_vm13, %v2521_v10 }
 0x27b   :  { %1735 = vst.msk [vmem:[%s4231_s6 + $0x1e0] sm:$0xff] %vm1674_vm11, %v2495_v44 }
 0x27c   :  { %1992 = vst.msk [vmem:[%s4231_s6 + $0x1e0] sm:$0xff] %vm1931_vm13, %v2520_v46 }
 0x27e   :  { %v2499_v47 = vpop.permute.xlu0 %2498 }
 0x27f   :  { %v2501_v48 = vunpack.i.h.bf16 %v2499_v47  ;;  %v2500_v49 = vunpack.i.l.bf16 %v2499_v47 }
 0x281   :  { %1706 = vst.msk [vmem:[%s4231_s6 + $0xf8] sm:$0xff] %vm1674_vm11, %v2501_v48 }
 0x282   :  { %1963 = vst.msk [vmem:[%s4231_s6 + $0xf8] sm:$0xff] %vm1931_vm13, %v2506_v50 }
 0x283   :  { %1705 = vst.msk [vmem:[%s4231_s6 + $0xf0] sm:$0xff] %vm1674_vm11, %v2500_v49 }
 0x284   :  { %1962 = vst.msk [vmem:[%s4231_s6 + $0xf0] sm:$0xff] %vm1931_vm13, %v2505_v51 }
 0x286   :  { %v2509_v52 = vpop.permute.xlu1 %2508  ;;  %v2524_v53 = vpop.permute.xlu0 %2523 }
 0x287   :  { %v2511_v54 = vunpack.i.h.bf16 %v2509_v52  ;;  %v2510_v55 = vunpack.i.l.bf16 %v2509_v52  ;;  %v2526_v56 = vunpack.i.h.bf16 %v2524_v53  ;;  %v2525_v57 = vunpack.i.l.bf16 %v2524_v53 }
 0x289   :  { %1738 = vst.msk [vmem:[%s4231_s6 + $0x1f8] sm:$0xff] %vm1674_vm11, %v2511_v54 }
 0x28a   :  { %1737 = vst.msk [vmem:[%s4231_s6 + $0x1f0] sm:$0xff] %vm1674_vm11, %v2510_v55 }
 0x28b   :  { %1995 = vst.msk [vmem:[%s4231_s6 + $0x1f8] sm:$0xff] %vm1931_vm13, %v2526_v56 }
 0x28c   :  { %1994 = vst.msk [vmem:[%s4231_s6 + $0x1f0] sm:$0xff] %vm1931_vm13, %v2525_v57 }
 0x28e   :  { %v2514_v58 = vpop.permute.xlu1 %2513 }
 0x28f   :  { %v2516_v59 = vunpack.i.h.bf16 %v2514_v58  ;;  %v2515_v60 = vunpack.i.l.bf16 %v2514_v58 }
 0x291   :  { %1990 = vst.msk [vmem:[%s4231_s6 + $0x1d0] sm:$0xff] %vm1931_vm13, %v2515_v60 }
 0x292   :  { %1991 = vst.msk [vmem:[%s4231_s6 + $0x1d8] sm:$0xff] %vm1931_vm13, %v2516_v59 }

// kernel: _detector_dense.13
= control target key start
LH: loop header
LB: loop body
LE: loop exit
PB: predicated region body
PF: predicated region fallthrough
CT: control target
= control target key end

     0   :  { %vm47_vm0 = vcmask 261120   ;;  %s1179_s0 = inlined_call_operand.vmem [shape: f32[128,32], index: 0, kind: input, shape index: {}]   ;;  %s1180_s1 = inlined_call_operand.vmem [shape: f32[32,32], index: 1, kind: input, shape index: {}]   ;;  %s1181_s2 = inlined_call_operand.vmem [shape: f32[1,32], index: 2, kind: input, shape index: {}]   ;;  %s1182_s3 = inlined_call_operand.vmem [shape: f32[32,24], index: 3, kind: input, shape index: {}]   ;;  %s1183_s4 = inlined_call_operand.vmem [shape: f32[1,24], index: 4, kind: input, shape index: {}]   ;;  %s1184_s5 = inlined_call_operand.hbm [shape: f32[128,32], index: 5, kind: output, shape index: {0}]   ;;  %s1185_s6 = inlined_call_operand.vmem [shape: f32[128,3], index: 6, kind: output, shape index: {1}]  }
   0x1   :  { %v42_v0 = vld [vmem:[%s1180_s1 + $0x18] sm:$0xff]  ;;  %v41_v1 = vld [vmem:[%s1180_s1 + $0x10] sm:$0xff]  ;;  %v40_v2 = vld [vmem:[%s1180_s1 + $0x8] sm:$0xff] }
   0x2   :  { %108 = vmatpush.msra.mxu0 %v42_v0  ;;  %627 = vmatpush.msra.mxu2 %v42_v0  ;;  %v39_v3 = vld [vmem:[%s1180_s1] sm:$0xff] }
   0x3   :  { %v23_v4 = vld [vmem:[%s1179_s0] sm:$0xff] }
   0x4   :  { %109 = vmatpush.msra.mxu0 %v41_v1  ;;  %628 = vmatpush.msra.mxu2 %v41_v1  ;;  %v31_v5 = vld [vmem:[%s1179_s0 + $0x40] sm:$0xff] }
   0x6   :  { %110 = vmatpush.msra.mxu0 %v40_v2  ;;  %629 = vmatpush.msra.mxu2 %v40_v2 }
   0x7   :  { %12 = vsyncpa [#allocation3], 0  ;;  %v24_v6 = vld [vmem:[%s1179_s0 + $0x8] sm:$0xff]  ;;  %v25_v8 = vld [vmem:[%s1179_s0 + $0x10] sm:$0xff]  ;;  %s750_s23 = smov 114   ;;  %s751_s24 = smov 121  }
   0x8   :  { %111 = vmatpush.msra.mxu0 %v39_v3  ;;  %630 = vmatpush.msra.mxu2 %v39_v3  ;;  %v32_v7 = vld [vmem:[%s1179_s0 + $0x48] sm:$0xff]  ;;  %v33_v9 = vld [vmem:[%s1179_s0 + $0x50] sm:$0xff]  ;;  %v26_v10 = vld [vmem:[%s1179_s0 + $0x18] sm:$0xff]  ;;  %s752_s22 = smov [#allocation2]   ;;  %s563_s28 = sshll.u32 %s1184_s5, 4  ;;  %s564_s28 = int_to_ptr.hbm [resolvable:$true] %s563_s28 }
   0x9   :  { %579 = vmatmul.msk.f32.vlgmr.msra.gmra.mxu0 %vm47_vm0, %v23_v4  ;;  %587 = vmatmul.msk.f32.vlgmr.msra.gmra.mxu2 %vm47_vm0, %v31_v5  ;;  %v34_v11 = vld [vmem:[%s1179_s0 + $0x58] sm:$0xff]  ;;  %v27_v13 = vld [vmem:[%s1179_s0 + $0x20] sm:$0xff]  ;;  %v28_v15 = vld [vmem:[%s1179_s0 + $0x28] sm:$0xff]  ;;  %s561_s25 = sshll.u32 %s752_s22, 4  ;;  %s753_s7 = smov 128   ;;  %s562_s25 = int_to_ptr.vmem [resolvable:$true] %s561_s25 }
   0xa   :  { %v228_v12 = vld [vmem:[%s1182_s3 + $0x18] sm:$0xff]  ;;  %v35_v14 = vld [vmem:[%s1179_s0 + $0x60] sm:$0xff]  ;;  %v36_v16 = vld [vmem:[%s1179_s0 + $0x68] sm:$0xff]  ;;  %s754_s8 = smov 8  }
   0xb   :  { %293 = vmatpush.msra.mxu1 %v228_v12  ;;  %631 = vmatpush.msra.mxu3 %v228_v12  ;;  %v29_v17 = vld [vmem:[%s1179_s0 + $0x30] sm:$0xff]  ;;  %v30_v19 = vld [vmem:[%s1179_s0 + $0x38] sm:$0xff]  ;;  %v226_v22 = vld [vmem:[%s1182_s3 + $0x8] sm:$0xff] }
   0xc   :  { %v37_v18 = vld [vmem:[%s1179_s0 + $0x70] sm:$0xff]  ;;  %v38_v20 = vld [vmem:[%s1179_s0 + $0x78] sm:$0xff]  ;;  %v225_v23 = vld [vmem:[%s1182_s3] sm:$0xff] }
   0xd   :  { %v227_v21 = vld [vmem:[%s1182_s3 + $0x10] sm:$0xff]  ;;  %v881_v24 = vld [vmem:[%s1181_s2] ss:$0 sm:$0xff] }
   0xe   :  { %294 = vmatpush.msra.mxu1 %v227_v21  ;;  %632 = vmatpush.msra.mxu3 %v227_v21 }
  0x10   :  { %295 = vmatpush.msra.mxu1 %v226_v22  ;;  %633 = vmatpush.msra.mxu3 %v226_v22 }
  0x11   :  { %580 = vmatmul.msk.f32.gmra.mxu0 %vm47_vm0, %v24_v6  ;;  %588 = vmatmul.msk.f32.gmra.mxu2 %vm47_vm0, %v32_v7 }
  0x12   :  { %296 = vmatpush.msra.mxu1 %v225_v23  ;;  %634 = vmatpush.msra.mxu3 %v225_v23 }
  0x19   :  { %581 = vmatmul.msk.f32.gmra.mxu0 %vm47_vm0, %v25_v8  ;;  %589 = vmatmul.msk.f32.gmra.mxu2 %vm47_vm0, %v33_v9 }
  0x21   :  { %582 = vmatmul.msk.f32.gmra.mxu0 %vm47_vm0, %v26_v10  ;;  %590 = vmatmul.msk.f32.gmra.mxu2 %vm47_vm0, %v34_v11 }
  0x29   :  { %583 = vmatmul.msk.f32.gmra.mxu0 %vm47_vm0, %v27_v13  ;;  %591 = vmatmul.msk.f32.gmra.mxu2 %vm47_vm0, %v35_v14 }
  0x31   :  { %584 = vmatmul.msk.f32.gmra.mxu0 %vm47_vm0, %v28_v15  ;;  %592 = vmatmul.msk.f32.gmra.mxu2 %vm47_vm0, %v36_v16 }
  0x39   :  { %585 = vmatmul.msk.f32.gmra.mxu0 %vm47_vm0, %v29_v17  ;;  %593 = vmatmul.msk.f32.gmra.mxu2 %vm47_vm0, %v37_v18 }
  0x41   :  { %586 = vmatmul.msk.f32.gmra.mxu0 %vm47_vm0, %v30_v19  ;;  %594 = vmatmul.msk.f32.gmra.mxu2 %vm47_vm0, %v38_v20 }
  0x86   :  { %v113_v25 = vpop.f32.mrf.mxu0 }
  0x87   :  { %v114_v26 = vadd.f32 %v881_v24, %v113_v25 }
  0x89   :  { %v177_v27 = vmul.f32 0.1, %v114_v26  ;;  %vm161_vm1 = vcmp.gt.f32.partialorder %v114_v26, 0.0 }
  0x8b   :  { %v193_v28 = vsel %vm161_vm1, %v114_v26, %v177_v27  ;;  %v934_v26 = vld [vmem:[%s1183_s4] ss:$0 sm:$0xff] }
  0x8c   :  { %v137_v29 = vpop.f32.mrf.mxu2  ;;  %209 = vst.msk [vmem:[#allocation2] sm:$0xff] %vm47_vm0, %v193_v28  ;;  %595 = vmatmul.msk.f32.vlgmr.msra.gmra.mxu1 %vm47_vm0, %v193_v28 }
  0x8d   :  { %v138_v30 = vadd.f32 %v881_v24, %v137_v29  ;;  %v749_v29 = vmov 0.0  }
  0x8e   :  { %v116_v31 = vpop.f32.mrf.mxu0 }
  0x8f   :  { %v185_v32 = vmul.f32 0.1, %v138_v30  ;;  %v117_v33 = vadd.f32 %v881_v24, %v116_v31  ;;  %vm169_vm2 = vcmp.gt.f32.partialorder %v138_v30, 0.0 }
  0x91   :  { %v178_v34 = vmul.f32 0.1, %v117_v33  ;;  %v201_v35 = vsel %vm169_vm2, %v138_v30, %v185_v32  ;;  %vm162_vm3 = vcmp.gt.f32.partialorder %v117_v33, 0.0  ;;  %vm394_vm2 = vcmask 7168  }
  0x92   :  { %217 = vst.msk [vmem:[#allocation2 + $0x40] sm:$0xff] %vm47_vm0, %v201_v35  ;;  %603 = vmatmul.msk.f32.vlgmr.msra.gmra.mxu3 %vm47_vm0, %v201_v35 }
  0x93   :  { %v194_v36 = vsel %vm162_vm3, %v117_v33, %v178_v34 }
  0x94   :  { %v140_v37 = vpop.f32.mrf.mxu2  ;;  %210 = vst.msk [vmem:[#allocation2 + $0x8] sm:$0xff] %vm47_vm0, %v194_v36  ;;  %596 = vmatmul.msk.f32.gmra.mxu1 %vm47_vm0, %v194_v36 }
  0x95   :  { %v141_v38 = vadd.f32 %v881_v24, %v140_v37 }
  0x96   :  { %v119_v39 = vpop.f32.mrf.mxu0 }
  0x97   :  { %v186_v40 = vmul.f32 0.1, %v141_v38  ;;  %v120_v41 = vadd.f32 %v881_v24, %v119_v39  ;;  %vm170_vm4 = vcmp.gt.f32.partialorder %v141_v38, 0.0 }
  0x99   :  { %v179_v42 = vmul.f32 0.1, %v120_v41  ;;  %v202_v43 = vsel %vm170_vm4, %v141_v38, %v186_v40  ;;  %vm163_vm5 = vcmp.gt.f32.partialorder %v120_v41, 0.0 }
  0x9a   :  { %218 = vst.msk [vmem:[#allocation2 + $0x48] sm:$0xff] %vm47_vm0, %v202_v43  ;;  %604 = vmatmul.msk.f32.gmra.mxu3 %vm47_vm0, %v202_v43 }
  0x9b   :  { %v195_v44 = vsel %vm163_vm5, %v120_v41, %v179_v42 }
  0x9c   :  { %v143_v45 = vpop.f32.mrf.mxu2  ;;  %211 = vst.msk [vmem:[#allocation2 + $0x10] sm:$0xff] %vm47_vm0, %v195_v44  ;;  %597 = vmatmul.msk.f32.gmra.mxu1 %vm47_vm0, %v195_v44 }
  0x9d   :  { %v144_v46 = vadd.f32 %v881_v24, %v143_v45 }
  0x9e   :  { %v122_v47 = vpop.f32.mrf.mxu0 }
  0x9f   :  { %v187_v48 = vmul.f32 0.1, %v144_v46  ;;  %v123_v49 = vadd.f32 %v881_v24, %v122_v47  ;;  %vm171_vm6 = vcmp.gt.f32.partialorder %v144_v46, 0.0 }
  0xa1   :  { %v180_v50 = vmul.f32 0.1, %v123_v49  ;;  %v203_v51 = vsel %vm171_vm6, %v144_v46, %v187_v48  ;;  %vm164_vm7 = vcmp.gt.f32.partialorder %v123_v49, 0.0 }
  0xa2   :  { %219 = vst.msk [vmem:[#allocation2 + $0x50] sm:$0xff] %vm47_vm0, %v203_v51  ;;  %605 = vmatmul.msk.f32.gmra.mxu3 %vm47_vm0, %v203_v51 }
  0xa3   :  { %v196_v52 = vsel %vm164_vm7, %v123_v49, %v180_v50 }
  0xa4   :  { %v146_v53 = vpop.f32.mrf.mxu2  ;;  %212 = vst.msk [vmem:[#allocation2 + $0x18] sm:$0xff] %vm47_vm0, %v196_v52  ;;  %598 = vmatmul.msk.f32.gmra.mxu1 %vm47_vm0, %v196_v52 }
  0xa5   :  { %v147_v54 = vadd.f32 %v881_v24, %v146_v53 }
  0xa6   :  { %v125_v55 = vpop.f32.mrf.mxu0 }
  0xa7   :  { %v188_v56 = vmul.f32 0.1, %v147_v54  ;;  %v126_v57 = vadd.f32 %v881_v24, %v125_v55  ;;  %vm172_vm8 = vcmp.gt.f32.partialorder %v147_v54, 0.0 }
  0xa9   :  { %v181_v58 = vmul.f32 0.1, %v126_v57  ;;  %v204_v59 = vsel %vm172_vm8, %v147_v54, %v188_v56  ;;  %vm165_vm9 = vcmp.gt.f32.partialorder %v126_v57, 0.0 }
  0xaa   :  { %220 = vst.msk [vmem:[#allocation2 + $0x58] sm:$0xff] %vm47_vm0, %v204_v59  ;;  %606 = vmatmul.msk.f32.gmra.mxu3 %vm47_vm0, %v204_v59 }
  0xab   :  { %v197_v60 = vsel %vm165_vm9, %v126_v57, %v181_v58 }
  0xac   :  { %v149_v61 = vpop.f32.mrf.mxu2  ;;  %213 = vst.msk [vmem:[#allocation2 + $0x20] sm:$0xff] %vm47_vm0, %v197_v60  ;;  %599 = vmatmul.msk.f32.gmra.mxu1 %vm47_vm0, %v197_v60 }
  0xad   :  { %v150_v62 = vadd.f32 %v881_v24, %v149_v61 }
  0xae   :  { %v128_v63 = vpop.f32.mrf.mxu0 }
  0xaf   :  { %v189_v0 = vmul.f32 0.1, %v150_v62  ;;  %v129_v1 = vadd.f32 %v881_v24, %v128_v63  ;;  %vm173_vm10 = vcmp.gt.f32.partialorder %v150_v62, 0.0 }
  0xb1   :  { %v182_v2 = vmul.f32 0.1, %v129_v1  ;;  %v205_v3 = vsel %vm173_vm10, %v150_v62, %v189_v0  ;;  %vm166_vm11 = vcmp.gt.f32.partialorder %v129_v1, 0.0 }
  0xb2   :  { %221 = vst.msk [vmem:[#allocation2 + $0x60] sm:$0xff] %vm47_vm0, %v205_v3  ;;  %607 = vmatmul.msk.f32.gmra.mxu3 %vm47_vm0, %v205_v3 }
  0xb3   :  { %v198_v4 = vsel %vm166_vm11, %v129_v1, %v182_v2 }
  0xb4   :  { %v152_v5 = vpop.f32.mrf.mxu2  ;;  %214 = vst.msk [vmem:[#allocation2 + $0x28] sm:$0xff] %vm47_vm0, %v198_v4  ;;  %600 = vmatmul.msk.f32.gmra.mxu1 %vm47_vm0, %v198_v4 }
  0xb5   :  { %v153_v6 = vadd.f32 %v881_v24, %v152_v5 }
  0xb6   :  { %v131_v7 = vpop.f32.mrf.mxu0 }
  0xb7   :  { %v190_v8 = vmul.f32 0.1, %v153_v6  ;;  %v132_v9 = vadd.f32 %v881_v24, %v131_v7  ;;  %vm174_vm12 = vcmp.gt.f32.partialorder %v153_v6, 0.0 }
  0xb9   :  { %v183_v10 = vmul.f32 0.1, %v132_v9  ;;  %v206_v11 = vsel %vm174_vm12, %v153_v6, %v190_v8  ;;  %vm167_vm13 = vcmp.gt.f32.partialorder %v132_v9, 0.0 }
  0xba   :  { %222 = vst.msk [vmem:[#allocation2 + $0x68] sm:$0xff] %vm47_vm0, %v206_v11  ;;  %608 = vmatmul.msk.f32.gmra.mxu3 %vm47_vm0, %v206_v11 }
  0xbb   :  { %v199_v12 = vsel %vm167_vm13, %v132_v9, %v183_v10 }
  0xbc   :  { %v155_v13 = vpop.f32.mrf.mxu2  ;;  %215 = vst.msk [vmem:[#allocation2 + $0x30] sm:$0xff] %vm47_vm0, %v199_v12  ;;  %601 = vmatmul.msk.f32.gmra.mxu1 %vm47_vm0, %v199_v12 }
  0xbd   :  { %v156_v14 = vadd.f32 %v881_v24, %v155_v13 }
  0xbe   :  { %v134_v15 = vpop.f32.mrf.mxu0 }
  0xbf   :  { %v191_v16 = vmul.f32 0.1, %v156_v14  ;;  %v135_v17 = vadd.f32 %v881_v24, %v134_v15  ;;  %vm175_vm14 = vcmp.gt.f32.partialorder %v156_v14, 0.0 }
  0xc1   :  { %v184_v18 = vmul.f32 0.1, %v135_v17  ;;  %v207_v19 = vsel %vm175_vm14, %v156_v14, %v191_v16  ;;  %vm168_vm15 = vcmp.gt.f32.partialorder %v135_v17, 0.0 }
  0xc2   :  { %223 = vst.msk [vmem:[#allocation2 + $0x70] sm:$0xff] %vm47_vm0, %v207_v19  ;;  %609 = vmatmul.msk.f32.gmra.mxu3 %vm47_vm0, %v207_v19 }
  0xc3   :  { %v200_v20 = vsel %vm168_vm15, %v135_v17, %v184_v18 }
  0xc4   :  { %v158_v21 = vpop.f32.mrf.mxu2  ;;  %216 = vst.msk [vmem:[#allocation2 + $0x38] sm:$0xff] %vm47_vm0, %v200_v20  ;;  %602 = vmatmul.msk.f32.gmra.mxu1 %vm47_vm0, %v200_v20 }
  0xc5   :  { %v159_v22 = vadd.f32 %v881_v24, %v158_v21 }
  0xc7   :  { %v192_v23 = vmul.f32 0.1, %v159_v22  ;;  %vm176_vm1 = vcmp.gt.f32.partialorder %v159_v22, 0.0 }
  0xc9   :  { %v208_v25 = vsel %vm176_vm1, %v159_v22, %v192_v23 }
  0xca   :  { %224 = vst.msk [vmem:[#allocation2 + $0x78] sm:$0xff] %vm47_vm0, %v208_v25  ;;  %610 = vmatmul.msk.f32.gmra.mxu3 %vm47_vm0, %v208_v25 }
  0xcb   :  { %569 = dma.vmem_to_hbm [thread:$0]  %s562_s25, 2048, %s564_s28, [#allocation3], %s753_s7, %s753_s7, %s754_s8  }
 0x109   :  { %v298_v27 = vpop.f32.mrf.mxu1 }
 0x10a   :  { %v299_v28 = vadd.f32 %v934_v26, %v298_v27 }
 0x10c   :  { %vm346_vm3 = vcmp.gt.f32.partialorder %v299_v28, 0.0 }
 0x10d   :  { %v611_v24 = vsel %vm346_vm3, 1.0, %v749_v29 }
 0x10e   :  { %395 = vst.msk [vmem:[%s1185_s6] sm:$0xff] %vm394_vm2, %v611_v24 }
 0x111   :  { %v301_v30 = vpop.f32.mrf.mxu1 }
 0x112   :  { %v302_v31 = vadd.f32 %v934_v26, %v301_v30 }
 0x114   :  { %vm347_vm0 = vcmp.gt.f32.partialorder %v302_v31, 0.0 }
 0x115   :  { %v612_v32 = vsel %vm347_vm0, 1.0, %v749_v29  ;;  %v322_v33 = vpop.f32.mrf.mxu3  ;;  %vm475_vm0 = vcmask 15368  }
 0x116   :  { %396 = vst.msk [vmem:[%s1185_s6 + $0x8] sm:$0xff] %vm394_vm2, %v612_v32  ;;  %v323_v34 = vadd.f32 %v934_v26, %v322_v33  ;;  %v646_v35 = vpack.i.bf16 %v612_v32, %v611_v24 }
 0x118   :  { %vm354_vm4 = vcmp.gt.f32.partialorder %v323_v34, 0.0  ;;  %647 = vrot.lane.b32.xlu2 %v646_v35, %s750_s23  ;;  %642 = vrot.lane.b32.xlu0 %v646_v35, %s751_s24 }
 0x119   :  { %v619_v36 = vsel %vm354_vm4, 1.0, %v749_v29  ;;  %v304_v37 = vpop.f32.mrf.mxu1 }
 0x11a   :  { %403 = vst.msk [vmem:[%s1185_s6 + $0x40] sm:$0xff] %vm394_vm2, %v619_v36  ;;  %v305_v38 = vadd.f32 %v934_v26, %v304_v37 }
 0x11c   :  { %vm348_vm5 = vcmp.gt.f32.partialorder %v305_v38, 0.0 }
 0x11d   :  { %v613_v39 = vsel %vm348_vm5, 1.0, %v749_v29  ;;  %v325_v40 = vpop.f32.mrf.mxu3 }
 0x11e   :  { %397 = vst.msk [vmem:[%s1185_s6 + $0x10] sm:$0xff] %vm394_vm2, %v613_v39  ;;  %v326_v41 = vadd.f32 %v934_v26, %v325_v40 }
 0x120   :  { %vm355_vm6 = vcmp.gt.f32.partialorder %v326_v41, 0.0 }
 0x121   :  { %v620_v42 = vsel %vm355_vm6, 1.0, %v749_v29  ;;  %v307_v43 = vpop.f32.mrf.mxu1 }
 0x122   :  { %404 = vst.msk [vmem:[%s1185_s6 + $0x48] sm:$0xff] %vm394_vm2, %v620_v42  ;;  %v308_v44 = vadd.f32 %v934_v26, %v307_v43  ;;  %v651_v45 = vpack.i.bf16 %v620_v42, %v619_v36 }
 0x124   :  { %vm349_vm7 = vcmp.gt.f32.partialorder %v308_v44, 0.0  ;;  %652 = vrot.lane.b32.xlu2 %v651_v45, %s751_s24  ;;  %657 = vrot.lane.b32.xlu0 %v651_v45, %s750_s23 }
 0x125   :  { %v614_v46 = vsel %vm349_vm7, 1.0, %v749_v29  ;;  %v328_v47 = vpop.f32.mrf.mxu3 }
 0x126   :  { %398 = vst.msk [vmem:[%s1185_s6 + $0x18] sm:$0xff] %vm394_vm2, %v614_v46  ;;  %v329_v48 = vadd.f32 %v934_v26, %v328_v47  ;;  %v661_v52 = vpack.i.bf16 %v614_v46, %v613_v39 }
 0x128   :  { %vm356_vm8 = vcmp.gt.f32.partialorder %v329_v48, 0.0 }
 0x129   :  { %v621_v49 = vsel %vm356_vm8, 1.0, %v749_v29  ;;  %v310_v50 = vpop.f32.mrf.mxu1 }
 0x12a   :  { %405 = vst.msk [vmem:[%s1185_s6 + $0x50] sm:$0xff] %vm394_vm2, %v621_v49  ;;  %v311_v51 = vadd.f32 %v934_v26, %v310_v50 }
 0x12c   :  { %vm350_vm9 = vcmp.gt.f32.partialorder %v311_v51, 0.0  ;;  %662 = vrot.lane.b32.xlu0 %v661_v52, %s751_s24 }
 0x12d   :  { %v615_v53 = vsel %vm350_vm9, 1.0, %v749_v29  ;;  %v331_v54 = vpop.f32.mrf.mxu3 }
 0x12e   :  { %399 = vst.msk [vmem:[%s1185_s6 + $0x20] sm:$0xff] %vm394_vm2, %v615_v53  ;;  %v332_v55 = vadd.f32 %v934_v26, %v331_v54 }
 0x130   :  { %vm357_vm10 = vcmp.gt.f32.partialorder %v332_v55, 0.0 }
 0x131   :  { %v622_v56 = vsel %vm357_vm10, 1.0, %v749_v29  ;;  %v313_v57 = vpop.f32.mrf.mxu1 }
 0x132   :  { %406 = vst.msk [vmem:[%s1185_s6 + $0x58] sm:$0xff] %vm394_vm2, %v622_v56  ;;  %v314_v58 = vadd.f32 %v934_v26, %v313_v57  ;;  %v671_v59 = vpack.i.bf16 %v622_v56, %v621_v49 }
 0x134   :  { %vm351_vm11 = vcmp.gt.f32.partialorder %v314_v58, 0.0  ;;  %672 = vrot.lane.b32.xlu2 %v671_v59, %s751_s24  ;;  %667 = vrot.lane.b32.xlu0 %v661_v52, %s750_s23 }
 0x135   :  { %v616_v60 = vsel %vm351_vm11, 1.0, %v749_v29  ;;  %v334_v61 = vpop.f32.mrf.mxu3 }
 0x136   :  { %400 = vst.msk [vmem:[%s1185_s6 + $0x28] sm:$0xff] %vm394_vm2, %v616_v60  ;;  %v335_v62 = vadd.f32 %v934_v26, %v334_v61  ;;  %v676_v63 = vpack.i.bf16 %v616_v60, %v615_v53 }
 0x138   :  { %vm358_vm12 = vcmp.gt.f32.partialorder %v335_v62, 0.0  ;;  %677 = vrot.lane.b32.xlu1 %v676_v63, %s751_s24 }
 0x139   :  { %v623_v0 = vsel %vm358_vm12, 1.0, %v749_v29  ;;  %v316_v1 = vpop.f32.mrf.mxu1 }
 0x13a   :  { %407 = vst.msk [vmem:[%s1185_s6 + $0x60] sm:$0xff] %vm394_vm2, %v623_v0  ;;  %v317_v2 = vadd.f32 %v934_v26, %v316_v1 }
 0x13c   :  { %vm352_vm13 = vcmp.gt.f32.partialorder %v317_v2, 0.0 }
 0x13d   :  { %v617_v3 = vsel %vm352_vm13, 1.0, %v749_v29  ;;  %v337_v4 = vpop.f32.mrf.mxu3 }
 0x13e   :  { %401 = vst.msk [vmem:[%s1185_s6 + $0x30] sm:$0xff] %vm394_vm2, %v617_v3  ;;  %v338_v5 = vadd.f32 %v934_v26, %v337_v4 }
 0x140   :  { %vm359_vm14 = vcmp.gt.f32.partialorder %v338_v5, 0.0  ;;  %682 = vrot.lane.b32.xlu1 %v676_v63, %s750_s23 }
 0x141   :  { %v624_v6 = vsel %vm359_vm14, 1.0, %v749_v29  ;;  %v319_v7 = vpop.f32.mrf.mxu1 }
 0x142   :  { %408 = vst.msk [vmem:[%s1185_s6 + $0x68] sm:$0xff] %vm394_vm2, %v624_v6  ;;  %v320_v8 = vadd.f32 %v934_v26, %v319_v7  ;;  %v686_v9 = vpack.i.bf16 %v624_v6, %v623_v0 }
 0x144   :  { %vm353_vm15 = vcmp.gt.f32.partialorder %v320_v8, 0.0  ;;  %687 = vrot.lane.b32.xlu0 %v686_v9, %s751_s24 }
 0x145   :  { %v618_v10 = vsel %vm353_vm15, 1.0, %v749_v29  ;;  %v340_v11 = vpop.f32.mrf.mxu3 }
 0x146   :  { %402 = vst.msk [vmem:[%s1185_s6 + $0x38] sm:$0xff] %vm394_vm2, %v618_v10  ;;  %v341_v12 = vadd.f32 %v934_v26, %v340_v11  ;;  %v691_v13 = vpack.i.bf16 %v618_v10, %v617_v3 }
 0x148   :  { %vm360_vm1 = vcmp.gt.f32.partialorder %v341_v12, 0.0  ;;  %692 = vrot.lane.b32.xlu1 %v691_v13, %s751_s24  ;;  %697 = vrot.lane.b32.xlu2 %v691_v13, %s750_s23 }
 0x149   :  { %v625_v14 = vsel %vm360_vm1, 1.0, %v749_v29 }
 0x14a   :  { %409 = vst.msk [vmem:[%s1185_s6 + $0x70] sm:$0xff] %vm394_vm2, %v625_v14 }
 0x14d   :  { %v343_v15 = vpop.f32.mrf.mxu3 }
 0x14e   :  { %v344_v16 = vadd.f32 %v934_v26, %v343_v15 }
 0x150   :  { %vm361_vm3 = vcmp.gt.f32.partialorder %v344_v16, 0.0  ;;  %712 = vrot.lane.b32.xlu2 %v686_v9, %s750_s23 }
 0x151   :  { %v626_v17 = vsel %vm361_vm3, 1.0, %v749_v29 }
 0x152   :  { %410 = vst.msk [vmem:[%s1185_s6 + $0x78] sm:$0xff] %vm394_vm2, %v626_v17  ;;  %v701_v18 = vpack.i.bf16 %v626_v17, %v625_v14  ;;  %vm540_vm2 = vcmask 23568  }
 0x154   :  { %702 = vrot.lane.b32.xlu1 %v701_v18, %s751_s24  ;;  %717 = vrot.lane.b32.xlu0 %v701_v18, %s750_s23 }
 0x15c   :  { %707 = vrot.lane.b32.xlu1 %v671_v59, %s750_s23 }
 0x172   :  { %v648_v19 = vpop.permute.xlu2 %647 }
 0x173   :  { %v650_v27 = vunpack.i.h.bf16 %v648_v19  ;;  %v649_v28 = vunpack.i.l.bf16 %v648_v19 }
 0x17e   :  { %v653_v20 = vpop.permute.xlu2 %652 }
 0x17f   :  { %v655_v21 = vunpack.i.h.bf16 %v653_v20  ;;  %v654_v22 = vunpack.i.l.bf16 %v653_v20 }
 0x181   :  { %485 = vst.msk [vmem:[%s1185_s6 + $0x48] sm:$0xff] %vm475_vm0, %v655_v21 }
 0x182   :  { %484 = vst.msk [vmem:[%s1185_s6 + $0x40] sm:$0xff] %vm475_vm0, %v654_v22 }
 0x18a   :  { %v643_v23 = vpop.permute.xlu0 %642 }
 0x18b   :  { %v645_v25 = vunpack.i.h.bf16 %v643_v23  ;;  %v644_v26 = vunpack.i.l.bf16 %v643_v23 }
 0x18d   :  { %477 = vst.msk [vmem:[%s1185_s6 + $0x8] sm:$0xff] %vm475_vm0, %v645_v25 }
 0x18e   :  { %542 = vst.msk [vmem:[%s1185_s6 + $0x8] sm:$0xff] %vm540_vm2, %v650_v27  ;;  %v673_v29 = vpop.permute.xlu2 %672 }
 0x18f   :  { %476 = vst.msk [vmem:[%s1185_s6] sm:$0xff] %vm475_vm0, %v644_v26  ;;  %v675_v24 = vunpack.i.h.bf16 %v673_v29  ;;  %v674_v30 = vunpack.i.l.bf16 %v673_v29 }
 0x190   :  { %541 = vst.msk [vmem:[%s1185_s6] sm:$0xff] %vm540_vm2, %v649_v28 }
 0x191   :  { %487 = vst.msk [vmem:[%s1185_s6 + $0x58] sm:$0xff] %vm475_vm0, %v675_v24 }
 0x192   :  { %486 = vst.msk [vmem:[%s1185_s6 + $0x50] sm:$0xff] %vm475_vm0, %v674_v30 }
 0x196   :  { %v658_v31 = vpop.permute.xlu0 %657 }
 0x197   :  { %v660_v32 = vunpack.i.h.bf16 %v658_v31  ;;  %v659_v33 = vunpack.i.l.bf16 %v658_v31 }
 0x199   :  { %550 = vst.msk [vmem:[%s1185_s6 + $0x48] sm:$0xff] %vm540_vm2, %v660_v32 }
 0x19a   :  { %549 = vst.msk [vmem:[%s1185_s6 + $0x40] sm:$0xff] %vm540_vm2, %v659_v33 }
 0x19e   :  { %v663_v34 = vpop.permute.xlu0 %662 }
 0x19f   :  { %v665_v35 = vunpack.i.h.bf16 %v663_v34  ;;  %v664_v36 = vunpack.i.l.bf16 %v663_v34 }
 0x1a1   :  { %479 = vst.msk [vmem:[%s1185_s6 + $0x18] sm:$0xff] %vm475_vm0, %v665_v35 }
 0x1a2   :  { %478 = vst.msk [vmem:[%s1185_s6 + $0x10] sm:$0xff] %vm475_vm0, %v664_v36  ;;  %v698_v41 = vpop.permute.xlu2 %697 }
 0x1a3   :  { %v699_v56 = vunpack.i.l.bf16 %v698_v41  ;;  %v700_v57 = vunpack.i.h.bf16 %v698_v41 }
 0x1a6   :  { %v668_v37 = vpop.permute.xlu0 %667 }
 0x1a7   :  { %v670_v38 = vunpack.i.h.bf16 %v668_v37  ;;  %v669_v39 = vunpack.i.l.bf16 %v668_v37 }
 0x1a9   :  { %543 = vst.msk [vmem:[%s1185_s6 + $0x10] sm:$0xff] %vm540_vm2, %v669_v39 }
 0x1aa   :  { %544 = vst.msk [vmem:[%s1185_s6 + $0x18] sm:$0xff] %vm540_vm2, %v670_v38  ;;  %v678_v40 = vpop.permute.xlu1 %677  ;;  %v713_v47 = vpop.permute.xlu2 %712 }
 0x1ab   :  { %v680_v42 = vunpack.i.h.bf16 %v678_v40  ;;  %v679_v43 = vunpack.i.l.bf16 %v678_v40  ;;  %v715_v51 = vunpack.i.h.bf16 %v713_v47  ;;  %v714_v52 = vunpack.i.l.bf16 %v713_v47 }
 0x1ad   :  { %481 = vst.msk [vmem:[%s1185_s6 + $0x28] sm:$0xff] %vm475_vm0, %v680_v42 }
 0x1ae   :  { %480 = vst.msk [vmem:[%s1185_s6 + $0x20] sm:$0xff] %vm475_vm0, %v679_v43 }
 0x1b2   :  { %v683_v44 = vpop.permute.xlu1 %682 }
 0x1b3   :  { %v685_v45 = vunpack.i.h.bf16 %v683_v44  ;;  %v684_v46 = vunpack.i.l.bf16 %v683_v44 }
 0x1b5   :  { %545 = vst.msk [vmem:[%s1185_s6 + $0x20] sm:$0xff] %vm540_vm2, %v684_v46 }
 0x1b6   :  { %546 = vst.msk [vmem:[%s1185_s6 + $0x28] sm:$0xff] %vm540_vm2, %v685_v45  ;;  %v688_v48 = vpop.permute.xlu0 %687 }
 0x1b7   :  { %v690_v49 = vunpack.i.h.bf16 %v688_v48  ;;  %v689_v50 = vunpack.i.l.bf16 %v688_v48 }
 0x1b9   :  { %489 = vst.msk [vmem:[%s1185_s6 + $0x68] sm:$0xff] %vm475_vm0, %v690_v49 }
 0x1ba   :  { %554 = vst.msk [vmem:[%s1185_s6 + $0x68] sm:$0xff] %vm540_vm2, %v715_v51  ;;  %v693_v53 = vpop.permute.xlu1 %692 }
 0x1bb   :  { %488 = vst.msk [vmem:[%s1185_s6 + $0x60] sm:$0xff] %vm475_vm0, %v689_v50  ;;  %v695_v54 = vunpack.i.h.bf16 %v693_v53  ;;  %v694_v55 = vunpack.i.l.bf16 %v693_v53 }
 0x1bc   :  { %553 = vst.msk [vmem:[%s1185_s6 + $0x60] sm:$0xff] %vm540_vm2, %v714_v52 }
 0x1bd   :  { %483 = vst.msk [vmem:[%s1185_s6 + $0x38] sm:$0xff] %vm475_vm0, %v695_v54 }
 0x1be   :  { %482 = vst.msk [vmem:[%s1185_s6 + $0x30] sm:$0xff] %vm475_vm0, %v694_v55 }
 0x1bf   :  { %547 = vst.msk [vmem:[%s1185_s6 + $0x30] sm:$0xff] %vm540_vm2, %v699_v56 }
 0x1c0   :  { %548 = vst.msk [vmem:[%s1185_s6 + $0x38] sm:$0xff] %vm540_vm2, %v700_v57 }
 0x1c6   :  { %v703_v58 = vpop.permute.xlu1 %702  ;;  %v718_v59 = vpop.permute.xlu0 %717 }
 0x1c7   :  { %v705_v60 = vunpack.i.h.bf16 %v703_v58  ;;  %v704_v61 = vunpack.i.l.bf16 %v703_v58  ;;  %v720_v62 = vunpack.i.h.bf16 %v718_v59  ;;  %v719_v63 = vunpack.i.l.bf16 %v718_v59 }
 0x1c9   :  { %491 = vst.msk [vmem:[%s1185_s6 + $0x78] sm:$0xff] %vm475_vm0, %v705_v60 }
 0x1ca   :  { %490 = vst.msk [vmem:[%s1185_s6 + $0x70] sm:$0xff] %vm475_vm0, %v704_v61 }
 0x1cb   :  { %556 = vst.msk [vmem:[%s1185_s6 + $0x78] sm:$0xff] %vm540_vm2, %v720_v62 }
 0x1cc   :  { %555 = vst.msk [vmem:[%s1185_s6 + $0x70] sm:$0xff] %vm540_vm2, %v719_v63 }
 0x1ce   :  { %v708_v0 = vpop.permute.xlu1 %707 }
 0x1cf   :  { %v710_v1 = vunpack.i.h.bf16 %v708_v0  ;;  %v709_v2 = vunpack.i.l.bf16 %v708_v0 }
 0x1d1   :  { %551 = vst.msk [vmem:[%s1185_s6 + $0x50] sm:$0xff] %vm540_vm2, %v709_v2 }
 0x1d2   :  { %552 = vst.msk [vmem:[%s1185_s6 + $0x58] sm:$0xff] %vm540_vm2, %v710_v1 }
 0x1d3   :  { %747 = dma.done.wait [#allocation3], 2048  }
 0x1d4   :  { %748 = vsyncadd [#allocation3], 4294965248 }
 0x1d5   :  { %578 = vsyncpa [#allocation3], 1 }

</bundles_post_ra>
